<compile_context>
chip_gen: v7x
topology: tpu7x:2x2x1
jax: 0.10.0
libtpu: 0.0.40
codegen_flags: <defaults>
</compile_context>

<pallas_src>
import functools
import math

import jax
import jax.numpy as jnp
from jax.experimental import pallas as pl
from jax.experimental.pallas import tpu as pltpu


# ---------------------------------------------------------------------------
# helpers
# ---------------------------------------------------------------------------

def _bf16(x):
    return x.astype(jnp.bfloat16)


def _ln_math(x, g, b, eps):
    """PyTorch-style LayerNorm over the last axis (biased variance), f32 math."""
    mean = jnp.mean(x, axis=-1, keepdims=True)
    xc = x - mean
    var = jnp.mean(xc * xc, axis=-1, keepdims=True)
    return xc * jax.lax.rsqrt(var + eps) * g + b


def _pick_tile(dim, candidates):
    for c in candidates:
        if c <= dim and dim % c == 0:
            return c
    return dim


def _batch_block(batch, seq, max_rows=1024):
    """Largest bb dividing `batch` with bb*seq <= max_rows rows per grid step.

    >= 128/256 rows fills the MXU; the cap bounds per-step VMEM (v7x has only
    64 MiB physical).  Blocked (non-full) dims are kept 8-aligned.
    """
    for bb in range(batch, 0, -1):
        if batch % bb:
            continue
        if bb * seq > max_rows:
            continue
        if bb == batch or bb % 8 == 0:
            return bb
    return batch


def _compiler_params(semantics, vmem_estimate):
    """Raise the scoped-VMEM limit only when needed; cap under v7x physical."""
    kwargs = {}
    if vmem_estimate > 12 * 1024 * 1024:
        kwargs["vmem_limit_bytes"] = int(min(vmem_estimate, 60 * 1024 * 1024))
    return pltpu.CompilerParams(dimension_semantics=semantics, **kwargs)


# ---------------------------------------------------------------------------
# Pallas kernels
# ---------------------------------------------------------------------------

def _linear_kernel(x_ref, w_ref, b_ref, o_ref):
    y = jnp.dot(_bf16(x_ref[...]), _bf16(w_ref[...]),
                preferred_element_type=jnp.float32)
    o_ref[...] = (y + b_ref[...].astype(jnp.float32)).astype(o_ref.dtype)


def _decoder_layer_kernel(
        x_ref, proj_ref,
        in_g_ref, in_b_ref,
        wqkv_ref, bqkv_ref, wao_ref, bao_ref, g1_ref, bt1_ref,
        wv_ref, bv_ref, wco_ref, bco_ref, g2_ref, bt2_ref,
        wff1_ref, bff1_ref, wff2_ref, bff2_ref, g3_ref, bt3_ref,
        o_ref,
        *, nhead, bb, eps, apply_input_ln):
    """One full post-norm TransformerDecoderLayer on a (bb*T, E) row block."""
    rows, E = x_ref.shape
    T = rows // bb
    hd = E // nhead
    scale = 1.0 / math.sqrt(hd)
    f32 = jnp.float32

    x = x_ref[...].astype(f32)
    if apply_input_ln:                      # fused embedding LayerNorm (layer 0)
        x = _ln_math(x, in_g_ref[...].astype(f32), in_b_ref[...].astype(f32), eps)

    # ---- self-attention: one (rows, E) @ (E, 3E) packed QKV matmul ----------
    qkv = jnp.dot(_bf16(x), wqkv_ref[...], preferred_element_type=f32)
    qkv = qkv + bqkv_ref[...].astype(f32)
    qkv3 = qkv.reshape(bb, T, 3 * E)

    heads = []                              # register concat, no VMEM scratch
    for h in range(nhead):
        qh = _bf16(qkv3[:, :, h * hd:(h + 1) * hd])
        kh = _bf16(qkv3[:, :, E + h * hd:E + (h + 1) * hd])
        vh = _bf16(qkv3[:, :, 2 * E + h * hd:2 * E + (h + 1) * hd])
        s = jnp.einsum("bqd,bkd->bqk", qh, kh,
                       preferred_element_type=f32) * scale        # (bb,T,T)
        s = s - jnp.max(s, axis=-1, keepdims=True)
        e = jnp.exp(s)
        p = e / jnp.sum(e, axis=-1, keepdims=True)
        heads.append(jnp.einsum("bqk,bkd->bqd", _bf16(p), vh,
                                preferred_element_type=f32))       # (bb,T,hd)
    attn = jnp.concatenate(heads, axis=-1).reshape(rows, E)
    sa = jnp.dot(_bf16(attn), wao_ref[...], preferred_element_type=f32)
    sa = sa + bao_ref[...].astype(f32)
    y = _ln_math(x + sa, g1_ref[...].astype(f32), bt1_ref[...].astype(f32), eps)

    # ---- cross-attention: memory keys are one row repeated over T -> softmax
    # is uniform over identical values -> output = Wo@(Wv@mem+bv)+bo exactly,
    # independent of the query (Wq/Wk provably drop out). -----------------------
    mem = proj_ref[...].astype(f32)                                 # (bb, E)
    cv = jnp.dot(_bf16(mem), wv_ref[...], preferred_element_type=f32)
    cv = cv + bv_ref[...].astype(f32)
    ca = jnp.dot(_bf16(cv), wco_ref[...], preferred_element_type=f32)
    ca = ca + bco_ref[...].astype(f32)                              # (bb, E)
    y = (y.reshape(bb, T, E) + ca[:, None, :]).reshape(rows, E)
    y = _ln_math(y, g2_ref[...].astype(f32), bt2_ref[...].astype(f32), eps)

    # ---- FFN: relu(y@w1+b1)@w2+b2, weights VMEM-resident --------------------
    h1 = jnp.dot(_bf16(y), wff1_ref[...], preferred_element_type=f32)
    h1 = jnp.maximum(h1 + bff1_ref[...].astype(f32), 0.0)
    ff = jnp.dot(_bf16(h1), wff2_ref[...], preferred_element_type=f32)
    ff = ff + bff2_ref[...].astype(f32)
    out = _ln_math(y + ff, g3_ref[...].astype(f32), bt3_ref[...].astype(f32), eps)
    o_ref[...] = out.astype(o_ref.dtype)


# ---------------------------------------------------------------------------
# pallas_call wrappers
# ---------------------------------------------------------------------------

def linear(x, w, b, *, out_dtype=jnp.float32):
    """y = x @ w + b, tiled over rows and output columns (both parallel)."""
    M, K = x.shape
    N = w.shape[1]
    npad = (-N) % 128
    if npad:                                 # keep the lane dim 128-aligned
        w = jnp.pad(w, ((0, 0), (0, npad)))
        b = jnp.pad(b, (0, npad))
    Np = N + npad
    tn = Np if Np <= 2048 else _pick_tile(Np, (2048, 1024, 512, 256, 128))
    tm = M if M <= 512 else _pick_tile(M, (512, 256, 128))
    est = 2 * (tm * K * 4 + K * tn * 2 + tm * tn * 4)
    out = pl.pallas_call(
        _linear_kernel,
        out_shape=jax.ShapeDtypeStruct((M, Np), out_dtype),
        grid_spec=pltpu.PrefetchScalarGridSpec(
            num_scalar_prefetch=0,
            grid=(M // tm, Np // tn),
            in_specs=[
                pl.BlockSpec((tm, K), lambda i, j: (i, 0)),
                pl.BlockSpec((K, tn), lambda i, j: (0, j)),
                pl.BlockSpec((1, tn), lambda i, j: (0, j)),
            ],
            out_specs=pl.BlockSpec((tm, tn), lambda i, j: (i, j)),
        ),
        compiler_params=_compiler_params(("parallel", "parallel"), est),
    )(x, w, b.reshape(1, Np))
    return out[:, :N] if npad else out


def decoder_layer(x, proj, lp, ln_in, *, nhead, batch, seq,
                  apply_input_ln, eps=1e-5):
    """One fused TransformerDecoderLayer over the (B*T, E) activation slab."""
    rows, E = x.shape
    F = lp["w1"].shape[1]
    bb = _batch_block(batch, seq)
    br = bb * seq
    sa, cx = lp["self_attn"], lp["cross_attn"]

    # bf16 weights (double-buffered) + rough f32 intermediates per grid step
    w_bytes = 2 * 2 * (E * 3 * E + 3 * E * E + E * F + F * E)
    a_bytes = 4 * br * (3 * E + 4 * E + F) + 8 * br * E
    est = w_bytes + a_bytes

    def _c(shape):                           # constant-index (VMEM-resident)
        return pl.BlockSpec(shape, lambda b: (0, 0))

    kernel = functools.partial(_decoder_layer_kernel, nhead=nhead, bb=bb,
                               eps=eps, apply_input_ln=apply_input_ln)
    return pl.pallas_call(
        kernel,
        out_shape=jax.ShapeDtypeStruct((rows, E), jnp.bfloat16),
        grid_spec=pltpu.PrefetchScalarGridSpec(
            num_scalar_prefetch=0,
            grid=(batch // bb,),
            in_specs=[
                pl.BlockSpec((br, E), lambda b: (b, 0)),    # activations
                pl.BlockSpec((bb, E), lambda b: (b, 0)),    # projected image rows
                _c((1, E)), _c((1, E)),                     # optional input LN
                _c((E, 3 * E)), _c((1, 3 * E)),             # packed QKV
                _c((E, E)), _c((1, E)),                     # self-attn out proj
                _c((1, E)), _c((1, E)),                     # LN1
                _c((E, E)), _c((1, E)),                     # cross Wv
                _c((E, E)), _c((1, E)),                     # cross Wo
                _c((1, E)), _c((1, E)),                     # LN2
                _c((E, F)), _c((1, F)),                     # FFN W1
                _c((F, E)), _c((1, E)),                     # FFN W2
                _c((1, E)), _c((1, E)),                     # LN3
            ],
            out_specs=pl.BlockSpec((br, E), lambda b: (b, 0)),
        ),
        compiler_params=_compiler_params(("parallel",), est),
    )(x, proj,
      ln_in[0].reshape(1, E), ln_in[1].reshape(1, E),
      sa["wqkv"], sa["bqkv"].reshape(1, 3 * E),
      sa["wo"], sa["bo"].reshape(1, E),
      lp["ln1_g"].reshape(1, E), lp["ln1_b"].reshape(1, E),
      cx["wv"], cx["bv"].reshape(1, E),
      cx["wo"], cx["bo"].reshape(1, E),
      lp["ln2_g"].reshape(1, E), lp["ln2_b"].reshape(1, E),
      lp["w1"], lp["b1"].reshape(1, F),
      lp["w2"], lp["b2"].reshape(1, E),
      lp["ln3_g"].reshape(1, E), lp["ln3_b"].reshape(1, E))


# ---------------------------------------------------------------------------
# Forward pass (activations stay as one (B*T, E) slab, batch-major rows)
# ---------------------------------------------------------------------------

def decoder_forward(params, images, captions, *, nhead):
    # images: (1, B, 768) f32,  captions: (B, T) int32
    _, B, IMG = images.shape
    T = captions.shape[1]
    E = params["emb_ln_g"].shape[0]

    # attended_features_projection(images).squeeze(0) -> (B, E); the T-fold
    # repeat that builds the decoder memory is handled algebraically inside
    # the fused layer kernel (all key rows of the memory are identical).
    proj = linear(images.reshape(B, IMG), params["proj_w"], params["proj_b"])

    # embedding gather; its LayerNorm is fused into the first layer kernel,
    # dropout is identity at eval.
    # TODO(synk): embedding gather kept as plain-JAX jnp.take (index glue).
    x = jnp.take(params["embedding"], captions, axis=0).reshape(B * T, E)

    layers = params["layers"]
    assert layers, "decoder needs >= 1 layer (embedding LN is fused into it)"
    ln_in = (params["emb_ln_g"], params["emb_ln_b"])
    for i, lp in enumerate(layers):
        x = decoder_layer(x, proj, lp, ln_in, nhead=nhead, batch=B, seq=T,
                          apply_input_ln=(i == 0))

    logits = linear(x, params["fc_w"], params["fc_b"])       # bf16 in, f32 out
    return logits.reshape(B, T, -1)


# ---------------------------------------------------------------------------
# Deterministic parameter init (shapes match the PyTorch module __init__).
# Matmul weights stored in bfloat16 (MXU-native, half the HBM traffic);
# biases / LayerNorm params / embedding stay float32.
# ---------------------------------------------------------------------------

def init_params(key, vocab_size, d_model, nhead, num_layers,
                dim_feedforward=2048, img_dim=768):
    keys = jax.random.split(key, 128)
    counter = [0]

    def nxt():
        counter[0] += 1
        return keys[counter[0] - 1]

    def dense(fan_in, fan_out):
        w = jax.random.normal(nxt(), (fan_in, fan_out), jnp.float32)
        return (w / jnp.sqrt(jnp.float32(fan_in))).astype(jnp.bfloat16)

    layers = []
    for _ in range(num_layers):
        layers.append({
            "self_attn": {
                "wqkv": dense(d_model, 3 * d_model),
                "bqkv": jnp.zeros((3 * d_model,), jnp.float32),
                "wo": dense(d_model, d_model),
                "bo": jnp.zeros((d_model,), jnp.float32),
            },
            # cross-attention: Wq/Wk (and their biases) provably do not affect
            # this module's forward (memory keys are a broadcast of one vector,
            # so softmax is uniform), so only Wv/Wo are materialized.
            "cross_attn": {
                "wv": dense(d_model, d_model),
                "bv": jnp.zeros((d_model,), jnp.float32),
                "wo": dense(d_model, d_model),
                "bo": jnp.zeros((d_model,), jnp.float32),
            },
            "w1": dense(d_model, dim_feedforward),
            "b1": jnp.zeros((dim_feedforward,), jnp.float32),
            "w2": dense(dim_feedforward, d_model),
            "b2": jnp.zeros((d_model,), jnp.float32),
            "ln1_g": jnp.ones((d_model,), jnp.float32),
            "ln1_b": jnp.zeros((d_model,), jnp.float32),
            "ln2_g": jnp.ones((d_model,), jnp.float32),
            "ln2_b": jnp.zeros((d_model,), jnp.float32),
            "ln3_g": jnp.ones((d_model,), jnp.float32),
            "ln3_b": jnp.zeros((d_model,), jnp.float32),
        })

    return {
        "proj_w": dense(img_dim, d_model),
        "proj_b": jnp.zeros((d_model,), jnp.float32),
        "embedding": jax.random.normal(nxt(), (vocab_size, d_model),
                                       jnp.float32) * 0.02,
        "emb_ln_g": jnp.ones((d_model,), jnp.float32),
        "emb_ln_b": jnp.zeros((d_model,), jnp.float32),
        "fc_w": dense(d_model, vocab_size),
        "fc_b": jnp.zeros((vocab_size,), jnp.float32),
        "layers": layers,
    }


if __name__ == "__main__":
    VOCAB, D_MODEL, NHEAD, NUM_LAYERS = 256, 128, 8, 2
    B, T = 2, 8

    root = jax.random.PRNGKey(0)
    kp, ki, kc = jax.random.split(root, 3)
    params = init_params(kp, VOCAB, D_MODEL, NHEAD, NUM_LAYERS)
    images = jax.random.normal(ki, (1, B, 768), jnp.float32)
    captions = jax.random.randint(kc, (B, T), 0, VOCAB, dtype=jnp.int32)

    fwd = jax.jit(functools.partial(decoder_forward, nhead=NHEAD))
    out = fwd(params, images, captions)
    jax.block_until_ready(out)

    assert out.shape == (B, T, VOCAB), out.shape
    assert bool(jnp.all(jnp.isfinite(out)))
    print("KERNEL_OK")
</pallas_src>

<mosaic_0001>
module attributes {stable_mosaic.version = 11 : i64} {
  func.func @_linear_kernel(%arg0: i32, %arg1: i32, %arg2: memref<2x768xf32, #tpu.memory_space<vmem>>, %arg3: memref<768x128xbf16, #tpu.memory_space<vmem>>, %arg4: memref<1x128xf32, #tpu.memory_space<vmem>>, %arg5: memref<2x128xf32, #tpu.memory_space<vmem>>) attributes {dimension_semantics = [#tpu.dimension_semantics<parallel>, #tpu.dimension_semantics<parallel>], iteration_bounds = array<i64: 1, 1>, scalar_prefetch = 0 : i64, scratch_operands = 0 : i64, tpu.core_type = #tpu.core_type<tc>, window_params = [{transform_indices = @transform_0, window_bounds = array<i64: 2, 768>}, {transform_indices = @transform_1, window_bounds = array<i64: 768, 128>}, {transform_indices = @transform_2, window_bounds = array<i64: 1, 128>}, {transform_indices = @transform_3, window_bounds = array<i64: 2, 128>}]} {
    %c0 = arith.constant 0 : index
    %c0_0 = arith.constant 0 : index
    %0 = vector.load %arg2[%c0, %c0_0] : memref<2x768xf32, #tpu.memory_space<vmem>>, vector<2x768xf32>
    %1 = arith.truncf %0 : vector<2x768xf32> to vector<2x768xbf16>
    %c0_1 = arith.constant 0 : index
    %c0_2 = arith.constant 0 : index
    %2 = vector.load %arg3[%c0_1, %c0_2] : memref<768x128xbf16, #tpu.memory_space<vmem>>, vector<768x128xbf16>
    %cst = arith.constant dense<0.000000e+00> : vector<2x128xf32>
    %3 = tpu.matmul %1, %2, %cst {dimension_numbers = #tpu.dot_dimension_numbers<[1], [0], [0], [1], [0, 0, 1, 1], [], []>} : vector<2x768xbf16>, vector<768x128xbf16>, vector<2x128xf32> -> vector<2x128xf32>
    %c0_3 = arith.constant 0 : index
    %c0_4 = arith.constant 0 : index
    %4 = vector.load %arg4[%c0_3, %c0_4] : memref<1x128xf32, #tpu.memory_space<vmem>>, vector<1x128xf32>
    %5 = vector.broadcast %4 : vector<1x128xf32> to vector<2x128xf32>
    %6 = arith.addf %3, %5 : vector<2x128xf32>
    %c0_5 = arith.constant 0 : index
    %c0_6 = arith.constant 0 : index
    %7 = vector.load %arg5[%c0_5, %c0_6] : memref<2x128xf32, #tpu.memory_space<vmem>>, vector<2x128xf32>
    tpu.vector_store %arg5[%c0_5, %c0_6], %6 {strides = array<i32>} : memref<2x128xf32, #tpu.memory_space<vmem>>, vector<2x128xf32>,
    return
  }
  func.func @transform_0(%arg0: i32, %arg1: i32) -> (i32, i32) {
    %c0_i32 = arith.constant 0 : i32
    %c0_i32_0 = arith.constant 0 : i32
    return %arg0, %c0_i32 : i32, i32
  }
  func.func @transform_1(%arg0: i32, %arg1: i32) -> (i32, i32) {
    %c0_i32 = arith.constant 0 : i32
    %c0_i32_0 = arith.constant 0 : i32
    return %c0_i32, %arg1 : i32, i32
  }
  func.func @transform_2(%arg0: i32, %arg1: i32) -> (i32, i32) {
    %c0_i32 = arith.constant 0 : i32
    %c0_i32_0 = arith.constant 0 : i32
    return %c0_i32, %arg1 : i32, i32
  }
  func.func @transform_3(%arg0: i32, %arg1: i32) -> (i32, i32) {
    %c0_i32 = arith.constant 0 : i32
    return %arg0, %arg1 : i32, i32
  }
}

module attributes {stable_mosaic.version = 11 : i64} {
  func.func @_linear_kernel(%arg0: i32, %arg1: i32, %arg2: memref<16x128xbf16, #tpu.memory_space<vmem>>, %arg3: memref<128x256xbf16, #tpu.memory_space<vmem>>, %arg4: memref<1x256xf32, #tpu.memory_space<vmem>>, %arg5: memref<16x256xf32, #tpu.memory_space<vmem>>) attributes {dimension_semantics = [#tpu.dimension_semantics<parallel>, #tpu.dimension_semantics<parallel>], iteration_bounds = array<i64: 1, 1>, scalar_prefetch = 0 : i64, scratch_operands = 0 : i64, tpu.core_type = #tpu.core_type<tc>, window_params = [{transform_indices = @transform_0, window_bounds = array<i64: 16, 128>}, {transform_indices = @transform_1, window_bounds = array<i64: 128, 256>}, {transform_indices = @transform_2, window_bounds = array<i64: 1, 256>}, {transform_indices = @transform_3, window_bounds = array<i64: 16, 256>}]} {
    %c0 = arith.constant 0 : index
    %c0_0 = arith.constant 0 : index
    %0 = vector.load %arg2[%c0, %c0_0] : memref<16x128xbf16, #tpu.memory_space<vmem>>, vector<16x128xbf16>
    %c0_1 = arith.constant 0 : index
    %c0_2 = arith.constant 0 : index
    %1 = vector.load %arg3[%c0_1, %c0_2] : memref<128x256xbf16, #tpu.memory_space<vmem>>, vector<128x256xbf16>
    %cst = arith.constant dense<0.000000e+00> : vector<16x256xf32>
    %2 = tpu.matmul %0, %1, %cst {dimension_numbers = #tpu.dot_dimension_numbers<[1], [0], [0], [1], [0, 0, 1, 1], [], []>} : vector<16x128xbf16>, vector<128x256xbf16>, vector<16x256xf32> -> vector<16x256xf32>
    %c0_3 = arith.constant 0 : index
    %c0_4 = arith.constant 0 : index
    %3 = vector.load %arg4[%c0_3, %c0_4] : memref<1x256xf32, #tpu.memory_space<vmem>>, vector<1x256xf32>
    %4 = vector.broadcast %3 : vector<1x256xf32> to vector<16x256xf32>
    %5 = arith.addf %2, %4 : vector<16x256xf32>
    %c0_5 = arith.constant 0 : index
    %c0_6 = arith.constant 0 : index
    %6 = vector.load %arg5[%c0_5, %c0_6] : memref<16x256xf32, #tpu.memory_space<vmem>>, vector<16x256xf32>
    tpu.vector_store %arg5[%c0_5, %c0_6], %5 {strides = array<i32>} : memref<16x256xf32, #tpu.memory_space<vmem>>, vector<16x256xf32>,
    return
  }
  func.func @transform_0(%arg0: i32, %arg1: i32) -> (i32, i32) {
    %c0_i32 = arith.constant 0 : i32
    %c0_i32_0 = arith.constant 0 : i32
    return %arg0, %c0_i32 : i32, i32
  }
  func.func @transform_1(%arg0: i32, %arg1: i32) -> (i32, i32) {
    %c0_i32 = arith.constant 0 : i32
    %c0_i32_0 = arith.constant 0 : i32
    return %c0_i32, %arg1 : i32, i32
  }
  func.func @transform_2(%arg0: i32, %arg1: i32) -> (i32, i32) {
    %c0_i32 = arith.constant 0 : i32
    %c0_i32_0 = arith.constant 0 : i32
    return %c0_i32, %arg1 : i32, i32
  }
  func.func @transform_3(%arg0: i32, %arg1: i32) -> (i32, i32) {
    %c0_i32 = arith.constant 0 : i32
    return %arg0, %arg1 : i32, i32
  }
}

module attributes {stable_mosaic.version = 11 : i64} {
  func.func @_decoder_layer_kernel(%arg0: i32, %arg1: memref<16x128xbf16, #tpu.memory_space<vmem>>, %arg2: memref<2x128xf32, #tpu.memory_space<vmem>>, %arg3: memref<1x128xf32, #tpu.memory_space<vmem>>, %arg4: memref<1x128xf32, #tpu.memory_space<vmem>>, %arg5: memref<128x384xbf16, #tpu.memory_space<vmem>>, %arg6: memref<1x384xf32, #tpu.memory_space<vmem>>, %arg7: memref<128x128xbf16, #tpu.memory_space<vmem>>, %arg8: memref<1x128xf32, #tpu.memory_space<vmem>>, %arg9: memref<1x128xf32, #tpu.memory_space<vmem>>, %arg10: memref<1x128xf32, #tpu.memory_space<vmem>>, %arg11: memref<128x128xbf16, #tpu.memory_space<vmem>>, %arg12: memref<1x128xf32, #tpu.memory_space<vmem>>, %arg13: memref<128x128xbf16, #tpu.memory_space<vmem>>, %arg14: memref<1x128xf32, #tpu.memory_space<vmem>>, %arg15: memref<1x128xf32, #tpu.memory_space<vmem>>, %arg16: memref<1x128xf32, #tpu.memory_space<vmem>>, %arg17: memref<128x2048xbf16, #tpu.memory_space<vmem>>, %arg18: memref<1x2048xf32, #tpu.memory_space<vmem>>, %arg19: memref<2048x128xbf16, #tpu.memory_space<vmem>>, %arg20: memref<1x128xf32, #tpu.memory_space<vmem>>, %arg21: memref<1x128xf32, #tpu.memory_space<vmem>>, %arg22: memref<1x128xf32, #tpu.memory_space<vmem>>, %arg23: memref<16x128xbf16, #tpu.memory_space<vmem>>) attributes {dimension_semantics = [#tpu.dimension_semantics<parallel>], iteration_bounds = array<i64: 1>, scalar_prefetch = 0 : i64, scratch_operands = 0 : i64, tpu.core_type = #tpu.core_type<tc>, window_params = [{transform_indices = @transform_0, window_bounds = array<i64: 16, 128>}, {transform_indices = @transform_1, window_bounds = array<i64: 2, 128>}, {pipeline_mode = #tpu.pipeline_mode<synchronous>, transform_indices = @transform_2, window_bounds = array<i64: 1, 128>}, {pipeline_mode = #tpu.pipeline_mode<synchronous>, transform_indices = @transform_3, window_bounds = array<i64: 1, 128>}, {pipeline_mode = #tpu.pipeline_mode<synchronous>, transform_indices = @transform_4, window_bounds = array<i64: 128, 384>}, {pipeline_mode = #tpu.pipeline_mode<synchronous>, transform_indices = @transform_5, window_bounds = array<i64: 1, 384>}, {pipeline_mode = #tpu.pipeline_mode<synchronous>, transform_indices = @transform_6, window_bounds = array<i64: 128, 128>}, {pipeline_mode = #tpu.pipeline_mode<synchronous>, transform_indices = @transform_7, window_bounds = array<i64: 1, 128>}, {pipeline_mode = #tpu.pipeline_mode<synchronous>, transform_indices = @transform_8, window_bounds = array<i64: 1, 128>}, {pipeline_mode = #tpu.pipeline_mode<synchronous>, transform_indices = @transform_9, window_bounds = array<i64: 1, 128>}, {pipeline_mode = #tpu.pipeline_mode<synchronous>, transform_indices = @transform_10, window_bounds = array<i64: 128, 128>}, {pipeline_mode = #tpu.pipeline_mode<synchronous>, transform_indices = @transform_11, window_bounds = array<i64: 1, 128>}, {pipeline_mode = #tpu.pipeline_mode<synchronous>, transform_indices = @transform_12, window_bounds = array<i64: 128, 128>}, {pipeline_mode = #tpu.pipeline_mode<synchronous>, transform_indices = @transform_13, window_bounds = array<i64: 1, 128>}, {pipeline_mode = #tpu.pipeline_mode<synchronous>, transform_indices = @transform_14, window_bounds = array<i64: 1, 128>}, {pipeline_mode = #tpu.pipeline_mode<synchronous>, transform_indices = @transform_15, window_bounds = array<i64: 1, 128>}, {pipeline_mode = #tpu.pipeline_mode<synchronous>, transform_indices = @transform_16, window_bounds = array<i64: 128, 2048>}, {pipeline_mode = #tpu.pipeline_mode<synchronous>, transform_indices = @transform_17, window_bounds = array<i64: 1, 2048>}, {pipeline_mode = #tpu.pipeline_mode<synchronous>, transform_indices = @transform_18, window_bounds = array<i64: 2048, 128>}, {pipeline_mode = #tpu.pipeline_mode<synchronous>, transform_indices = @transform_19, window_bounds = array<i64: 1, 128>}, {pipeline_mode = #tpu.pipeline_mode<synchronous>, transform_indices = @transform_20, window_bounds = array<i64: 1, 128>}, {pipeline_mode = #tpu.pipeline_mode<synchronous>, transform_indices = @transform_21, window_bounds = array<i64: 1, 128>}, {transform_indices = @transform_22, window_bounds = array<i64: 16, 128>}]} {
    %c0 = arith.constant 0 : index
    %c0_0 = arith.constant 0 : index
    %0 = vector.load %arg1[%c0, %c0_0] : memref<16x128xbf16, #tpu.memory_space<vmem>>, vector<16x128xbf16>
    %1 = arith.extf %0 : vector<16x128xbf16> to vector<16x128xf32>
    %2 = arith.truncf %1 : vector<16x128xf32> to vector<16x128xbf16>
    %c0_1 = arith.constant 0 : index
    %c0_2 = arith.constant 0 : index
    %3 = vector.load %arg5[%c0_1, %c0_2] : memref<128x384xbf16, #tpu.memory_space<vmem>>, vector<128x384xbf16>
    %cst = arith.constant dense<0.000000e+00> : vector<16x384xf32>
    %4 = tpu.matmul %2, %3, %cst {dimension_numbers = #tpu.dot_dimension_numbers<[1], [0], [0], [1], [0, 0, 1, 1], [], []>} : vector<16x128xbf16>, vector<128x384xbf16>, vector<16x384xf32> -> vector<16x384xf32>
    %c0_3 = arith.constant 0 : index
    %c0_4 = arith.constant 0 : index
    %5 = vector.load %arg6[%c0_3, %c0_4] : memref<1x384xf32, #tpu.memory_space<vmem>>, vector<1x384xf32>
    %6 = vector.broadcast %5 : vector<1x384xf32> to vector<16x384xf32>
    %7 = arith.addf %4, %6 : vector<16x384xf32>
    %8 = vector.shape_cast %7 : vector<16x384xf32> to vector<2x8x384xf32>
    %9 = vector.extract_strided_slice %8 {offsets = [0, 0, 0], sizes = [2, 8, 16], strides = [1, 1, 1]} : vector<2x8x384xf32> to vector<2x8x16xf32>
    %10 = arith.truncf %9 : vector<2x8x16xf32> to vector<2x8x16xbf16>
    %11 = vector.extract_strided_slice %8 {offsets = [0, 0, 128], sizes = [2, 8, 16], strides = [1, 1, 1]} : vector<2x8x384xf32> to vector<2x8x16xf32>
    %12 = arith.truncf %11 : vector<2x8x16xf32> to vector<2x8x16xbf16>
    %13 = vector.extract_strided_slice %8 {offsets = [0, 0, 256], sizes = [2, 8, 16], strides = [1, 1, 1]} : vector<2x8x384xf32> to vector<2x8x16xf32>
    %14 = arith.truncf %13 : vector<2x8x16xf32> to vector<2x8x16xbf16>
    "tpu.trace_start"() <{level = 10 : i32, message = "bqd,bkd->bqk"}> : () -> ()
    %cst_5 = arith.constant dense<0.000000e+00> : vector<2x8x8xf32>
    %15 = tpu.matmul %10, %12, %cst_5 {dimension_numbers = #tpu.dot_dimension_numbers<[2], [2], [1], [1], [0, 0, 0, 1, 1, 1], [0], [0]>} : vector<2x8x16xbf16>, vector<2x8x16xbf16>, vector<2x8x8xf32> -> vector<2x8x8xf32>
    "tpu.trace_stop"() : () -> ()
    %cst_6 = arith.constant 2.500000e-01 : f32
    %16 = vector.broadcast %cst_6 : f32 to vector<2x8x8xf32>
    %17 = arith.mulf %15, %16 : vector<2x8x8xf32>
    %cst_7 = arith.constant dense<0xFF800000> : vector<2x8xf32>
    %18 = vector.multi_reduction <maximumf>, %17, %cst_7 [2] : vector<2x8x8xf32> to vector<2x8xf32>
    %19 = vector.shape_cast %18 : vector<2x8xf32> to vector<2x8x1xf32>
    %20 = vector.broadcast %19 : vector<2x8x1xf32> to vector<2x8x8xf32>
    %21 = arith.subf %17, %20 : vector<2x8x8xf32>
    %22 = math.exp %21 : vector<2x8x8xf32>
    %cst_8 = arith.constant dense<0.000000e+00> : vector<2x8xf32>
    %23 = vector.multi_reduction <add>, %22, %cst_8 [2] : vector<2x8x8xf32> to vector<2x8xf32>
    %24 = vector.shape_cast %23 : vector<2x8xf32> to vector<2x8x1xf32>
    %25 = vector.broadcast %24 : vector<2x8x1xf32> to vector<2x8x8xf32>
    %26 = arith.divf %22, %25 : vector<2x8x8xf32>
    %27 = arith.truncf %26 : vector<2x8x8xf32> to vector<2x8x8xbf16>
    "tpu.trace_start"() <{level = 10 : i32, message = "bqk,bkd->bqd"}> : () -> ()
    %cst_9 = arith.constant dense<0.000000e+00> : vector<2x8x16xf32>
    %28 = tpu.matmul %27, %14, %cst_9 {dimension_numbers = #tpu.dot_dimension_numbers<[2], [1], [1], [2], [0, 0, 0, 1, 1, 2], [0], [0]>} : vector<2x8x8xbf16>, vector<2x8x16xbf16>, vector<2x8x16xf32> -> vector<2x8x16xf32>
    "tpu.trace_stop"() : () -> ()
    %29 = vector.extract_strided_slice %8 {offsets = [0, 0, 16], sizes = [2, 8, 16], strides = [1, 1, 1]} : vector<2x8x384xf32> to vector<2x8x16xf32>
    %30 = arith.truncf %29 : vector<2x8x16xf32> to vector<2x8x16xbf16>
    %31 = vector.extract_strided_slice %8 {offsets = [0, 0, 144], sizes = [2, 8, 16], strides = [1, 1, 1]} : vector<2x8x384xf32> to vector<2x8x16xf32>
    %32 = arith.truncf %31 : vector<2x8x16xf32> to vector<2x8x16xbf16>
    %33 = vector.extract_strided_slice %8 {offsets = [0, 0, 272], sizes = [2, 8, 16], strides = [1, 1, 1]} : vector<2x8x384xf32> to vector<2x8x16xf32>
    %34 = arith.truncf %33 : vector<2x8x16xf32> to vector<2x8x16xbf16>
    "tpu.trace_start"() <{level = 10 : i32, message = "bqd,bkd->bqk"}> : () -> ()
    %cst_10 = arith.constant dense<0.000000e+00> : vector<2x8x8xf32>
    %35 = tpu.matmul %30, %32, %cst_10 {dimension_numbers = #tpu.dot_dimension_numbers<[2], [2], [1], [1], [0, 0, 0, 1, 1, 1], [0], [0]>} : vector<2x8x16xbf16>, vector<2x8x16xbf16>, vector<2x8x8xf32> -> vector<2x8x8xf32>
    "tpu.trace_stop"() : () -> ()
    %cst_11 = arith.constant 2.500000e-01 : f32
    %36 = vector.broadcast %cst_11 : f32 to vector<2x8x8xf32>
    %37 = arith.mulf %35, %36 : vector<2x8x8xf32>
    %cst_12 = arith.constant dense<0xFF800000> : vector<2x8xf32>
    %38 = vector.multi_reduction <maximumf>, %37, %cst_12 [2] : vector<2x8x8xf32> to vector<2x8xf32>
    %39 = vector.shape_cast %38 : vector<2x8xf32> to vector<2x8x1xf32>
    %40 = vector.broadcast %39 : vector<2x8x1xf32> to vector<2x8x8xf32>
    %41 = arith.subf %37, %40 : vector<2x8x8xf32>
    %42 = math.exp %41 : vector<2x8x8xf32>
    %cst_13 = arith.constant dense<0.000000e+00> : vector<2x8xf32>
    %43 = vector.multi_reduction <add>, %42, %cst_13 [2] : vector<2x8x8xf32> to vector<2x8xf32>
    %44 = vector.shape_cast %43 : vector<2x8xf32> to vector<2x8x1xf32>
    %45 = vector.broadcast %44 : vector<2x8x1xf32> to vector<2x8x8xf32>
    %46 = arith.divf %42, %45 : vector<2x8x8xf32>
    %47 = arith.truncf %46 : vector<2x8x8xf32> to vector<2x8x8xbf16>
    "tpu.trace_start"() <{level = 10 : i32, message = "bqk,bkd->bqd"}> : () -> ()
    %cst_14 = arith.constant dense<0.000000e+00> : vector<2x8x16xf32>
    %48 = tpu.matmul %47, %34, %cst_14 {dimension_numbers = #tpu.dot_dimension_numbers<[2], [1], [1], [2], [0, 0, 0, 1, 1, 2], [0], [0]>} : vector<2x8x8xbf16>, vector<2x8x16xbf16>, vector<2x8x16xf32> -> vector<2x8x16xf32>
    "tpu.trace_stop"() : () -> ()
    %49 = vector.extract_strided_slice %8 {offsets = [0, 0, 32], sizes = [2, 8, 16], strides = [1, 1, 1]} : vector<2x8x384xf32> to vector<2x8x16xf32>
    %50 = arith.truncf %49 : vector<2x8x16xf32> to vector<2x8x16xbf16>
    %51 = vector.extract_strided_slice %8 {offsets = [0, 0, 160], sizes = [2, 8, 16], strides = [1, 1, 1]} : vector<2x8x384xf32> to vector<2x8x16xf32>
    %52 = arith.truncf %51 : vector<2x8x16xf32> to vector<2x8x16xbf16>
    %53 = vector.extract_strided_slice %8 {offsets = [0, 0, 288], sizes = [2, 8, 16], strides = [1, 1, 1]} : vector<2x8x384xf32> to vector<2x8x16xf32>
    %54 = arith.truncf %53 : vector<2x8x16xf32> to vector<2x8x16xbf16>
    "tpu.trace_start"() <{level = 10 : i32, message = "bqd,bkd->bqk"}> : () -> ()
    %cst_15 = arith.constant dense<0.000000e+00> : vector<2x8x8xf32>
    %55 = tpu.matmul %50, %52, %cst_15 {dimension_numbers = #tpu.dot_dimension_numbers<[2], [2], [1], [1], [0, 0, 0, 1, 1, 1], [0], [0]>} : vector<2x8x16xbf16>, vector<2x8x16xbf16>, vector<2x8x8xf32> -> vector<2x8x8xf32>
    "tpu.trace_stop"() : () -> ()
    %cst_16 = arith.constant 2.500000e-01 : f32
    %56 = vector.broadcast %cst_16 : f32 to vector<2x8x8xf32>
    %57 = arith.mulf %55, %56 : vector<2x8x8xf32>
    %cst_17 = arith.constant dense<0xFF800000> : vector<2x8xf32>
    %58 = vector.multi_reduction <maximumf>, %57, %cst_17 [2] : vector<2x8x8xf32> to vector<2x8xf32>
    %59 = vector.shape_cast %58 : vector<2x8xf32> to vector<2x8x1xf32>
    %60 = vector.broadcast %59 : vector<2x8x1xf32> to vector<2x8x8xf32>
    %61 = arith.subf %57, %60 : vector<2x8x8xf32>
    %62 = math.exp %61 : vector<2x8x8xf32>
    %cst_18 = arith.constant dense<0.000000e+00> : vector<2x8xf32>
    %63 = vector.multi_reduction <add>, %62, %cst_18 [2] : vector<2x8x8xf32> to vector<2x8xf32>
    %64 = vector.shape_cast %63 : vector<2x8xf32> to vector<2x8x1xf32>
    %65 = vector.broadcast %64 : vector<2x8x1xf32> to vector<2x8x8xf32>
    %66 = arith.divf %62, %65 : vector<2x8x8xf32>
    %67 = arith.truncf %66 : vector<2x8x8xf32> to vector<2x8x8xbf16>
    "tpu.trace_start"() <{level = 10 : i32, message = "bqk,bkd->bqd"}> : () -> ()
    %cst_19 = arith.constant dense<0.000000e+00> : vector<2x8x16xf32>
    %68 = tpu.matmul %67, %54, %cst_19 {dimension_numbers = #tpu.dot_dimension_numbers<[2], [1], [1], [2], [0, 0, 0, 1, 1, 2], [0], [0]>} : vector<2x8x8xbf16>, vector<2x8x16xbf16>, vector<2x8x16xf32> -> vector<2x8x16xf32>
    "tpu.trace_stop"() : () -> ()
    %69 = vector.extract_strided_slice %8 {offsets = [0, 0, 48], sizes = [2, 8, 16], strides = [1, 1, 1]} : vector<2x8x384xf32> to vector<2x8x16xf32>
    %70 = arith.truncf %69 : vector<2x8x16xf32> to vector<2x8x16xbf16>
    %71 = vector.extract_strided_slice %8 {offsets = [0, 0, 176], sizes = [2, 8, 16], strides = [1, 1, 1]} : vector<2x8x384xf32> to vector<2x8x16xf32>
    %72 = arith.truncf %71 : vector<2x8x16xf32> to vector<2x8x16xbf16>
    %73 = vector.extract_strided_slice %8 {offsets = [0, 0, 304], sizes = [2, 8, 16], strides = [1, 1, 1]} : vector<2x8x384xf32> to vector<2x8x16xf32>
    %74 = arith.truncf %73 : vector<2x8x16xf32> to vector<2x8x16xbf16>
    "tpu.trace_start"() <{level = 10 : i32, message = "bqd,bkd->bqk"}> : () -> ()
    %cst_20 = arith.constant dense<0.000000e+00> : vector<2x8x8xf32>
    %75 = tpu.matmul %70, %72, %cst_20 {dimension_numbers = #tpu.dot_dimension_numbers<[2], [2], [1], [1], [0, 0, 0, 1, 1, 1], [0], [0]>} : vector<2x8x16xbf16>, vector<2x8x16xbf16>, vector<2x8x8xf32> -> vector<2x8x8xf32>
    "tpu.trace_stop"() : () -> ()
    %cst_21 = arith.constant 2.500000e-01 : f32
    %76 = vector.broadcast %cst_21 : f32 to vector<2x8x8xf32>
    %77 = arith.mulf %75, %76 : vector<2x8x8xf32>
    %cst_22 = arith.constant dense<0xFF800000> : vector<2x8xf32>
    %78 = vector.multi_reduction <maximumf>, %77, %cst_22 [2] : vector<2x8x8xf32> to vector<2x8xf32>
    %79 = vector.shape_cast %78 : vector<2x8xf32> to vector<2x8x1xf32>
    %80 = vector.broadcast %79 : vector<2x8x1xf32> to vector<2x8x8xf32>
    %81 = arith.subf %77, %80 : vector<2x8x8xf32>
    %82 = math.exp %81 : vector<2x8x8xf32>
    %cst_23 = arith.constant dense<0.000000e+00> : vector<2x8xf32>
    %83 = vector.multi_reduction <add>, %82, %cst_23 [2] : vector<2x8x8xf32> to vector<2x8xf32>
    %84 = vector.shape_cast %83 : vector<2x8xf32> to vector<2x8x1xf32>
    %85 = vector.broadcast %84 : vector<2x8x1xf32> to vector<2x8x8xf32>
    %86 = arith.divf %82, %85 : vector<2x8x8xf32>
    %87 = arith.truncf %86 : vector<2x8x8xf32> to vector<2x8x8xbf16>
    "tpu.trace_start"() <{level = 10 : i32, message = "bqk,bkd->bqd"}> : () -> ()
    %cst_24 = arith.constant dense<0.000000e+00> : vector<2x8x16xf32>
    %88 = tpu.matmul %87, %74, %cst_24 {dimension_numbers = #tpu.dot_dimension_numbers<[2], [1], [1], [2], [0, 0, 0, 1, 1, 2], [0], [0]>} : vector<2x8x8xbf16>, vector<2x8x16xbf16>, vector<2x8x16xf32> -> vector<2x8x16xf32>
    "tpu.trace_stop"() : () -> ()
    %89 = vector.extract_strided_slice %8 {offsets = [0, 0, 64], sizes = [2, 8, 16], strides = [1, 1, 1]} : vector<2x8x384xf32> to vector<2x8x16xf32>
    %90 = arith.truncf %89 : vector<2x8x16xf32> to vector<2x8x16xbf16>
    %91 = vector.extract_strided_slice %8 {offsets = [0, 0, 192], sizes = [2, 8, 16], strides = [1, 1, 1]} : vector<2x8x384xf32> to vector<2x8x16xf32>
    %92 = arith.truncf %91 : vector<2x8x16xf32> to vector<2x8x16xbf16>
    %93 = vector.extract_strided_slice %8 {offsets = [0, 0, 320], sizes = [2, 8, 16], strides = [1, 1, 1]} : vector<2x8x384xf32> to vector<2x8x16xf32>
    %94 = arith.truncf %93 : vector<2x8x16xf32> to vector<2x8x16xbf16>
    "tpu.trace_start"() <{level = 10 : i32, message = "bqd,bkd->bqk"}> : () -> ()
    %cst_25 = arith.constant dense<0.000000e+00> : vector<2x8x8xf32>
    %95 = tpu.matmul %90, %92, %cst_25 {dimension_numbers = #tpu.dot_dimension_numbers<[2], [2], [1], [1], [0, 0, 0, 1, 1, 1], [0], [0]>} : vector<2x8x16xbf16>, vector<2x8x16xbf16>, vector<2x8x8xf32> -> vector<2x8x8xf32>
    "tpu.trace_stop"() : () -> ()
    %cst_26 = arith.constant 2.500000e-01 : f32
    %96 = vector.broadcast %cst_26 : f32 to vector<2x8x8xf32>
    %97 = arith.mulf %95, %96 : vector<2x8x8xf32>
    %cst_27 = arith.constant dense<0xFF800000> : vector<2x8xf32>
    %98 = vector.multi_reduction <maximumf>, %97, %cst_27 [2] : vector<2x8x8xf32> to vector<2x8xf32>
    %99 = vector.shape_cast %98 : vector<2x8xf32> to vector<2x8x1xf32>
    %100 = vector.broadcast %99 : vector<2x8x1xf32> to vector<2x8x8xf32>
    %101 = arith.subf %97, %100 : vector<2x8x8xf32>
    %102 = math.exp %101 : vector<2x8x8xf32>
    %cst_28 = arith.constant dense<0.000000e+00> : vector<2x8xf32>
    %103 = vector.multi_reduction <add>, %102, %cst_28 [2] : vector<2x8x8xf32> to vector<2x8xf32>
    %104 = vector.shape_cast %103 : vector<2x8xf32> to vector<2x8x1xf32>
    %105 = vector.broadcast %104 : vector<2x8x1xf32> to vector<2x8x8xf32>
    %106 = arith.divf %102, %105 : vector<2x8x8xf32>
    %107 = arith.truncf %106 : vector<2x8x8xf32> to vector<2x8x8xbf16>
    "tpu.trace_start"() <{level = 10 : i32, message = "bqk,bkd->bqd"}> : () -> ()
    %cst_29 = arith.constant dense<0.000000e+00> : vector<2x8x16xf32>
    %108 = tpu.matmul %107, %94, %cst_29 {dimension_numbers = #tpu.dot_dimension_numbers<[2], [1], [1], [2], [0, 0, 0, 1, 1, 2], [0], [0]>} : vector<2x8x8xbf16>, vector<2x8x16xbf16>, vector<2x8x16xf32> -> vector<2x8x16xf32>
    "tpu.trace_stop"() : () -> ()
    %109 = vector.extract_strided_slice %8 {offsets = [0, 0, 80], sizes = [2, 8, 16], strides = [1, 1, 1]} : vector<2x8x384xf32> to vector<2x8x16xf32>
    %110 = arith.truncf %109 : vector<2x8x16xf32> to vector<2x8x16xbf16>
    %111 = vector.extract_strided_slice %8 {offsets = [0, 0, 208], sizes = [2, 8, 16], strides = [1, 1, 1]} : vector<2x8x384xf32> to vector<2x8x16xf32>
    %112 = arith.truncf %111 : vector<2x8x16xf32> to vector<2x8x16xbf16>
    %113 = vector.extract_strided_slice %8 {offsets = [0, 0, 336], sizes = [2, 8, 16], strides = [1, 1, 1]} : vector<2x8x384xf32> to vector<2x8x16xf32>
    %114 = arith.truncf %113 : vector<2x8x16xf32> to vector<2x8x16xbf16>
    "tpu.trace_start"() <{level = 10 : i32, message = "bqd,bkd->bqk"}> : () -> ()
    %cst_30 = arith.constant dense<0.000000e+00> : vector<2x8x8xf32>
    %115 = tpu.matmul %110, %112, %cst_30 {dimension_numbers = #tpu.dot_dimension_numbers<[2], [2], [1], [1], [0, 0, 0, 1, 1, 1], [0], [0]>} : vector<2x8x16xbf16>, vector<2x8x16xbf16>, vector<2x8x8xf32> -> vector<2x8x8xf32>
    "tpu.trace_stop"() : () -> ()
    %cst_31 = arith.constant 2.500000e-01 : f32
    %116 = vector.broadcast %cst_31 : f32 to vector<2x8x8xf32>
    %117 = arith.mulf %115, %116 : vector<2x8x8xf32>
    %cst_32 = arith.constant dense<0xFF800000> : vector<2x8xf32>
    %118 = vector.multi_reduction <maximumf>, %117, %cst_32 [2] : vector<2x8x8xf32> to vector<2x8xf32>
    %119 = vector.shape_cast %118 : vector<2x8xf32> to vector<2x8x1xf32>
    %120 = vector.broadcast %119 : vector<2x8x1xf32> to vector<2x8x8xf32>
    %121 = arith.subf %117, %120 : vector<2x8x8xf32>
    %122 = math.exp %121 : vector<2x8x8xf32>
    %cst_33 = arith.constant dense<0.000000e+00> : vector<2x8xf32>
    %123 = vector.multi_reduction <add>, %122, %cst_33 [2] : vector<2x8x8xf32> to vector<2x8xf32>
    %124 = vector.shape_cast %123 : vector<2x8xf32> to vector<2x8x1xf32>
    %125 = vector.broadcast %124 : vector<2x8x1xf32> to vector<2x8x8xf32>
    %126 = arith.divf %122, %125 : vector<2x8x8xf32>
    %127 = arith.truncf %126 : vector<2x8x8xf32> to vector<2x8x8xbf16>
    "tpu.trace_start"() <{level = 10 : i32, message = "bqk,bkd->bqd"}> : () -> ()
    %cst_34 = arith.constant dense<0.000000e+00> : vector<2x8x16xf32>
    %128 = tpu.matmul %127, %114, %cst_34 {dimension_numbers = #tpu.dot_dimension_numbers<[2], [1], [1], [2], [0, 0, 0, 1, 1, 2], [0], [0]>} : vector<2x8x8xbf16>, vector<2x8x16xbf16>, vector<2x8x16xf32> -> vector<2x8x16xf32>
    "tpu.trace_stop"() : () -> ()
    %129 = vector.extract_strided_slice %8 {offsets = [0, 0, 96], sizes = [2, 8, 16], strides = [1, 1, 1]} : vector<2x8x384xf32> to vector<2x8x16xf32>
    %130 = arith.truncf %129 : vector<2x8x16xf32> to vector<2x8x16xbf16>
    %131 = vector.extract_strided_slice %8 {offsets = [0, 0, 224], sizes = [2, 8, 16], strides = [1, 1, 1]} : vector<2x8x384xf32> to vector<2x8x16xf32>
    %132 = arith.truncf %131 : vector<2x8x16xf32> to vector<2x8x16xbf16>
    %133 = vector.extract_strided_slice %8 {offsets = [0, 0, 352], sizes = [2, 8, 16], strides = [1, 1, 1]} : vector<2x8x384xf32> to vector<2x8x16xf32>
    %134 = arith.truncf %133 : vector<2x8x16xf32> to vector<2x8x16xbf16>
    "tpu.trace_start"() <{level = 10 : i32, message = "bqd,bkd->bqk"}> : () -> ()
    %cst_35 = arith.constant dense<0.000000e+00> : vector<2x8x8xf32>
    %135 = tpu.matmul %130, %132, %cst_35 {dimension_numbers = #tpu.dot_dimension_numbers<[2], [2], [1], [1], [0, 0, 0, 1, 1, 1], [0], [0]>} : vector<2x8x16xbf16>, vector<2x8x16xbf16>, vector<2x8x8xf32> -> vector<2x8x8xf32>
    "tpu.trace_stop"() : () -> ()
    %cst_36 = arith.constant 2.500000e-01 : f32
    %136 = vector.broadcast %cst_36 : f32 to vector<2x8x8xf32>
    %137 = arith.mulf %135, %136 : vector<2x8x8xf32>
    %cst_37 = arith.constant dense<0xFF800000> : vector<2x8xf32>
    %138 = vector.multi_reduction <maximumf>, %137, %cst_37 [2] : vector<2x8x8xf32> to vector<2x8xf32>
    %139 = vector.shape_cast %138 : vector<2x8xf32> to vector<2x8x1xf32>
    %140 = vector.broadcast %139 : vector<2x8x1xf32> to vector<2x8x8xf32>
    %141 = arith.subf %137, %140 : vector<2x8x8xf32>
    %142 = math.exp %141 : vector<2x8x8xf32>
    %cst_38 = arith.constant dense<0.000000e+00> : vector<2x8xf32>
    %143 = vector.multi_reduction <add>, %142, %cst_38 [2] : vector<2x8x8xf32> to vector<2x8xf32>
    %144 = vector.shape_cast %143 : vector<2x8xf32> to vector<2x8x1xf32>
    %145 = vector.broadcast %144 : vector<2x8x1xf32> to vector<2x8x8xf32>
    %146 = arith.divf %142, %145 : vector<2x8x8xf32>
    %147 = arith.truncf %146 : vector<2x8x8xf32> to vector<2x8x8xbf16>
    "tpu.trace_start"() <{level = 10 : i32, message = "bqk,bkd->bqd"}> : () -> ()
    %cst_39 = arith.constant dense<0.000000e+00> : vector<2x8x16xf32>
    %148 = tpu.matmul %147, %134, %cst_39 {dimension_numbers = #tpu.dot_dimension_numbers<[2], [1], [1], [2], [0, 0, 0, 1, 1, 2], [0], [0]>} : vector<2x8x8xbf16>, vector<2x8x16xbf16>, vector<2x8x16xf32> -> vector<2x8x16xf32>
    "tpu.trace_stop"() : () -> ()
    %149 = vector.extract_strided_slice %8 {offsets = [0, 0, 112], sizes = [2, 8, 16], strides = [1, 1, 1]} : vector<2x8x384xf32> to vector<2x8x16xf32>
    %150 = arith.truncf %149 : vector<2x8x16xf32> to vector<2x8x16xbf16>
    %151 = vector.extract_strided_slice %8 {offsets = [0, 0, 240], sizes = [2, 8, 16], strides = [1, 1, 1]} : vector<2x8x384xf32> to vector<2x8x16xf32>
    %152 = arith.truncf %151 : vector<2x8x16xf32> to vector<2x8x16xbf16>
    %153 = vector.extract_strided_slice %8 {offsets = [0, 0, 368], sizes = [2, 8, 16], strides = [1, 1, 1]} : vector<2x8x384xf32> to vector<2x8x16xf32>
    %154 = arith.truncf %153 : vector<2x8x16xf32> to vector<2x8x16xbf16>
    "tpu.trace_start"() <{level = 10 : i32, message = "bqd,bkd->bqk"}> : () -> ()
    %cst_40 = arith.constant dense<0.000000e+00> : vector<2x8x8xf32>
    %155 = tpu.matmul %150, %152, %cst_40 {dimension_numbers = #tpu.dot_dimension_numbers<[2], [2], [1], [1], [0, 0, 0, 1, 1, 1], [0], [0]>} : vector<2x8x16xbf16>, vector<2x8x16xbf16>, vector<2x8x8xf32> -> vector<2x8x8xf32>
    "tpu.trace_stop"() : () -> ()
    %cst_41 = arith.constant 2.500000e-01 : f32
    %156 = vector.broadcast %cst_41 : f32 to vector<2x8x8xf32>
    %157 = arith.mulf %155, %156 : vector<2x8x8xf32>
    %cst_42 = arith.constant dense<0xFF800000> : vector<2x8xf32>
    %158 = vector.multi_reduction <maximumf>, %157, %cst_42 [2] : vector<2x8x8xf32> to vector<2x8xf32>
    %159 = vector.shape_cast %158 : vector<2x8xf32> to vector<2x8x1xf32>
    %160 = vector.broadcast %159 : vector<2x8x1xf32> to vector<2x8x8xf32>
    %161 = arith.subf %157, %160 : vector<2x8x8xf32>
    %162 = math.exp %161 : vector<2x8x8xf32>
    %cst_43 = arith.constant dense<0.000000e+00> : vector<2x8xf32>
    %163 = vector.multi_reduction <add>, %162, %cst_43 [2] : vector<2x8x8xf32> to vector<2x8xf32>
    %164 = vector.shape_cast %163 : vector<2x8xf32> to vector<2x8x1xf32>
    %165 = vector.broadcast %164 : vector<2x8x1xf32> to vector<2x8x8xf32>
    %166 = arith.divf %162, %165 : vector<2x8x8xf32>
    %167 = arith.truncf %166 : vector<2x8x8xf32> to vector<2x8x8xbf16>
    "tpu.trace_start"() <{level = 10 : i32, message = "bqk,bkd->bqd"}> : () -> ()
    %cst_44 = arith.constant dense<0.000000e+00> : vector<2x8x16xf32>
    %168 = tpu.matmul %167, %154, %cst_44 {dimension_numbers = #tpu.dot_dimension_numbers<[2], [1], [1], [2], [0, 0, 0, 1, 1, 2], [0], [0]>} : vector<2x8x8xbf16>, vector<2x8x16xbf16>, vector<2x8x16xf32> -> vector<2x8x16xf32>
    "tpu.trace_stop"() : () -> ()
    %169 = tpu.concatenate %28, %48, %68, %88, %108, %128, %148, %168 in 2 : vector<2x8x16xf32>, vector<2x8x16xf32>, vector<2x8x16xf32>, vector<2x8x16xf32>, vector<2x8x16xf32>, vector<2x8x16xf32>, vector<2x8x16xf32>, vector<2x8x16xf32> -> vector<2x8x128xf32>
    %170 = vector.shape_cast %169 : vector<2x8x128xf32> to vector<16x128xf32>
    %171 = arith.truncf %170 : vector<16x128xf32> to vector<16x128xbf16>
    %c0_45 = arith.constant 0 : index
    %c0_46 = arith.constant 0 : index
    %172 = vector.load %arg7[%c0_45, %c0_46] : memref<128x128xbf16, #tpu.memory_space<vmem>>, vector<128x128xbf16>
    %cst_47 = arith.constant dense<0.000000e+00> : vector<16x128xf32>
    %173 = tpu.matmul %171, %172, %cst_47 {dimension_numbers = #tpu.dot_dimension_numbers<[1], [0], [0], [1], [0, 0, 1, 1], [], []>} : vector<16x128xbf16>, vector<128x128xbf16>, vector<16x128xf32> -> vector<16x128xf32>
    %c0_48 = arith.constant 0 : index
    %c0_49 = arith.constant 0 : index
    %174 = vector.load %arg8[%c0_48, %c0_49] : memref<1x128xf32, #tpu.memory_space<vmem>>, vector<1x128xf32>
    %175 = vector.broadcast %174 : vector<1x128xf32> to vector<16x128xf32>
    %176 = arith.addf %173, %175 : vector<16x128xf32>
    %177 = arith.addf %1, %176 : vector<16x128xf32>
    %c0_50 = arith.constant 0 : index
    %c0_51 = arith.constant 0 : index
    %178 = vector.load %arg9[%c0_50, %c0_51] : memref<1x128xf32, #tpu.memory_space<vmem>>, vector<1x128xf32>
    %c0_52 = arith.constant 0 : index
    %c0_53 = arith.constant 0 : index
    %179 = vector.load %arg10[%c0_52, %c0_53] : memref<1x128xf32, #tpu.memory_space<vmem>>, vector<1x128xf32>
    %cst_54 = arith.constant dense<0.000000e+00> : vector<16xf32>
    %180 = vector.multi_reduction <add>, %177, %cst_54 [1] : vector<16x128xf32> to vector<16xf32>
    %181 = vector.shape_cast %180 : vector<16xf32> to vector<16x1xf32>
    %cst_55 = arith.constant 1.280000e+02 : f32
    %182 = vector.broadcast %cst_55 : f32 to vector<16x1xf32>
    %183 = arith.divf %181, %182 : vector<16x1xf32>
    %184 = vector.broadcast %183 : vector<16x1xf32> to vector<16x128xf32>
    %185 = arith.subf %177, %184 : vector<16x128xf32>
    %186 = arith.mulf %185, %185 : vector<16x128xf32>
    %cst_56 = arith.constant dense<0.000000e+00> : vector<16xf32>
    %187 = vector.multi_reduction <add>, %186, %cst_56 [1] : vector<16x128xf32> to vector<16xf32>
    %188 = vector.shape_cast %187 : vector<16xf32> to vector<16x1xf32>
    %cst_57 = arith.constant 1.280000e+02 : f32
    %189 = vector.broadcast %cst_57 : f32 to vector<16x1xf32>
    %190 = arith.divf %188, %189 : vector<16x1xf32>
    %cst_58 = arith.constant 9.99999974E-6 : f32
    %191 = vector.broadcast %cst_58 : f32 to vector<16x1xf32>
    %192 = arith.addf %190, %191 : vector<16x1xf32>
    %193 = math.rsqrt %192 : vector<16x1xf32>
    %194 = vector.broadcast %193 : vector<16x1xf32> to vector<16x128xf32>
    %195 = arith.mulf %185, %194 : vector<16x128xf32>
    %196 = vector.broadcast %178 : vector<1x128xf32> to vector<16x128xf32>
    %197 = arith.mulf %195, %196 : vector<16x128xf32>
    %198 = vector.broadcast %179 : vector<1x128xf32> to vector<16x128xf32>
    %199 = arith.addf %197, %198 : vector<16x128xf32>
    %c0_59 = arith.constant 0 : index
    %c0_60 = arith.constant 0 : index
    %200 = vector.load %arg2[%c0_59, %c0_60] : memref<2x128xf32, #tpu.memory_space<vmem>>, vector<2x128xf32>
    %201 = arith.truncf %200 : vector<2x128xf32> to vector<2x128xbf16>
    %c0_61 = arith.constant 0 : index
    %c0_62 = arith.constant 0 : index
    %202 = vector.load %arg11[%c0_61, %c0_62] : memref<128x128xbf16, #tpu.memory_space<vmem>>, vector<128x128xbf16>
    %cst_63 = arith.constant dense<0.000000e+00> : vector<2x128xf32>
    %203 = tpu.matmul %201, %202, %cst_63 {dimension_numbers = #tpu.dot_dimension_numbers<[1], [0], [0], [1], [0, 0, 1, 1], [], []>} : vector<2x128xbf16>, vector<128x128xbf16>, vector<2x128xf32> -> vector<2x128xf32>
    %c0_64 = arith.constant 0 : index
    %c0_65 = arith.constant 0 : index
    %204 = vector.load %arg12[%c0_64, %c0_65] : memref<1x128xf32, #tpu.memory_space<vmem>>, vector<1x128xf32>
    %205 = vector.broadcast %204 : vector<1x128xf32> to vector<2x128xf32>
    %206 = arith.addf %203, %205 : vector<2x128xf32>
    %207 = arith.truncf %206 : vector<2x128xf32> to vector<2x128xbf16>
    %c0_66 = arith.constant 0 : index
    %c0_67 = arith.constant 0 : index
    %208 = vector.load %arg13[%c0_66, %c0_67] : memref<128x128xbf16, #tpu.memory_space<vmem>>, vector<128x128xbf16>
    %cst_68 = arith.constant dense<0.000000e+00> : vector<2x128xf32>
    %209 = tpu.matmul %207, %208, %cst_68 {dimension_numbers = #tpu.dot_dimension_numbers<[1], [0], [0], [1], [0, 0, 1, 1], [], []>} : vector<2x128xbf16>, vector<128x128xbf16>, vector<2x128xf32> -> vector<2x128xf32>
    %c0_69 = arith.constant 0 : index
    %c0_70 = arith.constant 0 : index
    %210 = vector.load %arg14[%c0_69, %c0_70] : memref<1x128xf32, #tpu.memory_space<vmem>>, vector<1x128xf32>
    %211 = vector.broadcast %210 : vector<1x128xf32> to vector<2x128xf32>
    %212 = arith.addf %209, %211 : vector<2x128xf32>
    %213 = vector.shape_cast %199 : vector<16x128xf32> to vector<2x8x128xf32>
    %214 = vector.shape_cast %212 : vector<2x128xf32> to vector<2x1x128xf32>
    %215 = vector.broadcast %214 : vector<2x1x128xf32> to vector<2x8x128xf32>
    %216 = arith.addf %213, %215 : vector<2x8x128xf32>
    %217 = vector.shape_cast %216 : vector<2x8x128xf32> to vector<16x128xf32>
    %c0_71 = arith.constant 0 : index
    %c0_72 = arith.constant 0 : index
    %218 = vector.load %arg15[%c0_71, %c0_72] : memref<1x128xf32, #tpu.memory_space<vmem>>, vector<1x128xf32>
    %c0_73 = arith.constant 0 : index
    %c0_74 = arith.constant 0 : index
    %219 = vector.load %arg16[%c0_73, %c0_74] : memref<1x128xf32, #tpu.memory_space<vmem>>, vector<1x128xf32>
    %cst_75 = arith.constant dense<0.000000e+00> : vector<16xf32>
    %220 = vector.multi_reduction <add>, %217, %cst_75 [1] : vector<16x128xf32> to vector<16xf32>
    %221 = vector.shape_cast %220 : vector<16xf32> to vector<16x1xf32>
    %cst_76 = arith.constant 1.280000e+02 : f32
    %222 = vector.broadcast %cst_76 : f32 to vector<16x1xf32>
    %223 = arith.divf %221, %222 : vector<16x1xf32>
    %224 = vector.broadcast %223 : vector<16x1xf32> to vector<16x128xf32>
    %225 = arith.subf %217, %224 : vector<16x128xf32>
    %226 = arith.mulf %225, %225 : vector<16x128xf32>
    %cst_77 = arith.constant dense<0.000000e+00> : vector<16xf32>
    %227 = vector.multi_reduction <add>, %226, %cst_77 [1] : vector<16x128xf32> to vector<16xf32>
    %228 = vector.shape_cast %227 : vector<16xf32> to vector<16x1xf32>
    %cst_78 = arith.constant 1.280000e+02 : f32
    %229 = vector.broadcast %cst_78 : f32 to vector<16x1xf32>
    %230 = arith.divf %228, %229 : vector<16x1xf32>
    %cst_79 = arith.constant 9.99999974E-6 : f32
    %231 = vector.broadcast %cst_79 : f32 to vector<16x1xf32>
    %232 = arith.addf %230, %231 : vector<16x1xf32>
    %233 = math.rsqrt %232 : vector<16x1xf32>
    %234 = vector.broadcast %233 : vector<16x1xf32> to vector<16x128xf32>
    %235 = arith.mulf %225, %234 : vector<16x128xf32>
    %236 = vector.broadcast %218 : vector<1x128xf32> to vector<16x128xf32>
    %237 = arith.mulf %235, %236 : vector<16x128xf32>
    %238 = vector.broadcast %219 : vector<1x128xf32> to vector<16x128xf32>
    %239 = arith.addf %237, %238 : vector<16x128xf32>
    %240 = arith.truncf %239 : vector<16x128xf32> to vector<16x128xbf16>
    %c0_80 = arith.constant 0 : index
    %c0_81 = arith.constant 0 : index
    %241 = vector.load %arg17[%c0_80, %c0_81] : memref<128x2048xbf16, #tpu.memory_space<vmem>>, vector<128x2048xbf16>
    %cst_82 = arith.constant dense<0.000000e+00> : vector<16x2048xf32>
    %242 = tpu.matmul %240, %241, %cst_82 {dimension_numbers = #tpu.dot_dimension_numbers<[1], [0], [0], [1], [0, 0, 1, 1], [], []>} : vector<16x128xbf16>, vector<128x2048xbf16>, vector<16x2048xf32> -> vector<16x2048xf32>
    %c0_83 = arith.constant 0 : index
    %c0_84 = arith.constant 0 : index
    %243 = vector.load %arg18[%c0_83, %c0_84] : memref<1x2048xf32, #tpu.memory_space<vmem>>, vector<1x2048xf32>
    %244 = vector.broadcast %243 : vector<1x2048xf32> to vector<16x2048xf32>
    %245 = arith.addf %242, %244 : vector<16x2048xf32>
    %cst_85 = arith.constant 0.000000e+00 : f32
    %246 = vector.broadcast %cst_85 : f32 to vector<16x2048xf32>
    %247 = arith.maximumf %245, %246 : vector<16x2048xf32>
    %248 = arith.truncf %247 : vector<16x2048xf32> to vector<16x2048xbf16>
    %c0_86 = arith.constant 0 : index
    %c0_87 = arith.constant 0 : index
    %249 = vector.load %arg19[%c0_86, %c0_87] : memref<2048x128xbf16, #tpu.memory_space<vmem>>, vector<2048x128xbf16>
    %cst_88 = arith.constant dense<0.000000e+00> : vector<16x128xf32>
    %250 = tpu.matmul %248, %249, %cst_88 {dimension_numbers = #tpu.dot_dimension_numbers<[1], [0], [0], [1], [0, 0, 1, 1], [], []>} : vector<16x2048xbf16>, vector<2048x128xbf16>, vector<16x128xf32> -> vector<16x128xf32>
    %c0_89 = arith.constant 0 : index
    %c0_90 = arith.constant 0 : index
    %251 = vector.load %arg20[%c0_89, %c0_90] : memref<1x128xf32, #tpu.memory_space<vmem>>, vector<1x128xf32>
    %252 = vector.broadcast %251 : vector<1x128xf32> to vector<16x128xf32>
    %253 = arith.addf %250, %252 : vector<16x128xf32>
    %254 = arith.addf %239, %253 : vector<16x128xf32>
    %c0_91 = arith.constant 0 : index
    %c0_92 = arith.constant 0 : index
    %255 = vector.load %arg21[%c0_91, %c0_92] : memref<1x128xf32, #tpu.memory_space<vmem>>, vector<1x128xf32>
    %c0_93 = arith.constant 0 : index
    %c0_94 = arith.constant 0 : index
    %256 = vector.load %arg22[%c0_93, %c0_94] : memref<1x128xf32, #tpu.memory_space<vmem>>, vector<1x128xf32>
    %cst_95 = arith.constant dense<0.000000e+00> : vector<16xf32>
    %257 = vector.multi_reduction <add>, %254, %cst_95 [1] : vector<16x128xf32> to vector<16xf32>
    %258 = vector.shape_cast %257 : vector<16xf32> to vector<16x1xf32>
    %cst_96 = arith.constant 1.280000e+02 : f32
    %259 = vector.broadcast %cst_96 : f32 to vector<16x1xf32>
    %260 = arith.divf %258, %259 : vector<16x1xf32>
    %261 = vector.broadcast %260 : vector<16x1xf32> to vector<16x128xf32>
    %262 = arith.subf %254, %261 : vector<16x128xf32>
    %263 = arith.mulf %262, %262 : vector<16x128xf32>
    %cst_97 = arith.constant dense<0.000000e+00> : vector<16xf32>
    %264 = vector.multi_reduction <add>, %263, %cst_97 [1] : vector<16x128xf32> to vector<16xf32>
    %265 = vector.shape_cast %264 : vector<16xf32> to vector<16x1xf32>
    %cst_98 = arith.constant 1.280000e+02 : f32
    %266 = vector.broadcast %cst_98 : f32 to vector<16x1xf32>
    %267 = arith.divf %265, %266 : vector<16x1xf32>
    %cst_99 = arith.constant 9.99999974E-6 : f32
    %268 = vector.broadcast %cst_99 : f32 to vector<16x1xf32>
    %269 = arith.addf %267, %268 : vector<16x1xf32>
    %270 = math.rsqrt %269 : vector<16x1xf32>
    %271 = vector.broadcast %270 : vector<16x1xf32> to vector<16x128xf32>
    %272 = arith.mulf %262, %271 : vector<16x128xf32>
    %273 = vector.broadcast %255 : vector<1x128xf32> to vector<16x128xf32>
    %274 = arith.mulf %272, %273 : vector<16x128xf32>
    %275 = vector.broadcast %256 : vector<1x128xf32> to vector<16x128xf32>
    %276 = arith.addf %274, %275 : vector<16x128xf32>
    %277 = arith.truncf %276 : vector<16x128xf32> to vector<16x128xbf16>
    %c0_100 = arith.constant 0 : index
    %c0_101 = arith.constant 0 : index
    %278 = vector.load %arg23[%c0_100, %c0_101] : memref<16x128xbf16, #tpu.memory_space<vmem>>, vector<16x128xbf16>
    tpu.vector_store %arg23[%c0_100, %c0_101], %277 {strides = array<i32>} : memref<16x128xbf16, #tpu.memory_space<vmem>>, vector<16x128xbf16>,
    return
  }
  func.func @transform_0(%arg0: i32) -> (i32, i32) {
    %c0_i32 = arith.constant 0 : i32
    %c0_i32_0 = arith.constant 0 : i32
    return %arg0, %c0_i32 : i32, i32
  }
  func.func @transform_1(%arg0: i32) -> (i32, i32) {
    %c0_i32 = arith.constant 0 : i32
    %c0_i32_0 = arith.constant 0 : i32
    return %arg0, %c0_i32 : i32, i32
  }
  func.func @transform_2(%arg0: i32) -> (i32, i32) {
    %c0_i32 = arith.constant 0 : i32
    %c0_i32_0 = arith.constant 0 : i32
    %c0_i32_1 = arith.constant 0 : i32
    return %c0_i32, %c0_i32_0 : i32, i32
  }
  func.func @transform_3(%arg0: i32) -> (i32, i32) {
    %c0_i32 = arith.constant 0 : i32
    %c0_i32_0 = arith.constant 0 : i32
    %c0_i32_1 = arith.constant 0 : i32
    return %c0_i32, %c0_i32_0 : i32, i32
  }
  func.func @transform_4(%arg0: i32) -> (i32, i32) {
    %c0_i32 = arith.constant 0 : i32
    %c0_i32_0 = arith.constant 0 : i32
    %c0_i32_1 = arith.constant 0 : i32
    return %c0_i32, %c0_i32_0 : i32, i32
  }
  func.func @transform_5(%arg0: i32) -> (i32, i32) {
    %c0_i32 = arith.constant 0 : i32
    %c0_i32_0 = arith.constant 0 : i32
    %c0_i32_1 = arith.constant 0 : i32
    return %c0_i32, %c0_i32_0 : i32, i32
  }
  func.func @transform_6(%arg0: i32) -> (i32, i32) {
    %c0_i32 = arith.constant 0 : i32
    %c0_i32_0 = arith.constant 0 : i32
    %c0_i32_1 = arith.constant 0 : i32
    return %c0_i32, %c0_i32_0 : i32, i32
  }
  func.func @transform_7(%arg0: i32) -> (i32, i32) {
    %c0_i32 = arith.constant 0 : i32
    %c0_i32_0 = arith.constant 0 : i32
    %c0_i32_1 = arith.constant 0 : i32
    return %c0_i32, %c0_i32_0 : i32, i32
  }
  func.func @transform_8(%arg0: i32) -> (i32, i32) {
    %c0_i32 = arith.constant 0 : i32
    %c0_i32_0 = arith.constant 0 : i32
    %c0_i32_1 = arith.constant 0 : i32
    return %c0_i32, %c0_i32_0 : i32, i32
  }
  func.func @transform_9(%arg0: i32) -> (i32, i32) {
    %c0_i32 = arith.constant 0 : i32
    %c0_i32_0 = arith.constant 0 : i32
    %c0_i32_1 = arith.constant 0 : i32
    return %c0_i32, %c0_i32_0 : i32, i32
  }
  func.func @transform_10(%arg0: i32) -> (i32, i32) {
    %c0_i32 = arith.constant 0 : i32
    %c0_i32_0 = arith.constant 0 : i32
    %c0_i32_1 = arith.constant 0 : i32
    return %c0_i32, %c0_i32_0 : i32, i32
  }
  func.func @transform_11(%arg0: i32) -> (i32, i32) {
    %c0_i32 = arith.constant 0 : i32
    %c0_i32_0 = arith.constant 0 : i32
    %c0_i32_1 = arith.constant 0 : i32
    return %c0_i32, %c0_i32_0 : i32, i32
  }
  func.func @transform_12(%arg0: i32) -> (i32, i32) {
    %c0_i32 = arith.constant 0 : i32
    %c0_i32_0 = arith.constant 0 : i32
    %c0_i32_1 = arith.constant 0 : i32
    return %c0_i32, %c0_i32_0 : i32, i32
  }
  func.func @transform_13(%arg0: i32) -> (i32, i32) {
    %c0_i32 = arith.constant 0 : i32
    %c0_i32_0 = arith.constant 0 : i32
    %c0_i32_1 = arith.constant 0 : i32
    return %c0_i32, %c0_i32_0 : i32, i32
  }
  func.func @transform_14(%arg0: i32) -> (i32, i32) {
    %c0_i32 = arith.constant 0 : i32
    %c0_i32_0 = arith.constant 0 : i32
    %c0_i32_1 = arith.constant 0 : i32
    return %c0_i32, %c0_i32_0 : i32, i32
  }
  func.func @transform_15(%arg0: i32) -> (i32, i32) {
    %c0_i32 = arith.constant 0 : i32
    %c0_i32_0 = arith.constant 0 : i32
    %c0_i32_1 = arith.constant 0 : i32
    return %c0_i32, %c0_i32_0 : i32, i32
  }
  func.func @transform_16(%arg0: i32) -> (i32, i32) {
    %c0_i32 = arith.constant 0 : i32
    %c0_i32_0 = arith.constant 0 : i32
    %c0_i32_1 = arith.constant 0 : i32
    return %c0_i32, %c0_i32_0 : i32, i32
  }
  func.func @transform_17(%arg0: i32) -> (i32, i32) {
    %c0_i32 = arith.constant 0 : i32
    %c0_i32_0 = arith.constant 0 : i32
    %c0_i32_1 = arith.constant 0 : i32
    return %c0_i32, %c0_i32_0 : i32, i32
  }
  func.func @transform_18(%arg0: i32) -> (i32, i32) {
    %c0_i32 = arith.constant 0 : i32
    %c0_i32_0 = arith.constant 0 : i32
    %c0_i32_1 = arith.constant 0 : i32
    return %c0_i32, %c0_i32_0 : i32, i32
  }
  func.func @transform_19(%arg0: i32) -> (i32, i32) {
    %c0_i32 = arith.constant 0 : i32
    %c0_i32_0 = arith.constant 0 : i32
    %c0_i32_1 = arith.constant 0 : i32
    return %c0_i32, %c0_i32_0 : i32, i32
  }
  func.func @transform_20(%arg0: i32) -> (i32, i32) {
    %c0_i32 = arith.constant 0 : i32
    %c0_i32_0 = arith.constant 0 : i32
    %c0_i32_1 = arith.constant 0 : i32
    return %c0_i32, %c0_i32_0 : i32, i32
  }
  func.func @transform_21(%arg0: i32) -> (i32, i32) {
    %c0_i32 = arith.constant 0 : i32
    %c0_i32_0 = arith.constant 0 : i32
    %c0_i32_1 = arith.constant 0 : i32
    return %c0_i32, %c0_i32_0 : i32, i32
  }
  func.func @transform_22(%arg0: i32) -> (i32, i32) {
    %c0_i32 = arith.constant 0 : i32
    %c0_i32_0 = arith.constant 0 : i32
    return %arg0, %c0_i32 : i32, i32
  }
}

module attributes {stable_mosaic.version = 11 : i64} {
  func.func @_decoder_layer_kernel(%arg0: i32, %arg1: memref<16x128xf32, #tpu.memory_space<vmem>>, %arg2: memref<2x128xf32, #tpu.memory_space<vmem>>, %arg3: memref<1x128xf32, #tpu.memory_space<vmem>>, %arg4: memref<1x128xf32, #tpu.memory_space<vmem>>, %arg5: memref<128x384xbf16, #tpu.memory_space<vmem>>, %arg6: memref<1x384xf32, #tpu.memory_space<vmem>>, %arg7: memref<128x128xbf16, #tpu.memory_space<vmem>>, %arg8: memref<1x128xf32, #tpu.memory_space<vmem>>, %arg9: memref<1x128xf32, #tpu.memory_space<vmem>>, %arg10: memref<1x128xf32, #tpu.memory_space<vmem>>, %arg11: memref<128x128xbf16, #tpu.memory_space<vmem>>, %arg12: memref<1x128xf32, #tpu.memory_space<vmem>>, %arg13: memref<128x128xbf16, #tpu.memory_space<vmem>>, %arg14: memref<1x128xf32, #tpu.memory_space<vmem>>, %arg15: memref<1x128xf32, #tpu.memory_space<vmem>>, %arg16: memref<1x128xf32, #tpu.memory_space<vmem>>, %arg17: memref<128x2048xbf16, #tpu.memory_space<vmem>>, %arg18: memref<1x2048xf32, #tpu.memory_space<vmem>>, %arg19: memref<2048x128xbf16, #tpu.memory_space<vmem>>, %arg20: memref<1x128xf32, #tpu.memory_space<vmem>>, %arg21: memref<1x128xf32, #tpu.memory_space<vmem>>, %arg22: memref<1x128xf32, #tpu.memory_space<vmem>>, %arg23: memref<16x128xbf16, #tpu.memory_space<vmem>>) attributes {dimension_semantics = [#tpu.dimension_semantics<parallel>], iteration_bounds = array<i64: 1>, scalar_prefetch = 0 : i64, scratch_operands = 0 : i64, tpu.core_type = #tpu.core_type<tc>, window_params = [{transform_indices = @transform_0, window_bounds = array<i64: 16, 128>}, {transform_indices = @transform_1, window_bounds = array<i64: 2, 128>}, {pipeline_mode = #tpu.pipeline_mode<synchronous>, transform_indices = @transform_2, window_bounds = array<i64: 1, 128>}, {pipeline_mode = #tpu.pipeline_mode<synchronous>, transform_indices = @transform_3, window_bounds = array<i64: 1, 128>}, {pipeline_mode = #tpu.pipeline_mode<synchronous>, transform_indices = @transform_4, window_bounds = array<i64: 128, 384>}, {pipeline_mode = #tpu.pipeline_mode<synchronous>, transform_indices = @transform_5, window_bounds = array<i64: 1, 384>}, {pipeline_mode = #tpu.pipeline_mode<synchronous>, transform_indices = @transform_6, window_bounds = array<i64: 128, 128>}, {pipeline_mode = #tpu.pipeline_mode<synchronous>, transform_indices = @transform_7, window_bounds = array<i64: 1, 128>}, {pipeline_mode = #tpu.pipeline_mode<synchronous>, transform_indices = @transform_8, window_bounds = array<i64: 1, 128>}, {pipeline_mode = #tpu.pipeline_mode<synchronous>, transform_indices = @transform_9, window_bounds = array<i64: 1, 128>}, {pipeline_mode = #tpu.pipeline_mode<synchronous>, transform_indices = @transform_10, window_bounds = array<i64: 128, 128>}, {pipeline_mode = #tpu.pipeline_mode<synchronous>, transform_indices = @transform_11, window_bounds = array<i64: 1, 128>}, {pipeline_mode = #tpu.pipeline_mode<synchronous>, transform_indices = @transform_12, window_bounds = array<i64: 128, 128>}, {pipeline_mode = #tpu.pipeline_mode<synchronous>, transform_indices = @transform_13, window_bounds = array<i64: 1, 128>}, {pipeline_mode = #tpu.pipeline_mode<synchronous>, transform_indices = @transform_14, window_bounds = array<i64: 1, 128>}, {pipeline_mode = #tpu.pipeline_mode<synchronous>, transform_indices = @transform_15, window_bounds = array<i64: 1, 128>}, {pipeline_mode = #tpu.pipeline_mode<synchronous>, transform_indices = @transform_16, window_bounds = array<i64: 128, 2048>}, {pipeline_mode = #tpu.pipeline_mode<synchronous>, transform_indices = @transform_17, window_bounds = array<i64: 1, 2048>}, {pipeline_mode = #tpu.pipeline_mode<synchronous>, transform_indices = @transform_18, window_bounds = array<i64: 2048, 128>}, {pipeline_mode = #tpu.pipeline_mode<synchronous>, transform_indices = @transform_19, window_bounds = array<i64: 1, 128>}, {pipeline_mode = #tpu.pipeline_mode<synchronous>, transform_indices = @transform_20, window_bounds = array<i64: 1, 128>}, {pipeline_mode = #tpu.pipeline_mode<synchronous>, transform_indices = @transform_21, window_bounds = array<i64: 1, 128>}, {transform_indices = @transform_22, window_bounds = array<i64: 16, 128>}]} {
    %c0 = arith.constant 0 : index
    %c0_0 = arith.constant 0 : index
    %0 = vector.load %arg1[%c0, %c0_0] : memref<16x128xf32, #tpu.memory_space<vmem>>, vector<16x128xf32>
    %c0_1 = arith.constant 0 : index
    %c0_2 = arith.constant 0 : index
    %1 = vector.load %arg3[%c0_1, %c0_2] : memref<1x128xf32, #tpu.memory_space<vmem>>, vector<1x128xf32>
    %c0_3 = arith.constant 0 : index
    %c0_4 = arith.constant 0 : index
    %2 = vector.load %arg4[%c0_3, %c0_4] : memref<1x128xf32, #tpu.memory_space<vmem>>, vector<1x128xf32>
    %cst = arith.constant dense<0.000000e+00> : vector<16xf32>
    %3 = vector.multi_reduction <add>, %0, %cst [1] : vector<16x128xf32> to vector<16xf32>
    %4 = vector.shape_cast %3 : vector<16xf32> to vector<16x1xf32>
    %cst_5 = arith.constant 1.280000e+02 : f32
    %5 = vector.broadcast %cst_5 : f32 to vector<16x1xf32>
    %6 = arith.divf %4, %5 : vector<16x1xf32>
    %7 = vector.broadcast %6 : vector<16x1xf32> to vector<16x128xf32>
    %8 = arith.subf %0, %7 : vector<16x128xf32>
    %9 = arith.mulf %8, %8 : vector<16x128xf32>
    %cst_6 = arith.constant dense<0.000000e+00> : vector<16xf32>
    %10 = vector.multi_reduction <add>, %9, %cst_6 [1] : vector<16x128xf32> to vector<16xf32>
    %11 = vector.shape_cast %10 : vector<16xf32> to vector<16x1xf32>
    %cst_7 = arith.constant 1.280000e+02 : f32
    %12 = vector.broadcast %cst_7 : f32 to vector<16x1xf32>
    %13 = arith.divf %11, %12 : vector<16x1xf32>
    %cst_8 = arith.constant 9.99999974E-6 : f32
    %14 = vector.broadcast %cst_8 : f32 to vector<16x1xf32>
    %15 = arith.addf %13, %14 : vector<16x1xf32>
    %16 = math.rsqrt %15 : vector<16x1xf32>
    %17 = vector.broadcast %16 : vector<16x1xf32> to vector<16x128xf32>
    %18 = arith.mulf %8, %17 : vector<16x128xf32>
    %19 = vector.broadcast %1 : vector<1x128xf32> to vector<16x128xf32>
    %20 = arith.mulf %18, %19 : vector<16x128xf32>
    %21 = vector.broadcast %2 : vector<1x128xf32> to vector<16x128xf32>
    %22 = arith.addf %20, %21 : vector<16x128xf32>
    %23 = arith.truncf %22 : vector<16x128xf32> to vector<16x128xbf16>
    %c0_9 = arith.constant 0 : index
    %c0_10 = arith.constant 0 : index
    %24 = vector.load %arg5[%c0_9, %c0_10] : memref<128x384xbf16, #tpu.memory_space<vmem>>, vector<128x384xbf16>
    %cst_11 = arith.constant dense<0.000000e+00> : vector<16x384xf32>
    %25 = tpu.matmul %23, %24, %cst_11 {dimension_numbers = #tpu.dot_dimension_numbers<[1], [0], [0], [1], [0, 0, 1, 1], [], []>} : vector<16x128xbf16>, vector<128x384xbf16>, vector<16x384xf32> -> vector<16x384xf32>
    %c0_12 = arith.constant 0 : index
    %c0_13 = arith.constant 0 : index
    %26 = vector.load %arg6[%c0_12, %c0_13] : memref<1x384xf32, #tpu.memory_space<vmem>>, vector<1x384xf32>
    %27 = vector.broadcast %26 : vector<1x384xf32> to vector<16x384xf32>
    %28 = arith.addf %25, %27 : vector<16x384xf32>
    %29 = vector.shape_cast %28 : vector<16x384xf32> to vector<2x8x384xf32>
    %30 = vector.extract_strided_slice %29 {offsets = [0, 0, 0], sizes = [2, 8, 16], strides = [1, 1, 1]} : vector<2x8x384xf32> to vector<2x8x16xf32>
    %31 = arith.truncf %30 : vector<2x8x16xf32> to vector<2x8x16xbf16>
    %32 = vector.extract_strided_slice %29 {offsets = [0, 0, 128], sizes = [2, 8, 16], strides = [1, 1, 1]} : vector<2x8x384xf32> to vector<2x8x16xf32>
    %33 = arith.truncf %32 : vector<2x8x16xf32> to vector<2x8x16xbf16>
    %34 = vector.extract_strided_slice %29 {offsets = [0, 0, 256], sizes = [2, 8, 16], strides = [1, 1, 1]} : vector<2x8x384xf32> to vector<2x8x16xf32>
    %35 = arith.truncf %34 : vector<2x8x16xf32> to vector<2x8x16xbf16>
    "tpu.trace_start"() <{level = 10 : i32, message = "bqd,bkd->bqk"}> : () -> ()
    %cst_14 = arith.constant dense<0.000000e+00> : vector<2x8x8xf32>
    %36 = tpu.matmul %31, %33, %cst_14 {dimension_numbers = #tpu.dot_dimension_numbers<[2], [2], [1], [1], [0, 0, 0, 1, 1, 1], [0], [0]>} : vector<2x8x16xbf16>, vector<2x8x16xbf16>, vector<2x8x8xf32> -> vector<2x8x8xf32>
    "tpu.trace_stop"() : () -> ()
    %cst_15 = arith.constant 2.500000e-01 : f32
    %37 = vector.broadcast %cst_15 : f32 to vector<2x8x8xf32>
    %38 = arith.mulf %36, %37 : vector<2x8x8xf32>
    %cst_16 = arith.constant dense<0xFF800000> : vector<2x8xf32>
    %39 = vector.multi_reduction <maximumf>, %38, %cst_16 [2] : vector<2x8x8xf32> to vector<2x8xf32>
    %40 = vector.shape_cast %39 : vector<2x8xf32> to vector<2x8x1xf32>
    %41 = vector.broadcast %40 : vector<2x8x1xf32> to vector<2x8x8xf32>
    %42 = arith.subf %38, %41 : vector<2x8x8xf32>
    %43 = math.exp %42 : vector<2x8x8xf32>
    %cst_17 = arith.constant dense<0.000000e+00> : vector<2x8xf32>
    %44 = vector.multi_reduction <add>, %43, %cst_17 [2] : vector<2x8x8xf32> to vector<2x8xf32>
    %45 = vector.shape_cast %44 : vector<2x8xf32> to vector<2x8x1xf32>
    %46 = vector.broadcast %45 : vector<2x8x1xf32> to vector<2x8x8xf32>
    %47 = arith.divf %43, %46 : vector<2x8x8xf32>
    %48 = arith.truncf %47 : vector<2x8x8xf32> to vector<2x8x8xbf16>
    "tpu.trace_start"() <{level = 10 : i32, message = "bqk,bkd->bqd"}> : () -> ()
    %cst_18 = arith.constant dense<0.000000e+00> : vector<2x8x16xf32>
    %49 = tpu.matmul %48, %35, %cst_18 {dimension_numbers = #tpu.dot_dimension_numbers<[2], [1], [1], [2], [0, 0, 0, 1, 1, 2], [0], [0]>} : vector<2x8x8xbf16>, vector<2x8x16xbf16>, vector<2x8x16xf32> -> vector<2x8x16xf32>
    "tpu.trace_stop"() : () -> ()
    %50 = vector.extract_strided_slice %29 {offsets = [0, 0, 16], sizes = [2, 8, 16], strides = [1, 1, 1]} : vector<2x8x384xf32> to vector<2x8x16xf32>
    %51 = arith.truncf %50 : vector<2x8x16xf32> to vector<2x8x16xbf16>
    %52 = vector.extract_strided_slice %29 {offsets = [0, 0, 144], sizes = [2, 8, 16], strides = [1, 1, 1]} : vector<2x8x384xf32> to vector<2x8x16xf32>
    %53 = arith.truncf %52 : vector<2x8x16xf32> to vector<2x8x16xbf16>
    %54 = vector.extract_strided_slice %29 {offsets = [0, 0, 272], sizes = [2, 8, 16], strides = [1, 1, 1]} : vector<2x8x384xf32> to vector<2x8x16xf32>
    %55 = arith.truncf %54 : vector<2x8x16xf32> to vector<2x8x16xbf16>
    "tpu.trace_start"() <{level = 10 : i32, message = "bqd,bkd->bqk"}> : () -> ()
    %cst_19 = arith.constant dense<0.000000e+00> : vector<2x8x8xf32>
    %56 = tpu.matmul %51, %53, %cst_19 {dimension_numbers = #tpu.dot_dimension_numbers<[2], [2], [1], [1], [0, 0, 0, 1, 1, 1], [0], [0]>} : vector<2x8x16xbf16>, vector<2x8x16xbf16>, vector<2x8x8xf32> -> vector<2x8x8xf32>
    "tpu.trace_stop"() : () -> ()
    %cst_20 = arith.constant 2.500000e-01 : f32
    %57 = vector.broadcast %cst_20 : f32 to vector<2x8x8xf32>
    %58 = arith.mulf %56, %57 : vector<2x8x8xf32>
    %cst_21 = arith.constant dense<0xFF800000> : vector<2x8xf32>
    %59 = vector.multi_reduction <maximumf>, %58, %cst_21 [2] : vector<2x8x8xf32> to vector<2x8xf32>
    %60 = vector.shape_cast %59 : vector<2x8xf32> to vector<2x8x1xf32>
    %61 = vector.broadcast %60 : vector<2x8x1xf32> to vector<2x8x8xf32>
    %62 = arith.subf %58, %61 : vector<2x8x8xf32>
    %63 = math.exp %62 : vector<2x8x8xf32>
    %cst_22 = arith.constant dense<0.000000e+00> : vector<2x8xf32>
    %64 = vector.multi_reduction <add>, %63, %cst_22 [2] : vector<2x8x8xf32> to vector<2x8xf32>
    %65 = vector.shape_cast %64 : vector<2x8xf32> to vector<2x8x1xf32>
    %66 = vector.broadcast %65 : vector<2x8x1xf32> to vector<2x8x8xf32>
    %67 = arith.divf %63, %66 : vector<2x8x8xf32>
    %68 = arith.truncf %67 : vector<2x8x8xf32> to vector<2x8x8xbf16>
    "tpu.trace_start"() <{level = 10 : i32, message = "bqk,bkd->bqd"}> : () -> ()
    %cst_23 = arith.constant dense<0.000000e+00> : vector<2x8x16xf32>
    %69 = tpu.matmul %68, %55, %cst_23 {dimension_numbers = #tpu.dot_dimension_numbers<[2], [1], [1], [2], [0, 0, 0, 1, 1, 2], [0], [0]>} : vector<2x8x8xbf16>, vector<2x8x16xbf16>, vector<2x8x16xf32> -> vector<2x8x16xf32>
    "tpu.trace_stop"() : () -> ()
    %70 = vector.extract_strided_slice %29 {offsets = [0, 0, 32], sizes = [2, 8, 16], strides = [1, 1, 1]} : vector<2x8x384xf32> to vector<2x8x16xf32>
    %71 = arith.truncf %70 : vector<2x8x16xf32> to vector<2x8x16xbf16>
    %72 = vector.extract_strided_slice %29 {offsets = [0, 0, 160], sizes = [2, 8, 16], strides = [1, 1, 1]} : vector<2x8x384xf32> to vector<2x8x16xf32>
    %73 = arith.truncf %72 : vector<2x8x16xf32> to vector<2x8x16xbf16>
    %74 = vector.extract_strided_slice %29 {offsets = [0, 0, 288], sizes = [2, 8, 16], strides = [1, 1, 1]} : vector<2x8x384xf32> to vector<2x8x16xf32>
    %75 = arith.truncf %74 : vector<2x8x16xf32> to vector<2x8x16xbf16>
    "tpu.trace_start"() <{level = 10 : i32, message = "bqd,bkd->bqk"}> : () -> ()
    %cst_24 = arith.constant dense<0.000000e+00> : vector<2x8x8xf32>
    %76 = tpu.matmul %71, %73, %cst_24 {dimension_numbers = #tpu.dot_dimension_numbers<[2], [2], [1], [1], [0, 0, 0, 1, 1, 1], [0], [0]>} : vector<2x8x16xbf16>, vector<2x8x16xbf16>, vector<2x8x8xf32> -> vector<2x8x8xf32>
    "tpu.trace_stop"() : () -> ()
    %cst_25 = arith.constant 2.500000e-01 : f32
    %77 = vector.broadcast %cst_25 : f32 to vector<2x8x8xf32>
    %78 = arith.mulf %76, %77 : vector<2x8x8xf32>
    %cst_26 = arith.constant dense<0xFF800000> : vector<2x8xf32>
    %79 = vector.multi_reduction <maximumf>, %78, %cst_26 [2] : vector<2x8x8xf32> to vector<2x8xf32>
    %80 = vector.shape_cast %79 : vector<2x8xf32> to vector<2x8x1xf32>
    %81 = vector.broadcast %80 : vector<2x8x1xf32> to vector<2x8x8xf32>
    %82 = arith.subf %78, %81 : vector<2x8x8xf32>
    %83 = math.exp %82 : vector<2x8x8xf32>
    %cst_27 = arith.constant dense<0.000000e+00> : vector<2x8xf32>
    %84 = vector.multi_reduction <add>, %83, %cst_27 [2] : vector<2x8x8xf32> to vector<2x8xf32>
    %85 = vector.shape_cast %84 : vector<2x8xf32> to vector<2x8x1xf32>
    %86 = vector.broadcast %85 : vector<2x8x1xf32> to vector<2x8x8xf32>
    %87 = arith.divf %83, %86 : vector<2x8x8xf32>
    %88 = arith.truncf %87 : vector<2x8x8xf32> to vector<2x8x8xbf16>
    "tpu.trace_start"() <{level = 10 : i32, message = "bqk,bkd->bqd"}> : () -> ()
    %cst_28 = arith.constant dense<0.000000e+00> : vector<2x8x16xf32>
    %89 = tpu.matmul %88, %75, %cst_28 {dimension_numbers = #tpu.dot_dimension_numbers<[2], [1], [1], [2], [0, 0, 0, 1, 1, 2], [0], [0]>} : vector<2x8x8xbf16>, vector<2x8x16xbf16>, vector<2x8x16xf32> -> vector<2x8x16xf32>
    "tpu.trace_stop"() : () -> ()
    %90 = vector.extract_strided_slice %29 {offsets = [0, 0, 48], sizes = [2, 8, 16], strides = [1, 1, 1]} : vector<2x8x384xf32> to vector<2x8x16xf32>
    %91 = arith.truncf %90 : vector<2x8x16xf32> to vector<2x8x16xbf16>
    %92 = vector.extract_strided_slice %29 {offsets = [0, 0, 176], sizes = [2, 8, 16], strides = [1, 1, 1]} : vector<2x8x384xf32> to vector<2x8x16xf32>
    %93 = arith.truncf %92 : vector<2x8x16xf32> to vector<2x8x16xbf16>
    %94 = vector.extract_strided_slice %29 {offsets = [0, 0, 304], sizes = [2, 8, 16], strides = [1, 1, 1]} : vector<2x8x384xf32> to vector<2x8x16xf32>
    %95 = arith.truncf %94 : vector<2x8x16xf32> to vector<2x8x16xbf16>
    "tpu.trace_start"() <{level = 10 : i32, message = "bqd,bkd->bqk"}> : () -> ()
    %cst_29 = arith.constant dense<0.000000e+00> : vector<2x8x8xf32>
    %96 = tpu.matmul %91, %93, %cst_29 {dimension_numbers = #tpu.dot_dimension_numbers<[2], [2], [1], [1], [0, 0, 0, 1, 1, 1], [0], [0]>} : vector<2x8x16xbf16>, vector<2x8x16xbf16>, vector<2x8x8xf32> -> vector<2x8x8xf32>
    "tpu.trace_stop"() : () -> ()
    %cst_30 = arith.constant 2.500000e-01 : f32
    %97 = vector.broadcast %cst_30 : f32 to vector<2x8x8xf32>
    %98 = arith.mulf %96, %97 : vector<2x8x8xf32>
    %cst_31 = arith.constant dense<0xFF800000> : vector<2x8xf32>
    %99 = vector.multi_reduction <maximumf>, %98, %cst_31 [2] : vector<2x8x8xf32> to vector<2x8xf32>
    %100 = vector.shape_cast %99 : vector<2x8xf32> to vector<2x8x1xf32>
    %101 = vector.broadcast %100 : vector<2x8x1xf32> to vector<2x8x8xf32>
    %102 = arith.subf %98, %101 : vector<2x8x8xf32>
    %103 = math.exp %102 : vector<2x8x8xf32>
    %cst_32 = arith.constant dense<0.000000e+00> : vector<2x8xf32>
    %104 = vector.multi_reduction <add>, %103, %cst_32 [2] : vector<2x8x8xf32> to vector<2x8xf32>
    %105 = vector.shape_cast %104 : vector<2x8xf32> to vector<2x8x1xf32>
    %106 = vector.broadcast %105 : vector<2x8x1xf32> to vector<2x8x8xf32>
    %107 = arith.divf %103, %106 : vector<2x8x8xf32>
    %108 = arith.truncf %107 : vector<2x8x8xf32> to vector<2x8x8xbf16>
    "tpu.trace_start"() <{level = 10 : i32, message = "bqk,bkd->bqd"}> : () -> ()
    %cst_33 = arith.constant dense<0.000000e+00> : vector<2x8x16xf32>
    %109 = tpu.matmul %108, %95, %cst_33 {dimension_numbers = #tpu.dot_dimension_numbers<[2], [1], [1], [2], [0, 0, 0, 1, 1, 2], [0], [0]>} : vector<2x8x8xbf16>, vector<2x8x16xbf16>, vector<2x8x16xf32> -> vector<2x8x16xf32>
    "tpu.trace_stop"() : () -> ()
    %110 = vector.extract_strided_slice %29 {offsets = [0, 0, 64], sizes = [2, 8, 16], strides = [1, 1, 1]} : vector<2x8x384xf32> to vector<2x8x16xf32>
    %111 = arith.truncf %110 : vector<2x8x16xf32> to vector<2x8x16xbf16>
    %112 = vector.extract_strided_slice %29 {offsets = [0, 0, 192], sizes = [2, 8, 16], strides = [1, 1, 1]} : vector<2x8x384xf32> to vector<2x8x16xf32>
    %113 = arith.truncf %112 : vector<2x8x16xf32> to vector<2x8x16xbf16>
    %114 = vector.extract_strided_slice %29 {offsets = [0, 0, 320], sizes = [2, 8, 16], strides = [1, 1, 1]} : vector<2x8x384xf32> to vector<2x8x16xf32>
    %115 = arith.truncf %114 : vector<2x8x16xf32> to vector<2x8x16xbf16>
    "tpu.trace_start"() <{level = 10 : i32, message = "bqd,bkd->bqk"}> : () -> ()
    %cst_34 = arith.constant dense<0.000000e+00> : vector<2x8x8xf32>
    %116 = tpu.matmul %111, %113, %cst_34 {dimension_numbers = #tpu.dot_dimension_numbers<[2], [2], [1], [1], [0, 0, 0, 1, 1, 1], [0], [0]>} : vector<2x8x16xbf16>, vector<2x8x16xbf16>, vector<2x8x8xf32> -> vector<2x8x8xf32>
    "tpu.trace_stop"() : () -> ()
    %cst_35 = arith.constant 2.500000e-01 : f32
    %117 = vector.broadcast %cst_35 : f32 to vector<2x8x8xf32>
    %118 = arith.mulf %116, %117 : vector<2x8x8xf32>
    %cst_36 = arith.constant dense<0xFF800000> : vector<2x8xf32>
    %119 = vector.multi_reduction <maximumf>, %118, %cst_36 [2] : vector<2x8x8xf32> to vector<2x8xf32>
    %120 = vector.shape_cast %119 : vector<2x8xf32> to vector<2x8x1xf32>
    %121 = vector.broadcast %120 : vector<2x8x1xf32> to vector<2x8x8xf32>
    %122 = arith.subf %118, %121 : vector<2x8x8xf32>
    %123 = math.exp %122 : vector<2x8x8xf32>
    %cst_37 = arith.constant dense<0.000000e+00> : vector<2x8xf32>
    %124 = vector.multi_reduction <add>, %123, %cst_37 [2] : vector<2x8x8xf32> to vector<2x8xf32>
    %125 = vector.shape_cast %124 : vector<2x8xf32> to vector<2x8x1xf32>
    %126 = vector.broadcast %125 : vector<2x8x1xf32> to vector<2x8x8xf32>
    %127 = arith.divf %123, %126 : vector<2x8x8xf32>
    %128 = arith.truncf %127 : vector<2x8x8xf32> to vector<2x8x8xbf16>
    "tpu.trace_start"() <{level = 10 : i32, message = "bqk,bkd->bqd"}> : () -> ()
    %cst_38 = arith.constant dense<0.000000e+00> : vector<2x8x16xf32>
    %129 = tpu.matmul %128, %115, %cst_38 {dimension_numbers = #tpu.dot_dimension_numbers<[2], [1], [1], [2], [0, 0, 0, 1, 1, 2], [0], [0]>} : vector<2x8x8xbf16>, vector<2x8x16xbf16>, vector<2x8x16xf32> -> vector<2x8x16xf32>
    "tpu.trace_stop"() : () -> ()
    %130 = vector.extract_strided_slice %29 {offsets = [0, 0, 80], sizes = [2, 8, 16], strides = [1, 1, 1]} : vector<2x8x384xf32> to vector<2x8x16xf32>
    %131 = arith.truncf %130 : vector<2x8x16xf32> to vector<2x8x16xbf16>
    %132 = vector.extract_strided_slice %29 {offsets = [0, 0, 208], sizes = [2, 8, 16], strides = [1, 1, 1]} : vector<2x8x384xf32> to vector<2x8x16xf32>
    %133 = arith.truncf %132 : vector<2x8x16xf32> to vector<2x8x16xbf16>
    %134 = vector.extract_strided_slice %29 {offsets = [0, 0, 336], sizes = [2, 8, 16], strides = [1, 1, 1]} : vector<2x8x384xf32> to vector<2x8x16xf32>
    %135 = arith.truncf %134 : vector<2x8x16xf32> to vector<2x8x16xbf16>
    "tpu.trace_start"() <{level = 10 : i32, message = "bqd,bkd->bqk"}> : () -> ()
    %cst_39 = arith.constant dense<0.000000e+00> : vector<2x8x8xf32>
    %136 = tpu.matmul %131, %133, %cst_39 {dimension_numbers = #tpu.dot_dimension_numbers<[2], [2], [1], [1], [0, 0, 0, 1, 1, 1], [0], [0]>} : vector<2x8x16xbf16>, vector<2x8x16xbf16>, vector<2x8x8xf32> -> vector<2x8x8xf32>
    "tpu.trace_stop"() : () -> ()
    %cst_40 = arith.constant 2.500000e-01 : f32
    %137 = vector.broadcast %cst_40 : f32 to vector<2x8x8xf32>
    %138 = arith.mulf %136, %137 : vector<2x8x8xf32>
    %cst_41 = arith.constant dense<0xFF800000> : vector<2x8xf32>
    %139 = vector.multi_reduction <maximumf>, %138, %cst_41 [2] : vector<2x8x8xf32> to vector<2x8xf32>
    %140 = vector.shape_cast %139 : vector<2x8xf32> to vector<2x8x1xf32>
    %141 = vector.broadcast %140 : vector<2x8x1xf32> to vector<2x8x8xf32>
    %142 = arith.subf %138, %141 : vector<2x8x8xf32>
    %143 = math.exp %142 : vector<2x8x8xf32>
    %cst_42 = arith.constant dense<0.000000e+00> : vector<2x8xf32>
    %144 = vector.multi_reduction <add>, %143, %cst_42 [2] : vector<2x8x8xf32> to vector<2x8xf32>
    %145 = vector.shape_cast %144 : vector<2x8xf32> to vector<2x8x1xf32>
    %146 = vector.broadcast %145 : vector<2x8x1xf32> to vector<2x8x8xf32>
    %147 = arith.divf %143, %146 : vector<2x8x8xf32>
    %148 = arith.truncf %147 : vector<2x8x8xf32> to vector<2x8x8xbf16>
    "tpu.trace_start"() <{level = 10 : i32, message = "bqk,bkd->bqd"}> : () -> ()
    %cst_43 = arith.constant dense<0.000000e+00> : vector<2x8x16xf32>
    %149 = tpu.matmul %148, %135, %cst_43 {dimension_numbers = #tpu.dot_dimension_numbers<[2], [1], [1], [2], [0, 0, 0, 1, 1, 2], [0], [0]>} : vector<2x8x8xbf16>, vector<2x8x16xbf16>, vector<2x8x16xf32> -> vector<2x8x16xf32>
    "tpu.trace_stop"() : () -> ()
    %150 = vector.extract_strided_slice %29 {offsets = [0, 0, 96], sizes = [2, 8, 16], strides = [1, 1, 1]} : vector<2x8x384xf32> to vector<2x8x16xf32>
    %151 = arith.truncf %150 : vector<2x8x16xf32> to vector<2x8x16xbf16>
    %152 = vector.extract_strided_slice %29 {offsets = [0, 0, 224], sizes = [2, 8, 16], strides = [1, 1, 1]} : vector<2x8x384xf32> to vector<2x8x16xf32>
    %153 = arith.truncf %152 : vector<2x8x16xf32> to vector<2x8x16xbf16>
    %154 = vector.extract_strided_slice %29 {offsets = [0, 0, 352], sizes = [2, 8, 16], strides = [1, 1, 1]} : vector<2x8x384xf32> to vector<2x8x16xf32>
    %155 = arith.truncf %154 : vector<2x8x16xf32> to vector<2x8x16xbf16>
    "tpu.trace_start"() <{level = 10 : i32, message = "bqd,bkd->bqk"}> : () -> ()
    %cst_44 = arith.constant dense<0.000000e+00> : vector<2x8x8xf32>
    %156 = tpu.matmul %151, %153, %cst_44 {dimension_numbers = #tpu.dot_dimension_numbers<[2], [2], [1], [1], [0, 0, 0, 1, 1, 1], [0], [0]>} : vector<2x8x16xbf16>, vector<2x8x16xbf16>, vector<2x8x8xf32> -> vector<2x8x8xf32>
    "tpu.trace_stop"() : () -> ()
    %cst_45 = arith.constant 2.500000e-01 : f32
    %157 = vector.broadcast %cst_45 : f32 to vector<2x8x8xf32>
    %158 = arith.mulf %156, %157 : vector<2x8x8xf32>
    %cst_46 = arith.constant dense<0xFF800000> : vector<2x8xf32>
    %159 = vector.multi_reduction <maximumf>, %158, %cst_46 [2] : vector<2x8x8xf32> to vector<2x8xf32>
    %160 = vector.shape_cast %159 : vector<2x8xf32> to vector<2x8x1xf32>
    %161 = vector.broadcast %160 : vector<2x8x1xf32> to vector<2x8x8xf32>
    %162 = arith.subf %158, %161 : vector<2x8x8xf32>
    %163 = math.exp %162 : vector<2x8x8xf32>
    %cst_47 = arith.constant dense<0.000000e+00> : vector<2x8xf32>
    %164 = vector.multi_reduction <add>, %163, %cst_47 [2] : vector<2x8x8xf32> to vector<2x8xf32>
    %165 = vector.shape_cast %164 : vector<2x8xf32> to vector<2x8x1xf32>
    %166 = vector.broadcast %165 : vector<2x8x1xf32> to vector<2x8x8xf32>
    %167 = arith.divf %163, %166 : vector<2x8x8xf32>
    %168 = arith.truncf %167 : vector<2x8x8xf32> to vector<2x8x8xbf16>
    "tpu.trace_start"() <{level = 10 : i32, message = "bqk,bkd->bqd"}> : () -> ()
    %cst_48 = arith.constant dense<0.000000e+00> : vector<2x8x16xf32>
    %169 = tpu.matmul %168, %155, %cst_48 {dimension_numbers = #tpu.dot_dimension_numbers<[2], [1], [1], [2], [0, 0, 0, 1, 1, 2], [0], [0]>} : vector<2x8x8xbf16>, vector<2x8x16xbf16>, vector<2x8x16xf32> -> vector<2x8x16xf32>
    "tpu.trace_stop"() : () -> ()
    %170 = vector.extract_strided_slice %29 {offsets = [0, 0, 112], sizes = [2, 8, 16], strides = [1, 1, 1]} : vector<2x8x384xf32> to vector<2x8x16xf32>
    %171 = arith.truncf %170 : vector<2x8x16xf32> to vector<2x8x16xbf16>
    %172 = vector.extract_strided_slice %29 {offsets = [0, 0, 240], sizes = [2, 8, 16], strides = [1, 1, 1]} : vector<2x8x384xf32> to vector<2x8x16xf32>
    %173 = arith.truncf %172 : vector<2x8x16xf32> to vector<2x8x16xbf16>
    %174 = vector.extract_strided_slice %29 {offsets = [0, 0, 368], sizes = [2, 8, 16], strides = [1, 1, 1]} : vector<2x8x384xf32> to vector<2x8x16xf32>
    %175 = arith.truncf %174 : vector<2x8x16xf32> to vector<2x8x16xbf16>
    "tpu.trace_start"() <{level = 10 : i32, message = "bqd,bkd->bqk"}> : () -> ()
    %cst_49 = arith.constant dense<0.000000e+00> : vector<2x8x8xf32>
    %176 = tpu.matmul %171, %173, %cst_49 {dimension_numbers = #tpu.dot_dimension_numbers<[2], [2], [1], [1], [0, 0, 0, 1, 1, 1], [0], [0]>} : vector<2x8x16xbf16>, vector<2x8x16xbf16>, vector<2x8x8xf32> -> vector<2x8x8xf32>
    "tpu.trace_stop"() : () -> ()
    %cst_50 = arith.constant 2.500000e-01 : f32
    %177 = vector.broadcast %cst_50 : f32 to vector<2x8x8xf32>
    %178 = arith.mulf %176, %177 : vector<2x8x8xf32>
    %cst_51 = arith.constant dense<0xFF800000> : vector<2x8xf32>
    %179 = vector.multi_reduction <maximumf>, %178, %cst_51 [2] : vector<2x8x8xf32> to vector<2x8xf32>
    %180 = vector.shape_cast %179 : vector<2x8xf32> to vector<2x8x1xf32>
    %181 = vector.broadcast %180 : vector<2x8x1xf32> to vector<2x8x8xf32>
    %182 = arith.subf %178, %181 : vector<2x8x8xf32>
    %183 = math.exp %182 : vector<2x8x8xf32>
    %cst_52 = arith.constant dense<0.000000e+00> : vector<2x8xf32>
    %184 = vector.multi_reduction <add>, %183, %cst_52 [2] : vector<2x8x8xf32> to vector<2x8xf32>
    %185 = vector.shape_cast %184 : vector<2x8xf32> to vector<2x8x1xf32>
    %186 = vector.broadcast %185 : vector<2x8x1xf32> to vector<2x8x8xf32>
    %187 = arith.divf %183, %186 : vector<2x8x8xf32>
    %188 = arith.truncf %187 : vector<2x8x8xf32> to vector<2x8x8xbf16>
    "tpu.trace_start"() <{level = 10 : i32, message = "bqk,bkd->bqd"}> : () -> ()
    %cst_53 = arith.constant dense<0.000000e+00> : vector<2x8x16xf32>
    %189 = tpu.matmul %188, %175, %cst_53 {dimension_numbers = #tpu.dot_dimension_numbers<[2], [1], [1], [2], [0, 0, 0, 1, 1, 2], [0], [0]>} : vector<2x8x8xbf16>, vector<2x8x16xbf16>, vector<2x8x16xf32> -> vector<2x8x16xf32>
    "tpu.trace_stop"() : () -> ()
    %190 = tpu.concatenate %49, %69, %89, %109, %129, %149, %169, %189 in 2 : vector<2x8x16xf32>, vector<2x8x16xf32>, vector<2x8x16xf32>, vector<2x8x16xf32>, vector<2x8x16xf32>, vector<2x8x16xf32>, vector<2x8x16xf32>, vector<2x8x16xf32> -> vector<2x8x128xf32>
    %191 = vector.shape_cast %190 : vector<2x8x128xf32> to vector<16x128xf32>
    %192 = arith.truncf %191 : vector<16x128xf32> to vector<16x128xbf16>
    %c0_54 = arith.constant 0 : index
    %c0_55 = arith.constant 0 : index
    %193 = vector.load %arg7[%c0_54, %c0_55] : memref<128x128xbf16, #tpu.memory_space<vmem>>, vector<128x128xbf16>
    %cst_56 = arith.constant dense<0.000000e+00> : vector<16x128xf32>
    %194 = tpu.matmul %192, %193, %cst_56 {dimension_numbers = #tpu.dot_dimension_numbers<[1], [0], [0], [1], [0, 0, 1, 1], [], []>} : vector<16x128xbf16>, vector<128x128xbf16>, vector<16x128xf32> -> vector<16x128xf32>
    %c0_57 = arith.constant 0 : index
    %c0_58 = arith.constant 0 : index
    %195 = vector.load %arg8[%c0_57, %c0_58] : memref<1x128xf32, #tpu.memory_space<vmem>>, vector<1x128xf32>
    %196 = vector.broadcast %195 : vector<1x128xf32> to vector<16x128xf32>
    %197 = arith.addf %194, %196 : vector<16x128xf32>
    %198 = arith.addf %22, %197 : vector<16x128xf32>
    %c0_59 = arith.constant 0 : index
    %c0_60 = arith.constant 0 : index
    %199 = vector.load %arg9[%c0_59, %c0_60] : memref<1x128xf32, #tpu.memory_space<vmem>>, vector<1x128xf32>
    %c0_61 = arith.constant 0 : index
    %c0_62 = arith.constant 0 : index
    %200 = vector.load %arg10[%c0_61, %c0_62] : memref<1x128xf32, #tpu.memory_space<vmem>>, vector<1x128xf32>
    %cst_63 = arith.constant dense<0.000000e+00> : vector<16xf32>
    %201 = vector.multi_reduction <add>, %198, %cst_63 [1] : vector<16x128xf32> to vector<16xf32>
    %202 = vector.shape_cast %201 : vector<16xf32> to vector<16x1xf32>
    %cst_64 = arith.constant 1.280000e+02 : f32
    %203 = vector.broadcast %cst_64 : f32 to vector<16x1xf32>
    %204 = arith.divf %202, %203 : vector<16x1xf32>
    %205 = vector.broadcast %204 : vector<16x1xf32> to vector<16x128xf32>
    %206 = arith.subf %198, %205 : vector<16x128xf32>
    %207 = arith.mulf %206, %206 : vector<16x128xf32>
    %cst_65 = arith.constant dense<0.000000e+00> : vector<16xf32>
    %208 = vector.multi_reduction <add>, %207, %cst_65 [1] : vector<16x128xf32> to vector<16xf32>
    %209 = vector.shape_cast %208 : vector<16xf32> to vector<16x1xf32>
    %cst_66 = arith.constant 1.280000e+02 : f32
    %210 = vector.broadcast %cst_66 : f32 to vector<16x1xf32>
    %211 = arith.divf %209, %210 : vector<16x1xf32>
    %cst_67 = arith.constant 9.99999974E-6 : f32
    %212 = vector.broadcast %cst_67 : f32 to vector<16x1xf32>
    %213 = arith.addf %211, %212 : vector<16x1xf32>
    %214 = math.rsqrt %213 : vector<16x1xf32>
    %215 = vector.broadcast %214 : vector<16x1xf32> to vector<16x128xf32>
    %216 = arith.mulf %206, %215 : vector<16x128xf32>
    %217 = vector.broadcast %199 : vector<1x128xf32> to vector<16x128xf32>
    %218 = arith.mulf %216, %217 : vector<16x128xf32>
    %219 = vector.broadcast %200 : vector<1x128xf32> to vector<16x128xf32>
    %220 = arith.addf %218, %219 : vector<16x128xf32>
    %c0_68 = arith.constant 0 : index
    %c0_69 = arith.constant 0 : index
    %221 = vector.load %arg2[%c0_68, %c0_69] : memref<2x128xf32, #tpu.memory_space<vmem>>, vector<2x128xf32>
    %222 = arith.truncf %221 : vector<2x128xf32> to vector<2x128xbf16>
    %c0_70 = arith.constant 0 : index
    %c0_71 = arith.constant 0 : index
    %223 = vector.load %arg11[%c0_70, %c0_71] : memref<128x128xbf16, #tpu.memory_space<vmem>>, vector<128x128xbf16>
    %cst_72 = arith.constant dense<0.000000e+00> : vector<2x128xf32>
    %224 = tpu.matmul %222, %223, %cst_72 {dimension_numbers = #tpu.dot_dimension_numbers<[1], [0], [0], [1], [0, 0, 1, 1], [], []>} : vector<2x128xbf16>, vector<128x128xbf16>, vector<2x128xf32> -> vector<2x128xf32>
    %c0_73 = arith.constant 0 : index
    %c0_74 = arith.constant 0 : index
    %225 = vector.load %arg12[%c0_73, %c0_74] : memref<1x128xf32, #tpu.memory_space<vmem>>, vector<1x128xf32>
    %226 = vector.broadcast %225 : vector<1x128xf32> to vector<2x128xf32>
    %227 = arith.addf %224, %226 : vector<2x128xf32>
    %228 = arith.truncf %227 : vector<2x128xf32> to vector<2x128xbf16>
    %c0_75 = arith.constant 0 : index
    %c0_76 = arith.constant 0 : index
    %229 = vector.load %arg13[%c0_75, %c0_76] : memref<128x128xbf16, #tpu.memory_space<vmem>>, vector<128x128xbf16>
    %cst_77 = arith.constant dense<0.000000e+00> : vector<2x128xf32>
    %230 = tpu.matmul %228, %229, %cst_77 {dimension_numbers = #tpu.dot_dimension_numbers<[1], [0], [0], [1], [0, 0, 1, 1], [], []>} : vector<2x128xbf16>, vector<128x128xbf16>, vector<2x128xf32> -> vector<2x128xf32>
    %c0_78 = arith.constant 0 : index
    %c0_79 = arith.constant 0 : index
    %231 = vector.load %arg14[%c0_78, %c0_79] : memref<1x128xf32, #tpu.memory_space<vmem>>, vector<1x128xf32>
    %232 = vector.broadcast %231 : vector<1x128xf32> to vector<2x128xf32>
    %233 = arith.addf %230, %232 : vector<2x128xf32>
    %234 = vector.shape_cast %220 : vector<16x128xf32> to vector<2x8x128xf32>
    %235 = vector.shape_cast %233 : vector<2x128xf32> to vector<2x1x128xf32>
    %236 = vector.broadcast %235 : vector<2x1x128xf32> to vector<2x8x128xf32>
    %237 = arith.addf %234, %236 : vector<2x8x128xf32>
    %238 = vector.shape_cast %237 : vector<2x8x128xf32> to vector<16x128xf32>
    %c0_80 = arith.constant 0 : index
    %c0_81 = arith.constant 0 : index
    %239 = vector.load %arg15[%c0_80, %c0_81] : memref<1x128xf32, #tpu.memory_space<vmem>>, vector<1x128xf32>
    %c0_82 = arith.constant 0 : index
    %c0_83 = arith.constant 0 : index
    %240 = vector.load %arg16[%c0_82, %c0_83] : memref<1x128xf32, #tpu.memory_space<vmem>>, vector<1x128xf32>
    %cst_84 = arith.constant dense<0.000000e+00> : vector<16xf32>
    %241 = vector.multi_reduction <add>, %238, %cst_84 [1] : vector<16x128xf32> to vector<16xf32>
    %242 = vector.shape_cast %241 : vector<16xf32> to vector<16x1xf32>
    %cst_85 = arith.constant 1.280000e+02 : f32
    %243 = vector.broadcast %cst_85 : f32 to vector<16x1xf32>
    %244 = arith.divf %242, %243 : vector<16x1xf32>
    %245 = vector.broadcast %244 : vector<16x1xf32> to vector<16x128xf32>
    %246 = arith.subf %238, %245 : vector<16x128xf32>
    %247 = arith.mulf %246, %246 : vector<16x128xf32>
    %cst_86 = arith.constant dense<0.000000e+00> : vector<16xf32>
    %248 = vector.multi_reduction <add>, %247, %cst_86 [1] : vector<16x128xf32> to vector<16xf32>
    %249 = vector.shape_cast %248 : vector<16xf32> to vector<16x1xf32>
    %cst_87 = arith.constant 1.280000e+02 : f32
    %250 = vector.broadcast %cst_87 : f32 to vector<16x1xf32>
    %251 = arith.divf %249, %250 : vector<16x1xf32>
    %cst_88 = arith.constant 9.99999974E-6 : f32
    %252 = vector.broadcast %cst_88 : f32 to vector<16x1xf32>
    %253 = arith.addf %251, %252 : vector<16x1xf32>
    %254 = math.rsqrt %253 : vector<16x1xf32>
    %255 = vector.broadcast %254 : vector<16x1xf32> to vector<16x128xf32>
    %256 = arith.mulf %246, %255 : vector<16x128xf32>
    %257 = vector.broadcast %239 : vector<1x128xf32> to vector<16x128xf32>
    %258 = arith.mulf %256, %257 : vector<16x128xf32>
    %259 = vector.broadcast %240 : vector<1x128xf32> to vector<16x128xf32>
    %260 = arith.addf %258, %259 : vector<16x128xf32>
    %261 = arith.truncf %260 : vector<16x128xf32> to vector<16x128xbf16>
    %c0_89 = arith.constant 0 : index
    %c0_90 = arith.constant 0 : index
    %262 = vector.load %arg17[%c0_89, %c0_90] : memref<128x2048xbf16, #tpu.memory_space<vmem>>, vector<128x2048xbf16>
    %cst_91 = arith.constant dense<0.000000e+00> : vector<16x2048xf32>
    %263 = tpu.matmul %261, %262, %cst_91 {dimension_numbers = #tpu.dot_dimension_numbers<[1], [0], [0], [1], [0, 0, 1, 1], [], []>} : vector<16x128xbf16>, vector<128x2048xbf16>, vector<16x2048xf32> -> vector<16x2048xf32>
    %c0_92 = arith.constant 0 : index
    %c0_93 = arith.constant 0 : index
    %264 = vector.load %arg18[%c0_92, %c0_93] : memref<1x2048xf32, #tpu.memory_space<vmem>>, vector<1x2048xf32>
    %265 = vector.broadcast %264 : vector<1x2048xf32> to vector<16x2048xf32>
    %266 = arith.addf %263, %265 : vector<16x2048xf32>
    %cst_94 = arith.constant 0.000000e+00 : f32
    %267 = vector.broadcast %cst_94 : f32 to vector<16x2048xf32>
    %268 = arith.maximumf %266, %267 : vector<16x2048xf32>
    %269 = arith.truncf %268 : vector<16x2048xf32> to vector<16x2048xbf16>
    %c0_95 = arith.constant 0 : index
    %c0_96 = arith.constant 0 : index
    %270 = vector.load %arg19[%c0_95, %c0_96] : memref<2048x128xbf16, #tpu.memory_space<vmem>>, vector<2048x128xbf16>
    %cst_97 = arith.constant dense<0.000000e+00> : vector<16x128xf32>
    %271 = tpu.matmul %269, %270, %cst_97 {dimension_numbers = #tpu.dot_dimension_numbers<[1], [0], [0], [1], [0, 0, 1, 1], [], []>} : vector<16x2048xbf16>, vector<2048x128xbf16>, vector<16x128xf32> -> vector<16x128xf32>
    %c0_98 = arith.constant 0 : index
    %c0_99 = arith.constant 0 : index
    %272 = vector.load %arg20[%c0_98, %c0_99] : memref<1x128xf32, #tpu.memory_space<vmem>>, vector<1x128xf32>
    %273 = vector.broadcast %272 : vector<1x128xf32> to vector<16x128xf32>
    %274 = arith.addf %271, %273 : vector<16x128xf32>
    %275 = arith.addf %260, %274 : vector<16x128xf32>
    %c0_100 = arith.constant 0 : index
    %c0_101 = arith.constant 0 : index
    %276 = vector.load %arg21[%c0_100, %c0_101] : memref<1x128xf32, #tpu.memory_space<vmem>>, vector<1x128xf32>
    %c0_102 = arith.constant 0 : index
    %c0_103 = arith.constant 0 : index
    %277 = vector.load %arg22[%c0_102, %c0_103] : memref<1x128xf32, #tpu.memory_space<vmem>>, vector<1x128xf32>
    %cst_104 = arith.constant dense<0.000000e+00> : vector<16xf32>
    %278 = vector.multi_reduction <add>, %275, %cst_104 [1] : vector<16x128xf32> to vector<16xf32>
    %279 = vector.shape_cast %278 : vector<16xf32> to vector<16x1xf32>
    %cst_105 = arith.constant 1.280000e+02 : f32
    %280 = vector.broadcast %cst_105 : f32 to vector<16x1xf32>
    %281 = arith.divf %279, %280 : vector<16x1xf32>
    %282 = vector.broadcast %281 : vector<16x1xf32> to vector<16x128xf32>
    %283 = arith.subf %275, %282 : vector<16x128xf32>
    %284 = arith.mulf %283, %283 : vector<16x128xf32>
    %cst_106 = arith.constant dense<0.000000e+00> : vector<16xf32>
    %285 = vector.multi_reduction <add>, %284, %cst_106 [1] : vector<16x128xf32> to vector<16xf32>
    %286 = vector.shape_cast %285 : vector<16xf32> to vector<16x1xf32>
    %cst_107 = arith.constant 1.280000e+02 : f32
    %287 = vector.broadcast %cst_107 : f32 to vector<16x1xf32>
    %288 = arith.divf %286, %287 : vector<16x1xf32>
    %cst_108 = arith.constant 9.99999974E-6 : f32
    %289 = vector.broadcast %cst_108 : f32 to vector<16x1xf32>
    %290 = arith.addf %288, %289 : vector<16x1xf32>
    %291 = math.rsqrt %290 : vector<16x1xf32>
    %292 = vector.broadcast %291 : vector<16x1xf32> to vector<16x128xf32>
    %293 = arith.mulf %283, %292 : vector<16x128xf32>
    %294 = vector.broadcast %276 : vector<1x128xf32> to vector<16x128xf32>
    %295 = arith.mulf %293, %294 : vector<16x128xf32>
    %296 = vector.broadcast %277 : vector<1x128xf32> to vector<16x128xf32>
    %297 = arith.addf %295, %296 : vector<16x128xf32>
    %298 = arith.truncf %297 : vector<16x128xf32> to vector<16x128xbf16>
    %c0_109 = arith.constant 0 : index
    %c0_110 = arith.constant 0 : index
    %299 = vector.load %arg23[%c0_109, %c0_110] : memref<16x128xbf16, #tpu.memory_space<vmem>>, vector<16x128xbf16>
    tpu.vector_store %arg23[%c0_109, %c0_110], %298 {strides = array<i32>} : memref<16x128xbf16, #tpu.memory_space<vmem>>, vector<16x128xbf16>,
    return
  }
  func.func @transform_0(%arg0: i32) -> (i32, i32) {
    %c0_i32 = arith.constant 0 : i32
    %c0_i32_0 = arith.constant 0 : i32
    return %arg0, %c0_i32 : i32, i32
  }
  func.func @transform_1(%arg0: i32) -> (i32, i32) {
    %c0_i32 = arith.constant 0 : i32
    %c0_i32_0 = arith.constant 0 : i32
    return %arg0, %c0_i32 : i32, i32
  }
  func.func @transform_2(%arg0: i32) -> (i32, i32) {
    %c0_i32 = arith.constant 0 : i32
    %c0_i32_0 = arith.constant 0 : i32
    %c0_i32_1 = arith.constant 0 : i32
    return %c0_i32, %c0_i32_0 : i32, i32
  }
  func.func @transform_3(%arg0: i32) -> (i32, i32) {
    %c0_i32 = arith.constant 0 : i32
    %c0_i32_0 = arith.constant 0 : i32
    %c0_i32_1 = arith.constant 0 : i32
    return %c0_i32, %c0_i32_0 : i32, i32
  }
  func.func @transform_4(%arg0: i32) -> (i32, i32) {
    %c0_i32 = arith.constant 0 : i32
    %c0_i32_0 = arith.constant 0 : i32
    %c0_i32_1 = arith.constant 0 : i32
    return %c0_i32, %c0_i32_0 : i32, i32
  }
  func.func @transform_5(%arg0: i32) -> (i32, i32) {
    %c0_i32 = arith.constant 0 : i32
    %c0_i32_0 = arith.constant 0 : i32
    %c0_i32_1 = arith.constant 0 : i32
    return %c0_i32, %c0_i32_0 : i32, i32
  }
  func.func @transform_6(%arg0: i32) -> (i32, i32) {
    %c0_i32 = arith.constant 0 : i32
    %c0_i32_0 = arith.constant 0 : i32
    %c0_i32_1 = arith.constant 0 : i32
    return %c0_i32, %c0_i32_0 : i32, i32
  }
  func.func @transform_7(%arg0: i32) -> (i32, i32) {
    %c0_i32 = arith.constant 0 : i32
    %c0_i32_0 = arith.constant 0 : i32
    %c0_i32_1 = arith.constant 0 : i32
    return %c0_i32, %c0_i32_0 : i32, i32
  }
  func.func @transform_8(%arg0: i32) -> (i32, i32) {
    %c0_i32 = arith.constant 0 : i32
    %c0_i32_0 = arith.constant 0 : i32
    %c0_i32_1 = arith.constant 0 : i32
    return %c0_i32, %c0_i32_0 : i32, i32
  }
  func.func @transform_9(%arg0: i32) -> (i32, i32) {
    %c0_i32 = arith.constant 0 : i32
    %c0_i32_0 = arith.constant 0 : i32
    %c0_i32_1 = arith.constant 0 : i32
    return %c0_i32, %c0_i32_0 : i32, i32
  }
  func.func @transform_10(%arg0: i32) -> (i32, i32) {
    %c0_i32 = arith.constant 0 : i32
    %c0_i32_0 = arith.constant 0 : i32
    %c0_i32_1 = arith.constant 0 : i32
    return %c0_i32, %c0_i32_0 : i32, i32
  }
  func.func @transform_11(%arg0: i32) -> (i32, i32) {
    %c0_i32 = arith.constant 0 : i32
    %c0_i32_0 = arith.constant 0 : i32
    %c0_i32_1 = arith.constant 0 : i32
    return %c0_i32, %c0_i32_0 : i32, i32
  }
  func.func @transform_12(%arg0: i32) -> (i32, i32) {
    %c0_i32 = arith.constant 0 : i32
    %c0_i32_0 = arith.constant 0 : i32
    %c0_i32_1 = arith.constant 0 : i32
    return %c0_i32, %c0_i32_0 : i32, i32
  }
  func.func @transform_13(%arg0: i32) -> (i32, i32) {
    %c0_i32 = arith.constant 0 : i32
    %c0_i32_0 = arith.constant 0 : i32
    %c0_i32_1 = arith.constant 0 : i32
    return %c0_i32, %c0_i32_0 : i32, i32
  }
  func.func @transform_14(%arg0: i32) -> (i32, i32) {
    %c0_i32 = arith.constant 0 : i32
    %c0_i32_0 = arith.constant 0 : i32
    %c0_i32_1 = arith.constant 0 : i32
    return %c0_i32, %c0_i32_0 : i32, i32
  }
  func.func @transform_15(%arg0: i32) -> (i32, i32) {
    %c0_i32 = arith.constant 0 : i32
    %c0_i32_0 = arith.constant 0 : i32
    %c0_i32_1 = arith.constant 0 : i32
    return %c0_i32, %c0_i32_0 : i32, i32
  }
  func.func @transform_16(%arg0: i32) -> (i32, i32) {
    %c0_i32 = arith.constant 0 : i32
    %c0_i32_0 = arith.constant 0 : i32
    %c0_i32_1 = arith.constant 0 : i32
    return %c0_i32, %c0_i32_0 : i32, i32
  }
  func.func @transform_17(%arg0: i32) -> (i32, i32) {
    %c0_i32 = arith.constant 0 : i32
    %c0_i32_0 = arith.constant 0 : i32
    %c0_i32_1 = arith.constant 0 : i32
    return %c0_i32, %c0_i32_0 : i32, i32
  }
  func.func @transform_18(%arg0: i32) -> (i32, i32) {
    %c0_i32 = arith.constant 0 : i32
    %c0_i32_0 = arith.constant 0 : i32
    %c0_i32_1 = arith.constant 0 : i32
    return %c0_i32, %c0_i32_0 : i32, i32
  }
  func.func @transform_19(%arg0: i32) -> (i32, i32) {
    %c0_i32 = arith.constant 0 : i32
    %c0_i32_0 = arith.constant 0 : i32
    %c0_i32_1 = arith.constant 0 : i32
    return %c0_i32, %c0_i32_0 : i32, i32
  }
  func.func @transform_20(%arg0: i32) -> (i32, i32) {
    %c0_i32 = arith.constant 0 : i32
    %c0_i32_0 = arith.constant 0 : i32
    %c0_i32_1 = arith.constant 0 : i32
    return %c0_i32, %c0_i32_0 : i32, i32
  }
  func.func @transform_21(%arg0: i32) -> (i32, i32) {
    %c0_i32 = arith.constant 0 : i32
    %c0_i32_0 = arith.constant 0 : i32
    %c0_i32_1 = arith.constant 0 : i32
    return %c0_i32, %c0_i32_0 : i32, i32
  }
  func.func @transform_22(%arg0: i32) -> (i32, i32) {
    %c0_i32 = arith.constant 0 : i32
    %c0_i32_0 = arith.constant 0 : i32
    return %arg0, %c0_i32 : i32, i32
  }
}

</mosaic_0001>

<bundles_post_ra>
// kernel: decoder_forward.7
= control target key start
LH: loop header
LB: loop body
LE: loop exit
PB: predicated region body
PF: predicated region fallthrough
CT: control target
= control target key end

     0   :  { %v265_v2 = vmov 0   ;;  %s355_s0 = inlined_call_operand.vmem [shape: bf16[16,128], index: 0, kind: input, shape index: {}]   ;;  %s356_s1 = inlined_call_operand.vmem [shape: bf16[128,256], index: 1, kind: input, shape index: {}]   ;;  %s357_s2 = inlined_call_operand.vmem [shape: f32[1,256], index: 2, kind: input, shape index: {}]   ;;  %s358_s3 = inlined_call_operand.hbm [shape: f32[16,256], index: 3, kind: output, shape index: {}]  }
   0x1   :  { %v216_v0 = vld [vmem:[%s356_s1 + $0x4] ss:$8 sps:$4 sm:$0xff]   ;;  %v218_v1 = vld [vmem:[%s356_s1] ss:$8 sps:$4 sm:$0xff]   ;;  %164 = vmatprep.mubr.bf16.mxu0 %v265_v2  ;;  %v219_v3 = vld [vmem:[%s356_s1 + $0x14] ss:$8 sps:$4 sm:$0xff]  }
   0x2   :  { %132 = vmatprep.subr.bf16.mxu0 %v216_v0  ;;  %v221_v4 = vld [vmem:[%s356_s1 + $0x10] ss:$8 sps:$4 sm:$0xff]   ;;  %v222_v5 = vld [vmem:[%s356_s1 + $0x24] ss:$8 sps:$4 sm:$0xff]   ;;  %v224_v6 = vld [vmem:[%s356_s1 + $0x20] ss:$8 sps:$4 sm:$0xff]  }
   0x3   :  { %133 = vmatpush1.bf16.msra.mxu0 %v218_v1  ;;  %v225_v7 = vld [vmem:[%s356_s1 + $0x34] ss:$8 sps:$4 sm:$0xff]   ;;  %v227_v8 = vld [vmem:[%s356_s1 + $0x30] ss:$8 sps:$4 sm:$0xff]   ;;  %v228_v9 = vld [vmem:[%s356_s1 + $0x44] ss:$8 sps:$4 sm:$0xff]  }
   0x4   :  { %134 = vmatprep.subr.bf16.mxu0 %v219_v3 }
   0x7   :  { %135 = vmatpush1.bf16.msra.mxu0 %v221_v4 }
   0x8   :  { %136 = vmatprep.subr.bf16.mxu0 %v222_v5 }
   0xb   :  { %137 = vmatpush1.bf16.msra.mxu0 %v224_v6 }
   0xc   :  { %138 = vmatprep.subr.bf16.mxu0 %v225_v7 }
   0xd   :  { %8 = vsyncpa [#allocation3], 0  ;;  %v230_v10 = vld [vmem:[%s356_s1 + $0x40] ss:$8 sps:$4 sm:$0xff]   ;;  %v231_v11 = vld [vmem:[%s356_s1 + $0x54] ss:$8 sps:$4 sm:$0xff]   ;;  %v36_v18 = vlaneseq }
   0xe   :  { %v233_v12 = vld [vmem:[%s356_s1 + $0x50] ss:$8 sps:$4 sm:$0xff]   ;;  %v234_v13 = vld [vmem:[%s356_s1 + $0x64] ss:$8 sps:$4 sm:$0xff]   ;;  %v236_v14 = vld [vmem:[%s356_s1 + $0x60] ss:$8 sps:$4 sm:$0xff]  }
   0xf   :  { %139 = vmatpush1.bf16.msra.mxu0 %v227_v8  ;;  %v237_v15 = vld [vmem:[%s356_s1 + $0x74] ss:$8 sps:$4 sm:$0xff]   ;;  %v239_v16 = vld [vmem:[%s356_s1 + $0x70] ss:$8 sps:$4 sm:$0xff]   ;;  %v240_v17 = vld [vmem:[%s355_s0] sm:$0xff]   ;;  %v37_v19 = vshrl.u32 %v36_v18, 7 }
  0x10   :  { %140 = vmatprep.subr.bf16.mxu0 %v228_v9  ;;  %v34_v21 = vld [vmem:[%s357_s2] sm:$0x3]  ;;  %s266_s21 = smov [#allocation2]  }
  0x11   :  { %v38_v20 = vsub.s32 0, %v37_v19  ;;  %v42_v22 = vsub.s32 1, %v37_v19  ;;  %s184_s1 = sshll.u32 %s266_s21, 4  ;;  %s185_s1 = int_to_ptr.vmem [resolvable:$true] %s184_s1 }
  0x12   :  { %s241_s0 = scalar_lea.vmem %s185_s1, 512  ;;  %p246_p1 = scmp.lt.s32.totalorder %s185_s1, %s185_s1 }
  0x13   :  { %141 = vmatpush1.bf16.msra.mxu0 %v230_v10  ;;  %v39_v23 = vrot.slane %v34_v21, %v38_v20  ;;  %v43_v24 = vrot.slane %v34_v21, %v42_v22  ;;  %p242_p0 = scmp.ne.s32.totalorder %s185_s1, %s241_s0  ;;  %p247_p2 = scmp.lt.s32.totalorder %s241_s0, %s241_s0 }
  0x14   :  { %142 = vmatprep.subr.bf16.mxu0 %v231_v11 }
  0x15   :  { %p248_p3 = por %p247_p2, %p246_p1 }
  0x17   :  { %143 = vmatpush1.bf16.msra.mxu0 %v233_v12  ;;  %p249_p4 = pnand %p248_p3, %p242_p0 }
  0x18   :  { %144 = vmatprep.subr.bf16.mxu0 %v234_v13 }
  0x1b   :  { %145 = vmatpush1.bf16.msra.mxu0 %v236_v14 }
  0x1c   :  { %146 = vmatprep.subr.bf16.mxu0 %v237_v15 }
  0x1f   :  { %147 = vmatpush1.bf16.msra.mxu0 %v239_v16 }
  0x22   :  { %165 = vmatmul.mubr.bf16.vlgmr.msra.gmra.mrb[0].mxu0 %v240_v17 }
  0xf5   :  { %v166_v25 = vpop.f32.mrb[0].mxu0 }
  0xf6   :  { %v167_v26 = vadd.f32 %v166_v25, %v39_v23  ;;  %v168_v27 = vpop.f32.mrb[1].mxu0 }
  0xf7   :  { %v169_v28 = vadd.f32 %v168_v27, %v43_v24  ;;  %v170_v29 = vpop.f32.mrb[2].mxu0 }
  0xf8   :  { %175 = vst [vmem:[#allocation2] sm:$0xff] %v167_v26  ;;  %v171_v30 = vadd.f32 %v170_v29, %v39_v23  ;;  %v172_v31 = vpop.f32.mrb[3].mxu0 }
  0xf9   :  { %176 = vst [vmem:[#allocation2 + $0x8] sm:$0xff] %v169_v28  ;;  %v173_v32 = vadd.f32 %v172_v31, %v43_v24 }
  0xfa   :  { %177 = vst [vmem:[#allocation2 + $0x10] sm:$0xff] %v171_v30 }
  0xfb   :  { %178 = vst [vmem:[#allocation2 + $0x18] sm:$0xff] %v173_v32 }
  0xfc   :  { %252 = shalt.err (!%p249_p4)
}
  0xfd   :  { %s253_s23 = scalar_lea.hbm %s358_s3, 512 }
  0xfe   :  { %p254_p5 = scmp.ne.s32.totalorder %s358_s3, %s253_s23  ;;  %p257_p6 = scmp.lt.u32.totalorder %s253_s23, %s358_s3 }
 0x100   :  { %p259_p7 = pnand %p257_p6, %p254_p5 }
 0x102   :  { %262 = shalt.err (!%p259_p7)
}
 0x103   :  { %s267_s28 = smov 256   ;;  %s268_s29 = smov 16  }
 0x104   :  { %190 = dma.vmem_to_hbm [thread:$0]  %s185_s1, 512, %s358_s3, [#allocation3], %s267_s28, %s267_s28, %s268_s29  }
 0x105   :  { %263 = dma.done.wait [#allocation3], 512  }
 0x106   :  { %264 = vsyncadd [#allocation3], 4294966784 }
 0x107   :  { %194 = vsyncpa [#allocation3], 1 }

// kernel: decoder_forward.4
= control target key start
LH: loop header
LB: loop body
LE: loop exit
PB: predicated region body
PF: predicated region fallthrough
CT: control target
= control target key end

     0   :  { %8 = vsyncpa [#allocation3], 0  ;;  %s780_s12 = smov [#allocation2]   ;;  %s828_s0 = inlined_call_operand.vmem [shape: f32[2,768], index: 0, kind: input, shape index: {}]   ;;  %s829_s1 = inlined_call_operand.hbm [shape: bf16[768,128], index: 1, kind: input, shape index: {}]   ;;  %s830_s2 = inlined_call_operand.vmem [shape: f32[1,128], index: 2, kind: input, shape index: {}]   ;;  %s831_s3 = inlined_call_operand.vmem [shape: f32[2,128], index: 3, kind: output, shape index: {}]  }
   0x1   :  { %s16_s13 = sshll.u32 %s780_s12, 4  ;;  %s756_s16 = scalar_lea.hbm %s829_s1, 6144  ;;  %s17_s13 = int_to_ptr.vmem [resolvable:$true] %s16_s13 }
   0x2   :  { %p757_p0 = scmp.ne.s32.totalorder %s829_s1, %s756_s16  ;;  %p760_p1 = scmp.lt.u32.totalorder %s756_s16, %s829_s1 }
   0x4   :  { %p762_p2 = pnand %p760_p1, %p757_p0 }
   0x6   :  { %765 = shalt.err (!%p762_p2)
}
   0x7   :  { %s766_s21 = scalar_lea.vmem %s17_s13, 6144  ;;  %p771_p4 = scmp.lt.s32.totalorder %s17_s13, %s17_s13 }
   0x8   :  { %p767_p3 = scmp.ne.s32.totalorder %s17_s13, %s766_s21  ;;  %p772_p5 = scmp.lt.s32.totalorder %s766_s21, %s766_s21 }
   0xa   :  { %p773_p6 = por %p772_p5, %p771_p4 }
   0xc   :  { %p774_p7 = pnand %p773_p6, %p767_p3 }
   0xe   :  { %777 = shalt.err (!%p774_p7)
}
   0xf   :  { %s781_s22 = smov 64   ;;  %s782_s23 = smov 4  }
  0x10   :  { %22 = dma.hbm_to_vmem [thread:$0]  %s829_s1, 6144, %s17_s13, [#allocation3], %s781_s22, %s781_s22, %s782_s23  }
  0x11   :  { %778 = dma.done.wait [#allocation3], 6144  }
  0x12   :  { %779 = vsyncadd [#allocation3], 4294961152  ;;  %v707_v0 = vld [vmem:[#allocation2 + $0x40] sm:$0xff]   ;;  %v711_v4 = vld [vmem:[#allocation2 + $0x48] sm:$0xff]   ;;  %v783_v21 = vmov 1983009808   ;;  %v37_v23 = vlaneseq }
  0x13   :  { %v708_v1 = vld [vmem:[#allocation2] sm:$0xff]   ;;  %637 = vmatprep.subr.bf16.mxu0 %v707_v0  ;;  %v712_v5 = vld [vmem:[#allocation2 + $0x8] sm:$0xff]   ;;  %v715_v8 = vld [vmem:[#allocation2 + $0x50] sm:$0xff]   ;;  %v35_v22 = vunpack.c.l.s4 %v783_v21 }
  0x14   :  { %v709_v2 = vld [vmem:[#allocation2 + $0xc0] sm:$0xff]   ;;  %638 = vmatpush3.bf16.msra.mxu0 %v708_v1  ;;  %v713_v6 = vld [vmem:[#allocation2 + $0xc8] sm:$0xff]   ;;  %v716_v9 = vld [vmem:[#allocation2 + $0x10] sm:$0xff]   ;;  %v38_v29 = vshrl.u32 %v37_v23, 7 }
  0x15   :  { %v710_v3 = vld [vmem:[#allocation2 + $0x80] sm:$0xff]   ;;  %659 = vmatprep.subr.bf16.mxu1 %v709_v2  ;;  %639 = vmatprep.subr.bf16.mxu0 %v711_v4  ;;  %v714_v7 = vld [vmem:[#allocation2 + $0x88] sm:$0xff]   ;;  %v717_v10 = vld [vmem:[#allocation2 + $0xd0] sm:$0xff]   ;;  %v36_v28 = vunpack.c.0.s8 %v35_v22 }
  0x16   :  { %660 = vmatpush3.bf16.msra.mxu1 %v710_v3  ;;  %v718_v11 = vld [vmem:[#allocation2 + $0x90] sm:$0xff]   ;;  %v719_v12 = vld [vmem:[#allocation2 + $0x58] sm:$0xff]   ;;  %v723_v16 = vld [vmem:[#allocation2 + $0x60] sm:$0xff]  }
  0x17   :  { %661 = vmatprep.subr.bf16.mxu1 %v713_v6  ;;  %v720_v13 = vld [vmem:[#allocation2 + $0x18] sm:$0xff]   ;;  %v724_v17 = vld [vmem:[#allocation2 + $0x20] sm:$0xff]   ;;  %v727_v20 = vld [vmem:[#allocation2 + $0x68] sm:$0xff]   ;;  %v39_v34 = vsub.s32 %v36_v28, %v38_v29 }
  0x18   :  { %640 = vmatpush3.bf16.msra.mxu0 %v712_v5  ;;  %v721_v14 = vld [vmem:[#allocation2 + $0xd8] sm:$0xff]   ;;  %v725_v18 = vld [vmem:[#allocation2 + $0xe0] sm:$0xff]   ;;  %v728_v24 = vld [vmem:[#allocation2 + $0x28] sm:$0xff]  }
  0x19   :  { %641 = vmatprep.subr.bf16.mxu0 %v715_v8  ;;  %v722_v15 = vld [vmem:[#allocation2 + $0x98] sm:$0xff]   ;;  %v726_v19 = vld [vmem:[#allocation2 + $0xa0] sm:$0xff]   ;;  %v729_v25 = vld [vmem:[#allocation2 + $0xe8] sm:$0xff]  }
  0x1a   :  { %662 = vmatpush3.bf16.msra.mxu1 %v714_v7  ;;  %v730_v26 = vld [vmem:[#allocation2 + $0xa8] sm:$0xff]   ;;  %v731_v27 = vld [vmem:[#allocation2 + $0x70] sm:$0xff]   ;;  %v735_v33 = vld [vmem:[#allocation2 + $0x78] sm:$0xff]  }
  0x1b   :  { %663 = vmatprep.subr.bf16.mxu1 %v717_v10  ;;  %v732_v30 = vld [vmem:[#allocation2 + $0x30] sm:$0xff]   ;;  %v736_v35 = vld [vmem:[#allocation2 + $0x38] sm:$0xff]   ;;  %v29_v37 = vld [vmem:[%s828_s0] sm:$0xff] }
  0x1c   :  { %642 = vmatpush3.bf16.msra.mxu0 %v716_v9  ;;  %v733_v31 = vld [vmem:[#allocation2 + $0xf0] sm:$0xff]   ;;  %v737_v36 = vld [vmem:[#allocation2 + $0xf8] sm:$0xff]   ;;  %v40_v38 = vrot.slane %v29_v37, %v39_v34  ;;  %v33_v40 = vcombine.high %v29_v37, %v29_v37  ;;  %v739_v41 = vld [vmem:[#allocation2 + $0x140] sm:$0xff]  }
  0x1d   :  { %643 = vmatprep.subr.bf16.mxu0 %v719_v12  ;;  %v734_v32 = vld [vmem:[#allocation2 + $0xb0] sm:$0xff]   ;;  %v738_v39 = vld [vmem:[#allocation2 + $0xb8] sm:$0xff]   ;;  %v741_v47 = vld [vmem:[#allocation2 + $0x100] sm:$0xff]  }
  0x1e   :  { %664 = vmatpush3.bf16.msra.mxu1 %v718_v11  ;;  %v48_v42 = vcombine.high %v40_v38, %v40_v38  ;;  %v47_v43 = vrot.slane %v33_v40, %v39_v34  ;;  %v64_v44 = vpack.c.bf16 %v40_v38, %v40_v38  ;;  %v742_v49 = vld [vmem:[#allocation2 + $0x148] sm:$0xff]   ;;  %v744_v52 = vld [vmem:[#allocation2 + $0x150] sm:$0xff]   ;;  %v746_v54 = vld [vmem:[#allocation2 + $0x158] sm:$0xff]  }
  0x1f   :  { %665 = vmatprep.subr.bf16.mxu1 %v721_v14  ;;  %v743_v51 = vld [vmem:[#allocation2 + $0x108] sm:$0xff]   ;;  %v745_v53 = vld [vmem:[#allocation2 + $0x110] sm:$0xff]   ;;  %v747_v55 = vld [vmem:[#allocation2 + $0x118] sm:$0xff]  }
  0x20   :  { %644 = vmatpush3.bf16.msra.mxu0 %v720_v13  ;;  %v65_v45 = vpack.c.bf16 %v48_v42, %v48_v42  ;;  %v49_v46 = vcombine.high %v47_v43, %v47_v43  ;;  %v66_v48 = vpack.c.bf16 %v47_v43, %v47_v43  ;;  %v587_v56 = vld.sshfl [vmem:[%s828_s0 + $0x8] sm:$0x33 pattern:$0x76325410]  ;;  %v748_v57 = vld [vmem:[#allocation2 + $0x160] sm:$0xff]   ;;  %v752_v63 = vld [vmem:[#allocation2 + $0x170] sm:$0xff]  }
  0x21   :  { %645 = vmatprep.subr.bf16.mxu0 %v723_v16  ;;  %v57_v58 = vcombine.high %v587_v56, %v587_v56  ;;  %v749_v60 = vld [vmem:[#allocation2 + $0x120] sm:$0xff]   ;;  %v750_v61 = vld [vmem:[#allocation2 + $0x168] sm:$0xff]   ;;  %v753_v0 = vld [vmem:[#allocation2 + $0x130] sm:$0xff]   ;;  %v68_v3 = vpack.c.bf16 %v587_v56, %v587_v56 }
  0x22   :  { %666 = vmatpush3.bf16.msra.mxu1 %v722_v15  ;;  %493 = vmatprep.mubr.bf16.mxu0 %v65_v45  ;;  %v67_v50 = vpack.c.bf16 %v49_v46, %v49_v46  ;;  %v751_v62 = vld [vmem:[#allocation2 + $0x128] sm:$0xff]   ;;  %v754_v1 = vld [vmem:[#allocation2 + $0x178] sm:$0xff]   ;;  %v588_v5 = vld [vmem:[%s830_s2] ss:$0 sm:$0xff] }
  0x23   :  { %667 = vmatprep.subr.bf16.mxu1 %v725_v18  ;;  %v69_v59 = vpack.c.bf16 %v57_v58, %v57_v58  ;;  %v755_v2 = vld [vmem:[#allocation2 + $0x138] sm:$0xff]  }
  0x24   :  { %646 = vmatpush3.bf16.msra.mxu0 %v724_v17  ;;  %533 = vmatprep.mubr.bf16.mxu1 %v67_v50 }
  0x25   :  { %647 = vmatprep.subr.bf16.mxu0 %v727_v20 }
  0x26   :  { %668 = vmatpush3.bf16.msra.mxu1 %v726_v19 }
  0x27   :  { %669 = vmatprep.subr.bf16.mxu1 %v729_v25 }
  0x28   :  { %648 = vmatpush3.bf16.msra.mxu0 %v728_v24 }
  0x29   :  { %649 = vmatprep.subr.bf16.mxu0 %v731_v27 }
  0x2a   :  { %670 = vmatpush3.bf16.msra.mxu1 %v730_v26 }
  0x2b   :  { %671 = vmatprep.subr.bf16.mxu1 %v733_v31 }
  0x2c   :  { %650 = vmatpush3.bf16.msra.mxu0 %v732_v30 }
  0x2d   :  { %651 = vmatprep.subr.bf16.mxu0 %v735_v33 }
  0x2e   :  { %672 = vmatpush3.bf16.msra.mxu1 %v734_v32 }
  0x2f   :  { %673 = vmatprep.subr.bf16.mxu1 %v737_v36 }
  0x30   :  { %652 = vmatpush3.bf16.msra.mxu0 %v736_v35 }
  0x31   :  { %681 = vmatprep.subr.bf16.mxu0 %v739_v41 }
  0x32   :  { %674 = vmatpush3.bf16.msra.mxu1 %v738_v39 }
  0x33   :  { %494 = vmatmul.mubr.bf16.vlgmr.msra.gmra.mrb[0].mxu0 %v64_v44 }
  0x34   :  { %682 = vmatpush3.bf16.msra.mxu0 %v741_v47  ;;  %573 = vmatprep.mubr.bf16.mxu0 %v69_v59 }
  0x35   :  { %534 = vmatmul.mubr.bf16.vlgmr.msra.gmra.mrb[0].mxu1 %v66_v48  ;;  %683 = vmatprep.subr.bf16.mxu0 %v742_v49 }
  0x38   :  { %684 = vmatpush3.bf16.msra.mxu0 %v743_v51 }
  0x39   :  { %685 = vmatprep.subr.bf16.mxu0 %v744_v52 }
  0x3c   :  { %686 = vmatpush3.bf16.msra.mxu0 %v745_v53 }
  0x3d   :  { %687 = vmatprep.subr.bf16.mxu0 %v746_v54 }
  0x40   :  { %688 = vmatpush3.bf16.msra.mxu0 %v747_v55 }
  0x41   :  { %689 = vmatprep.subr.bf16.mxu0 %v748_v57 }
  0x44   :  { %690 = vmatpush3.bf16.msra.mxu0 %v749_v60 }
  0x45   :  { %691 = vmatprep.subr.bf16.mxu0 %v750_v61 }
  0x48   :  { %692 = vmatpush3.bf16.msra.mxu0 %v751_v62 }
  0x49   :  { %693 = vmatprep.subr.bf16.mxu0 %v752_v63 }
  0x4c   :  { %694 = vmatpush3.bf16.msra.mxu0 %v753_v0 }
  0x4d   :  { %695 = vmatprep.subr.bf16.mxu0 %v754_v1 }
  0x50   :  { %696 = vmatpush3.bf16.msra.mxu0 %v755_v2 }
  0x53   :  { %574 = vmatmul.mubr.bf16.vlgmr.msra.gmra.mrb[4].mxu0 %v68_v3 }
 0x106   :  { %v653_v4 = vpop.f32.mrb[0].mxu0 }
 0x107   :  { %v654_v6 = vpop.f32.mrb[1].mxu0 }
 0x108   :  { %v655_v7 = vadd.f32 %v654_v6, %v653_v4  ;;  %v656_v8 = vpop.f32.mrb[2].mxu0  ;;  %v675_v9 = vpop.f32.mrb[0].mxu1 }
 0x109   :  { %v657_v10 = vpop.f32.mrb[3].mxu0  ;;  %v676_v11 = vpop.f32.mrb[1].mxu1 }
 0x10a   :  { %v496_v12 = vadd.f32 %v655_v7, %v588_v5  ;;  %v677_v13 = vadd.f32 %v676_v11, %v675_v9  ;;  %v678_v14 = vpop.f32.mrb[2].mxu1 }
 0x10b   :  { %v679_v15 = vpop.f32.mrb[3].mxu1 }
 0x10c   :  { %v536_v16 = vadd.f32 %v677_v13, %v496_v12 }
 0x126   :  { %v697_v17 = vpop.f32.mrb[4].mxu0 }
 0x127   :  { %v698_v18 = vpop.f32.mrb[5].mxu0 }
 0x128   :  { %v699_v19 = vadd.f32 %v698_v18, %v697_v17  ;;  %v700_v20 = vpop.f32.mrb[6].mxu0 }
 0x129   :  { %v701_v21 = vpop.f32.mrb[7].mxu0 }
 0x12a   :  { %v576_v22 = vadd.f32 %v699_v19, %v536_v16 }
 0x12c   :  { %581 = vst [vmem:[%s831_s3] sm:$0x3] %v576_v22 }
 0x12d   :  { %586 = vsyncpa [#allocation3], 1 }

// kernel: decoder_forward.6
= control target key start
LH: loop header
LB: loop body
LE: loop exit
PB: predicated region body
PF: predicated region fallthrough
CT: control target
= control target key end

     0   :  { %v6527_v1 = vmov 0   ;;  %v6528_v2 = vmov 0.0   ;;  %vm6529_vm0 = vmmov 0   ;;  %v110_v27 = vlaneseq  ;;  %s6530_s26 = smov 112   ;;  %s6532_s27 = smov 80   ;;  %s8131_s2 = inlined_call_operand.vmem [shape: f32[1,128], index: 2, kind: input, shape index: {}]   ;;  %s8132_s3 = inlined_call_operand.vmem [shape: f32[1,128], index: 3, kind: input, shape index: {}]   ;;  %s8133_s4 = inlined_call_operand.vmem [shape: bf16[128,384], index: 4, kind: input, shape index: {}]   ;;  %s8134_s0 = inlined_call_operand.vmem [shape: bf16[16,128], index: 0, kind: input, shape index: {}]   ;;  %s8135_s5 = inlined_call_operand.vmem [shape: f32[1,384], index: 5, kind: input, shape index: {}]   ;;  %s8136_s6 = inlined_call_operand.vmem [shape: bf16[128,128], index: 6, kind: input, shape index: {}]   ;;  %s8137_s10 = inlined_call_operand.vmem [shape: bf16[128,128], index: 10, kind: input, shape index: {}]   ;;  %s8138_s1 = inlined_call_operand.vmem [shape: f32[2,128], index: 1, kind: input, shape index: {}]   ;;  %s8139_s12 = inlined_call_operand.vmem [shape: bf16[128,128], index: 12, kind: input, shape index: {}]   ;;  %s8140_s11 = inlined_call_operand.vmem [shape: f32[1,128], index: 11, kind: input, shape index: {}]   ;;  %s8141_s7 = inlined_call_operand.vmem [shape: f32[1,128], index: 7, kind: input, shape index: {}]   ;;  %s8142_s13 = inlined_call_operand.vmem [shape: f32[1,128], index: 13, kind: input, shape index: {}]   ;;  %s8143_s8 = inlined_call_operand.vmem [shape: f32[1,128], index: 8, kind: input, shape index: {}]   ;;  %s8144_s9 = inlined_call_operand.vmem [shape: f32[1,128], index: 9, kind: input, shape index: {}]   ;;  %s8145_s16 = inlined_call_operand.vmem [shape: bf16[128,2048], index: 16, kind: input, shape index: {}]   ;;  %s8146_s18 = inlined_call_operand.vmem [shape: bf16[2048,128], index: 18, kind: input, shape index: {}]   ;;  %s8147_s14 = inlined_call_operand.vmem [shape: f32[1,128], index: 14, kind: input, shape index: {}]   ;;  %s8148_s15 = inlined_call_operand.vmem [shape: f32[1,128], index: 15, kind: input, shape index: {}]   ;;  %s8149_s17 = inlined_call_operand.vmem [shape: f32[1,2048], index: 17, kind: input, shape index: {}]   ;;  %s8150_s19 = inlined_call_operand.vmem [shape: f32[1,128], index: 19, kind: input, shape index: {}]   ;;  %s8151_s20 = inlined_call_operand.vmem [shape: f32[1,128], index: 20, kind: input, shape index: {}]   ;;  %s8152_s21 = inlined_call_operand.vmem [shape: f32[1,128], index: 21, kind: input, shape index: {}]   ;;  %s8153_s22 = inlined_call_operand.vmem [shape: bf16[16,128], index: 22, kind: output, shape index: {}]  }
   0x1   :  { %8158 = sst [smem:[#allocation2_spill]] %s8133_s4  ;;  %291 = vmatprep.mubr.bf16.mxu0 %v6527_v1  ;;  %5946 = vmatprep.subr.bf16.mxu1 %v6528_v2  ;;  %vm349_vm1 = vcmask 130048   ;;  %vm472_vm2 = vcmask 1043456   ;;  %vm444_vm3 = vcmask 64512   ;;  %s6531_s4 = smov 96   ;;  %vm2180_vm4 = vcmask 261120  }
   0x2   :  { %8159 = sst [smem:[#allocation3_spill]] %s8134_s0  ;;  %s8163_s29 = sld [smem:[#allocation2_spill]]  ;;  %5962 = vmatprep.mubr.msk.bf16.mxu1 %vm6529_vm0, %v6528_v2  ;;  %v6745_v28 = vshrl.u32 %v110_v27, 7  ;;  %vm2183_vm5 = vcmask 392192   ;;  %vm2186_vm6 = vcmask 523264   ;;  %vm2189_vm7 = vcmask 654336  }
   0x3   :  { %8160 = sst [smem:[#allocation4_spill]] %s8135_s5  ;;  %s8164_s30 = sld [smem:[#allocation3_spill]]  ;;  %vm2192_vm8 = vcmask 785408   ;;  %vm2195_vm9 = vcmask 916480  }
   0x4   :  { %8161 = sst [smem:[#allocation5_spill]] %s8136_s6  ;;  %v6748_v29 = vsub.s32 1, %v6745_v28  ;;  %s8165_s25 = sld [smem:[#allocation4_spill]]  ;;  %v6755_v32 = vsub.s32 0, %v6745_v28  ;;  %v6781_v48 = vsub.s32 2, %v6745_v28 }
   0x5   :  { %8162 = sst [smem:[#allocation6_spill]] %s8137_s10  ;;  %s6533_s0 = smov 64  }
   0x6   :  { %s6534_s28 = smov 48   ;;  %s6535_s5 = smov 32  }
   0x7   :  { %s6536_s2 = smov 16   ;;  %s8166_s6 = sld [smem:[#allocation5_spill]] }
   0x8   :  { %v6264_v0 = vld [vmem:[%s8163_s29 + $0x4] ss:$12 sps:$4 sm:$0xff]   ;;  %v6266_v3 = vld [vmem:[%s8163_s29] ss:$12 sps:$4 sm:$0xff]   ;;  %v6267_v4 = vld [vmem:[%s8163_s29 + $0x1c] ss:$12 sps:$4 sm:$0xff]  }
   0x9   :  { %259 = vmatprep.subr.bf16.mxu0 %v6264_v0  ;;  %v6269_v5 = vld [vmem:[%s8163_s29 + $0x18] ss:$12 sps:$4 sm:$0xff]   ;;  %v6270_v6 = vld [vmem:[%s8163_s29 + $0x34] ss:$12 sps:$4 sm:$0xff]   ;;  %v6272_v7 = vld [vmem:[%s8163_s29 + $0x30] ss:$12 sps:$4 sm:$0xff]  }
   0xa   :  { %260 = vmatpush1.bf16.msra.mxu0 %v6266_v3  ;;  %v6273_v8 = vld [vmem:[%s8163_s29 + $0x4c] ss:$12 sps:$4 sm:$0xff]   ;;  %v6275_v9 = vld [vmem:[%s8163_s29 + $0x48] ss:$12 sps:$4 sm:$0xff]   ;;  %v6276_v11 = vld [vmem:[%s8163_s29 + $0x64] ss:$12 sps:$4 sm:$0xff]  }
   0xb   :  { %261 = vmatprep.subr.bf16.mxu0 %v6267_v4  ;;  %v6289_v10 = vld [vmem:[%s8163_s29 + $0x8] ss:$12 sps:$4 sm:$0xff]   ;;  %v6290_v12 = vld [vmem:[%s8163_s29 + $0x20] ss:$12 sps:$4 sm:$0xff]   ;;  %v6291_v15 = vld [vmem:[%s8163_s29 + $0x38] ss:$12 sps:$4 sm:$0xff]  }
   0xc   :  { %5947 = vmatpush3.bf16.msra.mxu1 %v6289_v10  ;;  %v6278_v13 = vld [vmem:[%s8163_s29 + $0x60] ss:$12 sps:$4 sm:$0xff]   ;;  %v6279_v14 = vld [vmem:[%s8163_s29 + $0x7c] ss:$12 sps:$4 sm:$0xff]   ;;  %v6281_v16 = vld [vmem:[%s8163_s29 + $0x78] ss:$12 sps:$4 sm:$0xff]  }
   0xd   :  { %5948 = vmatprep.subr.bf16.mxu1 %v6528_v2  ;;  %v6282_v17 = vld [vmem:[%s8163_s29 + $0x94] ss:$12 sps:$4 sm:$0xff]   ;;  %v6292_v18 = vld [vmem:[%s8163_s29 + $0x50] ss:$12 sps:$4 sm:$0xff]   ;;  %v6285_v20 = vld [vmem:[%s8163_s29 + $0xac] ss:$12 sps:$4 sm:$0xff]  }
   0xe   :  { %262 = vmatpush1.bf16.msra.mxu0 %v6269_v5  ;;  %v6284_v19 = vld [vmem:[%s8163_s29 + $0x90] ss:$12 sps:$4 sm:$0xff]   ;;  %v6293_v21 = vld [vmem:[%s8163_s29 + $0x68] ss:$12 sps:$4 sm:$0xff]   ;;  %v72_v23 = vld [vmem:[%s8164_s30] sm:$0xff]  }
   0xf   :  { %263 = vmatprep.subr.bf16.mxu0 %v6270_v6  ;;  %v6287_v22 = vld [vmem:[%s8163_s29 + $0xa8] ss:$12 sps:$4 sm:$0xff]   ;;  %v6294_v24 = vld [vmem:[%s8163_s29 + $0x80] ss:$12 sps:$4 sm:$0xff]   ;;  %v6295_v25 = vld [vmem:[%s8163_s29 + $0x98] ss:$12 sps:$4 sm:$0xff]  }
  0x10   :  { %5949 = vmatpush3.bf16.msra.mxu1 %v6290_v12  ;;  %v6296_v26 = vld [vmem:[%s8163_s29 + $0xb0] ss:$12 sps:$4 sm:$0xff]   ;;  %v108_v30 = vld [vmem:[%s8165_s25] sm:$0x7] }
  0x11   :  { %5950 = vmatprep.subr.bf16.mxu1 %v6528_v2  ;;  %v117_v31 = vrot.slane %v108_v30, %v6748_v29  ;;  %v113_v38 = vrot.slane %v108_v30, %v6755_v32  ;;  %v121_v49 = vrot.slane %v108_v30, %v6781_v48 }
  0x12   :  { %264 = vmatpush1.bf16.msra.mxu0 %v6272_v7 }
  0x13   :  { %265 = vmatprep.subr.bf16.mxu0 %v6273_v8 }
  0x14   :  { %5951 = vmatpush3.bf16.msra.mxu1 %v6291_v15 }
  0x15   :  { %5952 = vmatprep.subr.bf16.mxu1 %v6528_v2 }
  0x16   :  { %266 = vmatpush1.bf16.msra.mxu0 %v6275_v9 }
  0x17   :  { %267 = vmatprep.subr.bf16.mxu0 %v6276_v11 }
  0x18   :  { %5953 = vmatpush3.bf16.msra.mxu1 %v6292_v18 }
  0x19   :  { %5954 = vmatprep.subr.bf16.mxu1 %v6528_v2 }
  0x1a   :  { %268 = vmatpush1.bf16.msra.mxu0 %v6278_v13 }
  0x1b   :  { %269 = vmatprep.subr.bf16.mxu0 %v6279_v14 }
  0x1c   :  { %5955 = vmatpush3.bf16.msra.mxu1 %v6293_v21 }
  0x1d   :  { %5956 = vmatprep.subr.bf16.mxu1 %v6528_v2 }
  0x1e   :  { %270 = vmatpush1.bf16.msra.mxu0 %v6281_v16 }
  0x1f   :  { %271 = vmatprep.subr.bf16.mxu0 %v6282_v17 }
  0x20   :  { %5957 = vmatpush3.bf16.msra.mxu1 %v6294_v24 }
  0x21   :  { %5958 = vmatprep.subr.bf16.mxu1 %v6528_v2 }
  0x22   :  { %272 = vmatpush1.bf16.msra.mxu0 %v6284_v19 }
  0x23   :  { %273 = vmatprep.subr.bf16.mxu0 %v6285_v20 }
  0x24   :  { %5959 = vmatpush3.bf16.msra.mxu1 %v6295_v25 }
  0x25   :  { %5960 = vmatprep.subr.bf16.mxu1 %v6528_v2 }
  0x26   :  { %274 = vmatpush1.bf16.msra.mxu0 %v6287_v22 }
  0x27   :  { %5990 = vmatprep.subr.bf16.mxu0 %v6528_v2 }
  0x28   :  { %5961 = vmatpush3.bf16.msra.mxu1 %v6296_v26 }
  0x29   :  { %292 = vmatmul.mubr.bf16.vlgmr.msra.gmra.mrb[0].mxu0 %v72_v23  ;;  %5966 = vmatprep.subr.bf16.mxu1 %v6528_v2 }
  0x2a   :  { %5992 = vmatprep.mubr.msk.bf16.mxu0 %vm6529_vm0, %v6528_v2 }
  0x2b   :  { %5963 = vmatmul.mubr.bf16.vlgmr.msra.gmra.mrb[0].mxu1 %v72_v23 }
  0x2c   :  { %5968 = vmatprep.mubr.msk.bf16.mxu1 %vm6529_vm0, %v6528_v2 }
  0xfc   :  { %v293_v33 = vpop.f32.mrb[0].mxu0 }
  0xfd   :  { %v295_v34 = vpop.f32.mrb[1].mxu0  ;;  %v294_v42 = vadd.f32 %v293_v33, %v113_v38 }
  0xfe   :  { %v296_v35 = vadd.f32 %v295_v34, %v117_v31  ;;  %v297_v36 = vpop.f32.mrb[2].mxu0  ;;  %v336_v50 = vpop.f32.mrb[0].mxu1 }
  0xff   :  { %v299_v37 = vpop.f32.mrb[3].mxu0  ;;  %v6765_v44 = vpack.c.bf16 %v294_v42, %v294_v42  ;;  %v298_v46 = vadd.f32 %v297_v36, %v113_v38  ;;  %v337_v51 = vadd.f32 %v336_v50, %v121_v49  ;;  %v5964_v52 = vpop.f32.mrb[1].mxu1 }
 0x100   :  { %v6758_v39 = vpack.c.bf16 %v296_v35, %v296_v35  ;;  %v300_v40 = vadd.f32 %v299_v37, %v117_v31  ;;  %v339_v53 = vpop.f32.mrb[2].mxu1 }
 0x101   :  { %v6774_v47 = vpack.c.bf16 %v298_v46, %v298_v46  ;;  %v6784_v54 = vpack.c.bf16 %v337_v51, %v337_v51  ;;  %v340_v55 = vadd.f32 %v339_v53, %v121_v49  ;;  %v5965_v56 = vpop.f32.mrb[3].mxu1 }
 0x102   :  { %v354_v41 = vsel %vm349_vm1, %v6758_v39, 0  ;;  %v6763_v43 = vpack.c.bf16 %v300_v40, %v300_v40 }
 0x103   :  { %5967 = vmatpush3.bf16.xpose.msra.mxu1 %v354_v41  ;;  %v474_v57 = vsel %vm472_vm2, %v6784_v54, 0  ;;  %v6803_v22 = vpack.c.bf16 %v340_v55, %v340_v55 }
 0x104   :  { %5972 = vmatprep.subr.bf16.mxu1 %v6528_v2  ;;  %v400_v45 = vsel %vm349_vm1, %v6763_v43, 0 }
 0x105   :  { %v520_v25 = vsel %vm472_vm2, %v6803_v22, 0 }
 0x10a   :  { %5969 = vmatmul.mubr.msk.bf16.vlgmr.msra.gmra.mrb[4].mxu1 %vm349_vm1, %v6765_v44 }
 0x10b   :  { %5973 = vmatpush3.bf16.xpose.msra.mxu1 %v400_v45  ;;  %5974 = vmatprep.mubr.msk.bf16.mxu1 %vm6529_vm0, %v6528_v2 }
 0x10c   :  { %5978 = vmatprep.subr.bf16.mxu1 %v6528_v2 }
 0x112   :  { %5975 = vmatmul.mubr.msk.bf16.vlgmr.msra.gmra.mrb[8].mxu1 %vm349_vm1, %v6774_v47 }
 0x113   :  { %5980 = vmatprep.mubr.msk.bf16.mxu1 %vm6529_vm0, %v6528_v2  ;;  %5979 = vmatpush3.bf16.msra.mxu1 %v474_v57 }
 0x114   :  { %5984 = vmatprep.subr.bf16.mxu1 %v6528_v2 }
 0x1dd   :  { %v390_v58 = vpop.f32.mrb[4].mxu1 }
 0x1de   :  { %v442_v59 = vmul.f32 0.25, %v390_v58  ;;  %v5970_v60 = vpop.f32.mrb[5].mxu1 }
 0x1df   :  { %v393_v61 = vpop.f32.mrb[6].mxu1 }
 0x1e0   :  { %v5971_v62 = vpop.f32.mrb[7].mxu1  ;;  %v445_v63 = vsel %vm444_vm3, %v442_v59, -inf }
 0x1e1   :  { %446 = vmax.xlane.f32.xlu0 %v445_v63 }
 0x1e5   :  { %v436_v0 = vpop.f32.mrb[8].mxu1 }
 0x1e6   :  { %v443_v3 = vmul.f32 0.25, %v436_v0  ;;  %v5976_v4 = vpop.f32.mrb[9].mxu1 }
 0x1e7   :  { %v439_v5 = vpop.f32.mrb[10].mxu1 }
 0x1e8   :  { %v5977_v6 = vpop.f32.mrb[11].mxu1  ;;  %v448_v7 = vsel %vm444_vm3, %v443_v3, -inf }
 0x1e9   :  { %449 = vmax.xlane.f32.xlu0 %v448_v7 }
 0x1ff   :  { %566 = vrot.lane.b32.xlu0 %v6758_v39, %s6530_s26 }
 0x26e   :  { %v447_v8 = vpop.xlane.xlu0 %446 }
 0x26f   :  { %v451_v9 = vsub.f32 %v442_v59, %v447_v8 }
 0x271   :  { %v453_v10 = vmul.f32 1.442695, %v451_v9 }
 0x273   :  { %6450 = vpow2.f32 %v453_v10 }
 0x276   :  { %v450_v11 = vpop.xlane.xlu0 %449 }
 0x277   :  { %v452_v16 = vsub.f32 %v443_v3, %v450_v11 }
 0x279   :  { %v455_v17 = vmul.f32 1.442695, %v452_v16 }
 0x27a   :  { %v567_v12 = vpop.permute.xlu0 %566 }
 0x27b   :  { %v572_v13 = vsel %vm349_vm1, %v567_v12, 0  ;;  %6452 = vpow2.f32 %v455_v17 }
 0x27c   :  { %5991 = vmatpush3.bf16.xpose.msra.mxu0 %v572_v13 }
 0x27d   :  { %v6451_v14 = vpop.eup %6450  ;;  %6002 = vmatprep.subr.bf16.mxu0 %v6528_v2 }
 0x27e   :  { %v457_v15 = vsel %vm444_vm3, %v6451_v14, 0.0 }
 0x27f   :  { %458 = vadd.xlane.f32.xlu1 %v457_v15 }
 0x285   :  { %v6453_v18 = vpop.eup %6452 }
 0x286   :  { %v460_v19 = vsel %vm444_vm3, %v6453_v18, 0.0 }
 0x290   :  { %618 = vrot.lane.b32.xlu1 %v6763_v43, %s6530_s26 }
 0x2b4   :  { %461 = vadd.xlane.f32.xlu1 %v460_v19 }
 0x2c5   :  { %563 = vrot.lane.b32.xlu1 %v6765_v44, %s6530_s26 }
 0x2c9   :  { %615 = vrot.lane.b32.xlu1 %v6774_v47, %s6530_s26 }
 0x30c   :  { %v459_v20 = vpop.xlane.xlu1 %458 }
 0x30d   :  { %6454 = vrcp.f32 %v459_v20 }
 0x310   :  { %v619_v26 = vpop.permute.xlu1 %618 }
 0x311   :  { %v624_v35 = vsel %vm349_vm1, %v619_v26, 0 }
 0x317   :  { %v6455_v21 = vpop.eup %6454 }
 0x318   :  { %v464_v23 = vmul.f32 %v6455_v21, %v6451_v14 }
 0x31a   :  { %v467_v24 = vpack.c.bf16 %v464_v23, %v464_v23 }
 0x31c   :  { %5981 = vmatmul.mubr.msk.bf16.vlgmr.msra.gmra.mrb[12].mxu1 %vm444_vm3, %v467_v24 }
 0x31d   :  { %5985 = vmatpush3.bf16.msra.mxu1 %v520_v25  ;;  %5986 = vmatprep.mubr.msk.bf16.mxu1 %vm6529_vm0, %v6528_v2 }
 0x31e   :  { %5996 = vmatprep.subr.bf16.mxu1 %v6528_v2 }
 0x341   :  { %v462_v27 = vpop.xlane.xlu1 %461 }
 0x342   :  { %6456 = vrcp.f32 %v462_v27 }
 0x345   :  { %v564_v30 = vpop.permute.xlu1 %563 }
 0x346   :  { %5993 = vmatmul.mubr.msk.bf16.vlgmr.msra.gmra.mrb[4].mxu0 %vm349_vm1, %v564_v30 }
 0x347   :  { %6004 = vmatprep.mubr.msk.bf16.mxu0 %vm6529_vm0, %v6528_v2 }
 0x349   :  { %v616_v36 = vpop.permute.xlu1 %615 }
 0x34c   :  { %v6457_v31 = vpop.eup %6456 }
 0x34d   :  { %v466_v33 = vmul.f32 %v6457_v31, %v6453_v18 }
 0x34f   :  { %v468_v34 = vpack.c.bf16 %v466_v33, %v466_v33 }
 0x351   :  { %5987 = vmatmul.mubr.msk.bf16.vlgmr.msra.gmra.mrb[16].mxu1 %vm444_vm3, %v468_v34 }
 0x352   :  { %5997 = vmatpush3.bf16.xpose.msra.mxu1 %v624_v35  ;;  %5998 = vmatprep.mubr.msk.bf16.mxu1 %vm6529_vm0, %v6528_v2 }
 0x353   :  { %6008 = vmatprep.subr.bf16.mxu1 %v6528_v2 }
 0x359   :  { %5999 = vmatmul.mubr.msk.bf16.vlgmr.msra.gmra.mrb[20].mxu1 %vm349_vm1, %v616_v36 }
 0x35a   :  { %6010 = vmatprep.mubr.msk.bf16.mxu1 %vm6529_vm0, %v6528_v2 }
 0x3ef   :  { %v6822_v37 = vpop.f32.mrb[12].mxu1 }
 0x3f0   :  { %v5982_v38 = vpop.f32.mrb[13].mxu1 }
 0x3f1   :  { %v513_v40 = vpop.f32.mrb[14].mxu1 }
 0x3f2   :  { %v5983_v41 = vpop.f32.mrb[15].mxu1 }
 0x419   :  { %v608_v42 = vpop.f32.mrb[4].mxu0 }
 0x41a   :  { %v666_v45 = vmul.f32 0.25, %v608_v42  ;;  %v5994_v46 = vpop.f32.mrb[5].mxu0 }
 0x41b   :  { %v611_v49 = vpop.f32.mrb[6].mxu0 }
 0x41c   :  { %v5995_v50 = vpop.f32.mrb[7].mxu0  ;;  %v668_v51 = vsel %vm444_vm3, %v666_v45, -inf }
 0x41d   :  { %669 = vmax.xlane.f32.xlu0 %v668_v51 }
 0x424   :  { %v6825_v52 = vpop.f32.mrb[16].mxu1 }
 0x425   :  { %v5988_v53 = vpop.f32.mrb[17].mxu1 }
 0x426   :  { %v559_v55 = vpop.f32.mrb[18].mxu1 }
 0x427   :  { %v5989_v56 = vpop.f32.mrb[19].mxu1 }
 0x42c   :  { %v660_v57 = vpop.f32.mrb[20].mxu1 }
 0x42d   :  { %v667_v58 = vmul.f32 0.25, %v660_v57  ;;  %v6000_v59 = vpop.f32.mrb[21].mxu1 }
 0x42e   :  { %v663_v60 = vpop.f32.mrb[22].mxu1 }
 0x42f   :  { %v6001_v61 = vpop.f32.mrb[23].mxu1  ;;  %v671_v62 = vsel %vm444_vm3, %v667_v58, -inf }
 0x430   :  { %672 = vmax.xlane.f32.xlu1 %v671_v62 }
 0x441   :  { %742 = vrot.lane.b32.xlu1 %v6803_v22, %s6530_s26 }
 0x445   :  { %792 = vrot.lane.b32.xlu1 %v6758_v39, %s6531_s4 }
 0x449   :  { %842 = vrot.lane.b32.xlu1 %v6763_v43, %s6531_s4 }
 0x44d   :  { %840 = vrot.lane.b32.xlu1 %v6774_v47, %s6531_s4 }
 0x4aa   :  { %v670_v63 = vpop.xlane.xlu0 %669 }
 0x4ab   :  { %v674_v0 = vsub.f32 %v666_v45, %v670_v63 }
 0x4ad   :  { %v676_v3 = vmul.f32 1.442695, %v674_v0 }
 0x4af   :  { %6458 = vpow2.f32 %v676_v3 }
 0x4b9   :  { %v6459_v4 = vpop.eup %6458 }
 0x4ba   :  { %v680_v5 = vsel %vm444_vm3, %v6459_v4, 0.0 }
 0x4bb   :  { %681 = vadd.xlane.f32.xlu0 %v680_v5 }
 0x4bd   :  { %v673_v6 = vpop.xlane.xlu1 %672 }
 0x4be   :  { %v675_v7 = vsub.f32 %v667_v58, %v673_v6 }
 0x4c0   :  { %v678_v8 = vmul.f32 1.442695, %v675_v7 }
 0x4c1   :  { %v743_v9 = vpop.permute.xlu1 %742 }
 0x4c2   :  { %6460 = vpow2.f32 %v678_v8  ;;  %v748_v10 = vsel %vm472_vm2, %v743_v9, 0 }
 0x4c3   :  { %6009 = vmatpush3.bf16.msra.mxu1 %v748_v10 }
 0x4c4   :  { %6020 = vmatprep.subr.bf16.mxu1 %v6528_v2 }
 0x4c5   :  { %v793_v19 = vpop.permute.xlu1 %792 }
 0x4c6   :  { %v798_v25 = vsel %vm349_vm1, %v793_v19, 0 }
 0x4c9   :  { %v843_v24 = vpop.permute.xlu1 %842 }
 0x4ca   :  { %v848_v27 = vsel %vm349_vm1, %v843_v24, 0 }
 0x4cc   :  { %v6461_v11 = vpop.eup %6460 }
 0x4cd   :  { %v683_v12 = vsel %vm444_vm3, %v6461_v11, 0.0  ;;  %v841_v31 = vpop.permute.xlu1 %840 }
 0x4ce   :  { %684 = vadd.xlane.f32.xlu0 %v683_v12 }
 0x4e4   :  { %693 = vrot.lane.b32.xlu0 %v6784_v54, %s6530_s26 }
 0x4e8   :  { %790 = vrot.lane.b32.xlu0 %v6765_v44, %s6531_s4 }
 0x548   :  { %v682_v13 = vpop.xlane.xlu0 %681 }
 0x549   :  { %6462 = vrcp.f32 %v682_v13 }
 0x553   :  { %v6463_v14 = vpop.eup %6462 }
 0x554   :  { %v687_v16 = vmul.f32 %v6463_v14, %v6459_v4 }
 0x556   :  { %v690_v20 = vpack.c.bf16 %v687_v16, %v687_v16 }
 0x55b   :  { %v685_v15 = vpop.xlane.xlu0 %684 }
 0x55c   :  { %6464 = vrcp.f32 %v685_v15 }
 0x55f   :  { %v694_v17 = vpop.permute.xlu0 %693 }
 0x560   :  { %v699_v18 = vsel %vm472_vm2, %v694_v17, 0 }
 0x561   :  { %6003 = vmatpush3.bf16.msra.mxu0 %v699_v18 }
 0x562   :  { %6014 = vmatprep.subr.bf16.mxu0 %v6528_v2 }
 0x563   :  { %v791_v30 = vpop.permute.xlu0 %790 }
 0x564   :  { %6005 = vmatmul.mubr.msk.bf16.vlgmr.msra.gmra.mrb[8].mxu0 %vm444_vm3, %v690_v20 }
 0x565   :  { %6016 = vmatprep.mubr.msk.bf16.mxu0 %vm6529_vm0, %v6528_v2 }
 0x566   :  { %v6465_v21 = vpop.eup %6464 }
 0x567   :  { %v689_v23 = vmul.f32 %v6465_v21, %v6461_v11 }
 0x569   :  { %v691_v26 = vpack.c.bf16 %v689_v23, %v689_v23 }
 0x56a   :  { %6015 = vmatpush3.bf16.xpose.msra.mxu0 %v798_v25 }
 0x56b   :  { %6011 = vmatmul.mubr.msk.bf16.vlgmr.msra.gmra.mrb[24].mxu1 %vm444_vm3, %v691_v26  ;;  %6026 = vmatprep.subr.bf16.mxu0 %v6528_v2 }
 0x56c   :  { %6021 = vmatpush3.bf16.xpose.msra.mxu1 %v848_v27  ;;  %6022 = vmatprep.mubr.msk.bf16.mxu1 %vm6529_vm0, %v6528_v2 }
 0x56d   :  { %6032 = vmatprep.subr.bf16.mxu1 %v6528_v2 }
 0x571   :  { %6017 = vmatmul.mubr.msk.bf16.vlgmr.msra.gmra.mrb[12].mxu0 %vm349_vm1, %v791_v30 }
 0x572   :  { %6028 = vmatprep.mubr.msk.bf16.mxu0 %vm6529_vm0, %v6528_v2 }
 0x573   :  { %6023 = vmatmul.mubr.msk.bf16.vlgmr.msra.gmra.mrb[28].mxu1 %vm349_vm1, %v841_v31 }
 0x574   :  { %6034 = vmatprep.mubr.msk.bf16.mxu1 %vm6529_vm0, %v6528_v2 }
 0x637   :  { %v6862_v33 = vpop.f32.mrb[8].mxu0 }
 0x638   :  { %v6006_v34 = vpop.f32.mrb[9].mxu0 }
 0x639   :  { %v738_v35 = vpop.f32.mrb[10].mxu0 }
 0x63a   :  { %v6007_v36 = vpop.f32.mrb[11].mxu0 }
 0x63e   :  { %v6864_v38 = vpop.f32.mrb[24].mxu1 }
 0x63f   :  { %v6229_v40 = vpack.i.bf16 %v6864_v38, %v6862_v33  ;;  %v6012_v41 = vpop.f32.mrb[25].mxu1 }
 0x640   :  { %v787_v42 = vpop.f32.mrb[26].mxu1 }
 0x641   :  { %v6013_v45 = vpop.f32.mrb[27].mxu1 }
 0x644   :  { %v834_v46 = vpop.f32.mrb[12].mxu0 }
 0x645   :  { %v890_v49 = vmul.f32 0.25, %v834_v46  ;;  %v6018_v50 = vpop.f32.mrb[13].mxu0 }
 0x646   :  { %v837_v51 = vpop.f32.mrb[14].mxu0  ;;  %v884_v53 = vpop.f32.mrb[28].mxu1 }
 0x647   :  { %v891_v55 = vmul.f32 0.25, %v884_v53  ;;  %v6019_v56 = vpop.f32.mrb[15].mxu0  ;;  %v6024_v57 = vpop.f32.mrb[29].mxu1  ;;  %v892_v58 = vsel %vm444_vm3, %v890_v49, -inf }
 0x648   :  { %893 = vmax.xlane.f32.xlu0 %v892_v58  ;;  %v887_v59 = vpop.f32.mrb[30].mxu1 }
 0x649   :  { %v6025_v60 = vpop.f32.mrb[31].mxu1  ;;  %v895_v61 = vsel %vm444_vm3, %v891_v55, -inf }
 0x64a   :  { %896 = vmax.xlane.f32.xlu1 %v895_v61 }
 0x65b   :  { %964 = vrot.lane.b32.xlu1 %v6803_v22, %s6531_s4 }
 0x65f   :  { %1014 = vrot.lane.b32.xlu1 %v6758_v39, %s6532_s27 }
 0x663   :  { %1064 = vrot.lane.b32.xlu1 %v6763_v43, %s6532_s27 }
 0x667   :  { %1062 = vrot.lane.b32.xlu1 %v6774_v47, %s6532_s27 }
 0x6d5   :  { %v894_v62 = vpop.xlane.xlu0 %893 }
 0x6d6   :  { %v898_v63 = vsub.f32 %v890_v49, %v894_v62 }
 0x6d7   :  { %v897_v0 = vpop.xlane.xlu1 %896 }
 0x6d8   :  { %v900_v3 = vmul.f32 1.442695, %v898_v63  ;;  %v899_v4 = vsub.f32 %v891_v55, %v897_v0 }
 0x6da   :  { %6466 = vpow2.f32 %v900_v3  ;;  %v902_v5 = vmul.f32 1.442695, %v899_v4 }
 0x6db   :  { %v965_v6 = vpop.permute.xlu1 %964 }
 0x6dc   :  { %6468 = vpow2.f32 %v902_v5  ;;  %v970_v7 = vsel %vm472_vm2, %v965_v6, 0 }
 0x6dd   :  { %6033 = vmatpush3.bf16.msra.mxu1 %v970_v7 }
 0x6de   :  { %6044 = vmatprep.subr.bf16.mxu1 %v6528_v2 }
 0x6df   :  { %v1015_v17 = vpop.permute.xlu1 %1014 }
 0x6e0   :  { %v1020_v24 = vsel %vm349_vm1, %v1015_v17, 0 }
 0x6e3   :  { %v1065_v23 = vpop.permute.xlu1 %1064 }
 0x6e4   :  { %v6467_v8 = vpop.eup %6466  ;;  %v1070_v26 = vsel %vm349_vm1, %v1065_v23, 0 }
 0x6e5   :  { %v904_v9 = vsel %vm444_vm3, %v6467_v8, 0.0 }
 0x6e6   :  { %v6469_v10 = vpop.eup %6468  ;;  %905 = vadd.xlane.f32.xlu0 %v904_v9 }
 0x6e7   :  { %v907_v11 = vsel %vm444_vm3, %v6469_v10, 0.0  ;;  %v1063_v30 = vpop.permute.xlu1 %1062 }
 0x6ea   :  { %908 = vadd.xlane.f32.xlu0 %v907_v11 }
 0x700   :  { %916 = vrot.lane.b32.xlu0 %v6784_v54, %s6531_s4 }
 0x704   :  { %1012 = vrot.lane.b32.xlu0 %v6765_v44, %s6532_s27 }
 0x773   :  { %v906_v12 = vpop.xlane.xlu0 %905 }
 0x774   :  { %6470 = vrcp.f32 %v906_v12 }
 0x777   :  { %v909_v13 = vpop.xlane.xlu0 %908 }
 0x778   :  { %6472 = vrcp.f32 %v909_v13 }
 0x77b   :  { %v917_v14 = vpop.permute.xlu0 %916 }
 0x77c   :  { %v922_v15 = vsel %vm472_vm2, %v917_v14, 0 }
 0x77d   :  { %6027 = vmatpush3.bf16.msra.mxu0 %v922_v15 }
 0x77e   :  { %v6471_v16 = vpop.eup %6470  ;;  %6038 = vmatprep.subr.bf16.mxu0 %v6528_v2 }
 0x77f   :  { %v911_v18 = vmul.f32 %v6471_v16, %v6467_v8  ;;  %v1013_v27 = vpop.permute.xlu0 %1012 }
 0x781   :  { %v914_v19 = vpack.c.bf16 %v911_v18, %v911_v18 }
 0x782   :  { %v6473_v20 = vpop.eup %6472 }
 0x783   :  { %v913_v21 = vmul.f32 %v6473_v20, %v6469_v10  ;;  %6029 = vmatmul.mubr.msk.bf16.vlgmr.msra.gmra.mrb[16].mxu0 %vm444_vm3, %v914_v19 }
 0x784   :  { %6040 = vmatprep.mubr.msk.bf16.mxu0 %vm6529_vm0, %v6528_v2 }
 0x785   :  { %v915_v25 = vpack.c.bf16 %v913_v21, %v913_v21 }
 0x786   :  { %6039 = vmatpush3.bf16.xpose.msra.mxu0 %v1020_v24 }
 0x787   :  { %6035 = vmatmul.mubr.msk.bf16.vlgmr.msra.gmra.mrb[32].mxu1 %vm444_vm3, %v915_v25  ;;  %6050 = vmatprep.subr.bf16.mxu0 %v6528_v2 }
 0x788   :  { %6045 = vmatpush3.bf16.xpose.msra.mxu1 %v1070_v26  ;;  %6046 = vmatprep.mubr.msk.bf16.mxu1 %vm6529_vm0, %v6528_v2 }
 0x789   :  { %6056 = vmatprep.subr.bf16.mxu1 %v6528_v2 }
 0x78d   :  { %6041 = vmatmul.mubr.msk.bf16.vlgmr.msra.gmra.mrb[20].mxu0 %vm349_vm1, %v1013_v27 }
 0x78e   :  { %6052 = vmatprep.mubr.msk.bf16.mxu0 %vm6529_vm0, %v6528_v2 }
 0x78f   :  { %6047 = vmatmul.mubr.msk.bf16.vlgmr.msra.gmra.mrb[36].mxu1 %vm349_vm1, %v1063_v30 }
 0x790   :  { %6058 = vmatprep.mubr.msk.bf16.mxu1 %vm6529_vm0, %v6528_v2 }
 0x856   :  { %v6904_v31 = vpop.f32.mrb[16].mxu0 }
 0x857   :  { %v6030_v34 = vpop.f32.mrb[17].mxu0 }
 0x858   :  { %v961_v35 = vpop.f32.mrb[18].mxu0 }
 0x859   :  { %v6031_v36 = vpop.f32.mrb[19].mxu0 }
 0x85a   :  { %v6906_v41 = vpop.f32.mrb[32].mxu1 }
 0x85b   :  { %v6234_v42 = vpack.i.bf16 %v6906_v41, %v6904_v31  ;;  %v6036_v45 = vpop.f32.mrb[33].mxu1 }
 0x85c   :  { %v1009_v46 = vpop.f32.mrb[34].mxu1 }
 0x85d   :  { %v6037_v49 = vpop.f32.mrb[35].mxu1 }
 0x860   :  { %v1056_v50 = vpop.f32.mrb[20].mxu0 }
 0x861   :  { %v1112_v51 = vmul.f32 0.25, %v1056_v50  ;;  %v6042_v53 = vpop.f32.mrb[21].mxu0 }
 0x862   :  { %v1059_v55 = vpop.f32.mrb[22].mxu0  ;;  %v1106_v56 = vpop.f32.mrb[36].mxu1 }
 0x863   :  { %v1113_v57 = vmul.f32 0.25, %v1106_v56  ;;  %v6043_v58 = vpop.f32.mrb[23].mxu0  ;;  %v6048_v59 = vpop.f32.mrb[37].mxu1  ;;  %v1114_v60 = vsel %vm444_vm3, %v1112_v51, -inf }
 0x864   :  { %1115 = vmax.xlane.f32.xlu0 %v1114_v60  ;;  %v1109_v61 = vpop.f32.mrb[38].mxu1 }
 0x865   :  { %v6049_v62 = vpop.f32.mrb[39].mxu1  ;;  %v1117_v63 = vsel %vm444_vm3, %v1113_v57, -inf }
 0x866   :  { %1118 = vmax.xlane.f32.xlu1 %v1117_v63 }
 0x877   :  { %1186 = vrot.lane.b32.xlu1 %v6803_v22, %s6532_s27 }
 0x87b   :  { %1236 = vrot.lane.b32.xlu1 %v6758_v39, %s6533_s0 }
 0x87f   :  { %1286 = vrot.lane.b32.xlu1 %v6763_v43, %s6533_s0 }
 0x883   :  { %1284 = vrot.lane.b32.xlu1 %v6774_v47, %s6533_s0 }
 0x8f1   :  { %v1116_v0 = vpop.xlane.xlu0 %1115 }
 0x8f2   :  { %v1120_v3 = vsub.f32 %v1112_v51, %v1116_v0 }
 0x8f3   :  { %v1119_v4 = vpop.xlane.xlu1 %1118 }
 0x8f4   :  { %v1122_v5 = vmul.f32 1.442695, %v1120_v3  ;;  %v1121_v6 = vsub.f32 %v1113_v57, %v1119_v4 }
 0x8f6   :  { %6474 = vpow2.f32 %v1122_v5  ;;  %v1124_v7 = vmul.f32 1.442695, %v1121_v6 }
 0x8f7   :  { %v1187_v8 = vpop.permute.xlu1 %1186 }
 0x8f8   :  { %6476 = vpow2.f32 %v1124_v7  ;;  %v1192_v9 = vsel %vm472_vm2, %v1187_v8, 0 }
 0x8f9   :  { %6057 = vmatpush3.bf16.msra.mxu1 %v1192_v9 }
 0x8fa   :  { %6068 = vmatprep.subr.bf16.mxu1 %v6528_v2 }
 0x8fb   :  { %v1237_v19 = vpop.permute.xlu1 %1236 }
 0x8fc   :  { %v1242_v26 = vsel %vm349_vm1, %v1237_v19, 0 }
 0x8ff   :  { %v1287_v25 = vpop.permute.xlu1 %1286 }
 0x900   :  { %v6475_v10 = vpop.eup %6474  ;;  %v1292_v30 = vsel %vm349_vm1, %v1287_v25, 0 }
 0x901   :  { %v1126_v11 = vsel %vm444_vm3, %v6475_v10, 0.0 }
 0x902   :  { %v6477_v12 = vpop.eup %6476  ;;  %1127 = vadd.xlane.f32.xlu0 %v1126_v11 }
 0x903   :  { %v1129_v13 = vsel %vm444_vm3, %v6477_v12, 0.0  ;;  %v1285_v35 = vpop.permute.xlu1 %1284 }
 0x906   :  { %1130 = vadd.xlane.f32.xlu0 %v1129_v13 }
 0x91c   :  { %1138 = vrot.lane.b32.xlu0 %v6784_v54, %s6532_s27 }
 0x920   :  { %1234 = vrot.lane.b32.xlu0 %v6765_v44, %s6533_s0 }
 0x98f   :  { %v1128_v14 = vpop.xlane.xlu0 %1127 }
 0x990   :  { %6478 = vrcp.f32 %v1128_v14 }
 0x993   :  { %v1131_v15 = vpop.xlane.xlu0 %1130 }
 0x994   :  { %6480 = vrcp.f32 %v1131_v15 }
 0x997   :  { %v1139_v16 = vpop.permute.xlu0 %1138 }
 0x998   :  { %v1144_v17 = vsel %vm472_vm2, %v1139_v16, 0 }
 0x999   :  { %6051 = vmatpush3.bf16.msra.mxu0 %v1144_v17 }
 0x99a   :  { %v6479_v18 = vpop.eup %6478  ;;  %6062 = vmatprep.subr.bf16.mxu0 %v6528_v2 }
 0x99b   :  { %v1133_v20 = vmul.f32 %v6479_v18, %v6475_v10  ;;  %v1235_v34 = vpop.permute.xlu0 %1234 }
 0x99d   :  { %v1136_v21 = vpack.c.bf16 %v1133_v20, %v1133_v20 }
 0x99e   :  { %v6481_v23 = vpop.eup %6480 }
 0x99f   :  { %v1135_v24 = vmul.f32 %v6481_v23, %v6477_v12  ;;  %6053 = vmatmul.mubr.msk.bf16.vlgmr.msra.gmra.mrb[24].mxu0 %vm444_vm3, %v1136_v21 }
 0x9a0   :  { %6064 = vmatprep.mubr.msk.bf16.mxu0 %vm6529_vm0, %v6528_v2 }
 0x9a1   :  { %v1137_v27 = vpack.c.bf16 %v1135_v24, %v1135_v24 }
 0x9a2   :  { %6063 = vmatpush3.bf16.xpose.msra.mxu0 %v1242_v26 }
 0x9a3   :  { %6059 = vmatmul.mubr.msk.bf16.vlgmr.msra.gmra.mrb[40].mxu1 %vm444_vm3, %v1137_v27  ;;  %6074 = vmatprep.subr.bf16.mxu0 %v6528_v2 }
 0x9a4   :  { %6069 = vmatpush3.bf16.xpose.msra.mxu1 %v1292_v30  ;;  %6070 = vmatprep.mubr.msk.bf16.mxu1 %vm6529_vm0, %v6528_v2 }
 0x9a5   :  { %6080 = vmatprep.subr.bf16.mxu1 %v6528_v2 }
 0x9a9   :  { %6065 = vmatmul.mubr.msk.bf16.vlgmr.msra.gmra.mrb[28].mxu0 %vm349_vm1, %v1235_v34 }
 0x9aa   :  { %6076 = vmatprep.mubr.msk.bf16.mxu0 %vm6529_vm0, %v6528_v2 }
 0x9ab   :  { %6071 = vmatmul.mubr.msk.bf16.vlgmr.msra.gmra.mrb[44].mxu1 %vm349_vm1, %v1285_v35 }
 0x9ac   :  { %6082 = vmatprep.mubr.msk.bf16.mxu1 %vm6529_vm0, %v6528_v2 }
 0xa72   :  { %v6946_v36 = vpop.f32.mrb[24].mxu0 }
 0xa73   :  { %v6054_v45 = vpop.f32.mrb[25].mxu0 }
 0xa74   :  { %v1183_v46 = vpop.f32.mrb[26].mxu0 }
 0xa75   :  { %v6055_v49 = vpop.f32.mrb[27].mxu0 }
 0xa76   :  { %v6948_v50 = vpop.f32.mrb[40].mxu1 }
 0xa77   :  { %v6239_v51 = vpack.i.bf16 %v6948_v50, %v6946_v36  ;;  %v6060_v53 = vpop.f32.mrb[41].mxu1 }
 0xa78   :  { %v1231_v55 = vpop.f32.mrb[42].mxu1 }
 0xa79   :  { %v6061_v56 = vpop.f32.mrb[43].mxu1 }
 0xa7c   :  { %v1278_v57 = vpop.f32.mrb[28].mxu0 }
 0xa7d   :  { %v1334_v58 = vmul.f32 0.25, %v1278_v57  ;;  %v6066_v59 = vpop.f32.mrb[29].mxu0 }
 0xa7e   :  { %v1281_v60 = vpop.f32.mrb[30].mxu0  ;;  %v1328_v61 = vpop.f32.mrb[44].mxu1 }
 0xa7f   :  { %v1335_v62 = vmul.f32 0.25, %v1328_v61  ;;  %v6067_v63 = vpop.f32.mrb[31].mxu0  ;;  %v6072_v0 = vpop.f32.mrb[45].mxu1  ;;  %v1336_v3 = vsel %vm444_vm3, %v1334_v58, -inf }
 0xa80   :  { %1337 = vmax.xlane.f32.xlu0 %v1336_v3  ;;  %v1331_v4 = vpop.f32.mrb[46].mxu1 }
 0xa81   :  { %v6073_v5 = vpop.f32.mrb[47].mxu1  ;;  %v1339_v6 = vsel %vm444_vm3, %v1335_v62, -inf }
 0xa82   :  { %1340 = vmax.xlane.f32.xlu1 %v1339_v6 }
 0xa93   :  { %1408 = vrot.lane.b32.xlu1 %v6803_v22, %s6533_s0 }
 0xa97   :  { %1458 = vrot.lane.b32.xlu1 %v6758_v39, %s6534_s28 }
 0xa9b   :  { %1508 = vrot.lane.b32.xlu1 %v6763_v43, %s6534_s28 }
 0xa9f   :  { %1506 = vrot.lane.b32.xlu1 %v6774_v47, %s6534_s28 }
 0xb0d   :  { %v1338_v7 = vpop.xlane.xlu0 %1337 }
 0xb0e   :  { %v1342_v8 = vsub.f32 %v1334_v58, %v1338_v7 }
 0xb0f   :  { %v1341_v9 = vpop.xlane.xlu1 %1340 }
 0xb10   :  { %v1344_v10 = vmul.f32 1.442695, %v1342_v8  ;;  %v1343_v11 = vsub.f32 %v1335_v62, %v1341_v9 }
 0xb12   :  { %6482 = vpow2.f32 %v1344_v10  ;;  %v1346_v12 = vmul.f32 1.442695, %v1343_v11 }
 0xb13   :  { %v1409_v13 = vpop.permute.xlu1 %1408 }
 0xb14   :  { %6484 = vpow2.f32 %v1346_v12  ;;  %v1414_v14 = vsel %vm472_vm2, %v1409_v13, 0 }
 0xb15   :  { %6081 = vmatpush3.bf16.msra.mxu1 %v1414_v14 }
 0xb16   :  { %6092 = vmatprep.subr.bf16.mxu1 %v6528_v2 }
 0xb17   :  { %v1459_v25 = vpop.permute.xlu1 %1458 }
 0xb18   :  { %v1464_v45 = vsel %vm349_vm1, %v1459_v25, 0 }
 0xb1b   :  { %v1509_v35 = vpop.permute.xlu1 %1508 }
 0xb1c   :  { %v6483_v15 = vpop.eup %6482  ;;  %v1514_v49 = vsel %vm349_vm1, %v1509_v35, 0 }
 0xb1d   :  { %v1348_v16 = vsel %vm444_vm3, %v6483_v15, 0.0 }
 0xb1e   :  { %v6485_v17 = vpop.eup %6484  ;;  %1349 = vadd.xlane.f32.xlu0 %v1348_v16 }
 0xb1f   :  { %v1351_v18 = vsel %vm444_vm3, %v6485_v17, 0.0  ;;  %v1507_v55 = vpop.permute.xlu1 %1506 }
 0xb22   :  { %1352 = vadd.xlane.f32.xlu0 %v1351_v18 }
 0xb38   :  { %1360 = vrot.lane.b32.xlu0 %v6784_v54, %s6533_s0 }
 0xb3c   :  { %1456 = vrot.lane.b32.xlu0 %v6765_v44, %s6534_s28 }
 0xbab   :  { %v1350_v19 = vpop.xlane.xlu0 %1349 }
 0xbac   :  { %6486 = vrcp.f32 %v1350_v19 }
 0xbaf   :  { %v1353_v20 = vpop.xlane.xlu0 %1352 }
 0xbb0   :  { %6488 = vrcp.f32 %v1353_v20 }
 0xbb3   :  { %v1361_v21 = vpop.permute.xlu0 %1360 }
 0xbb4   :  { %v1366_v23 = vsel %vm472_vm2, %v1361_v21, 0 }
 0xbb5   :  { %6075 = vmatpush3.bf16.msra.mxu0 %v1366_v23 }
 0xbb6   :  { %v6487_v24 = vpop.eup %6486  ;;  %6086 = vmatprep.subr.bf16.mxu0 %v6528_v2 }
 0xbb7   :  { %v1355_v26 = vmul.f32 %v6487_v24, %v6483_v15  ;;  %v1457_v53 = vpop.permute.xlu0 %1456 }
 0xbb9   :  { %v1358_v27 = vpack.c.bf16 %v1355_v26, %v1355_v26 }
 0xbba   :  { %v6489_v30 = vpop.eup %6488 }
 0xbbb   :  { %v1357_v34 = vmul.f32 %v6489_v30, %v6485_v17  ;;  %6077 = vmatmul.mubr.msk.bf16.vlgmr.msra.gmra.mrb[32].mxu0 %vm444_vm3, %v1358_v27 }
 0xbbc   :  { %6088 = vmatprep.mubr.msk.bf16.mxu0 %vm6529_vm0, %v6528_v2 }
 0xbbd   :  { %v1359_v46 = vpack.c.bf16 %v1357_v34, %v1357_v34 }
 0xbbe   :  { %6087 = vmatpush3.bf16.xpose.msra.mxu0 %v1464_v45 }
 0xbbf   :  { %6083 = vmatmul.mubr.msk.bf16.vlgmr.msra.gmra.mrb[48].mxu1 %vm444_vm3, %v1359_v46  ;;  %6098 = vmatprep.subr.bf16.mxu0 %v6528_v2 }
 0xbc0   :  { %6093 = vmatpush3.bf16.xpose.msra.mxu1 %v1514_v49  ;;  %6094 = vmatprep.mubr.msk.bf16.mxu1 %vm6529_vm0, %v6528_v2 }
 0xbc1   :  { %6104 = vmatprep.subr.bf16.mxu1 %v6528_v2 }
 0xbc5   :  { %6089 = vmatmul.mubr.msk.bf16.vlgmr.msra.gmra.mrb[36].mxu0 %vm349_vm1, %v1457_v53 }
 0xbc6   :  { %6100 = vmatprep.mubr.msk.bf16.mxu0 %vm6529_vm0, %v6528_v2 }
 0xbc7   :  { %6095 = vmatmul.mubr.msk.bf16.vlgmr.msra.gmra.mrb[52].mxu1 %vm349_vm1, %v1507_v55 }
 0xbc8   :  { %6106 = vmatprep.mubr.msk.bf16.mxu1 %vm6529_vm0, %v6528_v2 }
 0xc8e   :  { %v6988_v56 = vpop.f32.mrb[32].mxu0 }
 0xc8f   :  { %v6078_v57 = vpop.f32.mrb[33].mxu0 }
 0xc90   :  { %v1405_v58 = vpop.f32.mrb[34].mxu0 }
 0xc91   :  { %v6079_v59 = vpop.f32.mrb[35].mxu0 }
 0xc92   :  { %v6990_v60 = vpop.f32.mrb[48].mxu1 }
 0xc93   :  { %v6244_v61 = vpack.i.bf16 %v6990_v60, %v6988_v56  ;;  %v6084_v62 = vpop.f32.mrb[49].mxu1 }
 0xc94   :  { %v1453_v63 = vpop.f32.mrb[50].mxu1 }
 0xc95   :  { %v6085_v0 = vpop.f32.mrb[51].mxu1 }
 0xc98   :  { %v1500_v3 = vpop.f32.mrb[36].mxu0 }
 0xc99   :  { %v1556_v4 = vmul.f32 0.25, %v1500_v3  ;;  %v6090_v5 = vpop.f32.mrb[37].mxu0 }
 0xc9a   :  { %v1503_v6 = vpop.f32.mrb[38].mxu0  ;;  %v1550_v7 = vpop.f32.mrb[52].mxu1 }
 0xc9b   :  { %v1557_v8 = vmul.f32 0.25, %v1550_v7  ;;  %v6091_v9 = vpop.f32.mrb[39].mxu0  ;;  %v6096_v10 = vpop.f32.mrb[53].mxu1  ;;  %v1558_v11 = vsel %vm444_vm3, %v1556_v4, -inf }
 0xc9c   :  { %1559 = vmax.xlane.f32.xlu0 %v1558_v11  ;;  %v1553_v12 = vpop.f32.mrb[54].mxu1 }
 0xc9d   :  { %v6097_v13 = vpop.f32.mrb[55].mxu1  ;;  %v1561_v14 = vsel %vm444_vm3, %v1557_v8, -inf }
 0xc9e   :  { %1562 = vmax.xlane.f32.xlu1 %v1561_v14 }
 0xcaf   :  { %1630 = vrot.lane.b32.xlu1 %v6803_v22, %s6534_s28 }
 0xcb3   :  { %1680 = vrot.lane.b32.xlu1 %v6758_v39, %s6535_s5 }
 0xcb7   :  { %1730 = vrot.lane.b32.xlu1 %v6763_v43, %s6535_s5 }
 0xcbb   :  { %1728 = vrot.lane.b32.xlu1 %v6774_v47, %s6535_s5 }
 0xd29   :  { %v1560_v15 = vpop.xlane.xlu0 %1559 }
 0xd2a   :  { %v1564_v16 = vsub.f32 %v1556_v4, %v1560_v15 }
 0xd2b   :  { %v1563_v17 = vpop.xlane.xlu1 %1562 }
 0xd2c   :  { %v1566_v18 = vmul.f32 1.442695, %v1564_v16  ;;  %v1565_v19 = vsub.f32 %v1557_v8, %v1563_v17 }
 0xd2e   :  { %6490 = vpow2.f32 %v1566_v18  ;;  %v1568_v20 = vmul.f32 1.442695, %v1565_v19 }
 0xd2f   :  { %v1631_v21 = vpop.permute.xlu1 %1630 }
 0xd30   :  { %6492 = vpow2.f32 %v1568_v20  ;;  %v1636_v23 = vsel %vm472_vm2, %v1631_v21, 0 }
 0xd31   :  { %6105 = vmatpush3.bf16.msra.mxu1 %v1636_v23 }
 0xd32   :  { %6116 = vmatprep.subr.bf16.mxu1 %v6528_v2 }
 0xd33   :  { %v1681_v49 = vpop.permute.xlu1 %1680 }
 0xd34   :  { %v1686_v62 = vsel %vm349_vm1, %v1681_v49, 0 }
 0xd37   :  { %v1731_v59 = vpop.permute.xlu1 %1730 }
 0xd38   :  { %v6491_v24 = vpop.eup %6490  ;;  %v1736_v0 = vsel %vm349_vm1, %v1731_v59, 0 }
 0xd39   :  { %v1570_v25 = vsel %vm444_vm3, %v6491_v24, 0.0 }
 0xd3a   :  { %v6493_v26 = vpop.eup %6492  ;;  %1571 = vadd.xlane.f32.xlu0 %v1570_v25 }
 0xd3b   :  { %v1573_v27 = vsel %vm444_vm3, %v6493_v26, 0.0  ;;  %v1729_v4 = vpop.permute.xlu1 %1728 }
 0xd3e   :  { %1574 = vadd.xlane.f32.xlu0 %v1573_v27 }
 0xd54   :  { %1582 = vrot.lane.b32.xlu0 %v6784_v54, %s6534_s28 }
 0xd58   :  { %1678 = vrot.lane.b32.xlu0 %v6765_v44, %s6535_s5 }
 0xdc7   :  { %v1572_v30 = vpop.xlane.xlu0 %1571 }
 0xdc8   :  { %6494 = vrcp.f32 %v1572_v30 }
 0xdcb   :  { %v1575_v34 = vpop.xlane.xlu0 %1574 }
 0xdcc   :  { %6496 = vrcp.f32 %v1575_v34 }
 0xdcf   :  { %v1583_v35 = vpop.permute.xlu0 %1582 }
 0xdd0   :  { %v1588_v45 = vsel %vm472_vm2, %v1583_v35, 0 }
 0xdd1   :  { %6099 = vmatpush3.bf16.msra.mxu0 %v1588_v45 }
 0xdd2   :  { %v6495_v46 = vpop.eup %6494  ;;  %6110 = vmatprep.subr.bf16.mxu0 %v6528_v2 }
 0xdd3   :  { %v1577_v53 = vmul.f32 %v6495_v46, %v6491_v24  ;;  %v1679_v3 = vpop.permute.xlu0 %1678 }
 0xdd5   :  { %v1580_v55 = vpack.c.bf16 %v1577_v53, %v1577_v53 }
 0xdd6   :  { %v6497_v57 = vpop.eup %6496 }
 0xdd7   :  { %v1579_v58 = vmul.f32 %v6497_v57, %v6493_v26  ;;  %6101 = vmatmul.mubr.msk.bf16.vlgmr.msra.gmra.mrb[40].mxu0 %vm444_vm3, %v1580_v55 }
 0xdd8   :  { %6112 = vmatprep.mubr.msk.bf16.mxu0 %vm6529_vm0, %v6528_v2 }
 0xdd9   :  { %v1581_v63 = vpack.c.bf16 %v1579_v58, %v1579_v58 }
 0xdda   :  { %6111 = vmatpush3.bf16.xpose.msra.mxu0 %v1686_v62 }
 0xddb   :  { %6107 = vmatmul.mubr.msk.bf16.vlgmr.msra.gmra.mrb[56].mxu1 %vm444_vm3, %v1581_v63  ;;  %6122 = vmatprep.subr.bf16.mxu0 %v6528_v2 }
 0xddc   :  { %6117 = vmatpush3.bf16.xpose.msra.mxu1 %v1736_v0  ;;  %6118 = vmatprep.mubr.msk.bf16.mxu1 %vm6529_vm0, %v6528_v2 }
 0xddd   :  { %6128 = vmatprep.subr.bf16.mxu1 %v6528_v2 }
 0xde1   :  { %6113 = vmatmul.mubr.msk.bf16.vlgmr.msra.gmra.mrb[44].mxu0 %vm349_vm1, %v1679_v3 }
 0xde2   :  { %6124 = vmatprep.mubr.msk.bf16.mxu0 %vm6529_vm0, %v6528_v2 }
 0xde3   :  { %6119 = vmatmul.mubr.msk.bf16.vlgmr.msra.gmra.mrb[60].mxu1 %vm349_vm1, %v1729_v4 }
 0xde4   :  { %6130 = vmatprep.mubr.msk.bf16.mxu1 %vm6529_vm0, %v6528_v2 }
 0xeaa   :  { %v7030_v5 = vpop.f32.mrb[40].mxu0 }
 0xeab   :  { %v6102_v6 = vpop.f32.mrb[41].mxu0 }
 0xeac   :  { %v1627_v7 = vpop.f32.mrb[42].mxu0 }
 0xead   :  { %v6103_v8 = vpop.f32.mrb[43].mxu0 }
 0xeae   :  { %v7032_v9 = vpop.f32.mrb[56].mxu1 }
 0xeaf   :  { %v6249_v10 = vpack.i.bf16 %v7032_v9, %v7030_v5  ;;  %v6108_v11 = vpop.f32.mrb[57].mxu1  ;;  %v6297_v5 = vld [vmem:[%s8166_s6] sm:$0xff]   ;;  %v6298_v9 = vld [vmem:[%s8166_s6 + $0x8] sm:$0xff]  }
 0xeb0   :  { %v1675_v12 = vpop.f32.mrb[58].mxu1 }
 0xeb1   :  { %v6109_v13 = vpop.f32.mrb[59].mxu1 }
 0xeb4   :  { %v1722_v14 = vpop.f32.mrb[44].mxu0 }
 0xeb5   :  { %v1778_v15 = vmul.f32 0.25, %v1722_v14  ;;  %v6114_v16 = vpop.f32.mrb[45].mxu0 }
 0xeb6   :  { %v1725_v17 = vpop.f32.mrb[46].mxu0  ;;  %v1772_v18 = vpop.f32.mrb[60].mxu1 }
 0xeb7   :  { %v1779_v19 = vmul.f32 0.25, %v1772_v18  ;;  %v6115_v20 = vpop.f32.mrb[47].mxu0  ;;  %v6120_v21 = vpop.f32.mrb[61].mxu1  ;;  %v1780_v23 = vsel %vm444_vm3, %v1778_v15, -inf }
 0xeb8   :  { %1781 = vmax.xlane.f32.xlu0 %v1780_v23  ;;  %v1775_v24 = vpop.f32.mrb[62].mxu1 }
 0xeb9   :  { %v6121_v25 = vpop.f32.mrb[63].mxu1  ;;  %v1783_v26 = vsel %vm444_vm3, %v1779_v19, -inf }
 0xeba   :  { %1784 = vmax.xlane.f32.xlu1 %v1783_v26 }
 0xecb   :  { %1852 = vrot.lane.b32.xlu1 %v6803_v22, %s6535_s5 }
 0xecf   :  { %1902 = vrot.lane.b32.xlu1 %v6758_v39, %s6536_s2 }
 0xed3   :  { %1952 = vrot.lane.b32.xlu1 %v6763_v43, %s6536_s2 }
 0xed7   :  { %1950 = vrot.lane.b32.xlu1 %v6774_v47, %s6536_s2 }
 0xf45   :  { %v1782_v27 = vpop.xlane.xlu0 %1781 }
 0xf46   :  { %v1786_v30 = vsub.f32 %v1778_v15, %v1782_v27 }
 0xf47   :  { %v1785_v34 = vpop.xlane.xlu1 %1784 }
 0xf48   :  { %v1788_v35 = vmul.f32 1.442695, %v1786_v30  ;;  %v1787_v45 = vsub.f32 %v1779_v19, %v1785_v34 }
 0xf4a   :  { %6498 = vpow2.f32 %v1788_v35  ;;  %v1790_v46 = vmul.f32 1.442695, %v1787_v45 }
 0xf4b   :  { %v1853_v49 = vpop.permute.xlu1 %1852 }
 0xf4c   :  { %6500 = vpow2.f32 %v1790_v46  ;;  %v1858_v53 = vsel %vm472_vm2, %v1853_v49, 0 }
 0xf4d   :  { %6129 = vmatpush3.bf16.msra.mxu1 %v1858_v53 }
 0xf4e   :  { %6140 = vmatprep.subr.bf16.mxu1 %v6528_v2 }
 0xf4f   :  { %v1903_v0 = vpop.permute.xlu1 %1902 }
 0xf53   :  { %v1953_v8 = vpop.permute.xlu1 %1952 }
 0xf54   :  { %v6499_v39 = vpop.eup %6498  ;;  %v1958_v12 = vsel %vm349_vm1, %v1953_v8, 0  ;;  %v6304_v8 = vld [vmem:[%s8166_s6 + $0x38] sm:$0xff]  }
 0xf55   :  { %v1792_v43 = vsel %vm444_vm3, %v6499_v39, 0.0 }
 0xf56   :  { %v6501_v55 = vpop.eup %6500  ;;  %1793 = vadd.xlane.f32.xlu0 %v1792_v43 }
 0xf57   :  { %v1795_v47 = vsel %vm444_vm3, %v6501_v55, 0.0  ;;  %v1951_v14 = vpop.permute.xlu1 %1950 }
 0xf5a   :  { %1796 = vadd.xlane.f32.xlu0 %v1795_v47 }
 0xf70   :  { %1804 = vrot.lane.b32.xlu0 %v6784_v54, %s6535_s5 }
 0xf74   :  { %1900 = vrot.lane.b32.xlu0 %v6765_v44, %s6536_s2  ;;  %v1908_v44 = vsel %vm349_vm1, %v1903_v0, 0 }
 0xfe3   :  { %v1794_v57 = vpop.xlane.xlu0 %1793 }
 0xfe4   :  { %6502 = vrcp.f32 %v1794_v57 }
 0xfe7   :  { %v1797_v58 = vpop.xlane.xlu0 %1796 }
 0xfe8   :  { %6504 = vrcp.f32 %v1797_v58 }
 0xfeb   :  { %v1805_v59 = vpop.permute.xlu0 %1804 }
 0xfec   :  { %v1810_v62 = vsel %vm472_vm2, %v1805_v59, 0 }
 0xfed   :  { %6123 = vmatpush3.bf16.msra.mxu0 %v1810_v62 }
 0xfee   :  { %v6503_v63 = vpop.eup %6502  ;;  %6134 = vmatprep.subr.bf16.mxu0 %v6528_v2 }
 0xfef   :  { %v1799_v3 = vmul.f32 %v6503_v63, %v6499_v39  ;;  %v1901_v13 = vpop.permute.xlu0 %1900 }
 0xff1   :  { %v1802_v4 = vpack.c.bf16 %v1799_v3, %v1799_v3  ;;  %v6300_v3 = vld [vmem:[%s8166_s6 + $0x18] sm:$0xff]  }
 0xff2   :  { %v6505_v6 = vpop.eup %6504 }
 0xff3   :  { %v1801_v7 = vmul.f32 %v6505_v6, %v6501_v55  ;;  %6125 = vmatmul.mubr.msk.bf16.vlgmr.msra.gmra.mrb[48].mxu0 %vm444_vm3, %v1802_v4  ;;  %v6301_v4 = vld [vmem:[%s8166_s6 + $0x20] sm:$0xff]   ;;  %v6302_v6 = vld [vmem:[%s8166_s6 + $0x28] sm:$0xff]  }
 0xff4   :  { %6136 = vmatprep.mubr.msk.bf16.mxu0 %vm6529_vm0, %v6528_v2 }
 0xff5   :  { %v1803_v11 = vpack.c.bf16 %v1801_v7, %v1801_v7  ;;  %v6303_v7 = vld [vmem:[%s8166_s6 + $0x30] sm:$0xff]  }
 0xff6   :  { %6135 = vmatpush3.bf16.xpose.msra.mxu0 %v1908_v44 }
 0xff7   :  { %6131 = vmatmul.mubr.msk.bf16.vlgmr.msra.gmra.mrb[64].mxu1 %vm444_vm3, %v1803_v11  ;;  %6146 = vmatprep.subr.bf16.mxu0 %v6528_v2 }
 0xff8   :  { %6141 = vmatpush3.bf16.xpose.msra.mxu1 %v1958_v12  ;;  %6142 = vmatprep.mubr.msk.bf16.mxu1 %vm6529_vm0, %v6528_v2 }
 0xff9   :  { %6152 = vmatprep.subr.bf16.mxu1 %v6528_v2 }
 0xffd   :  { %6137 = vmatmul.mubr.msk.bf16.vlgmr.msra.gmra.mrb[52].mxu0 %vm349_vm1, %v1901_v13 }
 0xffe   :  { %6148 = vmatprep.mubr.msk.bf16.mxu0 %vm6529_vm0, %v6528_v2 }
 0xfff   :  { %6143 = vmatmul.mubr.msk.bf16.vlgmr.msra.gmra.mrb[68].mxu1 %vm349_vm1, %v1951_v14 }
0x1000   :  { %6154 = vmatprep.mubr.msk.bf16.mxu1 %vm6529_vm0, %v6528_v2 }
0x10c6   :  { %v1846_v15 = vpop.f32.mrb[48].mxu0 }
0x10c7   :  { %v6126_v16 = vpop.f32.mrb[49].mxu0 }
0x10c8   :  { %v1849_v17 = vpop.f32.mrb[50].mxu0 }
0x10c9   :  { %v6127_v18 = vpop.f32.mrb[51].mxu0 }
0x10ca   :  { %v1894_v19 = vpop.f32.mrb[64].mxu1 }
0x10cb   :  { %v6254_v20 = vpack.i.bf16 %v1894_v19, %v1846_v15  ;;  %v6132_v21 = vpop.f32.mrb[65].mxu1 }
0x10cc   :  { %v1897_v23 = vpop.f32.mrb[66].mxu1 }
0x10cd   :  { %v6133_v24 = vpop.f32.mrb[67].mxu1 }
0x10d0   :  { %v1944_v25 = vpop.f32.mrb[52].mxu0 }
0x10d1   :  { %v2000_v26 = vmul.f32 0.25, %v1944_v25  ;;  %v6138_v27 = vpop.f32.mrb[53].mxu0 }
0x10d2   :  { %v1947_v30 = vpop.f32.mrb[54].mxu0  ;;  %v1994_v34 = vpop.f32.mrb[68].mxu1 }
0x10d3   :  { %v2001_v35 = vmul.f32 0.25, %v1994_v34  ;;  %v6139_v45 = vpop.f32.mrb[55].mxu0  ;;  %v6144_v46 = vpop.f32.mrb[69].mxu1  ;;  %v2002_v49 = vsel %vm444_vm3, %v2000_v26, -inf  ;;  %v2354_v30 = vld [vmem:[%s8138_s1] sm:$0x3] }
0x10d4   :  { %2003 = vmax.xlane.f32.xlu0 %v2002_v49  ;;  %v1997_v53 = vpop.f32.mrb[70].mxu1  ;;  %v2355_v34 = vpack.c.bf16 %v2354_v30, %v2354_v30 }
0x10d5   :  { %v6145_v39 = vpop.f32.mrb[71].mxu1  ;;  %v2005_v43 = vsel %vm444_vm3, %v2001_v35, -inf }
0x10d6   :  { %2006 = vmax.xlane.f32.xlu1 %v2005_v43 }
0x10e7   :  { %2074 = vrot.lane.b32.xlu1 %v6803_v22, %s6536_s2 }
0x10eb   :  { %6230 = vrot.lane.b32.xlu1 %v6229_v40, %s6536_s2 }
0x10ef   :  { %6235 = vrot.lane.b32.xlu1 %v6234_v42, %s6535_s5 }
0x10f3   :  { %6245 = vrot.lane.b32.xlu1 %v6244_v61, %s6533_s0 }
0x10f7   :  { %6255 = vrot.lane.b32.xlu1 %v6254_v20, %s6531_s4  ;;  %s8167_s4 = sld [smem:[#allocation6_spill]] }
0x10fd   :  { %v6305_v11 = vld [vmem:[%s8167_s4] sm:$0xff]   ;;  %v6306_v14 = vld [vmem:[%s8167_s4 + $0x8] sm:$0xff]   ;;  %v6307_v20 = vld [vmem:[%s8167_s4 + $0x10] sm:$0xff]  }
0x10fe   :  { %v6308_v23 = vld [vmem:[%s8167_s4 + $0x18] sm:$0xff]   ;;  %v6309_v24 = vld [vmem:[%s8167_s4 + $0x20] sm:$0xff]   ;;  %v6310_v25 = vld [vmem:[%s8167_s4 + $0x28] sm:$0xff]  }
0x10ff   :  { %v6312_v27 = vld [vmem:[%s8167_s4 + $0x38] sm:$0xff]  }
0x1161   :  { %v2004_v55 = vpop.xlane.xlu0 %2003 }
0x1162   :  { %v2008_v47 = vsub.f32 %v2000_v26, %v2004_v55  ;;  %v6311_v26 = vld [vmem:[%s8167_s4 + $0x30] sm:$0xff]  }
0x1163   :  { %v2007_v22 = vpop.xlane.xlu1 %2006 }
0x1164   :  { %v2010_v57 = vmul.f32 1.442695, %v2008_v47  ;;  %v2009_v58 = vsub.f32 %v2001_v35, %v2007_v22 }
0x1166   :  { %6506 = vpow2.f32 %v2010_v57  ;;  %v2012_v33 = vmul.f32 1.442695, %v2009_v58 }
0x1167   :  { %v2075_v38 = vpop.permute.xlu1 %2074 }
0x1168   :  { %6508 = vpow2.f32 %v2012_v33  ;;  %v2080_v40 = vsel %vm472_vm2, %v2075_v38, 0 }
0x1169   :  { %6153 = vmatpush3.bf16.msra.mxu1 %v2080_v40 }
0x116a   :  { %6178 = vmatprep.subr.bf16.mxu1 %v6528_v2 }
0x116b   :  { %v6231_v35 = vpop.permute.xlu1 %6230 }
0x116c   :  { %v6233_v49 = vunpack.i.h.bf16 %v6231_v35  ;;  %v6232_v53 = vunpack.i.l.bf16 %v6231_v35 }
0x116e   :  { %v2179_v58 = vsel %vm349_vm1, %v6825_v52, %v6233_v49  ;;  %v2178_v33 = vsel %vm349_vm1, %v6822_v37, %v6232_v53 }
0x116f   :  { %v6236_v45 = vpop.permute.xlu1 %6235 }
0x1170   :  { %v6507_v31 = vpop.eup %6506  ;;  %v6238_v39 = vunpack.i.h.bf16 %v6236_v45  ;;  %v6237_v43 = vunpack.i.l.bf16 %v6236_v45 }
0x1171   :  { %v2014_v41 = vsel %vm444_vm3, %v6507_v31, 0.0 }
0x1172   :  { %v6509_v42 = vpop.eup %6508  ;;  %2015 = vadd.xlane.f32.xlu0 %v2014_v41  ;;  %v2181_v38 = vsel %vm2180_vm4, %v2178_v33, %v6237_v43  ;;  %v2182_v40 = vsel %vm2180_vm4, %v2179_v58, %v6238_v39 }
0x1173   :  { %v2017_v56 = vsel %vm444_vm3, %v6509_v42, 0.0  ;;  %v6246_v55 = vpop.permute.xlu1 %6245 }
0x1176   :  { %2018 = vadd.xlane.f32.xlu0 %v2017_v56 }
0x118c   :  { %2026 = vrot.lane.b32.xlu0 %v6784_v54, %s6536_s2 }
0x1190   :  { %6240 = vrot.lane.b32.xlu0 %v6239_v51, %s6534_s28 }
0x1194   :  { %6250 = vrot.lane.b32.xlu0 %v6249_v10, %s6532_s27  ;;  %v6299_v10 = vld [vmem:[%s8166_s6 + $0x10] sm:$0xff]  }
0x11ff   :  { %v2016_v60 = vpop.xlane.xlu0 %2015 }
0x1200   :  { %6510 = vrcp.f32 %v2016_v60  ;;  %v6248_v60 = vunpack.i.h.bf16 %v6246_v55 }
0x1203   :  { %v2019_v61 = vpop.xlane.xlu0 %2018 }
0x1204   :  { %6512 = vrcp.f32 %v2019_v61  ;;  %v6247_v61 = vunpack.i.l.bf16 %v6246_v55 }
0x1207   :  { %v2027_v59 = vpop.permute.xlu0 %2026 }
0x1208   :  { %v2032_v62 = vsel %vm472_vm2, %v2027_v59, 0  ;;  %v6256_v59 = vpop.permute.xlu1 %6255 }
0x1209   :  { %6147 = vmatpush3.bf16.msra.mxu0 %v2032_v62  ;;  %v6258_v52 = vunpack.i.h.bf16 %v6256_v59 }
0x120a   :  { %v6511_v63 = vpop.eup %6510  ;;  %6158 = vmatprep.subr.bf16.mxu0 %v6528_v2 }
0x120b   :  { %v2021_v54 = vmul.f32 %v6511_v63, %v6507_v31  ;;  %v6241_v46 = vpop.permute.xlu0 %6240 }
0x120c   :  { %v6243_v47 = vunpack.i.h.bf16 %v6241_v46  ;;  %v6242_v22 = vunpack.i.l.bf16 %v6241_v46 }
0x120d   :  { %v2024_v0 = vpack.c.bf16 %v2021_v54, %v2021_v54 }
0x120e   :  { %v6513_v36 = vpop.eup %6512  ;;  %v2184_v31 = vsel %vm2183_vm5, %v2181_v38, %v6242_v22  ;;  %v2185_v41 = vsel %vm2183_vm5, %v2182_v40, %v6243_v47 }
0x120f   :  { %v2023_v50 = vmul.f32 %v6513_v36, %v6509_v42  ;;  %6149 = vmatmul.mubr.msk.bf16.vlgmr.msra.gmra.mrb[56].mxu0 %vm444_vm3, %v2024_v0  ;;  %v6251_v57 = vpop.permute.xlu0 %6250  ;;  %v2187_v62 = vsel %vm2186_vm6, %v2184_v31, %v6247_v61  ;;  %v2188_v63 = vsel %vm2186_vm6, %v2185_v41, %v6248_v60  ;;  %v6257_v36 = vunpack.i.l.bf16 %v6256_v59 }
0x1210   :  { %6174 = vmatprep.mubr.msk.bf16.mxu0 %vm6529_vm0, %v6528_v2  ;;  %6159 = vmatpush3.bf16.msra.mxu0 %v6297_v5  ;;  %v6253_v42 = vunpack.i.h.bf16 %v6251_v57  ;;  %v6252_v56 = vunpack.i.l.bf16 %v6251_v57  ;;  %v6537_v41 = vmov 1966171168  }
0x1211   :  { %v2025_v51 = vpack.c.bf16 %v2023_v50, %v2023_v50  ;;  %6160 = vmatprep.subr.bf16.mxu0 %v6528_v2 }
0x1212   :  { %v2190_v54 = vsel %vm2189_vm7, %v2187_v62, %v6252_v56  ;;  %v2191_v0 = vsel %vm2189_vm7, %v2188_v63, %v6253_v42  ;;  %v2581_v42 = vunpack.c.l.s4 %v6537_v41  ;;  %v5391_v62 = vld [vmem:[%s8142_s13] ss:$0 sm:$0xff] }
0x1213   :  { %6155 = vmatmul.mubr.msk.bf16.vlgmr.msra.gmra.mrb[72].mxu1 %vm444_vm3, %v2025_v51  ;;  %v2193_v5 = vsel %vm2192_vm8, %v2190_v54, %v6257_v36 }
0x1214   :  { %6194 = vmatprep.mubr.msk.bf16.mxu1 %vm6529_vm0, %v6528_v2  ;;  %6161 = vmatpush3.bf16.msra.mxu0 %v6298_v9  ;;  %v2194_v9 = vsel %vm2192_vm8, %v2191_v0, %v6258_v52  ;;  %v2582_v61 = vunpack.c.0.s8 %v2581_v42 }
0x1215   :  { %6162 = vmatprep.subr.bf16.mxu0 %v6528_v2  ;;  %6179 = vmatpush3.bf16.msra.mxu1 %v6305_v11  ;;  %v6317_v11 = vld [vmem:[%s8139_s12 + $0x20] sm:$0xff]  }
0x1216   :  { %6180 = vmatprep.subr.bf16.mxu1 %v6528_v2  ;;  %v2585_v52 = vsub.s32 %v2582_v61, %v6745_v28  ;;  %v2711_v61 = vld [vmem:[%s8145_s16 + $0x1c0] sm:$0xff] }
0x1218   :  { %6163 = vmatpush3.bf16.msra.mxu0 %v6299_v10 }
0x1219   :  { %6164 = vmatprep.subr.bf16.mxu0 %v6528_v2  ;;  %6181 = vmatpush3.bf16.msra.mxu1 %v6306_v14  ;;  %v5382_v14 = vld [vmem:[%s8140_s11] ss:$0 sm:$0xff] }
0x121a   :  { %6182 = vmatprep.subr.bf16.mxu1 %v6528_v2 }
0x121c   :  { %6165 = vmatpush3.bf16.msra.mxu0 %v6300_v3 }
0x121d   :  { %6166 = vmatprep.subr.bf16.mxu0 %v6528_v2  ;;  %6183 = vmatpush3.bf16.msra.mxu1 %v6307_v20 }
0x121e   :  { %6184 = vmatprep.subr.bf16.mxu1 %v6528_v2 }
0x1220   :  { %6167 = vmatpush3.bf16.msra.mxu0 %v6301_v4 }
0x1221   :  { %6168 = vmatprep.subr.bf16.mxu0 %v6528_v2  ;;  %6185 = vmatpush3.bf16.msra.mxu1 %v6308_v23  ;;  %v5371_v23 = vld [vmem:[%s8141_s7] ss:$0 sm:$0xff] }
0x1222   :  { %6186 = vmatprep.subr.bf16.mxu1 %v6528_v2 }
0x1224   :  { %6169 = vmatpush3.bf16.msra.mxu0 %v6302_v6  ;;  %v6313_v6 = vld [vmem:[%s8139_s12] sm:$0xff]  }
0x1225   :  { %6170 = vmatprep.subr.bf16.mxu0 %v6528_v2  ;;  %6187 = vmatpush3.bf16.msra.mxu1 %v6309_v24  ;;  %v6526_v24 = vld [vmem:[%s8164_s30] sm:$0xff]  }
0x1226   :  { %6188 = vmatprep.subr.bf16.mxu1 %v6528_v2 }
0x1228   :  { %6171 = vmatpush3.bf16.msra.mxu0 %v6303_v7  ;;  %v6314_v7 = vld [vmem:[%s8139_s12 + $0x8] sm:$0xff]  }
0x1229   :  { %6172 = vmatprep.subr.bf16.mxu0 %v6528_v2  ;;  %6189 = vmatpush3.bf16.msra.mxu1 %v6310_v25  ;;  %v74_v25 = vunpack.c.l.bf16 %v6526_v24 }
0x122a   :  { %6190 = vmatprep.subr.bf16.mxu1 %v6528_v2 }
0x122c   :  { %6173 = vmatpush3.bf16.msra.mxu0 %v6304_v8  ;;  %v6315_v8 = vld [vmem:[%s8139_s12 + $0x10] sm:$0xff]  }
0x122d   :  { %6198 = vmatprep.subr.bf16.mxu0 %v6528_v2  ;;  %6191 = vmatpush3.bf16.msra.mxu1 %v6311_v26 }
0x122e   :  { %6192 = vmatprep.subr.bf16.mxu1 %v6528_v2 }
0x1231   :  { %6193 = vmatpush3.bf16.msra.mxu1 %v6312_v27 }
0x1234   :  { %6195 = vmatmul.mubr.bf16.vlgmr.msra.gmra.mrb[76].mxu1 %v2355_v34 }
0x1235   :  { %3539 = vmatprep.mubr.bf16.mxu1 %v6527_v1 }
0x12e2   :  { %v2068_v44 = vpop.f32.mrb[56].mxu0 }
0x12e3   :  { %v6150_v12 = vpop.f32.mrb[57].mxu0 }
0x12e4   :  { %v2071_v13 = vpop.f32.mrb[58].mxu0  ;;  %v6318_v12 = vld [vmem:[%s8139_s12 + $0x28] sm:$0xff]  }
0x12e5   :  { %v6151_v15 = vpop.f32.mrb[59].mxu0  ;;  %v6319_v13 = vld [vmem:[%s8139_s12 + $0x30] sm:$0xff]  }
0x12e6   :  { %v2116_v16 = vpop.f32.mrb[72].mxu1 }
0x12e7   :  { %v6259_v17 = vpack.i.bf16 %v2116_v16, %v2068_v44  ;;  %v6156_v18 = vpop.f32.mrb[73].mxu1  ;;  %v6316_v44 = vld [vmem:[%s8139_s12 + $0x18] sm:$0xff]  }
0x12e8   :  { %v2119_v19 = vpop.f32.mrb[74].mxu1  ;;  %v6320_v16 = vld [vmem:[%s8139_s12 + $0x38] sm:$0xff]  }
0x12e9   :  { %6260 = vrot.lane.b32.xlu0 %v6259_v17, %s6530_s26  ;;  %v6157_v21 = vpop.f32.mrb[75].mxu1 }
0x1307   :  { %v2461_v15 = vpop.f32.mrb[76].mxu1 }
0x1308   :  { %v2462_v17 = vadd.f32 %v5382_v14, %v2461_v15  ;;  %v6196_v18 = vpop.f32.mrb[77].mxu1 }
0x1309   :  { %v2464_v19 = vpop.f32.mrb[78].mxu1  ;;  %v2663_v18 = vld [vmem:[%s8145_s16 + $0x40] sm:$0xff] }
0x130a   :  { %v2467_v20 = vpack.c.bf16 %v2462_v17, %v2462_v17  ;;  %v6197_v21 = vpop.f32.mrb[79].mxu1  ;;  %v2655_v17 = vld [vmem:[%s8145_s16] sm:$0xff]  ;;  %v2656_v19 = vld [vmem:[%s8145_s16 + $0x8] sm:$0xff] }
0x130b   :  { %v5403_v21 = vcombine.high %v2655_v17, %v2663_v18 }
0x130d   :  { %3507 = vmatprep.subr.bf16.mxu1 %v5403_v21 }
0x135b   :  { %v6261_v37 = vpop.permute.xlu0 %6260 }
0x135c   :  { %v6263_v50 = vunpack.i.h.bf16 %v6261_v37  ;;  %v6262_v51 = vunpack.i.l.bf16 %v6261_v37 }
0x135e   :  { %v2197_v10 = vsel %vm2195_vm9, %v2194_v9, %v6263_v50  ;;  %v2196_v3 = vsel %vm2195_vm9, %v2193_v5, %v6262_v51  ;;  %v5380_v9 = vld [vmem:[%s8143_s8] ss:$0 sm:$0xff] }
0x135f   :  { %v2198_v4 = vpack.c.bf16 %v2197_v10, %v2196_v3  ;;  %v5381_v3 = vld [vmem:[%s8144_s9] ss:$0 sm:$0xff] }
0x1361   :  { %6175 = vmatmul.mubr.bf16.vlgmr.msra.gmra.mrb[60].mxu0 %v2198_v4 }
0x1362   :  { %6214 = vmatprep.mubr.msk.bf16.mxu0 %vm6529_vm0, %v6528_v2  ;;  %6199 = vmatpush3.bf16.msra.mxu0 %v6313_v6 }
0x1363   :  { %6200 = vmatprep.subr.bf16.mxu0 %v6528_v2 }
0x1366   :  { %6201 = vmatpush3.bf16.msra.mxu0 %v6314_v7 }
0x1367   :  { %6202 = vmatprep.subr.bf16.mxu0 %v6528_v2 }
0x136a   :  { %6203 = vmatpush3.bf16.msra.mxu0 %v6315_v8 }
0x136b   :  { %6204 = vmatprep.subr.bf16.mxu0 %v6528_v2 }
0x136e   :  { %6205 = vmatpush3.bf16.msra.mxu0 %v6316_v44 }
0x136f   :  { %6206 = vmatprep.subr.bf16.mxu0 %v6528_v2 }
0x1372   :  { %6207 = vmatpush3.bf16.msra.mxu0 %v6317_v11 }
0x1373   :  { %6208 = vmatprep.subr.bf16.mxu0 %v6528_v2 }
0x1376   :  { %6209 = vmatpush3.bf16.msra.mxu0 %v6318_v12 }
0x1377   :  { %6210 = vmatprep.subr.bf16.mxu0 %v6528_v2 }
0x137a   :  { %6211 = vmatpush3.bf16.msra.mxu0 %v6319_v13 }
0x137b   :  { %6212 = vmatprep.subr.bf16.mxu0 %v6528_v2  ;;  %v75_v2 = vunpack.c.h.bf16 %v6526_v24  ;;  %v2671_v24 = vld [vmem:[%s8145_s16 + $0x80] sm:$0xff] }
0x137e   :  { %6213 = vmatpush3.bf16.msra.mxu0 %v6320_v16 }
0x1381   :  { %6215 = vmatmul.mubr.bf16.vlgmr.msra.gmra.mrb[64].mxu0 %v2467_v20  ;;  %v5402_v20 = vcombine.low %v2655_v17, %v2663_v18  ;;  %v2760_v18 = vld [vmem:[%s8145_s16 + $0x348] sm:$0xff] }
0x1382   :  { %3582 = vmatprep.mubr.bf16.mxu0 %v6527_v1 }
0x1383   :  { %3508 = vmatpush1.bf16.msra.mxu1 %v5402_v20 }
0x1434   :  { %v2304_v26 = vpop.f32.mrb[60].mxu0 }
0x1435   :  { %v2305_v27 = vadd.f32 %v5371_v23, %v2304_v26  ;;  %v6176_v30 = vpop.f32.mrb[61].mxu0 }
0x1436   :  { %v2307_v34 = vpop.f32.mrb[62].mxu0 }
0x1437   :  { %v2308_v35 = vadd.f32 %v5371_v23, %v2307_v34  ;;  %v6177_v45 = vpop.f32.mrb[63].mxu0  ;;  %v2311_v46 = vadd.f32 %v2305_v27, %v74_v25  ;;  %v2664_v23 = vld [vmem:[%s8145_s16 + $0x48] sm:$0xff]  ;;  %v2679_v25 = vld [vmem:[%s8145_s16 + $0xc0] sm:$0xff] }
0x1438   :  { %v5404_v26 = vcombine.low %v2656_v19, %v2664_v23  ;;  %v5405_v27 = vcombine.high %v2656_v19, %v2664_v23  ;;  %v5419_v30 = vcombine.high %v2671_v24, %v2679_v25  ;;  %v2680_v34 = vld [vmem:[%s8145_s16 + $0xc8] sm:$0xff]  ;;  %v5418_v45 = vcombine.low %v2671_v24, %v2679_v25  ;;  %v2767_v23 = vld [vmem:[%s8145_s16 + $0x380] sm:$0xff] }
0x1439   :  { %2315 = vadd.xlane.f32.xlu1 %v2311_v46  ;;  %v2312_v49 = vadd.f32 %v2308_v35, %v75_v2  ;;  %v2672_v2 = vld [vmem:[%s8145_s16 + $0x88] sm:$0xff]  ;;  %v2775_v24 = vld [vmem:[%s8145_s16 + $0x3c0] sm:$0xff] }
0x143a   :  { %v5421_v35 = vcombine.high %v2672_v2, %v2680_v34  ;;  %3550 = vmatprep.subr.bf16.mxu0 %v5405_v27  ;;  %3509 = vmatprep.subr.bf16.mxu1 %v5419_v30  ;;  %v2768_v25 = vld [vmem:[%s8145_s16 + $0x388] sm:$0xff]  ;;  %v5514_v30 = vcombine.low %v2767_v23, %v2775_v24 }
0x143b   :  { %2317 = vadd.xlane.f32.xlu0 %v2312_v49  ;;  %3551 = vmatpush1.bf16.msra.mxu0 %v5404_v26  ;;  %v5515_v26 = vcombine.high %v2767_v23, %v2775_v24  ;;  %v2776_v27 = vld [vmem:[%s8145_s16 + $0x3c8] sm:$0xff] }
0x143c   :  { %3552 = vmatprep.subr.bf16.mxu0 %v5421_v35  ;;  %3510 = vmatpush1.bf16.msra.mxu1 %v5418_v45  ;;  %v2657_v35 = vld [vmem:[%s8145_s16 + $0x10] sm:$0xff] }
0x143d   :  { %v2665_v45 = vld [vmem:[%s8145_s16 + $0x50] sm:$0xff] }
0x1454   :  { %v2573_v33 = vpop.f32.mrb[64].mxu0 }
0x1455   :  { %v6216_v38 = vpop.f32.mrb[65].mxu0  ;;  %v2574_v0 = vadd.f32 %v5391_v62, %v2573_v33  ;;  %v2695_v33 = vld [vmem:[%s8145_s16 + $0x140] sm:$0xff] }
0x1456   :  { %v2576_v40 = vpop.f32.mrb[66].mxu0  ;;  %v2688_v38 = vld [vmem:[%s8145_s16 + $0x108] sm:$0xff] }
0x1457   :  { %v6217_v31 = vpop.f32.mrb[67].mxu0  ;;  %v2586_v37 = vrot.slane %v2574_v0, %v2585_v52 }
0x1458   :  { %v2696_v31 = vld [vmem:[%s8145_s16 + $0x148] sm:$0xff] }
0x1459   :  { %v2587_v50 = vcombine.high %v2586_v37, %v2586_v37  ;;  %v2594_v51 = vrot.slane %v2586_v37, %v2585_v52  ;;  %v5436_v42 = vcombine.low %v2688_v38, %v2696_v31  ;;  %v2727_v37 = vld [vmem:[%s8145_s16 + $0x240] sm:$0xff] }
0x145b   :  { %v2605_v6 = vrot.slane %v2594_v51, %v6755_v32  ;;  %v2601_v7 = vrot.slane %v2587_v50, %v2585_v52  ;;  %v2720_v50 = vld [vmem:[%s8145_s16 + $0x208] sm:$0xff] }
0x145d   :  { %v2609_v14 = vrot.slane %v2601_v7, %v6755_v32  ;;  %v2736_v7 = vld [vmem:[%s8145_s16 + $0x288] sm:$0xff] }
0x14c6   :  { %v2316_v53 = vpop.xlane.xlu1 %2315 }
0x14c7   :  { %v2320_v39 = vmul.f32 0.0078125, %v2316_v53 }
0x14c8   :  { %v2318_v43 = vpop.xlane.xlu0 %2317 }
0x14c9   :  { %v2322_v55 = vsub.f32 %v2311_v46, %v2320_v39  ;;  %v2321_v47 = vmul.f32 0.0078125, %v2318_v43  ;;  %v5420_v46 = vcombine.low %v2672_v2, %v2680_v34  ;;  %v5516_v2 = vcombine.low %v2768_v25, %v2776_v27 }
0x14ca   :  { %v5517_v34 = vcombine.high %v2768_v25, %v2776_v27  ;;  %v2737_v25 = vld [vmem:[%s8145_s16 + $0x290] sm:$0xff]  ;;  %v2738_v27 = vld [vmem:[%s8145_s16 + $0x298] sm:$0xff] }
0x14cb   :  { %v2323_v22 = vsub.f32 %v2312_v49, %v2321_v47  ;;  %v2324_v57 = vmul.f32 %v2322_v55, %v2322_v55  ;;  %3553 = vmatpush1.bf16.msra.mxu0 %v5420_v46  ;;  %v2658_v46 = vld [vmem:[%s8145_s16 + $0x18] sm:$0xff] }
0x14cd   :  { %2326 = vadd.xlane.f32.xlu0 %v2324_v57  ;;  %v2325_v58 = vmul.f32 %v2323_v22, %v2323_v22 }
0x14d1   :  { %2328 = vadd.xlane.f32.xlu0 %v2325_v58  ;;  %v2687_v58 = vld [vmem:[%s8145_s16 + $0x100] sm:$0xff] }
0x14d2   :  { %v5435_v40 = vcombine.high %v2687_v58, %v2695_v33  ;;  %v5434_v41 = vcombine.low %v2687_v58, %v2695_v33 }
0x14d4   :  { %3511 = vmatprep.subr.bf16.mxu1 %v5435_v40 }
0x14d5   :  { %3512 = vmatpush1.bf16.msra.mxu1 %v5434_v41 }
0x155a   :  { %v2327_v56 = vpop.xlane.xlu0 %2326 }
0x155b   :  { %v2330_v60 = vmul.f32 0.0078125, %v2327_v56  ;;  %v5437_v56 = vcombine.high %v2688_v38, %v2696_v31 }
0x155d   :  { %v2332_v59 = vadd.f32 1e-05, %v2330_v60  ;;  %3554 = vmatprep.subr.bf16.mxu0 %v5437_v56  ;;  %v2703_v60 = vld [vmem:[%s8145_s16 + $0x180] sm:$0xff] }
0x155e   :  { %v2329_v63 = vpop.xlane.xlu0 %2328  ;;  %3555 = vmatpush1.bf16.msra.mxu0 %v5436_v42  ;;  %v5451_v62 = vcombine.high %v2703_v60, %v2711_v61  ;;  %v5400_v56 = vld [vmem:[%s8147_s14] ss:$0 sm:$0xff] }
0x155f   :  { %6514 = vrsqrt.f32 %v2332_v59  ;;  %v2331_v54 = vmul.f32 0.0078125, %v2329_v63  ;;  %v2704_v59 = vld [vmem:[%s8145_s16 + $0x188] sm:$0xff] }
0x1560   :  { %v2712_v63 = vld [vmem:[%s8145_s16 + $0x1c8] sm:$0xff]  ;;  %3513 = vmatprep.subr.bf16.mxu1 %v5451_v62 }
0x1561   :  { %v2333_v36 = vadd.f32 1e-05, %v2331_v54  ;;  %v5450_v54 = vcombine.low %v2703_v60, %v2711_v61  ;;  %v5452_v0 = vcombine.low %v2704_v59, %v2712_v63  ;;  %v5453_v52 = vcombine.high %v2704_v59, %v2712_v63  ;;  %v5401_v61 = vld [vmem:[%s8148_s15] ss:$0 sm:$0xff]  ;;  %v2673_v63 = vld [vmem:[%s8145_s16 + $0x90] sm:$0xff] }
0x1563   :  { %6516 = vrsqrt.f32 %v2333_v36  ;;  %3556 = vmatprep.subr.bf16.mxu0 %v5453_v52  ;;  %3514 = vmatpush1.bf16.msra.mxu1 %v5450_v54  ;;  %v2719_v36 = vld [vmem:[%s8145_s16 + $0x200] sm:$0xff]  ;;  %v2674_v54 = vld [vmem:[%s8145_s16 + $0x98] sm:$0xff] }
0x1564   :  { %3557 = vmatpush1.bf16.msra.mxu0 %v5452_v0  ;;  %v5467_v51 = vcombine.high %v2719_v36, %v2727_v37  ;;  %v2682_v0 = vld [vmem:[%s8145_s16 + $0xd8] sm:$0xff] }
0x1566   :  { %3515 = vmatprep.subr.bf16.mxu1 %v5467_v51  ;;  %v2690_v51 = vld [vmem:[%s8145_s16 + $0x118] sm:$0xff] }
0x1569   :  { %v6515_v5 = vpop.eup %6514 }
0x156a   :  { %v2336_v10 = vmul.f32 %v6515_v5, %v2322_v55  ;;  %v2728_v5 = vld [vmem:[%s8145_s16 + $0x248] sm:$0xff] }
0x156c   :  { %v2344_v4 = vmul.f32 %v5380_v9, %v2336_v10  ;;  %v5468_v10 = vcombine.low %v2720_v50, %v2728_v5 }
0x156d   :  { %v6517_v8 = vpop.eup %6516 }
0x156e   :  { %v2352_v44 = vadd.f32 %v5381_v3, %v2344_v4  ;;  %v2337_v11 = vmul.f32 %v6517_v8, %v2323_v22  ;;  %v2735_v4 = vld [vmem:[%s8145_s16 + $0x280] sm:$0xff] }
0x1570   :  { %v2612_v12 = vadd.f32 %v2605_v6, %v2352_v44  ;;  %v2345_v13 = vmul.f32 %v5380_v9, %v2337_v11  ;;  %v5466_v9 = vcombine.low %v2719_v36, %v2727_v37  ;;  %v2743_v6 = vld [vmem:[%s8145_s16 + $0x2c0] sm:$0xff]  ;;  %v2744_v44 = vld [vmem:[%s8145_s16 + $0x2c8] sm:$0xff]  ;;  %v2689_v37 = vld [vmem:[%s8145_s16 + $0x110] sm:$0xff] }
0x1571   :  { %v5483_v8 = vcombine.high %v2735_v4, %v2743_v6  ;;  %v5482_v11 = vcombine.low %v2735_v4, %v2743_v6  ;;  %v5424_v6 = vcombine.low %v2674_v54, %v2682_v0 }
0x1572   :  { %2616 = vadd.xlane.f32.xlu1 %v2612_v12  ;;  %v2353_v15 = vadd.f32 %v5381_v3, %v2345_v13  ;;  %v5469_v3 = vcombine.high %v2720_v50, %v2728_v5  ;;  %3516 = vmatpush1.bf16.msra.mxu1 %v5466_v9  ;;  %v5485_v13 = vcombine.high %v2736_v7, %v2744_v44  ;;  %v2697_v50 = vld [vmem:[%s8145_s16 + $0x150] sm:$0xff]  ;;  %v2698_v5 = vld [vmem:[%s8145_s16 + $0x158] sm:$0xff] }
0x1573   :  { %3517 = vmatprep.subr.bf16.mxu1 %v5483_v8  ;;  %v2713_v8 = vld [vmem:[%s8145_s16 + $0x1d0] sm:$0xff] }
0x1574   :  { %v2613_v16 = vadd.f32 %v2609_v14, %v2353_v15  ;;  %3558 = vmatprep.subr.bf16.mxu0 %v5469_v3  ;;  %v2751_v14 = vld [vmem:[%s8145_s16 + $0x300] sm:$0xff]  ;;  %v5425_v3 = vcombine.high %v2674_v54, %v2682_v0 }
0x1575   :  { %3559 = vmatpush1.bf16.msra.mxu0 %v5468_v10  ;;  %v2759_v15 = vld [vmem:[%s8145_s16 + $0x340] sm:$0xff] }
0x1576   :  { %2618 = vadd.xlane.f32.xlu0 %v2613_v16  ;;  %3560 = vmatprep.subr.bf16.mxu0 %v5485_v13  ;;  %v5499_v17 = vcombine.high %v2751_v14, %v2759_v15  ;;  %v5498_v19 = vcombine.low %v2751_v14, %v2759_v15  ;;  %v5441_v13 = vcombine.high %v2690_v51, %v2698_v5 }
0x1577   :  { %3518 = vmatpush1.bf16.msra.mxu1 %v5482_v11  ;;  %v2714_v11 = vld [vmem:[%s8145_s16 + $0x1d8] sm:$0xff]  ;;  %v5438_v14 = vcombine.low %v2689_v37, %v2697_v50  ;;  %v5440_v15 = vcombine.low %v2690_v51, %v2698_v5  ;;  %v2676_v51 = vld [vmem:[%s8145_s16 + $0xa8] sm:$0xff] }
0x1578   :  { %3519 = vmatprep.subr.bf16.mxu1 %v5499_v17  ;;  %v2729_v17 = vld [vmem:[%s8145_s16 + $0x250] sm:$0xff]  ;;  %v2684_v5 = vld [vmem:[%s8145_s16 + $0xe8] sm:$0xff] }
0x157b   :  { %3520 = vmatpush1.bf16.msra.mxu1 %v5498_v19  ;;  %v2730_v19 = vld [vmem:[%s8145_s16 + $0x258] sm:$0xff] }
0x157c   :  { %3521 = vmatprep.subr.bf16.mxu1 %v5515_v26  ;;  %v2745_v26 = vld [vmem:[%s8145_s16 + $0x2d0] sm:$0xff] }
0x157f   :  { %3522 = vmatpush1.bf16.msra.mxu1 %v5514_v30  ;;  %v2746_v30 = vld [vmem:[%s8145_s16 + $0x2d8] sm:$0xff] }
0x15ff   :  { %v2617_v49 = vpop.xlane.xlu1 %2616 }
0x1600   :  { %v2620_v53 = vmul.f32 0.0078125, %v2617_v49  ;;  %v5406_v49 = vcombine.low %v2657_v35, %v2665_v45 }
0x1602   :  { %v7262_v39 = vsub.f32 %v2612_v12, %v2620_v53  ;;  %v5484_v12 = vcombine.low %v2736_v7, %v2744_v44  ;;  %v5407_v53 = vcombine.high %v2657_v35, %v2665_v45  ;;  %v2705_v7 = vld [vmem:[%s8145_s16 + $0x190] sm:$0xff]  ;;  %v2706_v44 = vld [vmem:[%s8145_s16 + $0x198] sm:$0xff] }
0x1603   :  { %v2619_v43 = vpop.xlane.xlu0 %2618  ;;  %v5454_v23 = vcombine.low %v2705_v7, %v2713_v8  ;;  %v5456_v24 = vcombine.low %v2706_v44, %v2714_v11 }
0x1604   :  { %v2621_v55 = vmul.f32 0.0078125, %v2619_v43  ;;  %v2624_v47 = vmul.f32 %v7262_v39, %v7262_v39  ;;  %3561 = vmatpush1.bf16.msra.mxu0 %v5484_v12  ;;  %v2666_v43 = vld [vmem:[%s8145_s16 + $0x58] sm:$0xff]  ;;  %3593 = vmatprep.subr.bf16.mxu1 %v5407_v53  ;;  %v5439_v12 = vcombine.high %v2689_v37, %v2697_v50  ;;  %v2675_v37 = vld [vmem:[%s8145_s16 + $0xa0] sm:$0xff] }
0x1605   :  { %v2754_v53 = vld [vmem:[%s8145_s16 + $0x318] sm:$0xff]  ;;  %v2683_v50 = vld [vmem:[%s8145_s16 + $0xe0] sm:$0xff] }
0x1606   :  { %v7266_v22 = vsub.f32 %v2613_v16, %v2621_v55  ;;  %2626 = vadd.xlane.f32.xlu1 %v2624_v47  ;;  %v2752_v16 = vld [vmem:[%s8145_s16 + $0x308] sm:$0xff]  ;;  %v5408_v55 = vcombine.low %v2658_v46, %v2666_v43  ;;  %v5409_v47 = vcombine.high %v2658_v46, %v2666_v43  ;;  %v2753_v46 = vld [vmem:[%s8145_s16 + $0x310] sm:$0xff]  ;;  %v2762_v43 = vld [vmem:[%s8145_s16 + $0x358] sm:$0xff] }
0x1607   :  { %v5500_v20 = vcombine.low %v2752_v16, %v2760_v18  ;;  %v5501_v21 = vcombine.high %v2752_v16, %v2760_v18  ;;  %v2721_v16 = vld [vmem:[%s8145_s16 + $0x210] sm:$0xff]  ;;  %v2722_v18 = vld [vmem:[%s8145_s16 + $0x218] sm:$0xff] }
0x1608   :  { %v2625_v57 = vmul.f32 %v7266_v22, %v7266_v22  ;;  %v5470_v35 = vcombine.low %v2721_v16, %v2729_v17  ;;  %v5472_v45 = vcombine.low %v2722_v18, %v2730_v19 }
0x1609   :  { %3562 = vmatprep.subr.bf16.mxu0 %v5501_v21  ;;  %v5457_v21 = vcombine.high %v2706_v44, %v2714_v11  ;;  %v2692_v44 = vld [vmem:[%s8145_s16 + $0x128] sm:$0xff] }
0x160a   :  { %2628 = vadd.xlane.f32.xlu0 %v2625_v57  ;;  %3563 = vmatpush1.bf16.msra.mxu0 %v5500_v20  ;;  %v5455_v20 = vcombine.high %v2705_v7, %v2713_v8  ;;  %v2691_v7 = vld [vmem:[%s8145_s16 + $0x120] sm:$0xff]  ;;  %v2700_v11 = vld [vmem:[%s8145_s16 + $0x168] sm:$0xff] }
0x160b   :  { %3564 = vmatprep.subr.bf16.mxu0 %v5517_v34  ;;  %v5473_v34 = vcombine.high %v2722_v18, %v2730_v19  ;;  %v2699_v8 = vld [vmem:[%s8145_s16 + $0x160] sm:$0xff]  ;;  %v2708_v18 = vld [vmem:[%s8145_s16 + $0x1a8] sm:$0xff] }
0x160c   :  { %v2716_v19 = vld [vmem:[%s8145_s16 + $0x1e8] sm:$0xff] }
0x160e   :  { %3565 = vmatpush1.bf16.msra.mxu0 %v5516_v2  ;;  %v5471_v2 = vcombine.high %v2721_v16, %v2729_v17  ;;  %v2707_v16 = vld [vmem:[%s8145_s16 + $0x1a0] sm:$0xff] }
0x160f   :  { %3636 = vmatprep.subr.bf16.mxu0 %v5409_v47  ;;  %v5489_v47 = vcombine.high %v2738_v27, %v2746_v30  ;;  %v2715_v17 = vld [vmem:[%s8145_s16 + $0x1e0] sm:$0xff] }
0x1693   :  { %v2627_v57 = vpop.xlane.xlu1 %2626 }
0x1694   :  { %v2630_v58 = vmul.f32 0.0078125, %v2627_v57  ;;  %v5486_v57 = vcombine.low %v2737_v25, %v2745_v26 }
0x1696   :  { %v2632_v33 = vadd.f32 1e-05, %v2630_v58  ;;  %v5488_v58 = vcombine.low %v2738_v27, %v2746_v30  ;;  %v2724_v27 = vld [vmem:[%s8145_s16 + $0x228] sm:$0xff] }
0x1697   :  { %v2629_v38 = vpop.xlane.xlu0 %2628  ;;  %v2732_v30 = vld [vmem:[%s8145_s16 + $0x268] sm:$0xff] }
0x1698   :  { %6518 = vrsqrt.f32 %v2632_v33  ;;  %v2631_v40 = vmul.f32 0.0078125, %v2629_v38  ;;  %v2769_v33 = vld [vmem:[%s8145_s16 + $0x390] sm:$0xff] }
0x1699   :  { %v2777_v38 = vld [vmem:[%s8145_s16 + $0x3d0] sm:$0xff] }
0x169a   :  { %v2633_v31 = vadd.f32 1e-05, %v2631_v40  ;;  %v2770_v40 = vld [vmem:[%s8145_s16 + $0x398] sm:$0xff]  ;;  %v5518_v0 = vcombine.low %v2769_v33, %v2777_v38 }
0x169c   :  { %6520 = vrsqrt.f32 %v2633_v31  ;;  %v2778_v31 = vld [vmem:[%s8145_s16 + $0x3d8] sm:$0xff] }
0x169d   :  { %v5521_v54 = vcombine.high %v2770_v40, %v2778_v31 }
0x16a2   :  { %v6519_v41 = vpop.eup %6518 }
0x16a3   :  { %v2636_v42 = vmul.f32 %v6519_v41, %v7262_v39  ;;  %v2681_v39 = vld [vmem:[%s8145_s16 + $0xd0] sm:$0xff] }
0x16a4   :  { %v5423_v10 = vcombine.high %v2673_v63, %v2681_v39  ;;  %v5422_v4 = vcombine.low %v2673_v63, %v2681_v39  ;;  %v2668_v63 = vld [vmem:[%s8145_s16 + $0x68] sm:$0xff]  ;;  %v5519_v39 = vcombine.high %v2769_v33, %v2777_v38  ;;  %v2755_v33 = vld [vmem:[%s8145_s16 + $0x320] sm:$0xff] }
0x16a5   :  { %v2644_v59 = vmul.f32 %v5400_v56, %v2636_v42  ;;  %v5505_v42 = vcombine.high %v2754_v53, %v2762_v43  ;;  %v2763_v38 = vld [vmem:[%s8145_s16 + $0x360] sm:$0xff] }
0x16a6   :  { %v6521_v60 = vpop.eup %6520 }
0x16a7   :  { %v2637_v62 = vmul.f32 %v6521_v60, %v7266_v22  ;;  %v7374_v36 = vadd.f32 %v5401_v61, %v2644_v59  ;;  %v5504_v60 = vcombine.low %v2754_v53, %v2762_v43  ;;  %v2667_v59 = vld [vmem:[%s8145_s16 + $0x60] sm:$0xff]  ;;  %v2740_v53 = vld [vmem:[%s8145_s16 + $0x2a8] sm:$0xff] }
0x16a8   :  { %v2748_v43 = vld [vmem:[%s8145_s16 + $0x2e8] sm:$0xff] }
0x16a9   :  { %v2645_v52 = vmul.f32 %v5400_v56, %v2637_v62  ;;  %v2660_v62 = vld [vmem:[%s8145_s16 + $0x28] sm:$0xff] }
0x16ab   :  { %v7376_v22 = vadd.f32 %v5401_v61, %v2645_v52  ;;  %v2659_v61 = vld [vmem:[%s8145_s16 + $0x20] sm:$0xff]  ;;  %v5520_v52 = vcombine.low %v2770_v40, %v2778_v31  ;;  %v2756_v40 = vld [vmem:[%s8145_s16 + $0x328] sm:$0xff] }
0x16ac   :  { %v2764_v31 = vld [vmem:[%s8145_s16 + $0x368] sm:$0xff] }
0x16ad   :  { %v7392_v9 = vpack.c.bf16 %v7376_v22, %v7374_v36 }
0x16af   :  { %3540 = vmatmul.mubr.bf16.vlgmr.msra.gmra.mrb[80].mxu1 %v7392_v9  ;;  %3583 = vmatmul.mubr.bf16.vlgmr.msra.gmra.mrb[68].mxu0 %v7392_v9 }
0x16b0   :  { %3594 = vmatpush1.bf16.msra.mxu1 %v5406_v49  ;;  %3637 = vmatpush1.bf16.msra.mxu0 %v5408_v55  ;;  %v2761_v49 = vld [vmem:[%s8145_s16 + $0x350] sm:$0xff]  ;;  %v5487_v55 = vcombine.high %v2737_v25, %v2745_v26  ;;  %v2723_v25 = vld [vmem:[%s8145_s16 + $0x220] sm:$0xff] }
0x16b1   :  { %3595 = vmatprep.subr.bf16.mxu1 %v5423_v10  ;;  %3638 = vmatprep.subr.bf16.mxu0 %v5425_v3  ;;  %v5503_v41 = vcombine.high %v2753_v46, %v2761_v49  ;;  %v5502_v56 = vcombine.low %v2753_v46, %v2761_v49  ;;  %v5411_v10 = vcombine.high %v2659_v61, %v2667_v59  ;;  %v2731_v26 = vld [vmem:[%s8145_s16 + $0x260] sm:$0xff] }
0x16b2   :  { %3625 = vmatprep.mubr.bf16.mxu1 %v6527_v1  ;;  %3668 = vmatprep.mubr.bf16.mxu0 %v6527_v1  ;;  %v5413_v3 = vcombine.high %v2660_v62, %v2668_v63  ;;  %v2739_v46 = vld [vmem:[%s8145_s16 + $0x2a0] sm:$0xff] }
0x16b3   :  { %v2747_v49 = vld [vmem:[%s8145_s16 + $0x2e0] sm:$0xff] }
0x16b4   :  { %3596 = vmatpush1.bf16.msra.mxu1 %v5422_v4  ;;  %3639 = vmatpush1.bf16.msra.mxu0 %v5424_v6  ;;  %v5410_v4 = vcombine.low %v2659_v61, %v2667_v59  ;;  %v5412_v6 = vcombine.low %v2660_v62, %v2668_v63  ;;  %v2771_v61 = vld [vmem:[%s8145_s16 + $0x3a0] sm:$0xff]  ;;  %v2772_v62 = vld [vmem:[%s8145_s16 + $0x3a8] sm:$0xff] }
0x16b5   :  { %3597 = vmatprep.subr.bf16.mxu1 %v5439_v12  ;;  %3640 = vmatprep.subr.bf16.mxu0 %v5441_v13  ;;  %v5427_v12 = vcombine.high %v2675_v37, %v2683_v50  ;;  %v5429_v13 = vcombine.high %v2676_v51, %v2684_v5  ;;  %v2779_v59 = vld [vmem:[%s8145_s16 + $0x3e0] sm:$0xff]  ;;  %v2780_v63 = vld [vmem:[%s8145_s16 + $0x3e8] sm:$0xff] }
0x16b8   :  { %3598 = vmatpush1.bf16.msra.mxu1 %v5438_v14  ;;  %3641 = vmatpush1.bf16.msra.mxu0 %v5440_v15  ;;  %v5426_v14 = vcombine.low %v2675_v37, %v2683_v50  ;;  %v5428_v15 = vcombine.low %v2676_v51, %v2684_v5  ;;  %v2661_v37 = vld [vmem:[%s8145_s16 + $0x30] sm:$0xff]  ;;  %v2662_v51 = vld [vmem:[%s8145_s16 + $0x38] sm:$0xff] }
0x16b9   :  { %3599 = vmatprep.subr.bf16.mxu1 %v5455_v20  ;;  %3642 = vmatprep.subr.bf16.mxu0 %v5457_v21  ;;  %v5443_v20 = vcombine.high %v2691_v7, %v2699_v8  ;;  %v5445_v21 = vcombine.high %v2692_v44, %v2700_v11  ;;  %v2669_v50 = vld [vmem:[%s8145_s16 + $0x70] sm:$0xff]  ;;  %v2670_v5 = vld [vmem:[%s8145_s16 + $0x78] sm:$0xff] }
0x16bc   :  { %3600 = vmatpush1.bf16.msra.mxu1 %v5454_v23  ;;  %3643 = vmatpush1.bf16.msra.mxu0 %v5456_v24  ;;  %v5442_v23 = vcombine.low %v2691_v7, %v2699_v8  ;;  %v5444_v24 = vcombine.low %v2692_v44, %v2700_v11  ;;  %v2677_v7 = vld [vmem:[%s8145_s16 + $0xb0] sm:$0xff]  ;;  %v2678_v44 = vld [vmem:[%s8145_s16 + $0xb8] sm:$0xff] }
0x16bd   :  { %3601 = vmatprep.subr.bf16.mxu1 %v5471_v2  ;;  %3644 = vmatprep.subr.bf16.mxu0 %v5473_v34  ;;  %v5459_v2 = vcombine.high %v2707_v16, %v2715_v17  ;;  %v5461_v34 = vcombine.high %v2708_v18, %v2716_v19  ;;  %v2685_v8 = vld [vmem:[%s8145_s16 + $0xf0] sm:$0xff]  ;;  %v2686_v11 = vld [vmem:[%s8145_s16 + $0xf8] sm:$0xff] }
0x16c0   :  { %3602 = vmatpush1.bf16.msra.mxu1 %v5470_v35  ;;  %3645 = vmatpush1.bf16.msra.mxu0 %v5472_v45  ;;  %v5458_v35 = vcombine.low %v2707_v16, %v2715_v17  ;;  %v5460_v45 = vcombine.low %v2708_v18, %v2716_v19  ;;  %v2693_v16 = vld [vmem:[%s8145_s16 + $0x130] sm:$0xff]  ;;  %v5431_v17 = vcombine.high %v2677_v7, %v2685_v8 }
0x16c1   :  { %3603 = vmatprep.subr.bf16.mxu1 %v5487_v55  ;;  %3646 = vmatprep.subr.bf16.mxu0 %v5489_v47  ;;  %v5475_v55 = vcombine.high %v2723_v25, %v2731_v26  ;;  %v5477_v47 = vcombine.high %v2724_v27, %v2732_v30  ;;  %v5433_v18 = vcombine.high %v2678_v44, %v2686_v11  ;;  %v2701_v19 = vld [vmem:[%s8145_s16 + $0x170] sm:$0xff] }
0x16c4   :  { %3604 = vmatpush1.bf16.msra.mxu1 %v5486_v57  ;;  %3647 = vmatpush1.bf16.msra.mxu0 %v5488_v58  ;;  %v5474_v57 = vcombine.low %v2723_v25, %v2731_v26  ;;  %v5476_v58 = vcombine.low %v2724_v27, %v2732_v30  ;;  %v5447_v25 = vcombine.high %v2693_v16, %v2701_v19  ;;  %v2709_v27 = vld [vmem:[%s8145_s16 + $0x1b0] sm:$0xff] }
0x16c5   :  { %3605 = vmatprep.subr.bf16.mxu1 %v5503_v41  ;;  %3648 = vmatprep.subr.bf16.mxu0 %v5505_v42  ;;  %v5491_v41 = vcombine.high %v2739_v46, %v2747_v49  ;;  %v5493_v42 = vcombine.high %v2740_v53, %v2748_v43  ;;  %v2717_v30 = vld [vmem:[%s8145_s16 + $0x1f0] sm:$0xff] }
0x16c8   :  { %3606 = vmatpush1.bf16.msra.mxu1 %v5502_v56  ;;  %3649 = vmatpush1.bf16.msra.mxu0 %v5504_v60  ;;  %v5490_v56 = vcombine.low %v2739_v46, %v2747_v49  ;;  %v5492_v60 = vcombine.low %v2740_v53, %v2748_v43  ;;  %v5463_v46 = vcombine.high %v2709_v27, %v2717_v30  ;;  %v2725_v53 = vld [vmem:[%s8145_s16 + $0x230] sm:$0xff] }
0x16c9   :  { %3607 = vmatprep.subr.bf16.mxu1 %v5519_v39  ;;  %3650 = vmatprep.subr.bf16.mxu0 %v5521_v54  ;;  %v5507_v39 = vcombine.high %v2755_v33, %v2763_v38  ;;  %v5509_v54 = vcombine.high %v2756_v40, %v2764_v31  ;;  %v2733_v43 = vld [vmem:[%s8145_s16 + $0x270] sm:$0xff] }
0x16cc   :  { %3608 = vmatpush1.bf16.msra.mxu1 %v5518_v0  ;;  %3651 = vmatpush1.bf16.msra.mxu0 %v5520_v52  ;;  %v5506_v0 = vcombine.low %v2755_v33, %v2763_v38  ;;  %v5508_v52 = vcombine.low %v2756_v40, %v2764_v31  ;;  %v2741_v38 = vld [vmem:[%s8145_s16 + $0x2b0] sm:$0xff]  ;;  %v2742_v31 = vld [vmem:[%s8145_s16 + $0x2b8] sm:$0xff] }
0x16cd   :  { %3679 = vmatprep.subr.bf16.mxu1 %v5411_v10  ;;  %3722 = vmatprep.subr.bf16.mxu0 %v5413_v3  ;;  %v5523_v10 = vcombine.high %v2771_v61, %v2779_v59  ;;  %v5525_v3 = vcombine.high %v2772_v62, %v2780_v63  ;;  %v2749_v40 = vld [vmem:[%s8145_s16 + $0x2f0] sm:$0xff] }
0x16cf   :  { %3626 = vmatmul.mubr.bf16.vlgmr.msra.gmra.mrb[84].mxu1 %v7392_v9  ;;  %3669 = vmatmul.mubr.bf16.vlgmr.msra.gmra.mrb[72].mxu0 %v7392_v9 }
0x16d0   :  { %3680 = vmatpush1.bf16.msra.mxu1 %v5410_v4  ;;  %3723 = vmatpush1.bf16.msra.mxu0 %v5412_v6  ;;  %v5522_v4 = vcombine.low %v2771_v61, %v2779_v59  ;;  %v5524_v6 = vcombine.low %v2772_v62, %v2780_v63  ;;  %v2757_v59 = vld [vmem:[%s8145_s16 + $0x330] sm:$0xff]  ;;  %v2758_v63 = vld [vmem:[%s8145_s16 + $0x338] sm:$0xff] }
0x16d1   :  { %3681 = vmatprep.subr.bf16.mxu1 %v5427_v12  ;;  %3724 = vmatprep.subr.bf16.mxu0 %v5429_v13  ;;  %v5415_v12 = vcombine.high %v2661_v37, %v2669_v50  ;;  %v5417_v13 = vcombine.high %v2662_v51, %v2670_v5  ;;  %v2765_v62 = vld [vmem:[%s8145_s16 + $0x370] sm:$0xff] }
0x16d2   :  { %3711 = vmatprep.mubr.bf16.mxu1 %v6527_v1  ;;  %3754 = vmatprep.mubr.bf16.mxu0 %v6527_v1 }
0x16d4   :  { %3682 = vmatpush1.bf16.msra.mxu1 %v5426_v14  ;;  %3725 = vmatpush1.bf16.msra.mxu0 %v5428_v15  ;;  %v5414_v14 = vcombine.low %v2661_v37, %v2669_v50  ;;  %v5416_v15 = vcombine.low %v2662_v51, %v2670_v5  ;;  %v2773_v50 = vld [vmem:[%s8145_s16 + $0x3b0] sm:$0xff]  ;;  %v2774_v5 = vld [vmem:[%s8145_s16 + $0x3b8] sm:$0xff] }
0x16d5   :  { %3683 = vmatprep.subr.bf16.mxu1 %v5443_v20  ;;  %3726 = vmatprep.subr.bf16.mxu0 %v5445_v21  ;;  %v2694_v20 = vld [vmem:[%s8145_s16 + $0x138] sm:$0xff]  ;;  %v2781_v51 = vld [vmem:[%s8145_s16 + $0x3f0] sm:$0xff] }
0x16d6   :  { %v2702_v21 = vld [vmem:[%s8145_s16 + $0x178] sm:$0xff] }
0x16d7   :  { %v5449_v26 = vcombine.high %v2694_v20, %v2702_v21 }
0x16d8   :  { %3684 = vmatpush1.bf16.msra.mxu1 %v5442_v23  ;;  %3727 = vmatpush1.bf16.msra.mxu0 %v5444_v24  ;;  %v5430_v23 = vcombine.low %v2677_v7, %v2685_v8  ;;  %v5432_v24 = vcombine.low %v2678_v44, %v2686_v11  ;;  %v5526_v8 = vcombine.low %v2773_v50, %v2781_v51  ;;  %v6321_v11 = vld [vmem:[%s8146_s18 + $0x40] sm:$0xff]  }
0x16d9   :  { %3685 = vmatprep.subr.bf16.mxu1 %v5459_v2  ;;  %3728 = vmatprep.subr.bf16.mxu0 %v5461_v34  ;;  %v2710_v2 = vld [vmem:[%s8145_s16 + $0x1b8] sm:$0xff] }
0x16da   :  { %v2718_v34 = vld [vmem:[%s8145_s16 + $0x1f8] sm:$0xff] }
0x16db   :  { %v5465_v49 = vcombine.high %v2710_v2, %v2718_v34 }
0x16dc   :  { %3686 = vmatpush1.bf16.msra.mxu1 %v5458_v35  ;;  %3729 = vmatpush1.bf16.msra.mxu0 %v5460_v45  ;;  %v5446_v35 = vcombine.low %v2693_v16, %v2701_v19  ;;  %v5448_v45 = vcombine.low %v2694_v20, %v2702_v21  ;;  %v6326_v16 = vld [vmem:[%s8146_s18 + $0xc8] sm:$0xff]   ;;  %v6329_v19 = vld [vmem:[%s8146_s18 + $0x50] sm:$0xff]  }
0x16dd   :  { %3687 = vmatprep.subr.bf16.mxu1 %v5475_v55  ;;  %3730 = vmatprep.subr.bf16.mxu0 %v5477_v47  ;;  %v2734_v55 = vld [vmem:[%s8145_s16 + $0x278] sm:$0xff]  ;;  %v5462_v47 = vcombine.low %v2709_v27, %v2717_v30  ;;  %v6331_v20 = vld [vmem:[%s8146_s18 + $0x10] sm:$0xff]   ;;  %v6337_v27 = vld [vmem:[%s8146_s18 + $0x60] sm:$0xff]  }
0x16de   :  { %v6332_v21 = vld [vmem:[%s8146_s18 + $0x90] sm:$0xff]   ;;  %v6338_v30 = vld [vmem:[%s8146_s18 + $0xe0] sm:$0xff]  }
0x16e0   :  { %3688 = vmatpush1.bf16.msra.mxu1 %v5474_v57  ;;  %3731 = vmatpush1.bf16.msra.mxu0 %v5476_v58  ;;  %v5464_v57 = vcombine.low %v2710_v2, %v2718_v34  ;;  %v5479_v58 = vcombine.high %v2725_v53, %v2733_v43  ;;  %v6339_v2 = vld [vmem:[%s8146_s18 + $0x20] sm:$0xff]  }
0x16e1   :  { %3689 = vmatprep.subr.bf16.mxu1 %v5491_v41  ;;  %3732 = vmatprep.subr.bf16.mxu0 %v5493_v42  ;;  %v2750_v41 = vld [vmem:[%s8145_s16 + $0x2f8] sm:$0xff]  ;;  %v5478_v42 = vcombine.low %v2725_v53, %v2733_v43  ;;  %v6340_v34 = vld [vmem:[%s8146_s18 + $0xa0] sm:$0xff]   ;;  %v6345_v53 = vld [vmem:[%s8146_s18 + $0x70] sm:$0xff]  }
0x16e2   :  { %v5497_v61 = vcombine.high %v2742_v31, %v2750_v41  ;;  %v6346_v43 = vld [vmem:[%s8146_s18 + $0xf0] sm:$0xff]  }
0x16e4   :  { %3690 = vmatpush1.bf16.msra.mxu1 %v5490_v56  ;;  %3733 = vmatpush1.bf16.msra.mxu0 %v5492_v60  ;;  %v5495_v60 = vcombine.high %v2741_v38, %v2749_v40 }
0x16e5   :  { %3691 = vmatprep.subr.bf16.mxu1 %v5507_v39  ;;  %3734 = vmatprep.subr.bf16.mxu0 %v5509_v54  ;;  %v2766_v39 = vld [vmem:[%s8145_s16 + $0x378] sm:$0xff]  ;;  %v5494_v54 = vcombine.low %v2741_v38, %v2749_v40  ;;  %v6353_v38 = vld [vmem:[%s8146_s18 + $0x140] sm:$0xff]  }
0x16e6   :  { %v5513_v37 = vcombine.high %v2758_v63, %v2766_v39  ;;  %v6354_v40 = vld [vmem:[%s8146_s18 + $0x1c0] sm:$0xff]  }
0x16e8   :  { %3692 = vmatpush1.bf16.msra.mxu1 %v5506_v0  ;;  %3735 = vmatpush1.bf16.msra.mxu0 %v5508_v52  ;;  %v5496_v0 = vcombine.low %v2742_v31, %v2750_v41  ;;  %v5511_v52 = vcombine.high %v2757_v59, %v2765_v62  ;;  %v7765_v31 = vld [vmem:[%s8149_s17 + $0x8] sm:$0xff]  ;;  %v2801_v41 = vsub.s32 3, %v6745_v28 }
0x16e9   :  { %3693 = vmatprep.subr.bf16.mxu1 %v5523_v10  ;;  %3736 = vmatprep.subr.bf16.mxu0 %v5525_v3  ;;  %v2782_v10 = vld [vmem:[%s8145_s16 + $0x3f8] sm:$0xff]  ;;  %v5510_v3 = vcombine.low %v2757_v59, %v2765_v62  ;;  %v2809_v59 = vsub.s32 5, %v6745_v28  ;;  %v2817_v62 = vsub.s32 7, %v6745_v28 }
0x16ea   :  { %v5529_v7 = vcombine.high %v2774_v5, %v2782_v10  ;;  %v5528_v44 = vcombine.low %v2774_v5, %v2782_v10 }
0x16ec   :  { %3694 = vmatpush1.bf16.msra.mxu1 %v5522_v4  ;;  %3737 = vmatpush1.bf16.msra.mxu0 %v5524_v6  ;;  %v5512_v4 = vcombine.low %v2758_v63, %v2766_v39  ;;  %v5527_v6 = vcombine.high %v2773_v50, %v2781_v51  ;;  %v7788_v39 = vrot.slane %v7765_v31, %v2809_v59 }
0x16ed   :  { %3765 = vmatprep.subr.bf16.mxu1 %v5415_v12  ;;  %3808 = vmatprep.subr.bf16.mxu0 %v5417_v13  ;;  %v6322_v12 = vld [vmem:[%s8146_s18 + $0xc0] sm:$0xff]  }
0x16ee   :  { %v6323_v13 = vld [vmem:[%s8146_s18] sm:$0xff]  }
0x16ef   :  { %3712 = vmatmul.mubr.bf16.vlgmr.msra.gmra.mrb[88].mxu1 %v7392_v9  ;;  %3755 = vmatmul.mubr.bf16.vlgmr.msra.gmra.mrb[76].mxu0 %v7392_v9 }
0x16f0   :  { %3766 = vmatpush1.bf16.msra.mxu1 %v5414_v14  ;;  %3809 = vmatpush1.bf16.msra.mxu0 %v5416_v15  ;;  %v6324_v14 = vld [vmem:[%s8146_s18 + $0x80] sm:$0xff]   ;;  %v6325_v15 = vld [vmem:[%s8146_s18 + $0x48] sm:$0xff]  }
0x16f1   :  { %3767 = vmatprep.subr.bf16.mxu1 %v5431_v17  ;;  %3810 = vmatprep.subr.bf16.mxu0 %v5433_v18  ;;  %v6327_v17 = vld [vmem:[%s8146_s18 + $0x8] sm:$0xff]  }
0x16f2   :  { %3797 = vmatprep.mubr.bf16.mxu1 %v6527_v1  ;;  %3840 = vmatprep.mubr.bf16.mxu0 %v6527_v1  ;;  %v2726_v1 = vld [vmem:[%s8145_s16 + $0x238] sm:$0xff]  ;;  %v6328_v18 = vld [vmem:[%s8146_s18 + $0x88] sm:$0xff]  }
0x16f3   :  { %v5481_v33 = vcombine.high %v2726_v1, %v2734_v55  ;;  %v5480_v56 = vcombine.low %v2726_v1, %v2734_v55  ;;  %v6347_v1 = vld [vmem:[%s8146_s18 + $0x30] sm:$0xff]  }
0x16f4   :  { %3768 = vmatpush1.bf16.msra.mxu1 %v5430_v23  ;;  %3811 = vmatpush1.bf16.msra.mxu0 %v5432_v24  ;;  %v6333_v23 = vld [vmem:[%s8146_s18 + $0x58] sm:$0xff]   ;;  %v6348_v55 = vld [vmem:[%s8146_s18 + $0xb0] sm:$0xff]  }
0x16f5   :  { %3769 = vmatprep.subr.bf16.mxu1 %v5447_v25  ;;  %3812 = vmatprep.subr.bf16.mxu0 %v5449_v26  ;;  %v6334_v24 = vld [vmem:[%s8146_s18 + $0xd8] sm:$0xff]  }
0x16f6   :  { %v6335_v25 = vld [vmem:[%s8146_s18 + $0x18] sm:$0xff]  }
0x16f7   :  { %v6336_v26 = vld [vmem:[%s8146_s18 + $0x98] sm:$0xff]  }
0x16f8   :  { %3770 = vmatpush1.bf16.msra.mxu1 %v5446_v35  ;;  %3813 = vmatpush1.bf16.msra.mxu0 %v5448_v45  ;;  %v6341_v35 = vld [vmem:[%s8146_s18 + $0x68] sm:$0xff]  }
0x16f9   :  { %3771 = vmatprep.subr.bf16.mxu1 %v5463_v46  ;;  %3814 = vmatprep.subr.bf16.mxu0 %v5465_v49  ;;  %v6342_v45 = vld [vmem:[%s8146_s18 + $0xe8] sm:$0xff]  }
0x16fa   :  { %v6343_v46 = vld [vmem:[%s8146_s18 + $0x28] sm:$0xff]  }
0x16fb   :  { %v6344_v49 = vld [vmem:[%s8146_s18 + $0xa8] sm:$0xff]  }
0x16fc   :  { %3772 = vmatpush1.bf16.msra.mxu1 %v5462_v47  ;;  %3815 = vmatpush1.bf16.msra.mxu0 %v5464_v57  ;;  %v6349_v47 = vld [vmem:[%s8146_s18 + $0x78] sm:$0xff]  }
0x16fd   :  { %3773 = vmatprep.subr.bf16.mxu1 %v5479_v58  ;;  %3816 = vmatprep.subr.bf16.mxu0 %v5481_v33  ;;  %v6350_v57 = vld [vmem:[%s8146_s18 + $0xf8] sm:$0xff]  }
0x16fe   :  { %v6351_v58 = vld [vmem:[%s8146_s18 + $0x38] sm:$0xff]  }
0x16ff   :  { %v6352_v33 = vld [vmem:[%s8146_s18 + $0xb8] sm:$0xff]  }
0x1700   :  { %3774 = vmatpush1.bf16.msra.mxu1 %v5478_v42  ;;  %3817 = vmatpush1.bf16.msra.mxu0 %v5480_v56  ;;  %v7769_v42 = vrot.slane %v7765_v31, %v2801_v41  ;;  %v2805_v56 = vsub.s32 4, %v6745_v28 }
0x1701   :  { %3775 = vmatprep.subr.bf16.mxu1 %v5495_v60  ;;  %3818 = vmatprep.subr.bf16.mxu0 %v5497_v61  ;;  %v2813_v60 = vsub.s32 6, %v6745_v28  ;;  %v6381_v28 = vld [vmem:[%s8146_s18 + $0x178] sm:$0xff]  }
0x1702   :  { %v7776_v61 = vrot.slane %v7765_v31, %v2805_v56 }
0x1703   :  { %v7783_v63 = vrot.slane %v7765_v31, %v2813_v60 }
0x1704   :  { %3776 = vmatpush1.bf16.msra.mxu1 %v5494_v54  ;;  %3819 = vmatpush1.bf16.msra.mxu0 %v5496_v0  ;;  %v7793_v54 = vrot.slane %v7765_v31, %v2817_v62  ;;  %v7798_v0 = vld [vmem:[%s8149_s17] sm:$0xff] }
0x1705   :  { %3777 = vmatprep.subr.bf16.mxu1 %v5511_v52  ;;  %3820 = vmatprep.subr.bf16.mxu0 %v5513_v37  ;;  %v2790_v52 = vrot.slane %v7798_v0, %v6755_v32  ;;  %v2798_v37 = vrot.slane %v7798_v0, %v6781_v48  ;;  %v2794_v50 = vrot.slane %v7798_v0, %v6748_v29 }
0x1706   :  { %v2802_v51 = vrot.slane %v7798_v0, %v2801_v41  ;;  %v6369_v41 = vld [vmem:[%s8146_s18 + $0x160] sm:$0xff]  }
0x1708   :  { %3778 = vmatpush1.bf16.msra.mxu1 %v5510_v3  ;;  %3821 = vmatpush1.bf16.msra.mxu0 %v5512_v4 }
0x1709   :  { %3779 = vmatprep.subr.bf16.mxu1 %v5527_v6  ;;  %3822 = vmatprep.subr.bf16.mxu0 %v5529_v7 }
0x170c   :  { %3780 = vmatpush1.bf16.msra.mxu1 %v5526_v8  ;;  %3823 = vmatpush1.bf16.msra.mxu0 %v5528_v44 }
0x170d   :  { %5770 = vmatprep.subr.bf16.mxu1 %v6321_v11  ;;  %5792 = vmatprep.subr.bf16.mxu0 %v6322_v12 }
0x170f   :  { %3798 = vmatmul.mubr.bf16.vlgmr.msra.gmra.mrb[92].mxu1 %v7392_v9  ;;  %3841 = vmatmul.mubr.bf16.vlgmr.msra.gmra.mrb[80].mxu0 %v7392_v9  ;;  %v6330_v9 = vld [vmem:[%s8146_s18 + $0xd0] sm:$0xff]  }
0x1710   :  { %5771 = vmatpush3.bf16.msra.mxu1 %v6323_v13  ;;  %5793 = vmatpush3.bf16.msra.mxu0 %v6324_v14 }
0x1711   :  { %5772 = vmatprep.subr.bf16.mxu1 %v6325_v15  ;;  %5794 = vmatprep.subr.bf16.mxu0 %v6326_v16 }
0x1714   :  { %5773 = vmatpush3.bf16.msra.mxu1 %v6327_v17  ;;  %5795 = vmatpush3.bf16.msra.mxu0 %v6328_v18 }
0x1715   :  { %5774 = vmatprep.subr.bf16.mxu1 %v6329_v19  ;;  %5796 = vmatprep.subr.bf16.mxu0 %v6330_v9 }
0x1718   :  { %5775 = vmatpush3.bf16.msra.mxu1 %v6331_v20  ;;  %5797 = vmatpush3.bf16.msra.mxu0 %v6332_v21 }
0x1719   :  { %5776 = vmatprep.subr.bf16.mxu1 %v6333_v23  ;;  %5798 = vmatprep.subr.bf16.mxu0 %v6334_v24 }
0x171c   :  { %5777 = vmatpush3.bf16.msra.mxu1 %v6335_v25  ;;  %5799 = vmatpush3.bf16.msra.mxu0 %v6336_v26 }
0x171d   :  { %5778 = vmatprep.subr.bf16.mxu1 %v6337_v27  ;;  %5800 = vmatprep.subr.bf16.mxu0 %v6338_v30 }
0x1720   :  { %5779 = vmatpush3.bf16.msra.mxu1 %v6339_v2  ;;  %5801 = vmatpush3.bf16.msra.mxu0 %v6340_v34 }
0x1721   :  { %5780 = vmatprep.subr.bf16.mxu1 %v6341_v35  ;;  %5802 = vmatprep.subr.bf16.mxu0 %v6342_v45  ;;  %v6355_v35 = vld [vmem:[%s8146_s18 + $0x100] sm:$0xff]  }
0x1722   :  { %v6356_v45 = vld [vmem:[%s8146_s18 + $0x180] sm:$0xff]  }
0x1724   :  { %5781 = vmatpush3.bf16.msra.mxu1 %v6343_v46  ;;  %5803 = vmatpush3.bf16.msra.mxu0 %v6344_v49  ;;  %v6357_v46 = vld [vmem:[%s8146_s18 + $0x148] sm:$0xff]  }
0x1725   :  { %5782 = vmatprep.subr.bf16.mxu1 %v6345_v53  ;;  %5804 = vmatprep.subr.bf16.mxu0 %v6346_v43  ;;  %v6358_v49 = vld [vmem:[%s8146_s18 + $0x1c8] sm:$0xff]  }
0x1726   :  { %v6359_v53 = vld [vmem:[%s8146_s18 + $0x108] sm:$0xff]  }
0x1727   :  { %v6360_v43 = vld [vmem:[%s8146_s18 + $0x188] sm:$0xff]  }
0x1728   :  { %5783 = vmatpush3.bf16.msra.mxu1 %v6347_v1  ;;  %5805 = vmatpush3.bf16.msra.mxu0 %v6348_v55  ;;  %v6361_v1 = vld [vmem:[%s8146_s18 + $0x150] sm:$0xff]  }
0x1729   :  { %5784 = vmatprep.subr.bf16.mxu1 %v6349_v47  ;;  %5806 = vmatprep.subr.bf16.mxu0 %v6350_v57  ;;  %v6362_v55 = vld [vmem:[%s8146_s18 + $0x1d0] sm:$0xff]  }
0x172a   :  { %v6363_v47 = vld [vmem:[%s8146_s18 + $0x110] sm:$0xff]  }
0x172b   :  { %v6364_v57 = vld [vmem:[%s8146_s18 + $0x190] sm:$0xff]  }
0x172c   :  { %5785 = vmatpush3.bf16.msra.mxu1 %v6351_v58  ;;  %5807 = vmatpush3.bf16.msra.mxu0 %v6352_v33  ;;  %v6365_v58 = vld [vmem:[%s8146_s18 + $0x158] sm:$0xff]  }
0x172d   :  { %5814 = vmatprep.subr.bf16.mxu1 %v6353_v38  ;;  %5836 = vmatprep.subr.bf16.mxu0 %v6354_v40  ;;  %v6366_v33 = vld [vmem:[%s8146_s18 + $0x1d8] sm:$0xff]  }
0x172e   :  { %v6367_v38 = vld [vmem:[%s8146_s18 + $0x118] sm:$0xff]  }
0x172f   :  { %v6368_v40 = vld [vmem:[%s8146_s18 + $0x198] sm:$0xff]  }
0x1782   :  { %v3541_v5 = vpop.f32.mrb[80].mxu1  ;;  %v3584_v10 = vpop.f32.mrb[68].mxu0 }
0x1783   :  { %v3542_v3 = vadd.f32 %v3541_v5, %v2790_v52  ;;  %v3585_v4 = vadd.f32 %v3584_v10, %v2798_v37  ;;  %v3543_v6 = vpop.f32.mrb[81].mxu1  ;;  %v3586_v7 = vpop.f32.mrb[69].mxu0  ;;  %v6374_v5 = vld [vmem:[%s8146_s18 + $0x1e8] sm:$0xff]  }
0x1784   :  { %v3544_v8 = vadd.f32 %v3543_v6, %v2794_v50  ;;  %v3587_v44 = vadd.f32 %v3586_v7, %v2802_v51  ;;  %v3545_v11 = vpop.f32.mrb[82].mxu1  ;;  %v3588_v12 = vpop.f32.mrb[70].mxu0  ;;  %v6375_v10 = vld [vmem:[%s8146_s18 + $0x128] sm:$0xff]   ;;  %v2814_v6 = vrot.slane %v7798_v0, %v2813_v60  ;;  %v6377_v7 = vld [vmem:[%s8146_s18 + $0x170] sm:$0xff]  }
0x1785   :  { %v3546_v13 = vadd.f32 %v3545_v11, %v2790_v52  ;;  %v3589_v14 = vadd.f32 %v3588_v12, %v2798_v37  ;;  %v3547_v15 = vpop.f32.mrb[83].mxu1  ;;  %v3590_v16 = vpop.f32.mrb[71].mxu0  ;;  %v3851_v19 = vmax.f32 %v3542_v3, 0.0  ;;  %v3853_v9 = vmax.f32 %v3585_v4, 0.0  ;;  %v6370_v52 = vld [vmem:[%s8146_s18 + $0x1e0] sm:$0xff]   ;;  %v6376_v3 = vld [vmem:[%s8146_s18 + $0x1a8] sm:$0xff]  }
0x1786   :  { %v3548_v17 = vadd.f32 %v3547_v15, %v2794_v50  ;;  %v3591_v18 = vadd.f32 %v3590_v16, %v2802_v51  ;;  %v3852_v23 = vmax.f32 %v3544_v8, 0.0  ;;  %v3854_v24 = vmax.f32 %v3587_v44, 0.0  ;;  %v6371_v37 = vld [vmem:[%s8146_s18 + $0x120] sm:$0xff]   ;;  %v6373_v51 = vld [vmem:[%s8146_s18 + $0x168] sm:$0xff]   ;;  %v6378_v8 = vld [vmem:[%s8146_s18 + $0x1f0] sm:$0xff]  }
0x1787   :  { %v3867_v20 = vmax.f32 %v3546_v13, 0.0  ;;  %v3869_v21 = vmax.f32 %v3589_v14, 0.0  ;;  %v6372_v50 = vld [vmem:[%s8146_s18 + $0x1a0] sm:$0xff]   ;;  %v2806_v4 = vrot.slane %v7798_v0, %v2805_v56  ;;  %v2810_v44 = vrot.slane %v7798_v0, %v2809_v59  ;;  %v6379_v60 = vld [vmem:[%s8146_s18 + $0x130] sm:$0xff]  }
0x1788   :  { %v3868_v25 = vmax.f32 %v3548_v17, 0.0  ;;  %v3870_v26 = vmax.f32 %v3591_v18, 0.0  ;;  %v2818_v56 = vrot.slane %v7798_v0, %v2817_v62  ;;  %v6380_v13 = vld [vmem:[%s8146_s18 + $0x1b0] sm:$0xff]   ;;  %v6382_v62 = vld [vmem:[%s8146_s18 + $0x1f8] sm:$0xff]  }
0x1789   :  { %v3883_v27 = vpack.c.bf16 %v3867_v20, %v3851_v19  ;;  %v3885_v30 = vpack.c.bf16 %v3869_v21, %v3853_v9 }
0x178a   :  { %v3884_v2 = vpack.c.bf16 %v3868_v25, %v3852_v23  ;;  %v3886_v34 = vpack.c.bf16 %v3870_v26, %v3854_v24  ;;  %v6383_v26 = vld [vmem:[%s8146_s18 + $0x138] sm:$0xff]  }
0x178c   :  { %4962 = vmatprep.mubr.bf16.mxu1 %v3884_v2  ;;  %5003 = vmatprep.mubr.bf16.mxu0 %v3886_v34 }
0x178d   :  { %4963 = vmatmul.mubr.bf16.vlgmr.msra.gmra.mrb[96].mxu1 %v3883_v27  ;;  %5004 = vmatmul.mubr.bf16.vlgmr.msra.gmra.mrb[84].mxu0 %v3885_v30  ;;  %v6384_v27 = vld [vmem:[%s8146_s18 + $0x1b8] sm:$0xff]  }
0x178e   :  { %5815 = vmatpush3.bf16.msra.mxu1 %v6355_v35  ;;  %5837 = vmatpush3.bf16.msra.mxu0 %v6356_v45  ;;  %v6385_v45 = vld [vmem:[%s8146_s18 + $0x240] sm:$0xff]  }
0x178f   :  { %5816 = vmatprep.subr.bf16.mxu1 %v6357_v46  ;;  %5838 = vmatprep.subr.bf16.mxu0 %v6358_v49  ;;  %v6386_v46 = vld [vmem:[%s8146_s18 + $0x2c0] sm:$0xff]  }
0x1792   :  { %5817 = vmatpush3.bf16.msra.mxu1 %v6359_v53  ;;  %5839 = vmatpush3.bf16.msra.mxu0 %v6360_v43 }
0x1793   :  { %5818 = vmatprep.subr.bf16.mxu1 %v6361_v1  ;;  %5840 = vmatprep.subr.bf16.mxu0 %v6362_v55 }
0x1796   :  { %5819 = vmatpush3.bf16.msra.mxu1 %v6363_v47  ;;  %5841 = vmatpush3.bf16.msra.mxu0 %v6364_v57 }
0x1797   :  { %5820 = vmatprep.subr.bf16.mxu1 %v6365_v58  ;;  %5842 = vmatprep.subr.bf16.mxu0 %v6366_v33  ;;  %v6387_v33 = vld [vmem:[%s8146_s18 + $0x200] sm:$0xff]  }
0x179a   :  { %5821 = vmatpush3.bf16.msra.mxu1 %v6367_v38  ;;  %5843 = vmatpush3.bf16.msra.mxu0 %v6368_v40  ;;  %v6388_v38 = vld [vmem:[%s8146_s18 + $0x280] sm:$0xff]   ;;  %v6389_v40 = vld [vmem:[%s8146_s18 + $0x248] sm:$0xff]  }
0x179b   :  { %5822 = vmatprep.subr.bf16.mxu1 %v6369_v41  ;;  %5844 = vmatprep.subr.bf16.mxu0 %v6370_v52  ;;  %v6390_v41 = vld [vmem:[%s8146_s18 + $0x2c8] sm:$0xff]  }
0x179c   :  { %v6391_v52 = vld [vmem:[%s8146_s18 + $0x208] sm:$0xff]  }
0x179e   :  { %5823 = vmatpush3.bf16.msra.mxu1 %v6371_v37  ;;  %5845 = vmatpush3.bf16.msra.mxu0 %v6372_v50  ;;  %v6392_v37 = vld [vmem:[%s8146_s18 + $0x288] sm:$0xff]   ;;  %v6393_v50 = vld [vmem:[%s8146_s18 + $0x250] sm:$0xff]  }
0x179f   :  { %5824 = vmatprep.subr.bf16.mxu1 %v6373_v51  ;;  %5846 = vmatprep.subr.bf16.mxu0 %v6374_v5  ;;  %v6394_v51 = vld [vmem:[%s8146_s18 + $0x2d0] sm:$0xff]  }
0x17a0   :  { %v6395_v5 = vld [vmem:[%s8146_s18 + $0x210] sm:$0xff]  }
0x17a2   :  { %v3627_v11 = vpop.f32.mrb[84].mxu1  ;;  %v3670_v12 = vpop.f32.mrb[72].mxu0  ;;  %5825 = vmatpush3.bf16.msra.mxu1 %v6375_v10  ;;  %5847 = vmatpush3.bf16.msra.mxu0 %v6376_v3  ;;  %v6396_v10 = vld [vmem:[%s8146_s18 + $0x290] sm:$0xff]   ;;  %v6397_v3 = vld [vmem:[%s8146_s18 + $0x258] sm:$0xff]  }
0x17a3   :  { %v3628_v14 = vadd.f32 %v3627_v11, %v2806_v4  ;;  %v3671_v15 = vadd.f32 %v3670_v12, %v2814_v6  ;;  %v3629_v16 = vpop.f32.mrb[85].mxu1  ;;  %v3672_v59 = vpop.f32.mrb[73].mxu0  ;;  %5826 = vmatprep.subr.bf16.mxu1 %v6377_v7  ;;  %5848 = vmatprep.subr.bf16.mxu0 %v6378_v8  ;;  %v6400_v7 = vld [vmem:[%s8146_s18 + $0x298] sm:$0xff]   ;;  %v6401_v8 = vld [vmem:[%s8146_s18 + $0x260] sm:$0xff]   ;;  %v6405_v12 = vld [vmem:[%s8146_s18 + $0x268] sm:$0xff]  }
0x17a4   :  { %v3630_v0 = vadd.f32 %v3629_v16, %v2810_v44  ;;  %v3673_v17 = vadd.f32 %v3672_v59, %v2818_v56  ;;  %v3631_v18 = vpop.f32.mrb[86].mxu1  ;;  %v3674_v19 = vpop.f32.mrb[74].mxu0  ;;  %v6404_v11 = vld [vmem:[%s8146_s18 + $0x2a0] sm:$0xff]   ;;  %v2830_v16 = vrot.slane %v7765_v31, %v6781_v48  ;;  %v6409_v59 = vld [vmem:[%s8146_s18 + $0x270] sm:$0xff]  }
0x17a5   :  { %v3632_v9 = vadd.f32 %v3631_v18, %v2806_v4  ;;  %v3675_v20 = vadd.f32 %v3674_v19, %v2814_v6  ;;  %v3633_v21 = vpop.f32.mrb[87].mxu1  ;;  %v3676_v23 = vpop.f32.mrb[75].mxu0  ;;  %v3855_v30 = vmax.f32 %v3628_v14, 0.0  ;;  %v3857_v2 = vmax.f32 %v3671_v15, 0.0  ;;  %v6398_v4 = vld [vmem:[%s8146_s18 + $0x2d8] sm:$0xff]   ;;  %v6408_v14 = vld [vmem:[%s8146_s18 + $0x2a8] sm:$0xff]  }
0x17a6   :  { %v3634_v24 = vadd.f32 %v3633_v21, %v2810_v44  ;;  %v3677_v25 = vadd.f32 %v3676_v23, %v2818_v56  ;;  %5827 = vmatpush3.bf16.msra.mxu1 %v6379_v60  ;;  %5849 = vmatpush3.bf16.msra.mxu0 %v6380_v13  ;;  %v3856_v49 = vmax.f32 %v3630_v0, 0.0  ;;  %v3858_v53 = vmax.f32 %v3673_v17, 0.0  ;;  %v6399_v6 = vld [vmem:[%s8146_s18 + $0x218] sm:$0xff]   ;;  %v6402_v44 = vld [vmem:[%s8146_s18 + $0x2e0] sm:$0xff]   ;;  %v6406_v60 = vld [vmem:[%s8146_s18 + $0x2e8] sm:$0xff]  }
0x17a7   :  { %v3871_v34 = vmax.f32 %v3632_v9, 0.0  ;;  %v3873_v35 = vmax.f32 %v3675_v20, 0.0  ;;  %5828 = vmatprep.subr.bf16.mxu1 %v6381_v28  ;;  %5850 = vmatprep.subr.bf16.mxu0 %v6382_v62  ;;  %v6403_v56 = vld [vmem:[%s8146_s18 + $0x220] sm:$0xff]   ;;  %v6407_v13 = vld [vmem:[%s8146_s18 + $0x228] sm:$0xff]   ;;  %v2822_v15 = vrot.slane %v7765_v31, %v6755_v32  ;;  %v6410_v28 = vld [vmem:[%s8146_s18 + $0x2f0] sm:$0xff]   ;;  %v2826_v62 = vrot.slane %v7765_v31, %v6748_v29 }
0x17a8   :  { %v3872_v43 = vmax.f32 %v3634_v24, 0.0  ;;  %v3874_v1 = vmax.f32 %v3677_v25, 0.0  ;;  %v6411_v32 = vld [vmem:[%s8146_s18 + $0x230] sm:$0xff]   ;;  %v6413_v29 = vld [vmem:[%s8146_s18 + $0x278] sm:$0xff]  }
0x17a9   :  { %v3887_v55 = vpack.c.bf16 %v3871_v34, %v3855_v30  ;;  %v3889_v47 = vpack.c.bf16 %v3873_v35, %v3857_v2  ;;  %v6412_v48 = vld [vmem:[%s8146_s18 + $0x2b0] sm:$0xff]   ;;  %v6414_v31 = vld [vmem:[%s8146_s18 + $0x2f8] sm:$0xff]  }
0x17aa   :  { %v3888_v57 = vpack.c.bf16 %v3872_v43, %v3856_v49  ;;  %v3890_v58 = vpack.c.bf16 %v3874_v1, %v3858_v53  ;;  %5829 = vmatpush3.bf16.msra.mxu1 %v6383_v26  ;;  %5851 = vmatpush3.bf16.msra.mxu0 %v6384_v27 }
0x17ab   :  { %5858 = vmatprep.subr.bf16.mxu1 %v6385_v45  ;;  %5880 = vmatprep.subr.bf16.mxu0 %v6386_v46  ;;  %v6415_v45 = vld [vmem:[%s8146_s18 + $0x238] sm:$0xff]  }
0x17ac   :  { %5044 = vmatprep.mubr.bf16.mxu1 %v3888_v57  ;;  %5085 = vmatprep.mubr.bf16.mxu0 %v3890_v58  ;;  %v6416_v46 = vld [vmem:[%s8146_s18 + $0x2b8] sm:$0xff]  }
0x17ad   :  { %5045 = vmatmul.mubr.bf16.vlgmr.msra.gmra.mrb[100].mxu1 %v3887_v55  ;;  %5086 = vmatmul.mubr.bf16.vlgmr.msra.gmra.mrb[88].mxu0 %v3889_v47  ;;  %v6418_v55 = vld [vmem:[%s8146_s18 + $0x3c0] sm:$0xff]  }
0x17ae   :  { %5859 = vmatpush3.bf16.msra.mxu1 %v6387_v33  ;;  %5881 = vmatpush3.bf16.msra.mxu0 %v6388_v38 }
0x17af   :  { %5860 = vmatprep.subr.bf16.mxu1 %v6389_v40  ;;  %5882 = vmatprep.subr.bf16.mxu0 %v6390_v41 }
0x17b2   :  { %5861 = vmatpush3.bf16.msra.mxu1 %v6391_v52  ;;  %5883 = vmatpush3.bf16.msra.mxu0 %v6392_v37  ;;  %v6419_v37 = vld [vmem:[%s8146_s18 + $0x300] sm:$0xff]  }
0x17b3   :  { %5862 = vmatprep.subr.bf16.mxu1 %v6393_v50  ;;  %5884 = vmatprep.subr.bf16.mxu0 %v6394_v51  ;;  %v6420_v50 = vld [vmem:[%s8146_s18 + $0x380] sm:$0xff]   ;;  %v6421_v51 = vld [vmem:[%s8146_s18 + $0x348] sm:$0xff]  }
0x17b6   :  { %5863 = vmatpush3.bf16.msra.mxu1 %v6395_v5  ;;  %5885 = vmatpush3.bf16.msra.mxu0 %v6396_v10  ;;  %v6422_v5 = vld [vmem:[%s8146_s18 + $0x3c8] sm:$0xff]  }
0x17b7   :  { %5864 = vmatprep.subr.bf16.mxu1 %v6397_v3  ;;  %5886 = vmatprep.subr.bf16.mxu0 %v6398_v4  ;;  %v6423_v10 = vld [vmem:[%s8146_s18 + $0x308] sm:$0xff]   ;;  %v6425_v4 = vld [vmem:[%s8146_s18 + $0x350] sm:$0xff]  }
0x17b8   :  { %v6424_v3 = vld [vmem:[%s8146_s18 + $0x388] sm:$0xff]  }
0x17ba   :  { %5865 = vmatpush3.bf16.msra.mxu1 %v6399_v6  ;;  %5887 = vmatpush3.bf16.msra.mxu0 %v6400_v7  ;;  %v6426_v6 = vld [vmem:[%s8146_s18 + $0x3d0] sm:$0xff]  }
0x17bb   :  { %5866 = vmatprep.subr.bf16.mxu1 %v6401_v8  ;;  %5888 = vmatprep.subr.bf16.mxu0 %v6402_v44  ;;  %v6427_v7 = vld [vmem:[%s8146_s18 + $0x310] sm:$0xff]   ;;  %v6429_v44 = vld [vmem:[%s8146_s18 + $0x358] sm:$0xff]  }
0x17bc   :  { %v6428_v8 = vld [vmem:[%s8146_s18 + $0x390] sm:$0xff]  }
0x17be   :  { %5867 = vmatpush3.bf16.msra.mxu1 %v6403_v56  ;;  %5889 = vmatpush3.bf16.msra.mxu0 %v6404_v11  ;;  %v6430_v56 = vld [vmem:[%s8146_s18 + $0x3d8] sm:$0xff]  }
0x17bf   :  { %5868 = vmatprep.subr.bf16.mxu1 %v6405_v12  ;;  %5890 = vmatprep.subr.bf16.mxu0 %v6406_v60  ;;  %v6431_v11 = vld [vmem:[%s8146_s18 + $0x318] sm:$0xff]   ;;  %v6433_v60 = vld [vmem:[%s8146_s18 + $0x360] sm:$0xff]  }
0x17c0   :  { %v6432_v12 = vld [vmem:[%s8146_s18 + $0x398] sm:$0xff]  }
0x17c2   :  { %v3713_v0 = vpop.f32.mrb[88].mxu1  ;;  %v3756_v17 = vpop.f32.mrb[76].mxu0  ;;  %5869 = vmatpush3.bf16.msra.mxu1 %v6407_v13  ;;  %5891 = vmatpush3.bf16.msra.mxu0 %v6408_v14  ;;  %v6434_v13 = vld [vmem:[%s8146_s18 + $0x3e0] sm:$0xff]  }
0x17c3   :  { %v3714_v18 = vadd.f32 %v3713_v0, %v2822_v15  ;;  %v3757_v19 = vadd.f32 %v3756_v17, %v2830_v16  ;;  %v3715_v9 = vpop.f32.mrb[89].mxu1  ;;  %v3758_v20 = vpop.f32.mrb[77].mxu0  ;;  %5870 = vmatprep.subr.bf16.mxu1 %v6409_v59  ;;  %5892 = vmatprep.subr.bf16.mxu0 %v6410_v28  ;;  %v6435_v14 = vld [vmem:[%s8146_s18 + $0x320] sm:$0xff]   ;;  %v6438_v59 = vld [vmem:[%s8146_s18 + $0x3e8] sm:$0xff]   ;;  %v6441_v0 = vld [vmem:[%s8146_s18 + $0x370] sm:$0xff]  }
0x17c4   :  { %v3716_v21 = vadd.f32 %v3715_v9, %v2826_v62  ;;  %v3759_v23 = vadd.f32 %v3758_v20, %v7769_v42  ;;  %v3717_v24 = vpop.f32.mrb[90].mxu1  ;;  %v3760_v25 = vpop.f32.mrb[78].mxu0  ;;  %v6439_v28 = vld [vmem:[%s8146_s18 + $0x328] sm:$0xff]   ;;  %v6442_v17 = vld [vmem:[%s8146_s18 + $0x3f0] sm:$0xff]  }
0x17c5   :  { %v3718_v26 = vadd.f32 %v3717_v24, %v2822_v15  ;;  %v3761_v27 = vadd.f32 %v3760_v25, %v2830_v16  ;;  %v3719_v30 = vpop.f32.mrb[91].mxu1  ;;  %v3762_v2 = vpop.f32.mrb[79].mxu0  ;;  %v3859_v49 = vmax.f32 %v3714_v18, 0.0  ;;  %v3861_v53 = vmax.f32 %v3757_v19, 0.0  ;;  %v6436_v15 = vld [vmem:[%s8146_s18 + $0x3a0] sm:$0xff]   ;;  %v6437_v16 = vld [vmem:[%s8146_s18 + $0x368] sm:$0xff]  }
0x17c6   :  { %v3720_v34 = vadd.f32 %v3719_v30, %v2826_v62  ;;  %v3763_v35 = vadd.f32 %v3762_v2, %v7769_v42  ;;  %5871 = vmatpush3.bf16.msra.mxu1 %v6411_v32  ;;  %5893 = vmatpush3.bf16.msra.mxu0 %v6412_v48  ;;  %v6417_v42 = vld [vmem:[%s8146_s18 + $0x340] sm:$0xff]   ;;  %v3860_v47 = vmax.f32 %v3716_v21, 0.0  ;;  %v3862_v57 = vmax.f32 %v3759_v23, 0.0  ;;  %v6440_v62 = vld [vmem:[%s8146_s18 + $0x3a8] sm:$0xff]   ;;  %v6443_v18 = vld [vmem:[%s8146_s18 + $0x330] sm:$0xff]  }
0x17c7   :  { %v3875_v43 = vmax.f32 %v3718_v26, 0.0  ;;  %v3877_v1 = vmax.f32 %v3761_v27, 0.0  ;;  %5872 = vmatprep.subr.bf16.mxu1 %v6413_v29  ;;  %5894 = vmatprep.subr.bf16.mxu0 %v6414_v31  ;;  %v6444_v19 = vld [vmem:[%s8146_s18 + $0x3b0] sm:$0xff]   ;;  %v6445_v21 = vld [vmem:[%s8146_s18 + $0x378] sm:$0xff]  }
0x17c8   :  { %v3876_v58 = vmax.f32 %v3720_v34, 0.0  ;;  %v3878_v33 = vmax.f32 %v3763_v35, 0.0  ;;  %v6446_v23 = vld [vmem:[%s8146_s18 + $0x3f8] sm:$0xff]  }
0x17c9   :  { %v3891_v38 = vpack.c.bf16 %v3875_v43, %v3859_v49  ;;  %v3893_v40 = vpack.c.bf16 %v3877_v1, %v3861_v53  ;;  %v6447_v49 = vld [vmem:[%s8146_s18 + $0x338] sm:$0xff]  }
0x17ca   :  { %v3892_v41 = vpack.c.bf16 %v3876_v58, %v3860_v47  ;;  %v3894_v52 = vpack.c.bf16 %v3878_v33, %v3862_v57  ;;  %5873 = vmatpush3.bf16.msra.mxu1 %v6415_v45  ;;  %5895 = vmatpush3.bf16.msra.mxu0 %v6416_v46  ;;  %v6448_v53 = vld [vmem:[%s8146_s18 + $0x3b8] sm:$0xff]  }
0x17cb   :  { %5902 = vmatprep.subr.bf16.mxu1 %v6417_v42  ;;  %5924 = vmatprep.subr.bf16.mxu0 %v6418_v55 }
0x17cc   :  { %5126 = vmatprep.mubr.bf16.mxu1 %v3892_v41  ;;  %5167 = vmatprep.mubr.bf16.mxu0 %v3894_v52  ;;  %v5530_v41 = vld [vmem:[%s8150_s19] ss:$0 sm:$0xff] }
0x17cd   :  { %5127 = vmatmul.mubr.bf16.vlgmr.msra.gmra.mrb[104].mxu1 %v3891_v38  ;;  %5168 = vmatmul.mubr.bf16.vlgmr.msra.gmra.mrb[92].mxu0 %v3893_v40 }
0x17ce   :  { %5903 = vmatpush3.bf16.msra.mxu1 %v6419_v37  ;;  %5925 = vmatpush3.bf16.msra.mxu0 %v6420_v50 }
0x17cf   :  { %5904 = vmatprep.subr.bf16.mxu1 %v6421_v51  ;;  %5926 = vmatprep.subr.bf16.mxu0 %v6422_v5 }
0x17d2   :  { %5905 = vmatpush3.bf16.msra.mxu1 %v6423_v10  ;;  %5927 = vmatpush3.bf16.msra.mxu0 %v6424_v3 }
0x17d3   :  { %5906 = vmatprep.subr.bf16.mxu1 %v6425_v4  ;;  %5928 = vmatprep.subr.bf16.mxu0 %v6426_v6 }
0x17d6   :  { %5907 = vmatpush3.bf16.msra.mxu1 %v6427_v7  ;;  %5929 = vmatpush3.bf16.msra.mxu0 %v6428_v8 }
0x17d7   :  { %5908 = vmatprep.subr.bf16.mxu1 %v6429_v44  ;;  %5930 = vmatprep.subr.bf16.mxu0 %v6430_v56 }
0x17da   :  { %5909 = vmatpush3.bf16.msra.mxu1 %v6431_v11  ;;  %5931 = vmatpush3.bf16.msra.mxu0 %v6432_v12 }
0x17db   :  { %5910 = vmatprep.subr.bf16.mxu1 %v6433_v60  ;;  %5932 = vmatprep.subr.bf16.mxu0 %v6434_v13 }
0x17de   :  { %5911 = vmatpush3.bf16.msra.mxu1 %v6435_v14  ;;  %5933 = vmatpush3.bf16.msra.mxu0 %v6436_v15 }
0x17df   :  { %5912 = vmatprep.subr.bf16.mxu1 %v6437_v16  ;;  %5934 = vmatprep.subr.bf16.mxu0 %v6438_v59 }
0x17e2   :  { %v3799_v32 = vpop.f32.mrb[92].mxu1  ;;  %v3842_v48 = vpop.f32.mrb[80].mxu0  ;;  %5913 = vmatpush3.bf16.msra.mxu1 %v6439_v28  ;;  %5935 = vmatpush3.bf16.msra.mxu0 %v6440_v62 }
0x17e3   :  { %v3800_v9 = vadd.f32 %v3799_v32, %v7776_v61  ;;  %v3843_v20 = vadd.f32 %v3842_v48, %v7783_v63  ;;  %v3801_v29 = vpop.f32.mrb[93].mxu1  ;;  %v3844_v31 = vpop.f32.mrb[81].mxu0  ;;  %5914 = vmatprep.subr.bf16.mxu1 %v6441_v0  ;;  %5936 = vmatprep.subr.bf16.mxu0 %v6442_v17 }
0x17e4   :  { %v3802_v24 = vadd.f32 %v3801_v29, %v7788_v39  ;;  %v3845_v25 = vadd.f32 %v3844_v31, %v7793_v54  ;;  %v3803_v26 = vpop.f32.mrb[94].mxu1  ;;  %v3846_v27 = vpop.f32.mrb[82].mxu0 }
0x17e5   :  { %v3804_v30 = vadd.f32 %v3803_v26, %v7776_v61  ;;  %v3847_v2 = vadd.f32 %v3846_v27, %v7783_v63  ;;  %v3805_v34 = vpop.f32.mrb[95].mxu1  ;;  %v3848_v35 = vpop.f32.mrb[83].mxu0  ;;  %v3863_v43 = vmax.f32 %v3800_v9, 0.0  ;;  %v3865_v61 = vmax.f32 %v3843_v20, 0.0 }
0x17e6   :  { %v3806_v45 = vadd.f32 %v3805_v34, %v7788_v39  ;;  %v3849_v46 = vadd.f32 %v3848_v35, %v7793_v54  ;;  %5915 = vmatpush3.bf16.msra.mxu1 %v6443_v18  ;;  %5937 = vmatpush3.bf16.msra.mxu0 %v6444_v19  ;;  %v3864_v42 = vmax.f32 %v3802_v24, 0.0  ;;  %v3866_v39 = vmax.f32 %v3845_v25, 0.0 }
0x17e7   :  { %v3879_v1 = vmax.f32 %v3804_v30, 0.0  ;;  %v3881_v63 = vmax.f32 %v3847_v2, 0.0  ;;  %5916 = vmatprep.subr.bf16.mxu1 %v6445_v21  ;;  %5938 = vmatprep.subr.bf16.mxu0 %v6446_v23 }
0x17e8   :  { %v3880_v55 = vmax.f32 %v3806_v45, 0.0  ;;  %v3882_v54 = vmax.f32 %v3849_v46, 0.0 }
0x17e9   :  { %v3895_v47 = vpack.c.bf16 %v3879_v1, %v3863_v43  ;;  %v3897_v57 = vpack.c.bf16 %v3881_v63, %v3865_v61 }
0x17ea   :  { %v3896_v58 = vpack.c.bf16 %v3880_v55, %v3864_v42  ;;  %v3898_v33 = vpack.c.bf16 %v3882_v54, %v3866_v39  ;;  %5917 = vmatpush3.bf16.msra.mxu1 %v6447_v49  ;;  %5939 = vmatpush3.bf16.msra.mxu0 %v6448_v53 }
0x17ec   :  { %5208 = vmatprep.mubr.bf16.mxu1 %v3896_v58  ;;  %5249 = vmatprep.mubr.bf16.mxu0 %v3898_v33 }
0x17ed   :  { %5209 = vmatmul.mubr.bf16.vlgmr.msra.gmra.mrb[108].mxu1 %v3895_v47  ;;  %5250 = vmatmul.mubr.bf16.vlgmr.msra.gmra.mrb[96].mxu0 %v3897_v57 }
0x1860   :  { %v5786_v38 = vpop.f32.mrb[96].mxu1  ;;  %v5808_v40 = vpop.f32.mrb[84].mxu0 }
0x1861   :  { %v5787_v52 = vpop.f32.mrb[97].mxu1  ;;  %v5809_v37 = vpop.f32.mrb[85].mxu0 }
0x1862   :  { %v5788_v50 = vadd.f32 %v5787_v52, %v5786_v38  ;;  %v5810_v51 = vadd.f32 %v5809_v37, %v5808_v40  ;;  %v5789_v5 = vpop.f32.mrb[98].mxu1  ;;  %v5811_v10 = vpop.f32.mrb[86].mxu0 }
0x1863   :  { %v5790_v3 = vpop.f32.mrb[99].mxu1  ;;  %v5812_v4 = vpop.f32.mrb[87].mxu0 }
0x1864   :  { %v4965_v6 = vadd.f32 %v5788_v50, %v5530_v41  ;;  %v5791_v7 = vadd.f32 %v5790_v3, %v5789_v5  ;;  %v5813_v8 = vadd.f32 %v5812_v4, %v5811_v10 }
0x1866   :  { %v5006_v44 = vadd.f32 %v5810_v51, %v4965_v6  ;;  %v4968_v56 = vadd.f32 %v5791_v7, %v5530_v41 }
0x1868   :  { %v5009_v11 = vadd.f32 %v5813_v8, %v4968_v56 }
0x1880   :  { %v5830_v12 = vpop.f32.mrb[100].mxu1  ;;  %v5852_v60 = vpop.f32.mrb[88].mxu0 }
0x1881   :  { %v5831_v13 = vpop.f32.mrb[101].mxu1  ;;  %v5853_v14 = vpop.f32.mrb[89].mxu0 }
0x1882   :  { %v5832_v15 = vadd.f32 %v5831_v13, %v5830_v12  ;;  %v5854_v16 = vadd.f32 %v5853_v14, %v5852_v60  ;;  %v5833_v59 = vpop.f32.mrb[102].mxu1  ;;  %v5855_v28 = vpop.f32.mrb[90].mxu0  ;;  %v5659_v60 = vld [vmem:[%s8151_s20] ss:$0 sm:$0xff] }
0x1883   :  { %v5834_v62 = vpop.f32.mrb[103].mxu1  ;;  %v5856_v0 = vpop.f32.mrb[91].mxu0 }
0x1884   :  { %v5047_v17 = vadd.f32 %v5832_v15, %v5006_v44  ;;  %v5835_v32 = vadd.f32 %v5834_v62, %v5833_v59  ;;  %v5857_v48 = vadd.f32 %v5856_v0, %v5855_v28  ;;  %v5660_v59 = vld [vmem:[%s8152_s21] ss:$0 sm:$0xff] }
0x1886   :  { %v5088_v18 = vadd.f32 %v5854_v16, %v5047_v17  ;;  %v5050_v19 = vadd.f32 %v5835_v32, %v5009_v11 }
0x1888   :  { %v5091_v9 = vadd.f32 %v5857_v48, %v5050_v19 }
0x18a0   :  { %v5874_v20 = vpop.f32.mrb[104].mxu1  ;;  %v5896_v29 = vpop.f32.mrb[92].mxu0 }
0x18a1   :  { %v5875_v31 = vpop.f32.mrb[105].mxu1  ;;  %v5897_v21 = vpop.f32.mrb[93].mxu0 }
0x18a2   :  { %v5876_v23 = vadd.f32 %v5875_v31, %v5874_v20  ;;  %v5898_v24 = vadd.f32 %v5897_v21, %v5896_v29  ;;  %v5877_v25 = vpop.f32.mrb[106].mxu1  ;;  %v5899_v26 = vpop.f32.mrb[94].mxu0 }
0x18a3   :  { %v5878_v27 = vpop.f32.mrb[107].mxu1  ;;  %v5900_v30 = vpop.f32.mrb[95].mxu0 }
0x18a4   :  { %v5129_v2 = vadd.f32 %v5876_v23, %v5088_v18  ;;  %v5879_v34 = vadd.f32 %v5878_v27, %v5877_v25  ;;  %v5901_v35 = vadd.f32 %v5900_v30, %v5899_v26 }
0x18a6   :  { %v5170_v45 = vadd.f32 %v5898_v24, %v5129_v2  ;;  %v5132_v46 = vadd.f32 %v5879_v34, %v5091_v9 }
0x18a8   :  { %v5173_v49 = vadd.f32 %v5901_v35, %v5132_v46 }
0x18c0   :  { %v5918_v53 = vpop.f32.mrb[108].mxu1  ;;  %v5940_v43 = vpop.f32.mrb[96].mxu0 }
0x18c1   :  { %v5919_v61 = vpop.f32.mrb[109].mxu1  ;;  %v5941_v1 = vpop.f32.mrb[97].mxu0 }
0x18c2   :  { %v5920_v63 = vadd.f32 %v5919_v61, %v5918_v53  ;;  %v5942_v42 = vadd.f32 %v5941_v1, %v5940_v43  ;;  %v5921_v39 = vpop.f32.mrb[110].mxu1  ;;  %v5943_v55 = vpop.f32.mrb[98].mxu0 }
0x18c3   :  { %v5922_v54 = vpop.f32.mrb[111].mxu1  ;;  %v5944_v47 = vpop.f32.mrb[99].mxu0 }
0x18c4   :  { %v5211_v57 = vadd.f32 %v5920_v63, %v5170_v45  ;;  %v5923_v58 = vadd.f32 %v5922_v54, %v5921_v39  ;;  %v5945_v33 = vadd.f32 %v5944_v47, %v5943_v55 }
0x18c6   :  { %v5252_v38 = vadd.f32 %v5942_v42, %v5211_v57  ;;  %v5214_v40 = vadd.f32 %v5923_v58, %v5173_v49 }
0x18c8   :  { %v5255_v41 = vadd.f32 %v5945_v33, %v5214_v40  ;;  %v5258_v52 = vadd.f32 %v5252_v38, %v7374_v36 }
0x18ca   :  { %5262 = vadd.xlane.f32.xlu1 %v5258_v52  ;;  %v5259_v37 = vadd.f32 %v5255_v41, %v7376_v22 }
0x18cc   :  { %5264 = vadd.xlane.f32.xlu0 %v5259_v37 }
0x1957   :  { %v5263_v50 = vpop.xlane.xlu1 %5262 }
0x1958   :  { %v5266_v51 = vmul.f32 0.0078125, %v5263_v50 }
0x1959   :  { %v5265_v5 = vpop.xlane.xlu0 %5264 }
0x195a   :  { %v5268_v10 = vsub.f32 %v5258_v52, %v5266_v51  ;;  %v5267_v3 = vmul.f32 0.0078125, %v5265_v5 }
0x195c   :  { %v5269_v4 = vsub.f32 %v5259_v37, %v5267_v3  ;;  %v5270_v6 = vmul.f32 %v5268_v10, %v5268_v10 }
0x195e   :  { %5272 = vadd.xlane.f32.xlu1 %v5270_v6  ;;  %v5271_v7 = vmul.f32 %v5269_v4, %v5269_v4 }
0x1960   :  { %5274 = vadd.xlane.f32.xlu0 %v5271_v7 }
0x19eb   :  { %v5273_v8 = vpop.xlane.xlu1 %5272 }
0x19ec   :  { %v5276_v44 = vmul.f32 0.0078125, %v5273_v8 }
0x19ed   :  { %v5275_v56 = vpop.xlane.xlu0 %5274 }
0x19ee   :  { %v5278_v11 = vadd.f32 1e-05, %v5276_v44  ;;  %v5277_v12 = vmul.f32 0.0078125, %v5275_v56 }
0x19f0   :  { %6522 = vrsqrt.f32 %v5278_v11  ;;  %v5279_v36 = vadd.f32 1e-05, %v5277_v12 }
0x19f2   :  { %6524 = vrsqrt.f32 %v5279_v36 }
0x19fa   :  { %v6523_v22 = vpop.eup %6522 }
0x19fb   :  { %v5282_v13 = vmul.f32 %v6523_v22, %v5268_v10 }
0x19fc   :  { %v6525_v14 = vpop.eup %6524 }
0x19fd   :  { %v5290_v15 = vmul.f32 %v5659_v60, %v5282_v13  ;;  %v5283_v16 = vmul.f32 %v6525_v14, %v5269_v4 }
0x19ff   :  { %v5291_v28 = vmul.f32 %v5659_v60, %v5283_v16  ;;  %v5298_v62 = vadd.f32 %v5660_v59, %v5290_v15 }
0x1a01   :  { %v5299_v0 = vadd.f32 %v5660_v59, %v5291_v28 }
0x1a03   :  { %v5668_v17 = vpack.c.bf16 %v5299_v0, %v5298_v62 }
0x1a05   :  { %5669 = vst [vmem:[%s8153_s22] sm:$0xff] %v5668_v17  }

// kernel: decoder_forward.5
= control target key start
LH: loop header
LB: loop body
LE: loop exit
PB: predicated region body
PF: predicated region fallthrough
CT: control target
= control target key end

     0   :  { %s7523_s0 = inlined_call_operand.vmem [shape: f32[16,128], index: 0, kind: input, shape index: {}]   ;;  %s7524_s1 = inlined_call_operand.vmem [shape: f32[2,128], index: 1, kind: input, shape index: {}]   ;;  %s7525_s2 = inlined_call_operand.vmem [shape: f32[1,128], index: 2, kind: input, shape index: {}]   ;;  %s7526_s3 = inlined_call_operand.vmem [shape: f32[1,128], index: 3, kind: input, shape index: {}]   ;;  %s7527_s4 = inlined_call_operand.vmem [shape: bf16[128,384], index: 4, kind: input, shape index: {}]   ;;  %s7528_s5 = inlined_call_operand.vmem [shape: f32[1,384], index: 5, kind: input, shape index: {}]   ;;  %s7529_s6 = inlined_call_operand.vmem [shape: bf16[128,128], index: 6, kind: input, shape index: {}]   ;;  %s7530_s7 = inlined_call_operand.vmem [shape: f32[1,128], index: 7, kind: input, shape index: {}]   ;;  %s7531_s8 = inlined_call_operand.vmem [shape: f32[1,128], index: 8, kind: input, shape index: {}]   ;;  %s7532_s9 = inlined_call_operand.vmem [shape: f32[1,128], index: 9, kind: input, shape index: {}]   ;;  %s7533_s10 = inlined_call_operand.vmem [shape: bf16[128,128], index: 10, kind: input, shape index: {}]   ;;  %s7534_s11 = inlined_call_operand.vmem [shape: f32[1,128], index: 11, kind: input, shape index: {}]   ;;  %s7535_s12 = inlined_call_operand.vmem [shape: bf16[128,128], index: 12, kind: input, shape index: {}]   ;;  %s7536_s13 = inlined_call_operand.vmem [shape: f32[1,128], index: 13, kind: input, shape index: {}]   ;;  %s7537_s14 = inlined_call_operand.vmem [shape: f32[1,128], index: 14, kind: input, shape index: {}]   ;;  %s7538_s15 = inlined_call_operand.vmem [shape: f32[1,128], index: 15, kind: input, shape index: {}]   ;;  %s7539_s16 = inlined_call_operand.hbm [shape: bf16[128,2048], index: 16, kind: input, shape index: {}]   ;;  %s7540_s17 = inlined_call_operand.vmem [shape: f32[1,2048], index: 17, kind: input, shape index: {}]   ;;  %s7541_s18 = inlined_call_operand.hbm [shape: bf16[2048,128], index: 18, kind: input, shape index: {}]   ;;  %s7542_s19 = inlined_call_operand.vmem [shape: f32[1,128], index: 19, kind: input, shape index: {}]   ;;  %s7543_s20 = inlined_call_operand.vmem [shape: f32[1,128], index: 20, kind: input, shape index: {}]   ;;  %s7544_s21 = inlined_call_operand.vmem [shape: f32[1,128], index: 21, kind: input, shape index: {}]   ;;  %s7545_s22 = inlined_call_operand.vmem [shape: bf16[16,128], index: 22, kind: output, shape index: {}]  }
   0x1   :  { %7549 = sst [smem:[#allocation8_spill]] %s7523_s0 }
   0x2   :  { %7550 = sst [smem:[#allocation9_spill]] %s7524_s1 }
   0x3   :  { %7551 = sst [smem:[#allocation10_spill]] %s7525_s2 }
   0x4   :  { %7552 = sst [smem:[#allocation11_spill]] %s7526_s3 }
   0x5   :  { %7553 = sst [smem:[#allocation12_spill]] %s7527_s4 }
   0x6   :  { %7554 = sst [smem:[#allocation13_spill]] %s7528_s5 }
   0x7   :  { %7555 = sst [smem:[#allocation14_spill]] %s7529_s6 }
   0x8   :  { %27 = vsyncpa [#allocation3], 0 }
   0x9   :  { %28 = vsyncpa [#allocation5], 0  ;;  %s6644_s3 = smov [#allocation2]   ;;  %s6596_s4 = scalar_lea.hbm %s7539_s16, 16384 }
   0xa   :  { %s66_s28 = sshll.u32 %s6644_s3, 4  ;;  %p6597_p0 = scmp.ne.s32.totalorder %s7539_s16, %s6596_s4  ;;  %s67_s28 = int_to_ptr.vmem [resolvable:$true] %s66_s28 }
   0xb   :  { %p6600_p1 = scmp.lt.u32.totalorder %s6596_s4, %s7539_s16 }
   0xd   :  { %p6602_p2 = pnand %p6600_p1, %p6597_p0 }
   0xf   :  { %6605 = shalt.err (!%p6602_p2)
}
  0x10   :  { %s6606_s24 = scalar_lea.vmem %s67_s28, 16384  ;;  %p6611_p4 = scmp.lt.s32.totalorder %s67_s28, %s67_s28 }
  0x11   :  { %p6607_p3 = scmp.ne.s32.totalorder %s67_s28, %s6606_s24  ;;  %p6612_p5 = scmp.lt.s32.totalorder %s6606_s24, %s6606_s24 }
  0x13   :  { %p6613_p6 = por %p6612_p5, %p6611_p4 }
  0x15   :  { %p6614_p7 = pnand %p6613_p6, %p6607_p3 }
  0x17   :  { %6617 = shalt.err (!%p6614_p7)
}
  0x18   :  { %s6645_s6 = smov 1024   ;;  %s6646_s25 = smov 64  }
  0x19   :  { %72 = dma.hbm_to_vmem [thread:$0]  %s7539_s16, 16384, %s67_s28, [#allocation3], %s6645_s6, %s6645_s6, %s6646_s25  }
  0x1a   :  { %s6647_s27 = smov [#allocation4]   ;;  %s6618_s4 = scalar_lea.hbm %s7541_s18, 16384 }
  0x1b   :  { %s80_s3 = sshll.u32 %s6647_s27, 4  ;;  %p6619_p8 = scmp.ne.s32.totalorder %s7541_s18, %s6618_s4  ;;  %s81_s3 = int_to_ptr.vmem [resolvable:$true] %s80_s3 }
  0x1c   :  { %p6622_p9 = scmp.lt.u32.totalorder %s6618_s4, %s7541_s18 }
  0x1e   :  { %p6624_p10 = pnand %p6622_p9, %p6619_p8 }
  0x20   :  { %6627 = shalt.err (!%p6624_p10)
}
  0x21   :  { %s6628_s24 = scalar_lea.vmem %s81_s3, 16384  ;;  %p6633_p12 = scmp.lt.s32.totalorder %s81_s3, %s81_s3 }
  0x22   :  { %p6629_p11 = scmp.ne.s32.totalorder %s81_s3, %s6628_s24  ;;  %p6634_p13 = scmp.lt.s32.totalorder %s6628_s24, %s6628_s24 }
  0x24   :  { %p6635_p0 = por %p6634_p13, %p6633_p12 }
  0x26   :  { %p6636_p1 = pnand %p6635_p0, %p6629_p11 }
  0x28   :  { %6639 = shalt.err (!%p6636_p1)
}
  0x29   :  { %s6648_s16 = smov 4  }
  0x2a   :  { %86 = dma.hbm_to_vmem [thread:$0]  %s7541_s18, 16384, %s81_s3, [#allocation5], %s6646_s25, %s6646_s25, %s6648_s16  }
  0x2b   :  { %6640 = dma.done.wait [#allocation3], 16384  }
  0x2c   :  { %6641 = vsyncadd [#allocation3], 4294950912 }
  0x2d   :  { %6642 = dma.done.wait [#allocation5], 16384  }
  0x2e   :  { %6643 = vsyncadd [#allocation5], 4294950912  ;;  %s7556_s27 = sld [smem:[#allocation8_spill]]  ;;  %s7557_s23 = sld [smem:[#allocation12_spill]]  ;;  %v6649_v4 = vmov 0.0   ;;  %v6650_v30 = vmov 0   ;;  %v178_v53 = vlaneseq }
  0x2f   :  { %6010 = vmatprep.subr.bf16.mxu1 %v6649_v4  ;;  %353 = vmatprep.mubr.bf16.mxu0 %v6650_v30  ;;  %vm6651_vm0 = vmmov 0   ;;  %s7558_s3 = sld [smem:[#allocation10_spill]]  ;;  %s7559_s16 = sld [smem:[#allocation11_spill]]  ;;  %vm411_vm1 = vcmask 130048   ;;  %vm534_vm2 = vcmask 1043456   ;;  %vm506_vm3 = vcmask 64512  }
  0x30   :  { %6026 = vmatprep.mubr.msk.bf16.mxu1 %vm6651_vm0, %v6649_v4  ;;  %v6918_v54 = vshrl.u32 %v178_v53, 7  ;;  %s7560_s26 = sld [smem:[#allocation13_spill]]  ;;  %s6652_s2 = smov 112   ;;  %vm2242_vm4 = vcmask 261120   ;;  %vm2245_vm5 = vcmask 392192   ;;  %vm2248_vm6 = vcmask 523264  }
  0x31   :  { %s6654_s29 = smov 80   ;;  %s6655_s30 = smov 48   ;;  %vm2251_vm7 = vcmask 654336   ;;  %vm2254_vm8 = vcmask 785408   ;;  %vm2257_vm9 = vcmask 916480  }
  0x32   :  { %v6921_v55 = vsub.s32 1, %v6918_v54  ;;  %v6927_v57 = vsub.s32 2, %v6918_v54  ;;  %v6931_v59 = vsub.s32 0, %v6918_v54  ;;  %s6656_s4 = smov 32   ;;  %s6657_s0 = smov 16  }
  0x33   :  { %s7562_s18 = sld [smem:[#allocation9_spill]] }
  0x34   :  { %v100_v0 = vld [vmem:[%s7556_s27] sm:$0xff]  ;;  %v101_v1 = vld [vmem:[%s7556_s27 + $0x8] sm:$0xff]  ;;  %v6342_v18 = vld [vmem:[%s7557_s23 + $0x30] ss:$12 sps:$4 sm:$0xff]   ;;  %s6653_s27 = smov 96  }
  0x35   :  { %104 = vadd.xlane.f32.xlu0 %v100_v0  ;;  %v6332_v2 = vld [vmem:[%s7557_s23 + $0x4] ss:$12 sps:$4 sm:$0xff]   ;;  %v6334_v3 = vld [vmem:[%s7557_s23] ss:$12 sps:$4 sm:$0xff]   ;;  %v6335_v5 = vld [vmem:[%s7557_s23 + $0x8] ss:$12 sps:$4 sm:$0xff]  }
  0x36   :  { %v6336_v6 = vld [vmem:[%s7557_s23 + $0x1c] ss:$12 sps:$4 sm:$0xff]   ;;  %321 = vmatprep.subr.bf16.mxu0 %v6332_v2  ;;  %6011 = vmatpush3.bf16.msra.mxu1 %v6335_v5  ;;  %v6338_v15 = vld [vmem:[%s7557_s23 + $0x18] ss:$12 sps:$4 sm:$0xff]   ;;  %v6339_v16 = vld [vmem:[%s7557_s23 + $0x20] ss:$12 sps:$4 sm:$0xff]  }
  0x37   :  { %322 = vmatpush1.bf16.msra.mxu0 %v6334_v3  ;;  %6012 = vmatprep.subr.bf16.mxu1 %v6649_v4  ;;  %v6340_v17 = vld [vmem:[%s7557_s23 + $0x34] ss:$12 sps:$4 sm:$0xff]   ;;  %v6343_v19 = vld [vmem:[%s7557_s23 + $0x38] ss:$12 sps:$4 sm:$0xff]   ;;  %v6347_v22 = vld [vmem:[%s7557_s23 + $0x50] ss:$12 sps:$4 sm:$0xff]  }
  0x38   :  { %323 = vmatprep.subr.bf16.mxu0 %v6336_v6  ;;  %v6344_v20 = vld [vmem:[%s7557_s23 + $0x4c] ss:$12 sps:$4 sm:$0xff]   ;;  %v6346_v21 = vld [vmem:[%s7557_s23 + $0x48] ss:$12 sps:$4 sm:$0xff]   ;;  %v6348_v23 = vld [vmem:[%s7557_s23 + $0x64] ss:$12 sps:$4 sm:$0xff]  }
  0x39   :  { %106 = vadd.xlane.f32.xlu0 %v101_v1  ;;  %v6350_v24 = vld [vmem:[%s7557_s23 + $0x60] ss:$12 sps:$4 sm:$0xff]   ;;  %v6351_v25 = vld [vmem:[%s7557_s23 + $0x68] ss:$12 sps:$4 sm:$0xff]   ;;  %v6354_v27 = vld [vmem:[%s7557_s23 + $0x78] ss:$12 sps:$4 sm:$0xff]  }
  0x3a   :  { %6013 = vmatpush3.bf16.msra.mxu1 %v6339_v16  ;;  %v6352_v26 = vld [vmem:[%s7557_s23 + $0x7c] ss:$12 sps:$4 sm:$0xff]   ;;  %v6355_v28 = vld [vmem:[%s7557_s23 + $0x80] ss:$12 sps:$4 sm:$0xff]   ;;  %v6359_v32 = vld [vmem:[%s7557_s23 + $0x98] ss:$12 sps:$4 sm:$0xff]  }
  0x3b   :  { %324 = vmatpush1.bf16.msra.mxu0 %v6338_v15  ;;  %6014 = vmatprep.subr.bf16.mxu1 %v6649_v4  ;;  %v6356_v29 = vld [vmem:[%s7557_s23 + $0x94] ss:$12 sps:$4 sm:$0xff]   ;;  %v6358_v31 = vld [vmem:[%s7557_s23 + $0x90] ss:$12 sps:$4 sm:$0xff]   ;;  %v6360_v33 = vld [vmem:[%s7557_s23 + $0xac] ss:$12 sps:$4 sm:$0xff]  }
  0x3c   :  { %325 = vmatprep.subr.bf16.mxu0 %v6340_v17  ;;  %v6362_v34 = vld [vmem:[%s7557_s23 + $0xa8] ss:$12 sps:$4 sm:$0xff]   ;;  %v6363_v35 = vld [vmem:[%s7557_s23 + $0xb0] ss:$12 sps:$4 sm:$0xff]   ;;  %v5377_v44 = vld [vmem:[%s7558_s3] ss:$0 sm:$0xff] }
  0x3d   :  { %v5378_v48 = vld [vmem:[%s7559_s16] ss:$0 sm:$0xff]  ;;  %s7561_s23 = sld [smem:[#allocation14_spill]] }
  0x3e   :  { %6015 = vmatpush3.bf16.msra.mxu1 %v6343_v19  ;;  %v176_v56 = vld [vmem:[%s7560_s26] sm:$0x7] }
  0x3f   :  { %326 = vmatpush1.bf16.msra.mxu0 %v6342_v18  ;;  %6016 = vmatprep.subr.bf16.mxu1 %v6649_v4  ;;  %v185_v58 = vrot.slane %v176_v56, %v6921_v55  ;;  %v189_v62 = vrot.slane %v176_v56, %v6927_v57 }
  0x40   :  { %327 = vmatprep.subr.bf16.mxu0 %v6344_v20 }
  0x42   :  { %6017 = vmatpush3.bf16.msra.mxu1 %v6347_v22 }
  0x43   :  { %328 = vmatpush1.bf16.msra.mxu0 %v6346_v21  ;;  %6018 = vmatprep.subr.bf16.mxu1 %v6649_v4 }
  0x44   :  { %329 = vmatprep.subr.bf16.mxu0 %v6348_v23 }
  0x46   :  { %6019 = vmatpush3.bf16.msra.mxu1 %v6351_v25 }
  0x47   :  { %330 = vmatpush1.bf16.msra.mxu0 %v6350_v24  ;;  %6020 = vmatprep.subr.bf16.mxu1 %v6649_v4 }
  0x48   :  { %331 = vmatprep.subr.bf16.mxu0 %v6352_v26 }
  0x4a   :  { %6021 = vmatpush3.bf16.msra.mxu1 %v6355_v28 }
  0x4b   :  { %332 = vmatpush1.bf16.msra.mxu0 %v6354_v27  ;;  %6022 = vmatprep.subr.bf16.mxu1 %v6649_v4 }
  0x4c   :  { %333 = vmatprep.subr.bf16.mxu0 %v6356_v29 }
  0x4e   :  { %6023 = vmatpush3.bf16.msra.mxu1 %v6359_v32 }
  0x4f   :  { %334 = vmatpush1.bf16.msra.mxu0 %v6358_v31  ;;  %6024 = vmatprep.subr.bf16.mxu1 %v6649_v4 }
  0x50   :  { %335 = vmatprep.subr.bf16.mxu0 %v6360_v33 }
  0x52   :  { %6025 = vmatpush3.bf16.msra.mxu1 %v6363_v35 }
  0x53   :  { %336 = vmatpush1.bf16.msra.mxu0 %v6362_v34  ;;  %6030 = vmatprep.subr.bf16.mxu1 %v6649_v4 }
  0x54   :  { %6054 = vmatprep.subr.bf16.mxu0 %v6649_v4 }
  0xc2   :  { %v105_v7 = vpop.xlane.xlu0 %104 }
  0xc3   :  { %v109_v8 = vmul.f32 0.0078125, %v105_v7 }
  0xc5   :  { %v6821_v9 = vsub.f32 %v100_v0, %v109_v8  ;;  %v181_v8 = vrot.slane %v176_v56, %v6931_v59 }
  0xc6   :  { %v107_v10 = vpop.xlane.xlu0 %106 }
  0xc7   :  { %v110_v11 = vmul.f32 0.0078125, %v107_v10  ;;  %v113_v12 = vmul.f32 %v6821_v9, %v6821_v9 }
  0xc9   :  { %v6825_v13 = vsub.f32 %v101_v1, %v110_v11  ;;  %115 = vadd.xlane.f32.xlu1 %v113_v12 }
  0xcb   :  { %v114_v14 = vmul.f32 %v6825_v13, %v6825_v13 }
  0xcd   :  { %117 = vadd.xlane.f32.xlu1 %v114_v14 }
 0x156   :  { %v116_v36 = vpop.xlane.xlu1 %115 }
 0x157   :  { %v119_v37 = vmul.f32 0.0078125, %v116_v36 }
 0x159   :  { %v121_v38 = vadd.f32 1e-05, %v119_v37 }
 0x15a   :  { %v118_v39 = vpop.xlane.xlu1 %117 }
 0x15b   :  { %6516 = vrsqrt.f32 %v121_v38  ;;  %v120_v40 = vmul.f32 0.0078125, %v118_v39 }
 0x15d   :  { %v122_v41 = vadd.f32 1e-05, %v120_v40 }
 0x15f   :  { %6518 = vrsqrt.f32 %v122_v41 }
 0x165   :  { %v6517_v42 = vpop.eup %6516 }
 0x166   :  { %v125_v43 = vmul.f32 %v6517_v42, %v6821_v9 }
 0x168   :  { %v133_v47 = vmul.f32 %v5377_v44, %v125_v43 }
 0x169   :  { %v6519_v45 = vpop.eup %6518 }
 0x16a   :  { %v126_v46 = vmul.f32 %v6519_v45, %v6825_v13  ;;  %v6908_v50 = vadd.f32 %v5378_v48, %v133_v47 }
 0x16c   :  { %v134_v49 = vmul.f32 %v5377_v44, %v126_v46 }
 0x16e   :  { %v6910_v51 = vadd.f32 %v5378_v48, %v134_v49 }
 0x170   :  { %v143_v52 = vpack.c.bf16 %v6910_v51, %v6908_v50 }
 0x172   :  { %354 = vmatmul.mubr.bf16.vlgmr.msra.gmra.mrb[0].mxu0 %v143_v52  ;;  %6027 = vmatmul.mubr.bf16.vlgmr.msra.gmra.mrb[0].mxu1 %v143_v52 }
 0x173   :  { %6032 = vmatprep.mubr.msk.bf16.mxu1 %vm6651_vm0, %v6649_v4  ;;  %6056 = vmatprep.mubr.msk.bf16.mxu0 %vm6651_vm0, %v6649_v4 }
 0x245   :  { %v355_v60 = vpop.f32.mrb[0].mxu0  ;;  %v398_v61 = vpop.f32.mrb[0].mxu1 }
 0x246   :  { %v357_v63 = vpop.f32.mrb[1].mxu0  ;;  %v6028_v0 = vpop.f32.mrb[1].mxu1  ;;  %v356_v12 = vadd.f32 %v355_v60, %v181_v8  ;;  %v399_v15 = vadd.f32 %v398_v61, %v189_v62 }
 0x247   :  { %v358_v1 = vadd.f32 %v357_v63, %v185_v58  ;;  %v359_v2 = vpop.f32.mrb[2].mxu0  ;;  %v401_v3 = vpop.f32.mrb[2].mxu1 }
 0x248   :  { %v6934_v5 = vadd.f32 %v401_v3, %v189_v62  ;;  %v361_v6 = vpop.f32.mrb[3].mxu0  ;;  %v6029_v7 = vpop.f32.mrb[3].mxu1  ;;  %v6944_v14 = vpack.c.bf16 %v356_v12, %v356_v12  ;;  %v360_v17 = vadd.f32 %v359_v2, %v181_v8  ;;  %v6953_v18 = vpack.c.bf16 %v399_v15, %v399_v15 }
 0x249   :  { %v6937_v9 = vpack.c.bf16 %v358_v1, %v358_v1  ;;  %v362_v10 = vadd.f32 %v361_v6, %v185_v58 }
 0x24a   :  { %v6955_v19 = vpack.c.bf16 %v360_v17, %v360_v17  ;;  %v536_v20 = vsel %vm534_vm2, %v6953_v18, 0  ;;  %v6980_v52 = vpack.c.bf16 %v6934_v5, %v6934_v5 }
 0x24b   :  { %v416_v11 = vsel %vm411_vm1, %v6937_v9, 0  ;;  %v6942_v13 = vpack.c.bf16 %v362_v10, %v362_v10 }
 0x24c   :  { %6031 = vmatpush3.bf16.xpose.msra.mxu1 %v416_v11  ;;  %v582_v60 = vsel %vm534_vm2, %v6980_v52, 0 }
 0x24d   :  { %6036 = vmatprep.subr.bf16.mxu1 %v6649_v4  ;;  %v462_v16 = vsel %vm411_vm1, %v6942_v13, 0 }
 0x253   :  { %6033 = vmatmul.mubr.msk.bf16.vlgmr.msra.gmra.mrb[4].mxu1 %vm411_vm1, %v6944_v14 }
 0x254   :  { %6037 = vmatpush3.bf16.xpose.msra.mxu1 %v462_v16  ;;  %6038 = vmatprep.mubr.msk.bf16.mxu1 %vm6651_vm0, %v6649_v4 }
 0x255   :  { %6042 = vmatprep.subr.bf16.mxu1 %v6649_v4 }
 0x25b   :  { %6039 = vmatmul.mubr.msk.bf16.vlgmr.msra.gmra.mrb[8].mxu1 %vm411_vm1, %v6955_v19 }
 0x25c   :  { %6043 = vmatpush3.bf16.msra.mxu1 %v536_v20  ;;  %6044 = vmatprep.mubr.msk.bf16.mxu1 %vm6651_vm0, %v6649_v4 }
 0x25d   :  { %6048 = vmatprep.subr.bf16.mxu1 %v6649_v4 }
 0x326   :  { %v452_v21 = vpop.f32.mrb[4].mxu1 }
 0x327   :  { %v504_v22 = vmul.f32 0.25, %v452_v21  ;;  %v6034_v23 = vpop.f32.mrb[5].mxu1 }
 0x328   :  { %v455_v24 = vpop.f32.mrb[6].mxu1 }
 0x329   :  { %v6035_v25 = vpop.f32.mrb[7].mxu1  ;;  %v507_v26 = vsel %vm506_vm3, %v504_v22, -inf }
 0x32a   :  { %508 = vmax.xlane.f32.xlu0 %v507_v26 }
 0x32e   :  { %v498_v27 = vpop.f32.mrb[8].mxu1 }
 0x32f   :  { %v505_v28 = vmul.f32 0.25, %v498_v27  ;;  %v6040_v29 = vpop.f32.mrb[9].mxu1 }
 0x330   :  { %v501_v31 = vpop.f32.mrb[10].mxu1 }
 0x331   :  { %v6041_v32 = vpop.f32.mrb[11].mxu1  ;;  %v510_v33 = vsel %vm506_vm3, %v505_v28, -inf }
 0x332   :  { %511 = vmax.xlane.f32.xlu1 %v510_v33 }
 0x343   :  { %680 = vrot.lane.b32.xlu1 %v6942_v13, %s6652_s2 }
 0x3b7   :  { %v509_v34 = vpop.xlane.xlu0 %508 }
 0x3b8   :  { %v513_v35 = vsub.f32 %v504_v22, %v509_v34 }
 0x3ba   :  { %v515_v36 = vmul.f32 1.442695, %v513_v35 }
 0x3bc   :  { %6520 = vpow2.f32 %v515_v36 }
 0x3bf   :  { %v512_v37 = vpop.xlane.xlu1 %511 }
 0x3c0   :  { %v514_v38 = vsub.f32 %v505_v28, %v512_v37 }
 0x3c2   :  { %v517_v39 = vmul.f32 1.442695, %v514_v38 }
 0x3c3   :  { %v681_v45 = vpop.permute.xlu1 %680 }
 0x3c4   :  { %6522 = vpow2.f32 %v517_v39  ;;  %v686_v0 = vsel %vm411_vm1, %v681_v45, 0 }
 0x3c6   :  { %v6521_v40 = vpop.eup %6520 }
 0x3c7   :  { %v519_v41 = vsel %vm506_vm3, %v6521_v40, 0.0 }
 0x3c8   :  { %520 = vadd.xlane.f32.xlu0 %v519_v41 }
 0x3ce   :  { %v6523_v42 = vpop.eup %6522 }
 0x3cf   :  { %v522_v43 = vsel %vm506_vm3, %v6523_v42, 0.0 }
 0x3d0   :  { %523 = vadd.xlane.f32.xlu1 %v522_v43 }
 0x3de   :  { %628 = vrot.lane.b32.xlu0 %v6937_v9, %s6652_s2 }
 0x3e1   :  { %625 = vrot.lane.b32.xlu1 %v6944_v14, %s6652_s2 }
 0x3e5   :  { %677 = vrot.lane.b32.xlu1 %v6955_v19, %s6652_s2 }
 0x455   :  { %v521_v44 = vpop.xlane.xlu0 %520 }
 0x456   :  { %6524 = vrcp.f32 %v521_v44 }
 0x459   :  { %v629_v46 = vpop.permute.xlu0 %628 }
 0x45a   :  { %v634_v47 = vsel %vm411_vm1, %v629_v46, 0 }
 0x45b   :  { %6055 = vmatpush3.bf16.xpose.msra.mxu0 %v634_v47 }
 0x45c   :  { %6066 = vmatprep.subr.bf16.mxu0 %v6649_v4 }
 0x45d   :  { %v524_v48 = vpop.xlane.xlu1 %523 }
 0x45e   :  { %6526 = vrcp.f32 %v524_v48 }
 0x460   :  { %v6525_v49 = vpop.eup %6524 }
 0x461   :  { %v526_v53 = vmul.f32 %v6525_v49, %v6521_v40  ;;  %v626_v56 = vpop.permute.xlu1 %625 }
 0x462   :  { %6057 = vmatmul.mubr.msk.bf16.vlgmr.msra.gmra.mrb[4].mxu0 %vm411_vm1, %v626_v56 }
 0x463   :  { %v529_v58 = vpack.c.bf16 %v526_v53, %v526_v53  ;;  %6068 = vmatprep.mubr.msk.bf16.mxu0 %vm6651_vm0, %v6649_v4 }
 0x465   :  { %6045 = vmatmul.mubr.msk.bf16.vlgmr.msra.gmra.mrb[12].mxu1 %vm506_vm3, %v529_v58  ;;  %v678_v1 = vpop.permute.xlu1 %677 }
 0x466   :  { %6049 = vmatpush3.bf16.msra.mxu1 %v582_v60  ;;  %6050 = vmatprep.mubr.msk.bf16.mxu1 %vm6651_vm0, %v6649_v4 }
 0x467   :  { %6060 = vmatprep.subr.bf16.mxu1 %v6649_v4 }
 0x468   :  { %v6527_v61 = vpop.eup %6526 }
 0x469   :  { %v528_v62 = vmul.f32 %v6527_v61, %v6523_v42 }
 0x46b   :  { %v530_v63 = vpack.c.bf16 %v528_v62, %v528_v62 }
 0x46d   :  { %6051 = vmatmul.mubr.msk.bf16.vlgmr.msra.gmra.mrb[16].mxu1 %vm506_vm3, %v530_v63 }
 0x46e   :  { %6062 = vmatprep.mubr.msk.bf16.mxu1 %vm6651_vm0, %v6649_v4 }
 0x46f   :  { %6061 = vmatpush3.bf16.xpose.msra.mxu1 %v686_v0 }
 0x470   :  { %6072 = vmatprep.subr.bf16.mxu1 %v6649_v4 }
 0x476   :  { %6063 = vmatmul.mubr.msk.bf16.vlgmr.msra.gmra.mrb[20].mxu1 %vm411_vm1, %v678_v1 }
 0x477   :  { %6074 = vmatprep.mubr.msk.bf16.mxu1 %vm6651_vm0, %v6649_v4 }
 0x535   :  { %v670_v2 = vpop.f32.mrb[4].mxu0 }
 0x536   :  { %v728_v3 = vmul.f32 0.25, %v670_v2  ;;  %v6058_v5 = vpop.f32.mrb[5].mxu0 }
 0x537   :  { %v673_v6 = vpop.f32.mrb[6].mxu0 }
 0x538   :  { %v6999_v7 = vpop.f32.mrb[12].mxu1  ;;  %v6059_v8 = vpop.f32.mrb[7].mxu0  ;;  %v730_v10 = vsel %vm506_vm3, %v728_v3, -inf }
 0x539   :  { %731 = vmax.xlane.f32.xlu0 %v730_v10  ;;  %v6046_v11 = vpop.f32.mrb[13].mxu1 }
 0x53a   :  { %v575_v12 = vpop.f32.mrb[14].mxu1 }
 0x53b   :  { %v6047_v15 = vpop.f32.mrb[15].mxu1 }
 0x540   :  { %v7002_v16 = vpop.f32.mrb[16].mxu1 }
 0x541   :  { %v6052_v17 = vpop.f32.mrb[17].mxu1 }
 0x542   :  { %v621_v20 = vpop.f32.mrb[18].mxu1 }
 0x543   :  { %v6053_v21 = vpop.f32.mrb[19].mxu1 }
 0x549   :  { %v722_v22 = vpop.f32.mrb[20].mxu1 }
 0x54a   :  { %v729_v23 = vmul.f32 0.25, %v722_v22  ;;  %v6064_v24 = vpop.f32.mrb[21].mxu1 }
 0x54b   :  { %v725_v25 = vpop.f32.mrb[22].mxu1 }
 0x54c   :  { %v6065_v26 = vpop.f32.mrb[23].mxu1  ;;  %v733_v27 = vsel %vm506_vm3, %v729_v23, -inf }
 0x54d   :  { %734 = vmax.xlane.f32.xlu1 %v733_v27 }
 0x55e   :  { %804 = vrot.lane.b32.xlu1 %v6980_v52, %s6652_s2 }
 0x562   :  { %854 = vrot.lane.b32.xlu1 %v6937_v9, %s6653_s27 }
 0x566   :  { %904 = vrot.lane.b32.xlu1 %v6942_v13, %s6653_s27 }
 0x56a   :  { %902 = vrot.lane.b32.xlu1 %v6955_v19, %s6653_s27 }
 0x5c6   :  { %v732_v28 = vpop.xlane.xlu0 %731 }
 0x5c7   :  { %v736_v29 = vsub.f32 %v728_v3, %v732_v28 }
 0x5c9   :  { %v738_v31 = vmul.f32 1.442695, %v736_v29 }
 0x5cb   :  { %6528 = vpow2.f32 %v738_v31 }
 0x5d5   :  { %v6529_v32 = vpop.eup %6528 }
 0x5d6   :  { %v742_v33 = vsel %vm506_vm3, %v6529_v32, 0.0 }
 0x5d7   :  { %743 = vadd.xlane.f32.xlu0 %v742_v33 }
 0x5da   :  { %v735_v34 = vpop.xlane.xlu1 %734 }
 0x5db   :  { %v737_v35 = vsub.f32 %v729_v23, %v735_v34 }
 0x5dd   :  { %v740_v36 = vmul.f32 1.442695, %v737_v35 }
 0x5de   :  { %v805_v37 = vpop.permute.xlu1 %804 }
 0x5df   :  { %6530 = vpow2.f32 %v740_v36  ;;  %v810_v38 = vsel %vm534_vm2, %v805_v37, 0 }
 0x5e0   :  { %6073 = vmatpush3.bf16.msra.mxu1 %v810_v38 }
 0x5e1   :  { %6084 = vmatprep.subr.bf16.mxu1 %v6649_v4 }
 0x5e2   :  { %v855_v47 = vpop.permute.xlu1 %854 }
 0x5e3   :  { %v860_v58 = vsel %vm411_vm1, %v855_v47, 0 }
 0x5e6   :  { %v905_v56 = vpop.permute.xlu1 %904 }
 0x5e7   :  { %v910_v61 = vsel %vm411_vm1, %v905_v56, 0 }
 0x5e9   :  { %v6531_v39 = vpop.eup %6530 }
 0x5ea   :  { %v745_v40 = vsel %vm506_vm3, %v6531_v39, 0.0  ;;  %v903_v63 = vpop.permute.xlu1 %902 }
 0x5eb   :  { %746 = vadd.xlane.f32.xlu0 %v745_v40 }
 0x601   :  { %755 = vrot.lane.b32.xlu0 %v6953_v18, %s6652_s2 }
 0x605   :  { %852 = vrot.lane.b32.xlu0 %v6944_v14, %s6653_s27 }
 0x664   :  { %v744_v41 = vpop.xlane.xlu0 %743 }
 0x665   :  { %6532 = vrcp.f32 %v744_v41 }
 0x66f   :  { %v6533_v42 = vpop.eup %6532 }
 0x670   :  { %v749_v44 = vmul.f32 %v6533_v42, %v6529_v32 }
 0x672   :  { %v752_v48 = vpack.c.bf16 %v749_v44, %v749_v44 }
 0x678   :  { %v747_v43 = vpop.xlane.xlu0 %746 }
 0x679   :  { %6534 = vrcp.f32 %v747_v43 }
 0x67c   :  { %v756_v45 = vpop.permute.xlu0 %755 }
 0x67d   :  { %v761_v46 = vsel %vm534_vm2, %v756_v45, 0 }
 0x67e   :  { %6067 = vmatpush3.bf16.msra.mxu0 %v761_v46 }
 0x67f   :  { %6078 = vmatprep.subr.bf16.mxu0 %v6649_v4 }
 0x680   :  { %v853_v62 = vpop.permute.xlu0 %852 }
 0x681   :  { %6069 = vmatmul.mubr.msk.bf16.vlgmr.msra.gmra.mrb[8].mxu0 %vm506_vm3, %v752_v48 }
 0x682   :  { %6080 = vmatprep.mubr.msk.bf16.mxu0 %vm6651_vm0, %v6649_v4 }
 0x683   :  { %v6535_v49 = vpop.eup %6534 }
 0x684   :  { %v751_v53 = vmul.f32 %v6535_v49, %v6531_v39 }
 0x686   :  { %v753_v60 = vpack.c.bf16 %v751_v53, %v751_v53 }
 0x687   :  { %6079 = vmatpush3.bf16.xpose.msra.mxu0 %v860_v58 }
 0x688   :  { %6075 = vmatmul.mubr.msk.bf16.vlgmr.msra.gmra.mrb[24].mxu1 %vm506_vm3, %v753_v60  ;;  %6090 = vmatprep.subr.bf16.mxu0 %v6649_v4 }
 0x689   :  { %6085 = vmatpush3.bf16.xpose.msra.mxu1 %v910_v61  ;;  %6086 = vmatprep.mubr.msk.bf16.mxu1 %vm6651_vm0, %v6649_v4 }
 0x68a   :  { %6096 = vmatprep.subr.bf16.mxu1 %v6649_v4 }
 0x68e   :  { %6081 = vmatmul.mubr.msk.bf16.vlgmr.msra.gmra.mrb[12].mxu0 %vm411_vm1, %v853_v62 }
 0x68f   :  { %6092 = vmatprep.mubr.msk.bf16.mxu0 %vm6651_vm0, %v6649_v4 }
 0x690   :  { %6087 = vmatmul.mubr.msk.bf16.vlgmr.msra.gmra.mrb[28].mxu1 %vm411_vm1, %v903_v63 }
 0x691   :  { %6098 = vmatprep.mubr.msk.bf16.mxu1 %vm6651_vm0, %v6649_v4 }
 0x754   :  { %v7039_v0 = vpop.f32.mrb[8].mxu0 }
 0x755   :  { %v6070_v1 = vpop.f32.mrb[9].mxu0 }
 0x756   :  { %v800_v2 = vpop.f32.mrb[10].mxu0 }
 0x757   :  { %v6071_v3 = vpop.f32.mrb[11].mxu0 }
 0x75b   :  { %v7041_v5 = vpop.f32.mrb[24].mxu1 }
 0x75c   :  { %v6297_v6 = vpack.i.bf16 %v7041_v5, %v7039_v0  ;;  %v6076_v8 = vpop.f32.mrb[25].mxu1 }
 0x75d   :  { %v849_v10 = vpop.f32.mrb[26].mxu1 }
 0x75e   :  { %v6077_v11 = vpop.f32.mrb[27].mxu1 }
 0x761   :  { %v896_v12 = vpop.f32.mrb[12].mxu0 }
 0x762   :  { %v952_v15 = vmul.f32 0.25, %v896_v12  ;;  %v6082_v17 = vpop.f32.mrb[13].mxu0 }
 0x763   :  { %v899_v20 = vpop.f32.mrb[14].mxu0  ;;  %v946_v21 = vpop.f32.mrb[28].mxu1 }
 0x764   :  { %v953_v22 = vmul.f32 0.25, %v946_v21  ;;  %v6083_v23 = vpop.f32.mrb[15].mxu0  ;;  %v6088_v24 = vpop.f32.mrb[29].mxu1  ;;  %v954_v25 = vsel %vm506_vm3, %v952_v15, -inf }
 0x765   :  { %955 = vmax.xlane.f32.xlu0 %v954_v25  ;;  %v949_v26 = vpop.f32.mrb[30].mxu1 }
 0x766   :  { %v6089_v27 = vpop.f32.mrb[31].mxu1  ;;  %v957_v28 = vsel %vm506_vm3, %v953_v22, -inf }
 0x767   :  { %958 = vmax.xlane.f32.xlu1 %v957_v28 }
 0x778   :  { %1026 = vrot.lane.b32.xlu1 %v6980_v52, %s6653_s27 }
 0x77c   :  { %1076 = vrot.lane.b32.xlu1 %v6937_v9, %s6654_s29 }
 0x780   :  { %1126 = vrot.lane.b32.xlu1 %v6942_v13, %s6654_s29 }
 0x784   :  { %1124 = vrot.lane.b32.xlu1 %v6955_v19, %s6654_s29 }
 0x7f2   :  { %v956_v29 = vpop.xlane.xlu0 %955 }
 0x7f3   :  { %v960_v31 = vsub.f32 %v952_v15, %v956_v29 }
 0x7f4   :  { %v959_v32 = vpop.xlane.xlu1 %958 }
 0x7f5   :  { %v962_v33 = vmul.f32 1.442695, %v960_v31  ;;  %v961_v34 = vsub.f32 %v953_v22, %v959_v32 }
 0x7f7   :  { %6536 = vpow2.f32 %v962_v33  ;;  %v964_v35 = vmul.f32 1.442695, %v961_v34 }
 0x7f8   :  { %v1027_v36 = vpop.permute.xlu1 %1026 }
 0x7f9   :  { %6538 = vpow2.f32 %v964_v35  ;;  %v1032_v37 = vsel %vm534_vm2, %v1027_v36, 0 }
 0x7fa   :  { %6097 = vmatpush3.bf16.msra.mxu1 %v1032_v37 }
 0x7fb   :  { %6108 = vmatprep.subr.bf16.mxu1 %v6649_v4 }
 0x7fc   :  { %v1077_v47 = vpop.permute.xlu1 %1076 }
 0x7fd   :  { %v1082_v60 = vsel %vm411_vm1, %v1077_v47, 0 }
 0x800   :  { %v1127_v58 = vpop.permute.xlu1 %1126 }
 0x801   :  { %v6537_v38 = vpop.eup %6536  ;;  %v1132_v62 = vsel %vm411_vm1, %v1127_v58, 0 }
 0x802   :  { %v966_v39 = vsel %vm506_vm3, %v6537_v38, 0.0 }
 0x803   :  { %v6539_v40 = vpop.eup %6538  ;;  %967 = vadd.xlane.f32.xlu0 %v966_v39 }
 0x804   :  { %v969_v41 = vsel %vm506_vm3, %v6539_v40, 0.0  ;;  %v1125_v1 = vpop.permute.xlu1 %1124 }
 0x807   :  { %970 = vadd.xlane.f32.xlu0 %v969_v41 }
 0x81d   :  { %978 = vrot.lane.b32.xlu0 %v6953_v18, %s6653_s27 }
 0x821   :  { %1074 = vrot.lane.b32.xlu0 %v6944_v14, %s6654_s29 }
 0x890   :  { %v968_v42 = vpop.xlane.xlu0 %967 }
 0x891   :  { %6540 = vrcp.f32 %v968_v42 }
 0x894   :  { %v971_v43 = vpop.xlane.xlu0 %970 }
 0x895   :  { %6542 = vrcp.f32 %v971_v43 }
 0x898   :  { %v979_v44 = vpop.permute.xlu0 %978 }
 0x899   :  { %v984_v45 = vsel %vm534_vm2, %v979_v44, 0 }
 0x89a   :  { %6091 = vmatpush3.bf16.msra.mxu0 %v984_v45 }
 0x89b   :  { %v6541_v46 = vpop.eup %6540  ;;  %6102 = vmatprep.subr.bf16.mxu0 %v6649_v4 }
 0x89c   :  { %v973_v48 = vmul.f32 %v6541_v46, %v6537_v38  ;;  %v1075_v63 = vpop.permute.xlu0 %1074 }
 0x89e   :  { %v976_v49 = vpack.c.bf16 %v973_v48, %v973_v48 }
 0x89f   :  { %v6543_v53 = vpop.eup %6542 }
 0x8a0   :  { %v975_v56 = vmul.f32 %v6543_v53, %v6539_v40  ;;  %6093 = vmatmul.mubr.msk.bf16.vlgmr.msra.gmra.mrb[16].mxu0 %vm506_vm3, %v976_v49 }
 0x8a1   :  { %6104 = vmatprep.mubr.msk.bf16.mxu0 %vm6651_vm0, %v6649_v4 }
 0x8a2   :  { %v977_v61 = vpack.c.bf16 %v975_v56, %v975_v56 }
 0x8a3   :  { %6103 = vmatpush3.bf16.xpose.msra.mxu0 %v1082_v60 }
 0x8a4   :  { %6099 = vmatmul.mubr.msk.bf16.vlgmr.msra.gmra.mrb[32].mxu1 %vm506_vm3, %v977_v61  ;;  %6114 = vmatprep.subr.bf16.mxu0 %v6649_v4 }
 0x8a5   :  { %6109 = vmatpush3.bf16.xpose.msra.mxu1 %v1132_v62  ;;  %6110 = vmatprep.mubr.msk.bf16.mxu1 %vm6651_vm0, %v6649_v4 }
 0x8a6   :  { %6120 = vmatprep.subr.bf16.mxu1 %v6649_v4 }
 0x8aa   :  { %6105 = vmatmul.mubr.msk.bf16.vlgmr.msra.gmra.mrb[20].mxu0 %vm411_vm1, %v1075_v63 }
 0x8ab   :  { %6116 = vmatprep.mubr.msk.bf16.mxu0 %vm6651_vm0, %v6649_v4 }
 0x8ac   :  { %6111 = vmatmul.mubr.msk.bf16.vlgmr.msra.gmra.mrb[36].mxu1 %vm411_vm1, %v1125_v1 }
 0x8ad   :  { %6122 = vmatprep.mubr.msk.bf16.mxu1 %vm6651_vm0, %v6649_v4 }
 0x973   :  { %v7081_v2 = vpop.f32.mrb[16].mxu0 }
 0x974   :  { %v6094_v3 = vpop.f32.mrb[17].mxu0 }
 0x975   :  { %v1023_v8 = vpop.f32.mrb[18].mxu0 }
 0x976   :  { %v6095_v10 = vpop.f32.mrb[19].mxu0 }
 0x977   :  { %v7083_v11 = vpop.f32.mrb[32].mxu1 }
 0x978   :  { %v6302_v12 = vpack.i.bf16 %v7083_v11, %v7081_v2  ;;  %v6100_v15 = vpop.f32.mrb[33].mxu1 }
 0x979   :  { %v1071_v17 = vpop.f32.mrb[34].mxu1 }
 0x97a   :  { %v6101_v20 = vpop.f32.mrb[35].mxu1 }
 0x97d   :  { %v1118_v21 = vpop.f32.mrb[20].mxu0 }
 0x97e   :  { %v1174_v22 = vmul.f32 0.25, %v1118_v21  ;;  %v6106_v23 = vpop.f32.mrb[21].mxu0 }
 0x97f   :  { %v1121_v24 = vpop.f32.mrb[22].mxu0  ;;  %v1168_v25 = vpop.f32.mrb[36].mxu1 }
 0x980   :  { %v1175_v26 = vmul.f32 0.25, %v1168_v25  ;;  %v6107_v27 = vpop.f32.mrb[23].mxu0  ;;  %v6112_v28 = vpop.f32.mrb[37].mxu1  ;;  %v1176_v29 = vsel %vm506_vm3, %v1174_v22, -inf }
 0x981   :  { %1177 = vmax.xlane.f32.xlu0 %v1176_v29  ;;  %v1171_v31 = vpop.f32.mrb[38].mxu1 }
 0x982   :  { %v6113_v32 = vpop.f32.mrb[39].mxu1  ;;  %v1179_v33 = vsel %vm506_vm3, %v1175_v26, -inf }
 0x983   :  { %1180 = vmax.xlane.f32.xlu1 %v1179_v33 }
 0x994   :  { %1248 = vrot.lane.b32.xlu1 %v6980_v52, %s6654_s29 }
 0x998   :  { %1298 = vrot.lane.b32.xlu1 %v6937_v9, %s6646_s25 }
 0x99c   :  { %1348 = vrot.lane.b32.xlu1 %v6942_v13, %s6646_s25 }
 0x9a0   :  { %1346 = vrot.lane.b32.xlu1 %v6955_v19, %s6646_s25 }
 0xa0e   :  { %v1178_v34 = vpop.xlane.xlu0 %1177 }
 0xa0f   :  { %v1182_v35 = vsub.f32 %v1174_v22, %v1178_v34 }
 0xa10   :  { %v1181_v36 = vpop.xlane.xlu1 %1180 }
 0xa11   :  { %v1184_v37 = vmul.f32 1.442695, %v1182_v35  ;;  %v1183_v38 = vsub.f32 %v1175_v26, %v1181_v36 }
 0xa13   :  { %6544 = vpow2.f32 %v1184_v37  ;;  %v1186_v39 = vmul.f32 1.442695, %v1183_v38 }
 0xa14   :  { %v1249_v40 = vpop.permute.xlu1 %1248 }
 0xa15   :  { %6546 = vpow2.f32 %v1186_v39  ;;  %v1254_v41 = vsel %vm534_vm2, %v1249_v40, 0 }
 0xa16   :  { %6121 = vmatpush3.bf16.msra.mxu1 %v1254_v41 }
 0xa17   :  { %6132 = vmatprep.subr.bf16.mxu1 %v6649_v4 }
 0xa18   :  { %v1299_v56 = vpop.permute.xlu1 %1298 }
 0xa19   :  { %v1304_v1 = vsel %vm411_vm1, %v1299_v56, 0 }
 0xa1c   :  { %v1349_v63 = vpop.permute.xlu1 %1348 }
 0xa1d   :  { %v6545_v42 = vpop.eup %6544  ;;  %v1354_v8 = vsel %vm411_vm1, %v1349_v63, 0 }
 0xa1e   :  { %v1188_v43 = vsel %vm506_vm3, %v6545_v42, 0.0 }
 0xa1f   :  { %v6547_v44 = vpop.eup %6546  ;;  %1189 = vadd.xlane.f32.xlu0 %v1188_v43 }
 0xa20   :  { %v1191_v45 = vsel %vm506_vm3, %v6547_v44, 0.0  ;;  %v1347_v15 = vpop.permute.xlu1 %1346 }
 0xa23   :  { %1192 = vadd.xlane.f32.xlu0 %v1191_v45 }
 0xa39   :  { %1200 = vrot.lane.b32.xlu0 %v6953_v18, %s6654_s29 }
 0xa3d   :  { %1296 = vrot.lane.b32.xlu0 %v6944_v14, %s6646_s25 }
 0xaac   :  { %v1190_v46 = vpop.xlane.xlu0 %1189 }
 0xaad   :  { %6548 = vrcp.f32 %v1190_v46 }
 0xab0   :  { %v1193_v47 = vpop.xlane.xlu0 %1192 }
 0xab1   :  { %6550 = vrcp.f32 %v1193_v47 }
 0xab4   :  { %v1201_v48 = vpop.permute.xlu0 %1200 }
 0xab5   :  { %v1206_v49 = vsel %vm534_vm2, %v1201_v48, 0 }
 0xab6   :  { %6115 = vmatpush3.bf16.msra.mxu0 %v1206_v49 }
 0xab7   :  { %v6549_v53 = vpop.eup %6548  ;;  %6126 = vmatprep.subr.bf16.mxu0 %v6649_v4 }
 0xab8   :  { %v1195_v58 = vmul.f32 %v6549_v53, %v6545_v42  ;;  %v1297_v10 = vpop.permute.xlu0 %1296 }
 0xaba   :  { %v1198_v60 = vpack.c.bf16 %v1195_v58, %v1195_v58 }
 0xabb   :  { %v6551_v61 = vpop.eup %6550 }
 0xabc   :  { %v1197_v62 = vmul.f32 %v6551_v61, %v6547_v44  ;;  %6117 = vmatmul.mubr.msk.bf16.vlgmr.msra.gmra.mrb[24].mxu0 %vm506_vm3, %v1198_v60 }
 0xabd   :  { %6128 = vmatprep.mubr.msk.bf16.mxu0 %vm6651_vm0, %v6649_v4 }
 0xabe   :  { %v1199_v3 = vpack.c.bf16 %v1197_v62, %v1197_v62 }
 0xabf   :  { %6127 = vmatpush3.bf16.xpose.msra.mxu0 %v1304_v1 }
 0xac0   :  { %6123 = vmatmul.mubr.msk.bf16.vlgmr.msra.gmra.mrb[40].mxu1 %vm506_vm3, %v1199_v3  ;;  %6138 = vmatprep.subr.bf16.mxu0 %v6649_v4 }
 0xac1   :  { %6133 = vmatpush3.bf16.xpose.msra.mxu1 %v1354_v8  ;;  %6134 = vmatprep.mubr.msk.bf16.mxu1 %vm6651_vm0, %v6649_v4 }
 0xac2   :  { %6144 = vmatprep.subr.bf16.mxu1 %v6649_v4 }
 0xac6   :  { %6129 = vmatmul.mubr.msk.bf16.vlgmr.msra.gmra.mrb[28].mxu0 %vm411_vm1, %v1297_v10 }
 0xac7   :  { %6140 = vmatprep.mubr.msk.bf16.mxu0 %vm6651_vm0, %v6649_v4 }
 0xac8   :  { %6135 = vmatmul.mubr.msk.bf16.vlgmr.msra.gmra.mrb[44].mxu1 %vm411_vm1, %v1347_v15 }
 0xac9   :  { %6146 = vmatprep.mubr.msk.bf16.mxu1 %vm6651_vm0, %v6649_v4 }
 0xb8f   :  { %v7123_v17 = vpop.f32.mrb[24].mxu0 }
 0xb90   :  { %v6118_v20 = vpop.f32.mrb[25].mxu0 }
 0xb91   :  { %v1245_v21 = vpop.f32.mrb[26].mxu0 }
 0xb92   :  { %v6119_v22 = vpop.f32.mrb[27].mxu0 }
 0xb93   :  { %v7125_v23 = vpop.f32.mrb[40].mxu1 }
 0xb94   :  { %v6307_v24 = vpack.i.bf16 %v7125_v23, %v7123_v17  ;;  %v6124_v25 = vpop.f32.mrb[41].mxu1 }
 0xb95   :  { %v1293_v26 = vpop.f32.mrb[42].mxu1 }
 0xb96   :  { %v6125_v27 = vpop.f32.mrb[43].mxu1 }
 0xb99   :  { %v1340_v28 = vpop.f32.mrb[28].mxu0 }
 0xb9a   :  { %v1396_v29 = vmul.f32 0.25, %v1340_v28  ;;  %v6130_v31 = vpop.f32.mrb[29].mxu0 }
 0xb9b   :  { %v1343_v32 = vpop.f32.mrb[30].mxu0  ;;  %v1390_v33 = vpop.f32.mrb[44].mxu1 }
 0xb9c   :  { %v1397_v34 = vmul.f32 0.25, %v1390_v33  ;;  %v6131_v35 = vpop.f32.mrb[31].mxu0  ;;  %v6136_v36 = vpop.f32.mrb[45].mxu1  ;;  %v1398_v37 = vsel %vm506_vm3, %v1396_v29, -inf }
 0xb9d   :  { %1399 = vmax.xlane.f32.xlu0 %v1398_v37  ;;  %v1393_v38 = vpop.f32.mrb[46].mxu1 }
 0xb9e   :  { %v6137_v39 = vpop.f32.mrb[47].mxu1  ;;  %v1401_v40 = vsel %vm506_vm3, %v1397_v34, -inf }
 0xb9f   :  { %1402 = vmax.xlane.f32.xlu1 %v1401_v40 }
 0xbb0   :  { %1470 = vrot.lane.b32.xlu1 %v6980_v52, %s6646_s25 }
 0xbb4   :  { %1520 = vrot.lane.b32.xlu1 %v6937_v9, %s6655_s30 }
 0xbb8   :  { %1570 = vrot.lane.b32.xlu1 %v6942_v13, %s6655_s30 }
 0xbbc   :  { %1568 = vrot.lane.b32.xlu1 %v6955_v19, %s6655_s30 }
 0xc2a   :  { %v1400_v41 = vpop.xlane.xlu0 %1399 }
 0xc2b   :  { %v1404_v42 = vsub.f32 %v1396_v29, %v1400_v41 }
 0xc2c   :  { %v1403_v43 = vpop.xlane.xlu1 %1402 }
 0xc2d   :  { %v1406_v44 = vmul.f32 1.442695, %v1404_v42  ;;  %v1405_v45 = vsub.f32 %v1397_v34, %v1403_v43 }
 0xc2f   :  { %6552 = vpow2.f32 %v1406_v44  ;;  %v1408_v46 = vmul.f32 1.442695, %v1405_v45 }
 0xc30   :  { %v1471_v47 = vpop.permute.xlu1 %1470 }
 0xc31   :  { %6554 = vpow2.f32 %v1408_v46  ;;  %v1476_v48 = vsel %vm534_vm2, %v1471_v47, 0 }
 0xc32   :  { %6145 = vmatpush3.bf16.msra.mxu1 %v1476_v48 }
 0xc33   :  { %6156 = vmatprep.subr.bf16.mxu1 %v6649_v4 }
 0xc34   :  { %v1521_v3 = vpop.permute.xlu1 %1520 }
 0xc35   :  { %v1526_v22 = vsel %vm411_vm1, %v1521_v3, 0 }
 0xc38   :  { %v1571_v21 = vpop.permute.xlu1 %1570 }
 0xc39   :  { %v6553_v49 = vpop.eup %6552  ;;  %v1576_v26 = vsel %vm411_vm1, %v1571_v21, 0 }
 0xc3a   :  { %v1410_v53 = vsel %vm506_vm3, %v6553_v49, 0.0 }
 0xc3b   :  { %v6555_v56 = vpop.eup %6554  ;;  %1411 = vadd.xlane.f32.xlu0 %v1410_v53 }
 0xc3c   :  { %v1413_v58 = vsel %vm506_vm3, %v6555_v56, 0.0  ;;  %v1569_v28 = vpop.permute.xlu1 %1568 }
 0xc3f   :  { %1414 = vadd.xlane.f32.xlu0 %v1413_v58 }
 0xc55   :  { %1422 = vrot.lane.b32.xlu0 %v6953_v18, %s6646_s25 }
 0xc59   :  { %1518 = vrot.lane.b32.xlu0 %v6944_v14, %s6655_s30 }
 0xcc8   :  { %v1412_v60 = vpop.xlane.xlu0 %1411 }
 0xcc9   :  { %6556 = vrcp.f32 %v1412_v60 }
 0xccc   :  { %v1415_v61 = vpop.xlane.xlu0 %1414 }
 0xccd   :  { %6558 = vrcp.f32 %v1415_v61 }
 0xcd0   :  { %v1423_v62 = vpop.permute.xlu0 %1422 }
 0xcd1   :  { %v1428_v63 = vsel %vm534_vm2, %v1423_v62, 0 }
 0xcd2   :  { %6139 = vmatpush3.bf16.msra.mxu0 %v1428_v63 }
 0xcd3   :  { %v6557_v1 = vpop.eup %6556  ;;  %6150 = vmatprep.subr.bf16.mxu0 %v6649_v4 }
 0xcd4   :  { %v1417_v8 = vmul.f32 %v6557_v1, %v6553_v49  ;;  %v1519_v27 = vpop.permute.xlu0 %1518 }
 0xcd6   :  { %v1420_v10 = vpack.c.bf16 %v1417_v8, %v1417_v8 }
 0xcd7   :  { %v6559_v15 = vpop.eup %6558 }
 0xcd8   :  { %v1419_v20 = vmul.f32 %v6559_v15, %v6555_v56  ;;  %6141 = vmatmul.mubr.msk.bf16.vlgmr.msra.gmra.mrb[32].mxu0 %vm506_vm3, %v1420_v10 }
 0xcd9   :  { %6152 = vmatprep.mubr.msk.bf16.mxu0 %vm6651_vm0, %v6649_v4 }
 0xcda   :  { %v1421_v25 = vpack.c.bf16 %v1419_v20, %v1419_v20 }
 0xcdb   :  { %6151 = vmatpush3.bf16.xpose.msra.mxu0 %v1526_v22 }
 0xcdc   :  { %6147 = vmatmul.mubr.msk.bf16.vlgmr.msra.gmra.mrb[48].mxu1 %vm506_vm3, %v1421_v25  ;;  %6162 = vmatprep.subr.bf16.mxu0 %v6649_v4 }
 0xcdd   :  { %6157 = vmatpush3.bf16.xpose.msra.mxu1 %v1576_v26  ;;  %6158 = vmatprep.mubr.msk.bf16.mxu1 %vm6651_vm0, %v6649_v4 }
 0xcde   :  { %6168 = vmatprep.subr.bf16.mxu1 %v6649_v4 }
 0xce2   :  { %6153 = vmatmul.mubr.msk.bf16.vlgmr.msra.gmra.mrb[36].mxu0 %vm411_vm1, %v1519_v27 }
 0xce3   :  { %6164 = vmatprep.mubr.msk.bf16.mxu0 %vm6651_vm0, %v6649_v4 }
 0xce4   :  { %6159 = vmatmul.mubr.msk.bf16.vlgmr.msra.gmra.mrb[52].mxu1 %vm411_vm1, %v1569_v28 }
 0xce5   :  { %6170 = vmatprep.mubr.msk.bf16.mxu1 %vm6651_vm0, %v6649_v4 }
 0xdab   :  { %v7165_v29 = vpop.f32.mrb[32].mxu0 }
 0xdac   :  { %v6142_v31 = vpop.f32.mrb[33].mxu0 }
 0xdad   :  { %v1467_v32 = vpop.f32.mrb[34].mxu0 }
 0xdae   :  { %v6143_v33 = vpop.f32.mrb[35].mxu0 }
 0xdaf   :  { %v7167_v34 = vpop.f32.mrb[48].mxu1 }
 0xdb0   :  { %v6312_v35 = vpack.i.bf16 %v7167_v34, %v7165_v29  ;;  %v6148_v36 = vpop.f32.mrb[49].mxu1 }
 0xdb1   :  { %v1515_v37 = vpop.f32.mrb[50].mxu1 }
 0xdb2   :  { %v6149_v38 = vpop.f32.mrb[51].mxu1 }
 0xdb5   :  { %v1562_v39 = vpop.f32.mrb[36].mxu0 }
 0xdb6   :  { %v1618_v40 = vmul.f32 0.25, %v1562_v39  ;;  %v6154_v41 = vpop.f32.mrb[37].mxu0 }
 0xdb7   :  { %v1565_v42 = vpop.f32.mrb[38].mxu0  ;;  %v1612_v43 = vpop.f32.mrb[52].mxu1 }
 0xdb8   :  { %v1619_v44 = vmul.f32 0.25, %v1612_v43  ;;  %v6155_v45 = vpop.f32.mrb[39].mxu0  ;;  %v6160_v46 = vpop.f32.mrb[53].mxu1  ;;  %v1620_v47 = vsel %vm506_vm3, %v1618_v40, -inf }
 0xdb9   :  { %1621 = vmax.xlane.f32.xlu0 %v1620_v47  ;;  %v1615_v48 = vpop.f32.mrb[54].mxu1 }
 0xdba   :  { %v6161_v49 = vpop.f32.mrb[55].mxu1  ;;  %v1623_v53 = vsel %vm506_vm3, %v1619_v44, -inf }
 0xdbb   :  { %1624 = vmax.xlane.f32.xlu1 %v1623_v53 }
 0xdcc   :  { %1692 = vrot.lane.b32.xlu1 %v6980_v52, %s6655_s30 }
 0xdd0   :  { %1742 = vrot.lane.b32.xlu1 %v6937_v9, %s6656_s4 }
 0xdd4   :  { %1792 = vrot.lane.b32.xlu1 %v6942_v13, %s6656_s4 }
 0xdd8   :  { %1790 = vrot.lane.b32.xlu1 %v6955_v19, %s6656_s4 }
 0xe46   :  { %v1622_v56 = vpop.xlane.xlu0 %1621 }
 0xe47   :  { %v1626_v58 = vsub.f32 %v1618_v40, %v1622_v56 }
 0xe48   :  { %v1625_v60 = vpop.xlane.xlu1 %1624 }
 0xe49   :  { %v1628_v61 = vmul.f32 1.442695, %v1626_v58  ;;  %v1627_v62 = vsub.f32 %v1619_v44, %v1625_v60 }
 0xe4b   :  { %6560 = vpow2.f32 %v1628_v61  ;;  %v1630_v63 = vmul.f32 1.442695, %v1627_v62 }
 0xe4c   :  { %v1693_v1 = vpop.permute.xlu1 %1692 }
 0xe4d   :  { %6562 = vpow2.f32 %v1630_v63  ;;  %v1698_v3 = vsel %vm534_vm2, %v1693_v1, 0 }
 0xe4e   :  { %6169 = vmatpush3.bf16.msra.mxu1 %v1698_v3 }
 0xe4f   :  { %6180 = vmatprep.subr.bf16.mxu1 %v6649_v4 }
 0xe50   :  { %v1743_v28 = vpop.permute.xlu1 %1742 }
 0xe51   :  { %v1748_v38 = vsel %vm411_vm1, %v1743_v28, 0 }
 0xe54   :  { %v1793_v37 = vpop.permute.xlu1 %1792 }
 0xe55   :  { %v6561_v8 = vpop.eup %6560  ;;  %v1798_v40 = vsel %vm411_vm1, %v1793_v37, 0 }
 0xe56   :  { %v1632_v10 = vsel %vm506_vm3, %v6561_v8, 0.0 }
 0xe57   :  { %v6563_v15 = vpop.eup %6562  ;;  %1633 = vadd.xlane.f32.xlu0 %v1632_v10 }
 0xe58   :  { %v1635_v20 = vsel %vm506_vm3, %v6563_v15, 0.0  ;;  %v1791_v42 = vpop.permute.xlu1 %1790 }
 0xe5b   :  { %1636 = vadd.xlane.f32.xlu0 %v1635_v20 }
 0xe71   :  { %1644 = vrot.lane.b32.xlu0 %v6953_v18, %s6655_s30 }
 0xe75   :  { %1740 = vrot.lane.b32.xlu0 %v6944_v14, %s6656_s4 }
 0xee4   :  { %v1634_v21 = vpop.xlane.xlu0 %1633 }
 0xee5   :  { %6564 = vrcp.f32 %v1634_v21 }
 0xee8   :  { %v1637_v22 = vpop.xlane.xlu0 %1636 }
 0xee9   :  { %6566 = vrcp.f32 %v1637_v22 }
 0xeec   :  { %v1645_v25 = vpop.permute.xlu0 %1644 }
 0xeed   :  { %v1650_v26 = vsel %vm534_vm2, %v1645_v25, 0 }
 0xeee   :  { %6163 = vmatpush3.bf16.msra.mxu0 %v1650_v26 }
 0xeef   :  { %v6565_v27 = vpop.eup %6564  ;;  %6174 = vmatprep.subr.bf16.mxu0 %v6649_v4 }
 0xef0   :  { %v1639_v31 = vmul.f32 %v6565_v27, %v6561_v8  ;;  %v1741_v41 = vpop.permute.xlu0 %1740 }
 0xef2   :  { %v1642_v32 = vpack.c.bf16 %v1639_v31, %v1639_v31 }
 0xef3   :  { %v6567_v33 = vpop.eup %6566 }
 0xef4   :  { %v1641_v36 = vmul.f32 %v6567_v33, %v6563_v15  ;;  %6165 = vmatmul.mubr.msk.bf16.vlgmr.msra.gmra.mrb[40].mxu0 %vm506_vm3, %v1642_v32 }
 0xef5   :  { %6176 = vmatprep.mubr.msk.bf16.mxu0 %vm6651_vm0, %v6649_v4 }
 0xef6   :  { %v1643_v39 = vpack.c.bf16 %v1641_v36, %v1641_v36 }
 0xef7   :  { %6175 = vmatpush3.bf16.xpose.msra.mxu0 %v1748_v38 }
 0xef8   :  { %6171 = vmatmul.mubr.msk.bf16.vlgmr.msra.gmra.mrb[56].mxu1 %vm506_vm3, %v1643_v39  ;;  %6186 = vmatprep.subr.bf16.mxu0 %v6649_v4 }
 0xef9   :  { %6181 = vmatpush3.bf16.xpose.msra.mxu1 %v1798_v40  ;;  %6182 = vmatprep.mubr.msk.bf16.mxu1 %vm6651_vm0, %v6649_v4 }
 0xefa   :  { %6192 = vmatprep.subr.bf16.mxu1 %v6649_v4 }
 0xefe   :  { %6177 = vmatmul.mubr.msk.bf16.vlgmr.msra.gmra.mrb[44].mxu0 %vm411_vm1, %v1741_v41 }
 0xeff   :  { %6188 = vmatprep.mubr.msk.bf16.mxu0 %vm6651_vm0, %v6649_v4 }
 0xf00   :  { %6183 = vmatmul.mubr.msk.bf16.vlgmr.msra.gmra.mrb[60].mxu1 %vm411_vm1, %v1791_v42 }
 0xf01   :  { %6194 = vmatprep.mubr.msk.bf16.mxu1 %vm6651_vm0, %v6649_v4 }
 0xfc7   :  { %v7207_v43 = vpop.f32.mrb[40].mxu0 }
 0xfc8   :  { %v6166_v44 = vpop.f32.mrb[41].mxu0 }
 0xfc9   :  { %v1689_v45 = vpop.f32.mrb[42].mxu0 }
 0xfca   :  { %v6167_v46 = vpop.f32.mrb[43].mxu0 }
 0xfcb   :  { %v7209_v47 = vpop.f32.mrb[56].mxu1 }
 0xfcc   :  { %v6317_v48 = vpack.i.bf16 %v7209_v47, %v7207_v43  ;;  %v6172_v49 = vpop.f32.mrb[57].mxu1  ;;  %v6364_v43 = vld [vmem:[%s7561_s23] sm:$0xff]   ;;  %v6365_v47 = vld [vmem:[%s7561_s23 + $0x8] sm:$0xff]  }
 0xfcd   :  { %v1737_v53 = vpop.f32.mrb[58].mxu1 }
 0xfce   :  { %v6173_v56 = vpop.f32.mrb[59].mxu1 }
 0xfd1   :  { %v1784_v58 = vpop.f32.mrb[44].mxu0 }
 0xfd2   :  { %v1840_v60 = vmul.f32 0.25, %v1784_v58  ;;  %v6178_v61 = vpop.f32.mrb[45].mxu0 }
 0xfd3   :  { %v1787_v62 = vpop.f32.mrb[46].mxu0  ;;  %v1834_v63 = vpop.f32.mrb[60].mxu1 }
 0xfd4   :  { %v1841_v1 = vmul.f32 0.25, %v1834_v63  ;;  %v6179_v3 = vpop.f32.mrb[47].mxu0  ;;  %v6184_v8 = vpop.f32.mrb[61].mxu1  ;;  %v1842_v10 = vsel %vm506_vm3, %v1840_v60, -inf }
 0xfd5   :  { %1843 = vmax.xlane.f32.xlu0 %v1842_v10  ;;  %v1837_v15 = vpop.f32.mrb[62].mxu1 }
 0xfd6   :  { %v6185_v20 = vpop.f32.mrb[63].mxu1  ;;  %v1845_v21 = vsel %vm506_vm3, %v1841_v1, -inf }
 0xfd7   :  { %1846 = vmax.xlane.f32.xlu1 %v1845_v21 }
 0xfe8   :  { %1914 = vrot.lane.b32.xlu1 %v6980_v52, %s6656_s4 }
 0xfec   :  { %1964 = vrot.lane.b32.xlu1 %v6937_v9, %s6657_s0 }
 0xff0   :  { %2014 = vrot.lane.b32.xlu1 %v6942_v13, %s6657_s0 }
 0xff4   :  { %2012 = vrot.lane.b32.xlu1 %v6955_v19, %s6657_s0 }
0x1062   :  { %v1844_v22 = vpop.xlane.xlu0 %1843 }
0x1063   :  { %v1848_v25 = vsub.f32 %v1840_v60, %v1844_v22 }
0x1064   :  { %v1847_v26 = vpop.xlane.xlu1 %1846 }
0x1065   :  { %v1850_v27 = vmul.f32 1.442695, %v1848_v25  ;;  %v1849_v28 = vsub.f32 %v1841_v1, %v1847_v26 }
0x1067   :  { %6568 = vpow2.f32 %v1850_v27  ;;  %v1852_v31 = vmul.f32 1.442695, %v1849_v28 }
0x1068   :  { %v1915_v32 = vpop.permute.xlu1 %1914 }
0x1069   :  { %6570 = vpow2.f32 %v1852_v31  ;;  %v1920_v33 = vsel %vm534_vm2, %v1915_v32, 0 }
0x106a   :  { %6193 = vmatpush3.bf16.msra.mxu1 %v1920_v33 }
0x106b   :  { %6204 = vmatprep.subr.bf16.mxu1 %v6649_v4 }
0x106c   :  { %v1965_v42 = vpop.permute.xlu1 %1964 }
0x1070   :  { %v2015_v53 = vpop.permute.xlu1 %2014 }
0x1071   :  { %v6569_v9 = vpop.eup %6568  ;;  %v2020_v58 = vsel %vm411_vm1, %v2015_v53, 0  ;;  %v6369_v53 = vld [vmem:[%s7561_s23 + $0x28] sm:$0xff]  }
0x1072   :  { %v1854_v13 = vsel %vm506_vm3, %v6569_v9, 0.0 }
0x1073   :  { %v6571_v36 = vpop.eup %6570  ;;  %1855 = vadd.xlane.f32.xlu0 %v1854_v13 }
0x1074   :  { %v1857_v19 = vsel %vm506_vm3, %v6571_v36, 0.0  ;;  %v2013_v61 = vpop.permute.xlu1 %2012 }
0x1077   :  { %1858 = vadd.xlane.f32.xlu0 %v1857_v19 }
0x108d   :  { %1866 = vrot.lane.b32.xlu0 %v6953_v18, %s6656_s4 }
0x1091   :  { %1962 = vrot.lane.b32.xlu0 %v6944_v14, %s6657_s0  ;;  %v1970_v14 = vsel %vm411_vm1, %v1965_v42, 0 }
0x1100   :  { %v1856_v37 = vpop.xlane.xlu0 %1855 }
0x1101   :  { %6572 = vrcp.f32 %v1856_v37 }
0x1104   :  { %v1859_v38 = vpop.xlane.xlu0 %1858 }
0x1105   :  { %6574 = vrcp.f32 %v1859_v38 }
0x1108   :  { %v1867_v39 = vpop.permute.xlu0 %1866 }
0x1109   :  { %v1872_v40 = vsel %vm534_vm2, %v1867_v39, 0 }
0x110a   :  { %6187 = vmatpush3.bf16.msra.mxu0 %v1872_v40 }
0x110b   :  { %v6573_v41 = vpop.eup %6572  ;;  %6198 = vmatprep.subr.bf16.mxu0 %v6649_v4 }
0x110c   :  { %v1861_v44 = vmul.f32 %v6573_v41, %v6569_v9  ;;  %v1963_v60 = vpop.permute.xlu0 %1962 }
0x110e   :  { %v1864_v45 = vpack.c.bf16 %v1861_v44, %v1861_v44 }
0x110f   :  { %v6575_v46 = vpop.eup %6574 }
0x1110   :  { %v1863_v49 = vmul.f32 %v6575_v46, %v6571_v36  ;;  %6189 = vmatmul.mubr.msk.bf16.vlgmr.msra.gmra.mrb[48].mxu0 %vm506_vm3, %v1864_v45  ;;  %v6367_v46 = vld [vmem:[%s7561_s23 + $0x18] sm:$0xff]  }
0x1111   :  { %6200 = vmatprep.mubr.msk.bf16.mxu0 %vm6651_vm0, %v6649_v4 }
0x1112   :  { %v1865_v56 = vpack.c.bf16 %v1863_v49, %v1863_v49  ;;  %v6368_v49 = vld [vmem:[%s7561_s23 + $0x20] sm:$0xff]  }
0x1113   :  { %6199 = vmatpush3.bf16.xpose.msra.mxu0 %v1970_v14  ;;  %v6370_v14 = vld [vmem:[%s7561_s23 + $0x30] sm:$0xff]  }
0x1114   :  { %6195 = vmatmul.mubr.msk.bf16.vlgmr.msra.gmra.mrb[64].mxu1 %vm506_vm3, %v1865_v56  ;;  %6210 = vmatprep.subr.bf16.mxu0 %v6649_v4  ;;  %v6371_v56 = vld [vmem:[%s7561_s23 + $0x38] sm:$0xff]  }
0x1115   :  { %6205 = vmatpush3.bf16.xpose.msra.mxu1 %v2020_v58  ;;  %6206 = vmatprep.mubr.msk.bf16.mxu1 %vm6651_vm0, %v6649_v4  ;;  %v6372_v58 = vld [vmem:[%s7533_s10] sm:$0xff]  }
0x1116   :  { %6216 = vmatprep.subr.bf16.mxu1 %v6649_v4 }
0x111a   :  { %6201 = vmatmul.mubr.msk.bf16.vlgmr.msra.gmra.mrb[52].mxu0 %vm411_vm1, %v1963_v60 }
0x111b   :  { %6212 = vmatprep.mubr.msk.bf16.mxu0 %vm6651_vm0, %v6649_v4 }
0x111c   :  { %6207 = vmatmul.mubr.msk.bf16.vlgmr.msra.gmra.mrb[68].mxu1 %vm411_vm1, %v2013_v61 }
0x111d   :  { %6218 = vmatprep.mubr.msk.bf16.mxu1 %vm6651_vm0, %v6649_v4 }
0x11e3   :  { %v1908_v62 = vpop.f32.mrb[48].mxu0 }
0x11e4   :  { %v6190_v63 = vpop.f32.mrb[49].mxu0 }
0x11e5   :  { %v1911_v1 = vpop.f32.mrb[50].mxu0 }
0x11e6   :  { %v6191_v3 = vpop.f32.mrb[51].mxu0 }
0x11e7   :  { %v1956_v8 = vpop.f32.mrb[64].mxu1 }
0x11e8   :  { %v6322_v10 = vpack.i.bf16 %v1956_v8, %v1908_v62  ;;  %v6196_v15 = vpop.f32.mrb[65].mxu1  ;;  %v6373_v62 = vld [vmem:[%s7533_s10 + $0x8] sm:$0xff]  }
0x11e9   :  { %v1959_v20 = vpop.f32.mrb[66].mxu1  ;;  %v6374_v15 = vld [vmem:[%s7533_s10 + $0x10] sm:$0xff]  }
0x11ea   :  { %v6197_v21 = vpop.f32.mrb[67].mxu1 }
0x11ed   :  { %v2006_v22 = vpop.f32.mrb[52].mxu0 }
0x11ee   :  { %v2062_v25 = vmul.f32 0.25, %v2006_v22  ;;  %v6202_v26 = vpop.f32.mrb[53].mxu0  ;;  %v6375_v22 = vld [vmem:[%s7533_s10 + $0x18] sm:$0xff]  }
0x11ef   :  { %v2009_v27 = vpop.f32.mrb[54].mxu0  ;;  %v2056_v28 = vpop.f32.mrb[68].mxu1  ;;  %v6377_v26 = vld [vmem:[%s7533_s10 + $0x28] sm:$0xff]  }
0x11f0   :  { %v2063_v31 = vmul.f32 0.25, %v2056_v28  ;;  %v6203_v32 = vpop.f32.mrb[55].mxu0  ;;  %v6208_v33 = vpop.f32.mrb[69].mxu1  ;;  %v2064_v9 = vsel %vm506_vm3, %v2062_v25, -inf  ;;  %v6378_v27 = vld [vmem:[%s7533_s10 + $0x30] sm:$0xff]   ;;  %v6379_v28 = vld [vmem:[%s7533_s10 + $0x38] sm:$0xff]  }
0x11f1   :  { %2065 = vmax.xlane.f32.xlu0 %v2064_v9  ;;  %v2059_v13 = vpop.f32.mrb[70].mxu1 }
0x11f2   :  { %v6209_v36 = vpop.f32.mrb[71].mxu1  ;;  %v2067_v19 = vsel %vm506_vm3, %v2063_v31, -inf }
0x11f3   :  { %2068 = vmax.xlane.f32.xlu1 %v2067_v19 }
0x1204   :  { %2136 = vrot.lane.b32.xlu1 %v6980_v52, %s6657_s0 }
0x1208   :  { %6298 = vrot.lane.b32.xlu1 %v6297_v6, %s6657_s0 }
0x120c   :  { %6303 = vrot.lane.b32.xlu1 %v6302_v12, %s6656_s4 }
0x1210   :  { %6313 = vrot.lane.b32.xlu1 %v6312_v35, %s6646_s25 }
0x1214   :  { %6323 = vrot.lane.b32.xlu1 %v6322_v10, %s6653_s27 }
0x127e   :  { %v2066_v37 = vpop.xlane.xlu0 %2065 }
0x127f   :  { %v2070_v38 = vsub.f32 %v2062_v25, %v2066_v37  ;;  %v6376_v25 = vld [vmem:[%s7533_s10 + $0x20] sm:$0xff]  }
0x1280   :  { %v2069_v52 = vpop.xlane.xlu1 %2068 }
0x1281   :  { %v2072_v39 = vmul.f32 1.442695, %v2070_v38  ;;  %v2071_v40 = vsub.f32 %v2063_v31, %v2069_v52  ;;  %v2415_v31 = vld [vmem:[%s7562_s18] sm:$0x3] }
0x1282   :  { %v2416_v32 = vpack.c.bf16 %v2415_v31, %v2415_v31 }
0x1283   :  { %6576 = vpow2.f32 %v2072_v39  ;;  %v2074_v0 = vmul.f32 1.442695, %v2071_v40 }
0x1284   :  { %v2137_v5 = vpop.permute.xlu1 %2136 }
0x1285   :  { %6578 = vpow2.f32 %v2074_v0  ;;  %v2142_v6 = vsel %vm534_vm2, %v2137_v5, 0 }
0x1286   :  { %6217 = vmatpush3.bf16.msra.mxu1 %v2142_v6 }
0x1287   :  { %6242 = vmatprep.subr.bf16.mxu1 %v6649_v4 }
0x1288   :  { %v6299_v33 = vpop.permute.xlu1 %6298 }
0x1289   :  { %v6301_v36 = vunpack.i.h.bf16 %v6299_v33  ;;  %v6300_v19 = vunpack.i.l.bf16 %v6299_v33 }
0x128b   :  { %v2241_v5 = vsel %vm411_vm1, %v7002_v16, %v6301_v36  ;;  %v2240_v6 = vsel %vm411_vm1, %v6999_v7, %v6300_v19 }
0x128c   :  { %v6304_v9 = vpop.permute.xlu1 %6303 }
0x128d   :  { %v6577_v2 = vpop.eup %6576  ;;  %v6306_v37 = vunpack.i.h.bf16 %v6304_v9  ;;  %v6305_v38 = vunpack.i.l.bf16 %v6304_v9 }
0x128e   :  { %v2076_v11 = vsel %vm506_vm3, %v6577_v2, 0.0 }
0x128f   :  { %v6579_v12 = vpop.eup %6578  ;;  %2077 = vadd.xlane.f32.xlu0 %v2076_v11  ;;  %v2244_v11 = vsel %vm2242_vm4, %v2241_v5, %v6306_v37 }
0x1290   :  { %v2079_v29 = vsel %vm506_vm3, %v6579_v12, 0.0  ;;  %v6314_v52 = vpop.permute.xlu1 %6313 }
0x1293   :  { %2080 = vadd.xlane.f32.xlu0 %v2079_v29 }
0x12a9   :  { %2088 = vrot.lane.b32.xlu0 %v6953_v18, %s6657_s0 }
0x12ad   :  { %6308 = vrot.lane.b32.xlu0 %v6307_v24, %s6655_s30 }
0x12b1   :  { %6318 = vrot.lane.b32.xlu0 %v6317_v48, %s6654_s29  ;;  %v6366_v48 = vld [vmem:[%s7561_s23 + $0x10] sm:$0xff]  }
0x131c   :  { %v2078_v34 = vpop.xlane.xlu0 %2077 }
0x131d   :  { %6580 = vrcp.f32 %v2078_v34 }
0x1320   :  { %v2081_v35 = vpop.xlane.xlu0 %2080 }
0x1321   :  { %6582 = vrcp.f32 %v2081_v35 }
0x1324   :  { %v2089_v41 = vpop.permute.xlu0 %2088 }
0x1325   :  { %v2094_v42 = vsel %vm534_vm2, %v2089_v41, 0  ;;  %v6316_v41 = vunpack.i.h.bf16 %v6314_v52 }
0x1326   :  { %6211 = vmatpush3.bf16.msra.mxu0 %v2094_v42  ;;  %v6315_v42 = vunpack.i.l.bf16 %v6314_v52 }
0x1327   :  { %v6581_v44 = vpop.eup %6580  ;;  %6222 = vmatprep.subr.bf16.mxu0 %v6649_v4 }
0x1328   :  { %v2083_v18 = vmul.f32 %v6581_v44, %v6577_v2  ;;  %v6309_v13 = vpop.permute.xlu0 %6308  ;;  %v2243_v2 = vsel %vm2242_vm4, %v2240_v6, %v6305_v38  ;;  %v6324_v44 = vpop.permute.xlu1 %6323 }
0x1329   :  { %v6311_v39 = vunpack.i.h.bf16 %v6309_v13  ;;  %v6310_v40 = vunpack.i.l.bf16 %v6309_v13  ;;  %v6326_v16 = vunpack.i.h.bf16 %v6324_v44 }
0x132a   :  { %v2086_v45 = vpack.c.bf16 %v2083_v18, %v2083_v18 }
0x132b   :  { %v6583_v17 = vpop.eup %6582  ;;  %v2247_v29 = vsel %vm2245_vm5, %v2244_v11, %v6311_v39 }
0x132c   :  { %v2085_v23 = vmul.f32 %v6583_v17, %v6579_v12  ;;  %6213 = vmatmul.mubr.msk.bf16.vlgmr.msra.gmra.mrb[56].mxu0 %vm506_vm3, %v2086_v45  ;;  %v6319_v0 = vpop.permute.xlu0 %6318  ;;  %v2246_v12 = vsel %vm2245_vm5, %v2243_v2, %v6310_v40  ;;  %v2250_v45 = vsel %vm2248_vm6, %v2247_v29, %v6316_v41  ;;  %v5455_v41 = vld [vmem:[%s7536_s13] ss:$0 sm:$0xff] }
0x132d   :  { %6238 = vmatprep.mubr.msk.bf16.mxu0 %vm6651_vm0, %v6649_v4  ;;  %6223 = vmatpush3.bf16.msra.mxu0 %v6364_v43  ;;  %v6321_v34 = vunpack.i.h.bf16 %v6319_v0  ;;  %v6320_v35 = vunpack.i.l.bf16 %v6319_v0  ;;  %v2249_v18 = vsel %vm2248_vm6, %v2246_v12, %v6315_v42  ;;  %v6658_v12 = vmov 1966171168  }
0x132e   :  { %v2087_v24 = vpack.c.bf16 %v2085_v23, %v2085_v23  ;;  %6224 = vmatprep.subr.bf16.mxu0 %v6649_v4 }
0x132f   :  { %v2252_v17 = vsel %vm2251_vm7, %v2249_v18, %v6320_v35  ;;  %v2253_v23 = vsel %vm2251_vm7, %v2250_v45, %v6321_v34 }
0x1330   :  { %6219 = vmatmul.mubr.msk.bf16.vlgmr.msra.gmra.mrb[72].mxu1 %vm506_vm3, %v2087_v24  ;;  %v6325_v24 = vunpack.i.l.bf16 %v6324_v44 }
0x1331   :  { %6258 = vmatprep.mubr.msk.bf16.mxu1 %vm6651_vm0, %v6649_v4  ;;  %6225 = vmatpush3.bf16.msra.mxu0 %v6365_v47 }
0x1332   :  { %6226 = vmatprep.subr.bf16.mxu0 %v6649_v4  ;;  %6243 = vmatpush3.bf16.msra.mxu1 %v6372_v58  ;;  %v6381_v58 = vld [vmem:[%s7535_s12 + $0x8] sm:$0xff]  }
0x1333   :  { %6244 = vmatprep.subr.bf16.mxu1 %v6649_v4 }
0x1335   :  { %6227 = vmatpush3.bf16.msra.mxu0 %v6366_v48  ;;  %v2255_v48 = vsel %vm2254_vm8, %v2252_v17, %v6325_v24 }
0x1336   :  { %6228 = vmatprep.subr.bf16.mxu0 %v6649_v4  ;;  %6245 = vmatpush3.bf16.msra.mxu1 %v6373_v62  ;;  %v6384_v62 = vld [vmem:[%s7535_s12 + $0x20] sm:$0xff]  }
0x1337   :  { %6246 = vmatprep.subr.bf16.mxu1 %v6649_v4 }
0x1339   :  { %6229 = vmatpush3.bf16.msra.mxu0 %v6367_v46  ;;  %v2256_v46 = vsel %vm2254_vm8, %v2253_v23, %v6326_v16 }
0x133a   :  { %6230 = vmatprep.subr.bf16.mxu0 %v6649_v4  ;;  %6247 = vmatpush3.bf16.msra.mxu1 %v6374_v15 }
0x133b   :  { %6248 = vmatprep.subr.bf16.mxu1 %v6649_v4 }
0x133d   :  { %6231 = vmatpush3.bf16.msra.mxu0 %v6368_v49 }
0x133e   :  { %6232 = vmatprep.subr.bf16.mxu0 %v6649_v4  ;;  %6249 = vmatpush3.bf16.msra.mxu1 %v6375_v22 }
0x133f   :  { %6250 = vmatprep.subr.bf16.mxu1 %v6649_v4 }
0x1341   :  { %6233 = vmatpush3.bf16.msra.mxu0 %v6369_v53 }
0x1342   :  { %6234 = vmatprep.subr.bf16.mxu0 %v6649_v4  ;;  %6251 = vmatpush3.bf16.msra.mxu1 %v6376_v25 }
0x1343   :  { %6252 = vmatprep.subr.bf16.mxu1 %v6649_v4 }
0x1345   :  { %6235 = vmatpush3.bf16.msra.mxu0 %v6370_v14 }
0x1346   :  { %6236 = vmatprep.subr.bf16.mxu0 %v6649_v4  ;;  %6253 = vmatpush3.bf16.msra.mxu1 %v6377_v26  ;;  %v5435_v26 = vld [vmem:[%s7530_s7] ss:$0 sm:$0xff] }
0x1347   :  { %6254 = vmatprep.subr.bf16.mxu1 %v6649_v4 }
0x1349   :  { %6237 = vmatpush3.bf16.msra.mxu0 %v6371_v56  ;;  %v6380_v56 = vld [vmem:[%s7535_s12] sm:$0xff]  }
0x134a   :  { %6262 = vmatprep.subr.bf16.mxu0 %v6649_v4  ;;  %6255 = vmatpush3.bf16.msra.mxu1 %v6378_v27 }
0x134b   :  { %6256 = vmatprep.subr.bf16.mxu1 %v6649_v4 }
0x134e   :  { %6257 = vmatpush3.bf16.msra.mxu1 %v6379_v28 }
0x1351   :  { %6259 = vmatmul.mubr.bf16.vlgmr.msra.gmra.mrb[76].mxu1 %v2416_v32 }
0x1352   :  { %3600 = vmatprep.mubr.bf16.mxu1 %v6650_v30 }
0x13ff   :  { %v2130_v60 = vpop.f32.mrb[56].mxu0 }
0x1400   :  { %v6214_v61 = vpop.f32.mrb[57].mxu0 }
0x1401   :  { %v2133_v63 = vpop.f32.mrb[58].mxu0  ;;  %v6383_v61 = vld [vmem:[%s7535_s12 + $0x18] sm:$0xff]  }
0x1402   :  { %v6215_v1 = vpop.f32.mrb[59].mxu0  ;;  %v6385_v63 = vld [vmem:[%s7535_s12 + $0x28] sm:$0xff]  }
0x1403   :  { %v2178_v3 = vpop.f32.mrb[72].mxu1  ;;  %v6386_v1 = vld [vmem:[%s7535_s12 + $0x30] sm:$0xff]  }
0x1404   :  { %v6327_v8 = vpack.i.bf16 %v2178_v3, %v2130_v60  ;;  %v6220_v10 = vpop.f32.mrb[73].mxu1  ;;  %v6382_v60 = vld [vmem:[%s7535_s12 + $0x10] sm:$0xff]   ;;  %v5446_v3 = vld [vmem:[%s7534_s11] ss:$0 sm:$0xff] }
0x1405   :  { %v2181_v20 = vpop.f32.mrb[74].mxu1  ;;  %v6387_v10 = vld [vmem:[%s7535_s12 + $0x38] sm:$0xff]  }
0x1406   :  { %6328 = vrot.lane.b32.xlu0 %v6327_v8, %s6652_s2  ;;  %v6221_v21 = vpop.f32.mrb[75].mxu1 }
0x1424   :  { %v2522_v8 = vpop.f32.mrb[76].mxu1 }
0x1425   :  { %v2523_v15 = vadd.f32 %v5446_v3, %v2522_v8  ;;  %v6260_v20 = vpop.f32.mrb[77].mxu1  ;;  %v2716_v3 = vld [vmem:[#allocation2] sm:$0xff] }
0x1426   :  { %v2525_v21 = vpop.f32.mrb[78].mxu1  ;;  %v2724_v8 = vld [vmem:[#allocation2 + $0x40] sm:$0xff] }
0x1427   :  { %v2528_v22 = vpack.c.bf16 %v2523_v15, %v2523_v15  ;;  %v6261_v25 = vpop.f32.mrb[79].mxu1  ;;  %v5466_v15 = vcombine.low %v2716_v3, %v2724_v8  ;;  %v5467_v20 = vcombine.high %v2716_v3, %v2724_v8  ;;  %v2725_v21 = vld [vmem:[#allocation2 + $0x48] sm:$0xff] }
0x1428   :  { %v2740_v25 = vld [vmem:[#allocation2 + $0xc0] sm:$0xff]  ;;  %v2821_v8 = vld [vmem:[#allocation2 + $0x348] sm:$0xff] }
0x1429   :  { %3568 = vmatprep.subr.bf16.mxu1 %v5467_v20 }
0x142a   :  { %3569 = vmatpush1.bf16.msra.mxu1 %v5466_v15 }
0x1478   :  { %v6329_v7 = vpop.permute.xlu0 %6328 }
0x1479   :  { %v6331_v43 = vunpack.i.h.bf16 %v6329_v7  ;;  %v6330_v47 = vunpack.i.l.bf16 %v6329_v7 }
0x147b   :  { %v2259_v49 = vsel %vm2257_vm9, %v2256_v46, %v6331_v43  ;;  %v2258_v53 = vsel %vm2257_vm9, %v2255_v48, %v6330_v47  ;;  %v5444_v43 = vld [vmem:[%s7531_s8] ss:$0 sm:$0xff] }
0x147c   :  { %v2260_v14 = vpack.c.bf16 %v2259_v49, %v2258_v53  ;;  %v5445_v48 = vld [vmem:[%s7532_s9] ss:$0 sm:$0xff] }
0x147e   :  { %6239 = vmatmul.mubr.bf16.vlgmr.msra.gmra.mrb[60].mxu0 %v2260_v14 }
0x147f   :  { %6278 = vmatprep.mubr.msk.bf16.mxu0 %vm6651_vm0, %v6649_v4  ;;  %6263 = vmatpush3.bf16.msra.mxu0 %v6380_v56 }
0x1480   :  { %6264 = vmatprep.subr.bf16.mxu0 %v6649_v4 }
0x1483   :  { %6265 = vmatpush3.bf16.msra.mxu0 %v6381_v58 }
0x1484   :  { %6266 = vmatprep.subr.bf16.mxu0 %v6649_v4 }
0x1487   :  { %6267 = vmatpush3.bf16.msra.mxu0 %v6382_v60 }
0x1488   :  { %6268 = vmatprep.subr.bf16.mxu0 %v6649_v4 }
0x148b   :  { %6269 = vmatpush3.bf16.msra.mxu0 %v6383_v61 }
0x148c   :  { %6270 = vmatprep.subr.bf16.mxu0 %v6649_v4 }
0x148f   :  { %6271 = vmatpush3.bf16.msra.mxu0 %v6384_v62 }
0x1490   :  { %6272 = vmatprep.subr.bf16.mxu0 %v6649_v4 }
0x1493   :  { %6273 = vmatpush3.bf16.msra.mxu0 %v6385_v63 }
0x1494   :  { %6274 = vmatprep.subr.bf16.mxu0 %v6649_v4 }
0x1497   :  { %6275 = vmatpush3.bf16.msra.mxu0 %v6386_v1 }
0x1498   :  { %6276 = vmatprep.subr.bf16.mxu0 %v6649_v4 }
0x149b   :  { %6277 = vmatpush3.bf16.msra.mxu0 %v6387_v10  ;;  %v2717_v10 = vld [vmem:[#allocation2 + $0x8] sm:$0xff] }
0x149e   :  { %6279 = vmatmul.mubr.bf16.vlgmr.msra.gmra.mrb[64].mxu0 %v2528_v22  ;;  %v2732_v22 = vld [vmem:[#allocation2 + $0x80] sm:$0xff] }
0x149f   :  { %3643 = vmatprep.mubr.bf16.mxu0 %v6650_v30 }
0x1551   :  { %v2366_v27 = vpop.f32.mrb[60].mxu0 }
0x1552   :  { %v2367_v28 = vadd.f32 %v5435_v26, %v2366_v27  ;;  %v6240_v31 = vpop.f32.mrb[61].mxu0  ;;  %v5469_v27 = vcombine.high %v2717_v10, %v2725_v21 }
0x1553   :  { %v2369_v32 = vpop.f32.mrb[62].mxu0  ;;  %v2733_v31 = vld [vmem:[#allocation2 + $0x88] sm:$0xff] }
0x1554   :  { %v2370_v33 = vadd.f32 %v5435_v26, %v2369_v32  ;;  %v6241_v9 = vpop.f32.mrb[63].mxu0  ;;  %v2373_v13 = vadd.f32 %v2367_v28, %v6908_v50  ;;  %v2642_v50 = vunpack.c.l.s4 %v6658_v12  ;;  %v5468_v26 = vcombine.low %v2717_v10, %v2725_v21  ;;  %v2741_v32 = vld [vmem:[#allocation2 + $0xc8] sm:$0xff]  ;;  %3611 = vmatprep.subr.bf16.mxu0 %v5469_v27  ;;  %v2828_v21 = vld [vmem:[#allocation2 + $0x380] sm:$0xff] }
0x1555   :  { %v5483_v28 = vcombine.high %v2732_v22, %v2740_v25  ;;  %v5482_v9 = vcombine.low %v2732_v22, %v2740_v25  ;;  %v2836_v22 = vld [vmem:[#allocation2 + $0x3c0] sm:$0xff]  ;;  %v2829_v25 = vld [vmem:[#allocation2 + $0x388] sm:$0xff] }
0x1556   :  { %2377 = vadd.xlane.f32.xlu1 %v2373_v13  ;;  %v2374_v4 = vadd.f32 %v2370_v33, %v6910_v51  ;;  %v2643_v51 = vunpack.c.0.s8 %v2642_v50  ;;  %v5485_v33 = vcombine.high %v2733_v31, %v2741_v32  ;;  %3612 = vmatpush1.bf16.msra.mxu0 %v5468_v26  ;;  %v5579_v26 = vcombine.high %v2828_v21, %v2836_v22  ;;  %v2837_v27 = vld [vmem:[#allocation2 + $0x3c8] sm:$0xff] }
0x1557   :  { %3570 = vmatprep.subr.bf16.mxu1 %v5483_v28  ;;  %v5578_v28 = vcombine.low %v2828_v21, %v2836_v22 }
0x1558   :  { %2379 = vadd.xlane.f32.xlu0 %v2374_v4  ;;  %v2646_v45 = vsub.s32 %v2643_v51, %v6918_v54  ;;  %3613 = vmatprep.subr.bf16.mxu0 %v5485_v33  ;;  %v2772_v51 = vld [vmem:[#allocation2 + $0x1c0] sm:$0xff]  ;;  %v2718_v33 = vld [vmem:[#allocation2 + $0x10] sm:$0xff] }
0x1559   :  { %3571 = vmatpush1.bf16.msra.mxu1 %v5482_v9  ;;  %v2726_v9 = vld [vmem:[#allocation2 + $0x50] sm:$0xff] }
0x1571   :  { %v2634_v5 = vpop.f32.mrb[64].mxu0 }
0x1572   :  { %v6280_v6 = vpop.f32.mrb[65].mxu0  ;;  %v2635_v18 = vadd.f32 %v5455_v41, %v2634_v5  ;;  %v2756_v5 = vld [vmem:[#allocation2 + $0x140] sm:$0xff] }
0x1573   :  { %v2637_v2 = vpop.f32.mrb[66].mxu0  ;;  %v2749_v6 = vld [vmem:[#allocation2 + $0x108] sm:$0xff] }
0x1574   :  { %v6281_v11 = vpop.f32.mrb[67].mxu0  ;;  %v2647_v23 = vrot.slane %v2635_v18, %v2646_v45 }
0x1575   :  { %v2757_v11 = vld [vmem:[#allocation2 + $0x148] sm:$0xff] }
0x1576   :  { %v2648_v16 = vcombine.high %v2647_v23, %v2647_v23  ;;  %v2655_v24 = vrot.slane %v2647_v23, %v2646_v45  ;;  %v5500_v50 = vcombine.low %v2749_v6, %v2757_v11  ;;  %v2788_v23 = vld [vmem:[#allocation2 + $0x240] sm:$0xff] }
0x1578   :  { %v2666_v49 = vrot.slane %v2655_v24, %v6931_v59  ;;  %v2662_v53 = vrot.slane %v2648_v16, %v2646_v45  ;;  %v2781_v16 = vld [vmem:[#allocation2 + $0x208] sm:$0xff] }
0x157a   :  { %v2670_v62 = vrot.slane %v2662_v53, %v6931_v59  ;;  %v2797_v53 = vld [vmem:[#allocation2 + $0x288] sm:$0xff] }
0x15e3   :  { %v2378_v36 = vpop.xlane.xlu1 %2377 }
0x15e4   :  { %v2381_v19 = vmul.f32 0.0078125, %v2378_v36 }
0x15e5   :  { %v2380_v37 = vpop.xlane.xlu0 %2379 }
0x15e6   :  { %v2383_v38 = vsub.f32 %v2373_v13, %v2381_v19  ;;  %v2382_v52 = vmul.f32 0.0078125, %v2380_v37  ;;  %v5484_v13 = vcombine.low %v2733_v31, %v2741_v32  ;;  %v5580_v31 = vcombine.low %v2829_v25, %v2837_v27 }
0x15e7   :  { %v5581_v32 = vcombine.high %v2829_v25, %v2837_v27  ;;  %v2798_v27 = vld [vmem:[#allocation2 + $0x290] sm:$0xff] }
0x15e8   :  { %v2384_v39 = vsub.f32 %v2374_v4, %v2382_v52  ;;  %v2385_v40 = vmul.f32 %v2383_v38, %v2383_v38  ;;  %3614 = vmatpush1.bf16.msra.mxu0 %v5484_v13  ;;  %v2719_v13 = vld [vmem:[#allocation2 + $0x18] sm:$0xff] }
0x15ea   :  { %2387 = vadd.xlane.f32.xlu0 %v2385_v40  ;;  %v2386_v0 = vmul.f32 %v2384_v39, %v2384_v39 }
0x15ee   :  { %2389 = vadd.xlane.f32.xlu0 %v2386_v0  ;;  %v2748_v0 = vld [vmem:[#allocation2 + $0x100] sm:$0xff] }
0x15ef   :  { %v5499_v2 = vcombine.high %v2748_v0, %v2756_v5  ;;  %v5498_v12 = vcombine.low %v2748_v0, %v2756_v5 }
0x15f1   :  { %3572 = vmatprep.subr.bf16.mxu1 %v5499_v2 }
0x15f2   :  { %3573 = vmatpush1.bf16.msra.mxu1 %v5498_v12 }
0x1677   :  { %v2388_v29 = vpop.xlane.xlu0 %2387 }
0x1678   :  { %v2391_v34 = vmul.f32 0.0078125, %v2388_v29  ;;  %v5501_v29 = vcombine.high %v2749_v6, %v2757_v11 }
0x167a   :  { %v2393_v35 = vadd.f32 1e-05, %v2391_v34  ;;  %3615 = vmatprep.subr.bf16.mxu0 %v5501_v29  ;;  %v2764_v34 = vld [vmem:[#allocation2 + $0x180] sm:$0xff] }
0x167b   :  { %v2390_v42 = vpop.xlane.xlu0 %2389  ;;  %3616 = vmatpush1.bf16.msra.mxu0 %v5500_v50  ;;  %v5515_v41 = vcombine.high %v2764_v34, %v2772_v51  ;;  %v5464_v29 = vld [vmem:[%s7537_s14] ss:$0 sm:$0xff] }
0x167c   :  { %6584 = vrsqrt.f32 %v2393_v35  ;;  %v2392_v44 = vmul.f32 0.0078125, %v2390_v42  ;;  %v2765_v35 = vld [vmem:[#allocation2 + $0x188] sm:$0xff] }
0x167d   :  { %v2773_v42 = vld [vmem:[#allocation2 + $0x1c8] sm:$0xff]  ;;  %3574 = vmatprep.subr.bf16.mxu1 %v5515_v41  ;;  %v5465_v41 = vld [vmem:[%s7538_s15] ss:$0 sm:$0xff] }
0x167e   :  { %v2394_v17 = vadd.f32 1e-05, %v2392_v44  ;;  %v5514_v44 = vcombine.low %v2764_v34, %v2772_v51  ;;  %v5516_v18 = vcombine.low %v2765_v35, %v2773_v42  ;;  %v5517_v45 = vcombine.high %v2765_v35, %v2773_v42 }
0x1680   :  { %6586 = vrsqrt.f32 %v2394_v17  ;;  %3617 = vmatprep.subr.bf16.mxu0 %v5517_v45  ;;  %3575 = vmatpush1.bf16.msra.mxu1 %v5514_v44  ;;  %v2780_v17 = vld [vmem:[#allocation2 + $0x200] sm:$0xff]  ;;  %v2734_v44 = vld [vmem:[#allocation2 + $0x90] sm:$0xff]  ;;  %v2735_v45 = vld [vmem:[#allocation2 + $0x98] sm:$0xff] }
0x1681   :  { %3618 = vmatpush1.bf16.msra.mxu0 %v5516_v18  ;;  %v5531_v24 = vcombine.high %v2780_v17, %v2788_v23  ;;  %v2742_v18 = vld [vmem:[#allocation2 + $0xd0] sm:$0xff] }
0x1683   :  { %3576 = vmatprep.subr.bf16.mxu1 %v5531_v24  ;;  %v5487_v24 = vcombine.high %v2734_v44, %v2742_v18 }
0x1686   :  { %v6585_v7 = vpop.eup %6584 }
0x1687   :  { %v2397_v47 = vmul.f32 %v6585_v7, %v2383_v38  ;;  %v2789_v7 = vld [vmem:[#allocation2 + $0x248] sm:$0xff] }
0x1689   :  { %v2405_v46 = vmul.f32 %v5444_v43, %v2397_v47  ;;  %v5532_v47 = vcombine.low %v2781_v16, %v2789_v7 }
0x168a   :  { %v6587_v14 = vpop.eup %6586 }
0x168b   :  { %v2413_v56 = vadd.f32 %v5445_v48, %v2405_v46  ;;  %v2398_v58 = vmul.f32 %v6587_v14, %v2384_v39  ;;  %v2796_v46 = vld [vmem:[#allocation2 + $0x280] sm:$0xff] }
0x168d   :  { %v2673_v60 = vadd.f32 %v2666_v49, %v2413_v56  ;;  %v2406_v61 = vmul.f32 %v5444_v43, %v2398_v58  ;;  %v5530_v43 = vcombine.low %v2780_v17, %v2788_v23  ;;  %v2804_v49 = vld [vmem:[#allocation2 + $0x2c0] sm:$0xff]  ;;  %v2805_v56 = vld [vmem:[#allocation2 + $0x2c8] sm:$0xff]  ;;  %v2743_v17 = vld [vmem:[#allocation2 + $0xd8] sm:$0xff] }
0x168e   :  { %v5547_v14 = vcombine.high %v2796_v46, %v2804_v49  ;;  %v5546_v58 = vcombine.low %v2796_v46, %v2804_v49  ;;  %v5486_v46 = vcombine.low %v2734_v44, %v2742_v18  ;;  %v5488_v49 = vcombine.low %v2735_v45, %v2743_v17  ;;  %v2721_v44 = vld [vmem:[#allocation2 + $0x28] sm:$0xff] }
0x168f   :  { %2677 = vadd.xlane.f32.xlu1 %v2673_v60  ;;  %v2414_v63 = vadd.f32 %v5445_v48, %v2406_v61  ;;  %v5533_v48 = vcombine.high %v2781_v16, %v2789_v7  ;;  %3577 = vmatpush1.bf16.msra.mxu1 %v5530_v43  ;;  %v5549_v61 = vcombine.high %v2797_v53, %v2805_v56  ;;  %v2758_v43 = vld [vmem:[#allocation2 + $0x150] sm:$0xff]  ;;  %v2729_v18 = vld [vmem:[#allocation2 + $0x68] sm:$0xff] }
0x1690   :  { %3578 = vmatprep.subr.bf16.mxu1 %v5547_v14  ;;  %v5489_v7 = vcombine.high %v2735_v45, %v2743_v17 }
0x1691   :  { %v2674_v1 = vadd.f32 %v2670_v62, %v2414_v63  ;;  %3619 = vmatprep.subr.bf16.mxu0 %v5533_v48  ;;  %v2812_v62 = vld [vmem:[#allocation2 + $0x300] sm:$0xff]  ;;  %v2759_v48 = vld [vmem:[#allocation2 + $0x158] sm:$0xff] }
0x1692   :  { %3620 = vmatpush1.bf16.msra.mxu0 %v5532_v47  ;;  %v2820_v63 = vld [vmem:[#allocation2 + $0x340] sm:$0xff]  ;;  %v2751_v47 = vld [vmem:[#allocation2 + $0x118] sm:$0xff] }
0x1693   :  { %2679 = vadd.xlane.f32.xlu0 %v2674_v1  ;;  %3621 = vmatprep.subr.bf16.mxu0 %v5549_v61  ;;  %v5563_v3 = vcombine.high %v2812_v62, %v2820_v63  ;;  %v5562_v10 = vcombine.low %v2812_v62, %v2820_v63  ;;  %v5505_v14 = vcombine.high %v2751_v47, %v2759_v48  ;;  %v2775_v61 = vld [vmem:[#allocation2 + $0x1d8] sm:$0xff] }
0x1694   :  { %3579 = vmatpush1.bf16.msra.mxu1 %v5546_v58  ;;  %v2774_v58 = vld [vmem:[#allocation2 + $0x1d0] sm:$0xff]  ;;  %v5504_v63 = vcombine.low %v2751_v47, %v2759_v48  ;;  %v2737_v47 = vld [vmem:[#allocation2 + $0xa8] sm:$0xff] }
0x1695   :  { %3580 = vmatprep.subr.bf16.mxu1 %v5563_v3  ;;  %v2745_v48 = vld [vmem:[#allocation2 + $0xe8] sm:$0xff] }
0x1698   :  { %3581 = vmatpush1.bf16.msra.mxu1 %v5562_v10  ;;  %v2790_v10 = vld [vmem:[#allocation2 + $0x250] sm:$0xff] }
0x1699   :  { %3582 = vmatprep.subr.bf16.mxu1 %v5579_v26 }
0x169c   :  { %3583 = vmatpush1.bf16.msra.mxu1 %v5578_v28  ;;  %v2806_v28 = vld [vmem:[#allocation2 + $0x2d0] sm:$0xff] }
0x171c   :  { %v2678_v4 = vpop.xlane.xlu1 %2677 }
0x171d   :  { %v2681_v36 = vmul.f32 0.0078125, %v2678_v4  ;;  %v5470_v4 = vcombine.low %v2718_v33, %v2726_v9 }
0x171f   :  { %v7414_v19 = vsub.f32 %v2673_v60, %v2681_v36  ;;  %v5548_v60 = vcombine.low %v2797_v53, %v2805_v56  ;;  %v5471_v36 = vcombine.high %v2718_v33, %v2726_v9  ;;  %v2766_v56 = vld [vmem:[#allocation2 + $0x190] sm:$0xff] }
0x1720   :  { %v2680_v37 = vpop.xlane.xlu0 %2679  ;;  %v5518_v21 = vcombine.low %v2766_v56, %v2774_v58 }
0x1721   :  { %v2682_v38 = vmul.f32 0.0078125, %v2680_v37  ;;  %v2685_v52 = vmul.f32 %v7414_v19, %v7414_v19  ;;  %3622 = vmatpush1.bf16.msra.mxu0 %v5548_v60  ;;  %v2727_v37 = vld [vmem:[#allocation2 + $0x58] sm:$0xff]  ;;  %3654 = vmatprep.subr.bf16.mxu1 %v5471_v36  ;;  %v2814_v36 = vld [vmem:[#allocation2 + $0x310] sm:$0xff] }
0x1722   :  { %v2767_v60 = vld [vmem:[#allocation2 + $0x198] sm:$0xff] }
0x1723   :  { %v7418_v39 = vsub.f32 %v2674_v1, %v2682_v38  ;;  %2687 = vadd.xlane.f32.xlu1 %v2685_v52  ;;  %v2813_v1 = vld [vmem:[#allocation2 + $0x308] sm:$0xff]  ;;  %v5472_v38 = vcombine.low %v2719_v13, %v2727_v37  ;;  %v5473_v52 = vcombine.high %v2719_v13, %v2727_v37  ;;  %v5521_v3 = vcombine.high %v2767_v60, %v2775_v61  ;;  %v2822_v37 = vld [vmem:[#allocation2 + $0x350] sm:$0xff] }
0x1724   :  { %v5564_v15 = vcombine.low %v2813_v1, %v2821_v8  ;;  %v5565_v20 = vcombine.high %v2813_v1, %v2821_v8  ;;  %v5519_v1 = vcombine.high %v2766_v56, %v2774_v58  ;;  %v2782_v8 = vld [vmem:[#allocation2 + $0x210] sm:$0xff]  ;;  %v5520_v22 = vcombine.low %v2767_v60, %v2775_v61  ;;  %v2752_v56 = vld [vmem:[#allocation2 + $0x120] sm:$0xff]  ;;  %v2753_v60 = vld [vmem:[#allocation2 + $0x128] sm:$0xff] }
0x1725   :  { %v2686_v40 = vmul.f32 %v7418_v39, %v7418_v39  ;;  %v5535_v25 = vcombine.high %v2782_v8, %v2790_v10  ;;  %v5534_v33 = vcombine.low %v2782_v8, %v2790_v10  ;;  %v5551_v13 = vcombine.high %v2798_v27, %v2806_v28  ;;  %v2760_v58 = vld [vmem:[#allocation2 + $0x160] sm:$0xff]  ;;  %v2761_v61 = vld [vmem:[#allocation2 + $0x168] sm:$0xff] }
0x1726   :  { %3623 = vmatprep.subr.bf16.mxu0 %v5565_v20  ;;  %v2791_v20 = vld [vmem:[#allocation2 + $0x258] sm:$0xff]  ;;  %v2768_v8 = vld [vmem:[#allocation2 + $0x1a0] sm:$0xff] }
0x1727   :  { %2689 = vadd.xlane.f32.xlu0 %v2686_v40  ;;  %3624 = vmatpush1.bf16.msra.mxu0 %v5564_v15  ;;  %v2783_v15 = vld [vmem:[#allocation2 + $0x218] sm:$0xff]  ;;  %v2776_v10 = vld [vmem:[#allocation2 + $0x1e0] sm:$0xff] }
0x1728   :  { %3625 = vmatprep.subr.bf16.mxu0 %v5581_v32  ;;  %v5537_v26 = vcombine.high %v2783_v15, %v2791_v20  ;;  %v2807_v32 = vld [vmem:[#allocation2 + $0x2d8] sm:$0xff]  ;;  %v5536_v9 = vcombine.low %v2783_v15, %v2791_v20  ;;  %v2769_v15 = vld [vmem:[#allocation2 + $0x1a8] sm:$0xff] }
0x1729   :  { %v2777_v20 = vld [vmem:[#allocation2 + $0x1e8] sm:$0xff] }
0x172b   :  { %3626 = vmatpush1.bf16.msra.mxu0 %v5580_v31  ;;  %v2799_v31 = vld [vmem:[#allocation2 + $0x298] sm:$0xff] }
0x172c   :  { %3697 = vmatprep.subr.bf16.mxu0 %v5473_v52  ;;  %v2823_v52 = vld [vmem:[#allocation2 + $0x358] sm:$0xff] }
0x17b0   :  { %v2688_v40 = vpop.xlane.xlu1 %2687 }
0x17b1   :  { %v2691_v0 = vmul.f32 0.0078125, %v2688_v40  ;;  %v5550_v40 = vcombine.low %v2798_v27, %v2806_v28  ;;  %v2784_v27 = vld [vmem:[#allocation2 + $0x220] sm:$0xff] }
0x17b2   :  { %v2792_v28 = vld [vmem:[#allocation2 + $0x260] sm:$0xff] }
0x17b3   :  { %v2693_v5 = vadd.f32 1e-05, %v2691_v0  ;;  %v5552_v0 = vcombine.low %v2799_v31, %v2807_v32 }
0x17b4   :  { %v2690_v6 = vpop.xlane.xlu0 %2689 }
0x17b5   :  { %6588 = vrsqrt.f32 %v2693_v5  ;;  %v2692_v2 = vmul.f32 0.0078125, %v2690_v6  ;;  %v5567_v5 = vcombine.high %v2814_v36, %v2822_v37 }
0x17b7   :  { %v2694_v11 = vadd.f32 1e-05, %v2692_v2  ;;  %v2830_v2 = vld [vmem:[#allocation2 + $0x390] sm:$0xff] }
0x17b9   :  { %6590 = vrsqrt.f32 %v2694_v11  ;;  %v2838_v11 = vld [vmem:[#allocation2 + $0x3d0] sm:$0xff] }
0x17ba   :  { %v5582_v45 = vcombine.low %v2830_v2, %v2838_v11 }
0x17bf   :  { %v6589_v12 = vpop.eup %6588 }
0x17c0   :  { %v2697_v50 = vmul.f32 %v6589_v12, %v7414_v19  ;;  %v2831_v12 = vld [vmem:[#allocation2 + $0x398] sm:$0xff] }
0x17c2   :  { %v2705_v51 = vmul.f32 %v5464_v29, %v2697_v50  ;;  %v2839_v50 = vld [vmem:[#allocation2 + $0x3d8] sm:$0xff] }
0x17c3   :  { %v6591_v34 = vpop.eup %6590  ;;  %v5584_v17 = vcombine.low %v2831_v12, %v2839_v50 }
0x17c4   :  { %v2698_v35 = vmul.f32 %v6591_v34, %v7418_v39  ;;  %v7430_v23 = vadd.f32 %v5465_v41, %v2705_v51  ;;  %v2750_v39 = vld [vmem:[#allocation2 + $0x110] sm:$0xff]  ;;  %v5583_v51 = vcombine.high %v2830_v2, %v2838_v11  ;;  %v2816_v2 = vld [vmem:[#allocation2 + $0x320] sm:$0xff] }
0x17c5   :  { %v5503_v53 = vcombine.high %v2750_v39, %v2758_v43  ;;  %v5502_v62 = vcombine.low %v2750_v39, %v2758_v43  ;;  %v2736_v39 = vld [vmem:[#allocation2 + $0xa0] sm:$0xff] }
0x17c6   :  { %v2706_v42 = vmul.f32 %v5464_v29, %v2698_v35  ;;  %v5566_v29 = vcombine.low %v2814_v36, %v2822_v37  ;;  %v5585_v35 = vcombine.high %v2831_v12, %v2839_v50  ;;  %v2744_v43 = vld [vmem:[#allocation2 + $0xe0] sm:$0xff]  ;;  %v2817_v12 = vld [vmem:[#allocation2 + $0x328] sm:$0xff] }
0x17c7   :  { %v2800_v36 = vld [vmem:[#allocation2 + $0x2a0] sm:$0xff]  ;;  %v2825_v50 = vld [vmem:[#allocation2 + $0x368] sm:$0xff] }
0x17c8   :  { %v7432_v19 = vadd.f32 %v5465_v41, %v2706_v42  ;;  %v2720_v41 = vld [vmem:[#allocation2 + $0x20] sm:$0xff] }
0x17c9   :  { %v2728_v42 = vld [vmem:[#allocation2 + $0x60] sm:$0xff] }
0x17ca   :  { %v7436_v16 = vpack.c.bf16 %v7432_v19, %v7430_v23  ;;  %v2808_v37 = vld [vmem:[#allocation2 + $0x2e0] sm:$0xff] }
0x17cb   :  { %v2824_v11 = vld [vmem:[#allocation2 + $0x360] sm:$0xff] }
0x17cc   :  { %3601 = vmatmul.mubr.bf16.vlgmr.msra.gmra.mrb[80].mxu1 %v7436_v16  ;;  %3644 = vmatmul.mubr.bf16.vlgmr.msra.gmra.mrb[68].mxu0 %v7436_v16 }
0x17cd   :  { %3655 = vmatpush1.bf16.msra.mxu1 %v5470_v4  ;;  %3698 = vmatpush1.bf16.msra.mxu0 %v5472_v38  ;;  %v5553_v4 = vcombine.high %v2799_v31, %v2807_v32  ;;  %v2815_v38 = vld [vmem:[#allocation2 + $0x318] sm:$0xff]  ;;  %v2785_v31 = vld [vmem:[#allocation2 + $0x228] sm:$0xff] }
0x17ce   :  { %3656 = vmatprep.subr.bf16.mxu1 %v5487_v24  ;;  %3699 = vmatprep.subr.bf16.mxu0 %v5489_v7  ;;  %v5569_v6 = vcombine.high %v2815_v38, %v2823_v52  ;;  %v5568_v34 = vcombine.low %v2815_v38, %v2823_v52  ;;  %v5475_v24 = vcombine.high %v2720_v41, %v2728_v42  ;;  %v2793_v32 = vld [vmem:[#allocation2 + $0x268] sm:$0xff] }
0x17cf   :  { %3686 = vmatprep.mubr.bf16.mxu1 %v6650_v30  ;;  %3729 = vmatprep.mubr.bf16.mxu0 %v6650_v30  ;;  %v5477_v7 = vcombine.high %v2721_v44, %v2729_v18  ;;  %v2801_v38 = vld [vmem:[#allocation2 + $0x2a8] sm:$0xff] }
0x17d0   :  { %v2809_v52 = vld [vmem:[#allocation2 + $0x2e8] sm:$0xff] }
0x17d1   :  { %3657 = vmatpush1.bf16.msra.mxu1 %v5486_v46  ;;  %3700 = vmatpush1.bf16.msra.mxu0 %v5488_v49  ;;  %v5474_v46 = vcombine.low %v2720_v41, %v2728_v42  ;;  %v5476_v49 = vcombine.low %v2721_v44, %v2729_v18  ;;  %v2832_v41 = vld [vmem:[#allocation2 + $0x3a0] sm:$0xff]  ;;  %v2833_v44 = vld [vmem:[#allocation2 + $0x3a8] sm:$0xff] }
0x17d2   :  { %3658 = vmatprep.subr.bf16.mxu1 %v5503_v53  ;;  %3701 = vmatprep.subr.bf16.mxu0 %v5505_v14  ;;  %v5491_v53 = vcombine.high %v2736_v39, %v2744_v43  ;;  %v5493_v14 = vcombine.high %v2737_v47, %v2745_v48  ;;  %v2840_v42 = vld [vmem:[#allocation2 + $0x3e0] sm:$0xff]  ;;  %v2841_v18 = vld [vmem:[#allocation2 + $0x3e8] sm:$0xff] }
0x17d5   :  { %3659 = vmatpush1.bf16.msra.mxu1 %v5502_v62  ;;  %3702 = vmatpush1.bf16.msra.mxu0 %v5504_v63  ;;  %v5490_v62 = vcombine.low %v2736_v39, %v2744_v43  ;;  %v5492_v63 = vcombine.low %v2737_v47, %v2745_v48  ;;  %v2722_v39 = vld [vmem:[#allocation2 + $0x30] sm:$0xff]  ;;  %v2723_v47 = vld [vmem:[#allocation2 + $0x38] sm:$0xff] }
0x17d6   :  { %3660 = vmatprep.subr.bf16.mxu1 %v5519_v1  ;;  %3703 = vmatprep.subr.bf16.mxu0 %v5521_v3  ;;  %v5507_v1 = vcombine.high %v2752_v56, %v2760_v58  ;;  %v5509_v3 = vcombine.high %v2753_v60, %v2761_v61  ;;  %v2730_v43 = vld [vmem:[#allocation2 + $0x70] sm:$0xff]  ;;  %v2731_v48 = vld [vmem:[#allocation2 + $0x78] sm:$0xff] }
0x17d9   :  { %3661 = vmatpush1.bf16.msra.mxu1 %v5518_v21  ;;  %3704 = vmatpush1.bf16.msra.mxu0 %v5520_v22  ;;  %v5506_v21 = vcombine.low %v2752_v56, %v2760_v58  ;;  %v5508_v22 = vcombine.low %v2753_v60, %v2761_v61  ;;  %v2738_v56 = vld [vmem:[#allocation2 + $0xb0] sm:$0xff]  ;;  %v2739_v60 = vld [vmem:[#allocation2 + $0xb8] sm:$0xff] }
0x17da   :  { %3662 = vmatprep.subr.bf16.mxu1 %v5535_v25  ;;  %3705 = vmatprep.subr.bf16.mxu0 %v5537_v26  ;;  %v5523_v25 = vcombine.high %v2768_v8, %v2776_v10  ;;  %v5525_v26 = vcombine.high %v2769_v15, %v2777_v20  ;;  %v2746_v58 = vld [vmem:[#allocation2 + $0xf0] sm:$0xff]  ;;  %v2747_v61 = vld [vmem:[#allocation2 + $0xf8] sm:$0xff] }
0x17dd   :  { %3663 = vmatpush1.bf16.msra.mxu1 %v5534_v33  ;;  %3706 = vmatpush1.bf16.msra.mxu0 %v5536_v9  ;;  %v5522_v33 = vcombine.low %v2768_v8, %v2776_v10  ;;  %v5524_v9 = vcombine.low %v2769_v15, %v2777_v20  ;;  %v2754_v8 = vld [vmem:[#allocation2 + $0x130] sm:$0xff]  ;;  %v2755_v15 = vld [vmem:[#allocation2 + $0x138] sm:$0xff] }
0x17de   :  { %3664 = vmatprep.subr.bf16.mxu1 %v5551_v13  ;;  %3707 = vmatprep.subr.bf16.mxu0 %v5553_v4  ;;  %v5539_v13 = vcombine.high %v2784_v27, %v2792_v28  ;;  %v5541_v4 = vcombine.high %v2785_v31, %v2793_v32  ;;  %v2762_v10 = vld [vmem:[#allocation2 + $0x170] sm:$0xff]  ;;  %v2763_v20 = vld [vmem:[#allocation2 + $0x178] sm:$0xff] }
0x17e1   :  { %3665 = vmatpush1.bf16.msra.mxu1 %v5550_v40  ;;  %3708 = vmatpush1.bf16.msra.mxu0 %v5552_v0  ;;  %v5538_v40 = vcombine.low %v2784_v27, %v2792_v28  ;;  %v5540_v0 = vcombine.low %v2785_v31, %v2793_v32  ;;  %v2770_v27 = vld [vmem:[#allocation2 + $0x1b0] sm:$0xff]  ;;  %v2771_v31 = vld [vmem:[#allocation2 + $0x1b8] sm:$0xff] }
0x17e2   :  { %3666 = vmatprep.subr.bf16.mxu1 %v5567_v5  ;;  %3709 = vmatprep.subr.bf16.mxu0 %v5569_v6  ;;  %v5555_v5 = vcombine.high %v2800_v36, %v2808_v37  ;;  %v5557_v6 = vcombine.high %v2801_v38, %v2809_v52  ;;  %v2778_v28 = vld [vmem:[#allocation2 + $0x1f0] sm:$0xff]  ;;  %v2779_v32 = vld [vmem:[#allocation2 + $0x1f8] sm:$0xff] }
0x17e5   :  { %3667 = vmatpush1.bf16.msra.mxu1 %v5566_v29  ;;  %3710 = vmatpush1.bf16.msra.mxu0 %v5568_v34  ;;  %v5554_v29 = vcombine.low %v2800_v36, %v2808_v37  ;;  %v5556_v34 = vcombine.low %v2801_v38, %v2809_v52  ;;  %v2786_v36 = vld [vmem:[#allocation2 + $0x230] sm:$0xff]  ;;  %v2787_v38 = vld [vmem:[#allocation2 + $0x238] sm:$0xff] }
0x17e6   :  { %3668 = vmatprep.subr.bf16.mxu1 %v5583_v51  ;;  %3711 = vmatprep.subr.bf16.mxu0 %v5585_v35  ;;  %v5571_v51 = vcombine.high %v2816_v2, %v2824_v11  ;;  %v5573_v35 = vcombine.high %v2817_v12, %v2825_v50  ;;  %v2794_v37 = vld [vmem:[#allocation2 + $0x270] sm:$0xff]  ;;  %v2795_v52 = vld [vmem:[#allocation2 + $0x278] sm:$0xff] }
0x17e9   :  { %3669 = vmatpush1.bf16.msra.mxu1 %v5582_v45  ;;  %3712 = vmatpush1.bf16.msra.mxu0 %v5584_v17  ;;  %v5570_v45 = vcombine.low %v2816_v2, %v2824_v11  ;;  %v5572_v17 = vcombine.low %v2817_v12, %v2825_v50  ;;  %v2810_v2 = vld [vmem:[#allocation2 + $0x2f0] sm:$0xff]  ;;  %v2803_v11 = vld [vmem:[#allocation2 + $0x2b8] sm:$0xff]  ;;  %v5542_v50 = vcombine.low %v2786_v36, %v2794_v37 }
0x17ea   :  { %3740 = vmatprep.subr.bf16.mxu1 %v5475_v24  ;;  %3783 = vmatprep.subr.bf16.mxu0 %v5477_v7  ;;  %v5587_v24 = vcombine.high %v2832_v41, %v2840_v42  ;;  %v5589_v7 = vcombine.high %v2833_v44, %v2841_v18  ;;  %v2811_v12 = vld [vmem:[#allocation2 + $0x2f8] sm:$0xff] }
0x17ec   :  { %3687 = vmatmul.mubr.bf16.vlgmr.msra.gmra.mrb[84].mxu1 %v7436_v16  ;;  %3730 = vmatmul.mubr.bf16.vlgmr.msra.gmra.mrb[72].mxu0 %v7436_v16 }
0x17ed   :  { %3741 = vmatpush1.bf16.msra.mxu1 %v5474_v46  ;;  %3784 = vmatpush1.bf16.msra.mxu0 %v5476_v49  ;;  %v5586_v46 = vcombine.low %v2832_v41, %v2840_v42  ;;  %v5588_v49 = vcombine.low %v2833_v44, %v2841_v18  ;;  %v2826_v41 = vld [vmem:[#allocation2 + $0x370] sm:$0xff]  ;;  %v2819_v42 = vld [vmem:[#allocation2 + $0x338] sm:$0xff] }
0x17ee   :  { %3742 = vmatprep.subr.bf16.mxu1 %v5491_v53  ;;  %3785 = vmatprep.subr.bf16.mxu0 %v5493_v14  ;;  %v5479_v53 = vcombine.high %v2722_v39, %v2730_v43  ;;  %v5481_v14 = vcombine.high %v2723_v47, %v2731_v48  ;;  %v2827_v44 = vld [vmem:[#allocation2 + $0x378] sm:$0xff] }
0x17ef   :  { %3772 = vmatprep.mubr.bf16.mxu1 %v6650_v30  ;;  %3815 = vmatprep.mubr.bf16.mxu0 %v6650_v30 }
0x17f1   :  { %3743 = vmatpush1.bf16.msra.mxu1 %v5490_v62  ;;  %3786 = vmatpush1.bf16.msra.mxu0 %v5492_v63  ;;  %v5478_v62 = vcombine.low %v2722_v39, %v2730_v43  ;;  %v5480_v63 = vcombine.low %v2723_v47, %v2731_v48  ;;  %v2842_v39 = vld [vmem:[#allocation2 + $0x3f0] sm:$0xff]  ;;  %v2835_v43 = vld [vmem:[#allocation2 + $0x3b8] sm:$0xff] }
0x17f2   :  { %3744 = vmatprep.subr.bf16.mxu1 %v5507_v1  ;;  %3787 = vmatprep.subr.bf16.mxu0 %v5509_v3  ;;  %v5495_v1 = vcombine.high %v2738_v56, %v2746_v58  ;;  %v5497_v3 = vcombine.high %v2739_v60, %v2747_v61  ;;  %v2843_v47 = vld [vmem:[#allocation2 + $0x3f8] sm:$0xff] }
0x17f5   :  { %3745 = vmatpush1.bf16.msra.mxu1 %v5506_v21  ;;  %3788 = vmatpush1.bf16.msra.mxu0 %v5508_v22  ;;  %v5494_v21 = vcombine.low %v2738_v56, %v2746_v58  ;;  %v5496_v22 = vcombine.low %v2739_v60, %v2747_v61  ;;  %v5592_v56 = vcombine.low %v2835_v43, %v2843_v47  ;;  %v6388_v58 = vld [vmem:[#allocation4 + $0x40] sm:$0xff]  }
0x17f6   :  { %3746 = vmatprep.subr.bf16.mxu1 %v5523_v25  ;;  %3789 = vmatprep.subr.bf16.mxu0 %v5525_v26  ;;  %v5511_v25 = vcombine.high %v2754_v8, %v2762_v10  ;;  %v5513_v26 = vcombine.high %v2755_v15, %v2763_v20  ;;  %v6389_v60 = vld [vmem:[#allocation4 + $0xc0] sm:$0xff]  }
0x17f7   :  { %v6390_v61 = vld [vmem:[#allocation4] sm:$0xff]  }
0x17f9   :  { %3747 = vmatpush1.bf16.msra.mxu1 %v5522_v33  ;;  %3790 = vmatpush1.bf16.msra.mxu0 %v5524_v9  ;;  %v5510_v33 = vcombine.low %v2754_v8, %v2762_v10  ;;  %v5512_v9 = vcombine.low %v2755_v15, %v2763_v20  ;;  %v6395_v8 = vld [vmem:[#allocation4 + $0x88] sm:$0xff]   ;;  %v6396_v10 = vld [vmem:[#allocation4 + $0x50] sm:$0xff]  }
0x17fa   :  { %3748 = vmatprep.subr.bf16.mxu1 %v5539_v13  ;;  %3791 = vmatprep.subr.bf16.mxu0 %v5541_v4  ;;  %v5527_v13 = vcombine.high %v2770_v27, %v2778_v28  ;;  %v5529_v4 = vcombine.high %v2771_v31, %v2779_v32  ;;  %v6397_v15 = vld [vmem:[#allocation4 + $0xd0] sm:$0xff]  }
0x17fb   :  { %v6398_v20 = vld [vmem:[#allocation4 + $0x10] sm:$0xff]  }
0x17fd   :  { %3749 = vmatpush1.bf16.msra.mxu1 %v5538_v40  ;;  %3792 = vmatpush1.bf16.msra.mxu0 %v5540_v0  ;;  %v5526_v40 = vcombine.low %v2770_v27, %v2778_v28  ;;  %v5528_v0 = vcombine.low %v2771_v31, %v2779_v32  ;;  %v6404_v27 = vld [vmem:[#allocation4 + $0x60] sm:$0xff]  }
0x17fe   :  { %3750 = vmatprep.subr.bf16.mxu1 %v5555_v5  ;;  %3793 = vmatprep.subr.bf16.mxu0 %v5557_v6  ;;  %v5543_v5 = vcombine.high %v2786_v36, %v2794_v37  ;;  %v2802_v6 = vld [vmem:[#allocation2 + $0x2b0] sm:$0xff]  ;;  %v6405_v28 = vld [vmem:[#allocation4 + $0xe0] sm:$0xff]  }
0x17ff   :  { %v5558_v18 = vcombine.low %v2802_v6, %v2810_v2  ;;  %v6406_v31 = vld [vmem:[#allocation4 + $0x20] sm:$0xff]   ;;  %v6412_v36 = vld [vmem:[#allocation4 + $0x70] sm:$0xff]  }
0x1800   :  { %v6407_v32 = vld [vmem:[#allocation4 + $0xa0] sm:$0xff]   ;;  %v6413_v37 = vld [vmem:[#allocation4 + $0xf0] sm:$0xff]  }
0x1801   :  { %3751 = vmatpush1.bf16.msra.mxu1 %v5554_v29  ;;  %3794 = vmatpush1.bf16.msra.mxu0 %v5556_v34  ;;  %v5544_v29 = vcombine.low %v2787_v38, %v2795_v52  ;;  %v5559_v34 = vcombine.high %v2802_v6, %v2810_v2  ;;  %v6420_v6 = vld [vmem:[#allocation4 + $0x140] sm:$0xff]  }
0x1802   :  { %3752 = vmatprep.subr.bf16.mxu1 %v5571_v51  ;;  %3795 = vmatprep.subr.bf16.mxu0 %v5573_v35  ;;  %v5561_v51 = vcombine.high %v2803_v11, %v2811_v12  ;;  %v2818_v35 = vld [vmem:[#allocation2 + $0x330] sm:$0xff]  ;;  %v6421_v2 = vld [vmem:[#allocation4 + $0x1c0] sm:$0xff]  }
0x1803   :  { %v5574_v48 = vcombine.low %v2818_v35, %v2826_v41 }
0x1805   :  { %3753 = vmatpush1.bf16.msra.mxu1 %v5570_v45  ;;  %3796 = vmatpush1.bf16.msra.mxu0 %v5572_v17  ;;  %v5560_v45 = vcombine.low %v2803_v11, %v2811_v12  ;;  %v5575_v17 = vcombine.high %v2818_v35, %v2826_v41  ;;  %v7455_v11 = vld [vmem:[%s7540_s17] sm:$0xff]  ;;  %v2862_v12 = vsub.s32 3, %v6918_v54 }
0x1806   :  { %3754 = vmatprep.subr.bf16.mxu1 %v5587_v24  ;;  %3797 = vmatprep.subr.bf16.mxu0 %v5589_v7  ;;  %v5577_v24 = vcombine.high %v2819_v42, %v2827_v44  ;;  %v2834_v7 = vld [vmem:[#allocation2 + $0x3b0] sm:$0xff] }
0x1809   :  { %3755 = vmatpush1.bf16.msra.mxu1 %v5586_v46  ;;  %3798 = vmatpush1.bf16.msra.mxu0 %v5588_v49  ;;  %v5576_v46 = vcombine.low %v2819_v42, %v2827_v44  ;;  %v5591_v49 = vcombine.high %v2834_v7, %v2842_v39 }
0x180a   :  { %3826 = vmatprep.subr.bf16.mxu1 %v5479_v53  ;;  %3869 = vmatprep.subr.bf16.mxu0 %v5481_v14  ;;  %v5593_v53 = vcombine.high %v2835_v43, %v2843_v47  ;;  %v5590_v14 = vcombine.low %v2834_v7, %v2842_v39 }
0x180c   :  { %3773 = vmatmul.mubr.bf16.vlgmr.msra.gmra.mrb[88].mxu1 %v7436_v16  ;;  %3816 = vmatmul.mubr.bf16.vlgmr.msra.gmra.mrb[76].mxu0 %v7436_v16 }
0x180d   :  { %3827 = vmatpush1.bf16.msra.mxu1 %v5478_v62  ;;  %3870 = vmatpush1.bf16.msra.mxu0 %v5480_v63  ;;  %v6391_v62 = vld [vmem:[#allocation4 + $0x80] sm:$0xff]   ;;  %v6392_v63 = vld [vmem:[#allocation4 + $0x48] sm:$0xff]  }
0x180e   :  { %3828 = vmatprep.subr.bf16.mxu1 %v5495_v1  ;;  %3871 = vmatprep.subr.bf16.mxu0 %v5497_v3  ;;  %v6393_v1 = vld [vmem:[#allocation4 + $0xc8] sm:$0xff]  }
0x180f   :  { %3858 = vmatprep.mubr.bf16.mxu1 %v6650_v30  ;;  %3901 = vmatprep.mubr.bf16.mxu0 %v6650_v30  ;;  %v5545_v30 = vcombine.high %v2787_v38, %v2795_v52  ;;  %v6394_v3 = vld [vmem:[#allocation4 + $0x8] sm:$0xff]   ;;  %v6414_v38 = vld [vmem:[#allocation4 + $0x30] sm:$0xff]  }
0x1810   :  { %v6415_v52 = vld [vmem:[#allocation4 + $0xb0] sm:$0xff]  }
0x1811   :  { %3829 = vmatpush1.bf16.msra.mxu1 %v5494_v21  ;;  %3872 = vmatpush1.bf16.msra.mxu0 %v5496_v22  ;;  %v6399_v21 = vld [vmem:[#allocation4 + $0x90] sm:$0xff]   ;;  %v6400_v22 = vld [vmem:[#allocation4 + $0x58] sm:$0xff]  }
0x1812   :  { %3830 = vmatprep.subr.bf16.mxu1 %v5511_v25  ;;  %3873 = vmatprep.subr.bf16.mxu0 %v5513_v26  ;;  %v6401_v25 = vld [vmem:[#allocation4 + $0xd8] sm:$0xff]  }
0x1813   :  { %v6402_v26 = vld [vmem:[#allocation4 + $0x18] sm:$0xff]  }
0x1815   :  { %3831 = vmatpush1.bf16.msra.mxu1 %v5510_v33  ;;  %3874 = vmatpush1.bf16.msra.mxu0 %v5512_v9  ;;  %v6408_v33 = vld [vmem:[#allocation4 + $0x68] sm:$0xff]  }
0x1816   :  { %3832 = vmatprep.subr.bf16.mxu1 %v5527_v13  ;;  %3875 = vmatprep.subr.bf16.mxu0 %v5529_v4  ;;  %v6409_v9 = vld [vmem:[#allocation4 + $0xe8] sm:$0xff]  }
0x1817   :  { %v6410_v13 = vld [vmem:[#allocation4 + $0x28] sm:$0xff]  }
0x1818   :  { %v6411_v4 = vld [vmem:[#allocation4 + $0xa8] sm:$0xff]  }
0x1819   :  { %3833 = vmatpush1.bf16.msra.mxu1 %v5526_v40  ;;  %3876 = vmatpush1.bf16.msra.mxu0 %v5528_v0  ;;  %v6416_v40 = vld [vmem:[#allocation4 + $0x78] sm:$0xff]  }
0x181a   :  { %3834 = vmatprep.subr.bf16.mxu1 %v5543_v5  ;;  %3877 = vmatprep.subr.bf16.mxu0 %v5545_v30  ;;  %v6417_v0 = vld [vmem:[#allocation4 + $0xf8] sm:$0xff]  }
0x181b   :  { %v6418_v5 = vld [vmem:[#allocation4 + $0x38] sm:$0xff]  }
0x181c   :  { %v6419_v30 = vld [vmem:[#allocation4 + $0xb8] sm:$0xff]  }
0x181d   :  { %3835 = vmatpush1.bf16.msra.mxu1 %v5542_v50  ;;  %3878 = vmatpush1.bf16.msra.mxu0 %v5544_v29  ;;  %v2851_v50 = vrot.slane %v7455_v11, %v6931_v59  ;;  %v2859_v29 = vrot.slane %v7455_v11, %v6927_v57 }
0x181e   :  { %3836 = vmatprep.subr.bf16.mxu1 %v5559_v34  ;;  %3879 = vmatprep.subr.bf16.mxu0 %v5561_v51  ;;  %v2855_v34 = vrot.slane %v7455_v11, %v6921_v55  ;;  %v2863_v51 = vrot.slane %v7455_v11, %v2862_v12 }
0x1821   :  { %3837 = vmatpush1.bf16.msra.mxu1 %v5558_v18  ;;  %3880 = vmatpush1.bf16.msra.mxu0 %v5560_v45 }
0x1822   :  { %3838 = vmatprep.subr.bf16.mxu1 %v5575_v17  ;;  %3881 = vmatprep.subr.bf16.mxu0 %v5577_v24 }
0x1825   :  { %3839 = vmatpush1.bf16.msra.mxu1 %v5574_v48  ;;  %3882 = vmatpush1.bf16.msra.mxu0 %v5576_v46 }
0x1826   :  { %3840 = vmatprep.subr.bf16.mxu1 %v5591_v49  ;;  %3883 = vmatprep.subr.bf16.mxu0 %v5593_v53 }
0x1829   :  { %3841 = vmatpush1.bf16.msra.mxu1 %v5590_v14  ;;  %3884 = vmatpush1.bf16.msra.mxu0 %v5592_v56 }
0x182a   :  { %5834 = vmatprep.subr.bf16.mxu1 %v6388_v58  ;;  %5856 = vmatprep.subr.bf16.mxu0 %v6389_v60 }
0x182c   :  { %3859 = vmatmul.mubr.bf16.vlgmr.msra.gmra.mrb[92].mxu1 %v7436_v16  ;;  %3902 = vmatmul.mubr.bf16.vlgmr.msra.gmra.mrb[80].mxu0 %v7436_v16  ;;  %v6403_v16 = vld [vmem:[#allocation4 + $0x98] sm:$0xff]  }
0x182d   :  { %5835 = vmatpush3.bf16.msra.mxu1 %v6390_v61  ;;  %5857 = vmatpush3.bf16.msra.mxu0 %v6391_v62 }
0x182e   :  { %5836 = vmatprep.subr.bf16.mxu1 %v6392_v63  ;;  %5858 = vmatprep.subr.bf16.mxu0 %v6393_v1 }
0x1831   :  { %5837 = vmatpush3.bf16.msra.mxu1 %v6394_v3  ;;  %5859 = vmatpush3.bf16.msra.mxu0 %v6395_v8 }
0x1832   :  { %5838 = vmatprep.subr.bf16.mxu1 %v6396_v10  ;;  %5860 = vmatprep.subr.bf16.mxu0 %v6397_v15 }
0x1835   :  { %5839 = vmatpush3.bf16.msra.mxu1 %v6398_v20  ;;  %5861 = vmatpush3.bf16.msra.mxu0 %v6399_v21  ;;  %v6422_v20 = vld [vmem:[#allocation4 + $0x100] sm:$0xff]  }
0x1836   :  { %5840 = vmatprep.subr.bf16.mxu1 %v6400_v22  ;;  %5862 = vmatprep.subr.bf16.mxu0 %v6401_v25  ;;  %v6423_v21 = vld [vmem:[#allocation4 + $0x180] sm:$0xff]   ;;  %v6424_v22 = vld [vmem:[#allocation4 + $0x148] sm:$0xff]  }
0x1837   :  { %v6425_v25 = vld [vmem:[#allocation4 + $0x1c8] sm:$0xff]  }
0x1839   :  { %5841 = vmatpush3.bf16.msra.mxu1 %v6402_v26  ;;  %5863 = vmatpush3.bf16.msra.mxu0 %v6403_v16  ;;  %v6426_v26 = vld [vmem:[#allocation4 + $0x108] sm:$0xff]  }
0x183a   :  { %5842 = vmatprep.subr.bf16.mxu1 %v6404_v27  ;;  %5864 = vmatprep.subr.bf16.mxu0 %v6405_v28  ;;  %v6427_v16 = vld [vmem:[#allocation4 + $0x188] sm:$0xff]   ;;  %v6428_v27 = vld [vmem:[#allocation4 + $0x150] sm:$0xff]  }
0x183b   :  { %v6429_v28 = vld [vmem:[#allocation4 + $0x1d0] sm:$0xff]  }
0x183d   :  { %5843 = vmatpush3.bf16.msra.mxu1 %v6406_v31  ;;  %5865 = vmatpush3.bf16.msra.mxu0 %v6407_v32  ;;  %v6430_v31 = vld [vmem:[#allocation4 + $0x110] sm:$0xff]  }
0x183e   :  { %5844 = vmatprep.subr.bf16.mxu1 %v6408_v33  ;;  %5866 = vmatprep.subr.bf16.mxu0 %v6409_v9  ;;  %v6431_v32 = vld [vmem:[#allocation4 + $0x190] sm:$0xff]   ;;  %v6432_v33 = vld [vmem:[#allocation4 + $0x158] sm:$0xff]  }
0x183f   :  { %v6433_v9 = vld [vmem:[#allocation4 + $0x1d8] sm:$0xff]  }
0x1841   :  { %5845 = vmatpush3.bf16.msra.mxu1 %v6410_v13  ;;  %5867 = vmatpush3.bf16.msra.mxu0 %v6411_v4  ;;  %v6434_v13 = vld [vmem:[#allocation4 + $0x118] sm:$0xff]  }
0x1842   :  { %5846 = vmatprep.subr.bf16.mxu1 %v6412_v36  ;;  %5868 = vmatprep.subr.bf16.mxu0 %v6413_v37  ;;  %v6435_v4 = vld [vmem:[#allocation4 + $0x198] sm:$0xff]   ;;  %v6436_v36 = vld [vmem:[#allocation4 + $0x160] sm:$0xff]  }
0x1843   :  { %v6437_v37 = vld [vmem:[#allocation4 + $0x1e0] sm:$0xff]  }
0x1845   :  { %5847 = vmatpush3.bf16.msra.mxu1 %v6414_v38  ;;  %5869 = vmatpush3.bf16.msra.mxu0 %v6415_v52  ;;  %v6438_v38 = vld [vmem:[#allocation4 + $0x120] sm:$0xff]  }
0x1846   :  { %5848 = vmatprep.subr.bf16.mxu1 %v6416_v40  ;;  %5870 = vmatprep.subr.bf16.mxu0 %v6417_v0  ;;  %v6439_v52 = vld [vmem:[#allocation4 + $0x1a0] sm:$0xff]   ;;  %v6440_v40 = vld [vmem:[#allocation4 + $0x168] sm:$0xff]  }
0x1847   :  { %v6441_v0 = vld [vmem:[#allocation4 + $0x1e8] sm:$0xff]  }
0x1849   :  { %5849 = vmatpush3.bf16.msra.mxu1 %v6418_v5  ;;  %5871 = vmatpush3.bf16.msra.mxu0 %v6419_v30  ;;  %v2866_v5 = vsub.s32 4, %v6918_v54  ;;  %v2874_v30 = vsub.s32 6, %v6918_v54 }
0x184a   :  { %5878 = vmatprep.subr.bf16.mxu1 %v6420_v6  ;;  %5900 = vmatprep.subr.bf16.mxu0 %v6421_v2  ;;  %v2870_v6 = vsub.s32 5, %v6918_v54  ;;  %v2878_v2 = vsub.s32 7, %v6918_v54 }
0x189f   :  { %v3602_v35 = vpop.f32.mrb[80].mxu1  ;;  %v3645_v41 = vpop.f32.mrb[68].mxu0 }
0x18a0   :  { %v3603_v42 = vadd.f32 %v3602_v35, %v2851_v50  ;;  %v3646_v44 = vadd.f32 %v3645_v41, %v2859_v29  ;;  %v3604_v18 = vpop.f32.mrb[81].mxu1  ;;  %v3647_v45 = vpop.f32.mrb[69].mxu0  ;;  %v6444_v35 = vld [vmem:[#allocation4 + $0x170] sm:$0xff]  }
0x18a1   :  { %v3605_v17 = vadd.f32 %v3604_v18, %v2855_v34  ;;  %v3648_v24 = vadd.f32 %v3647_v45, %v2863_v51  ;;  %v3606_v7 = vpop.f32.mrb[82].mxu1  ;;  %v3649_v39 = vpop.f32.mrb[70].mxu0  ;;  %v6445_v41 = vld [vmem:[#allocation4 + $0x1f0] sm:$0xff]  }
0x18a2   :  { %v3607_v43 = vadd.f32 %v3606_v7, %v2851_v50  ;;  %v3650_v47 = vadd.f32 %v3649_v39, %v2859_v29  ;;  %v3608_v48 = vpop.f32.mrb[83].mxu1  ;;  %v3651_v46 = vpop.f32.mrb[71].mxu0  ;;  %v3912_v14 = vmax.f32 %v3603_v42, 0.0  ;;  %v3914_v56 = vmax.f32 %v3646_v44, 0.0  ;;  %v6442_v50 = vld [vmem:[#allocation4 + $0x128] sm:$0xff]  }
0x18a3   :  { %v3609_v49 = vadd.f32 %v3608_v48, %v2855_v34  ;;  %v3652_v53 = vadd.f32 %v3651_v46, %v2863_v51  ;;  %v3913_v61 = vmax.f32 %v3605_v17, 0.0  ;;  %v3915_v62 = vmax.f32 %v3648_v24, 0.0  ;;  %v6443_v29 = vld [vmem:[#allocation4 + $0x1a8] sm:$0xff]   ;;  %v6446_v17 = vld [vmem:[#allocation4 + $0x130] sm:$0xff]   ;;  %v6448_v48 = vld [vmem:[#allocation4 + $0x178] sm:$0xff]  }
0x18a4   :  { %v3928_v58 = vmax.f32 %v3607_v43, 0.0  ;;  %v3930_v60 = vmax.f32 %v3650_v47, 0.0  ;;  %v2867_v34 = vrot.slane %v7455_v11, %v2866_v5  ;;  %v2875_v51 = vrot.slane %v7455_v11, %v2874_v30  ;;  %v6447_v24 = vld [vmem:[#allocation4 + $0x1b0] sm:$0xff]   ;;  %v6449_v46 = vld [vmem:[#allocation4 + $0x1f8] sm:$0xff]  }
0x18a5   :  { %v3929_v63 = vmax.f32 %v3609_v49, 0.0  ;;  %v3931_v1 = vmax.f32 %v3652_v53, 0.0  ;;  %v2871_v42 = vrot.slane %v7455_v11, %v2870_v6  ;;  %v2879_v44 = vrot.slane %v7455_v11, %v2878_v2 }
0x18a6   :  { %v3944_v3 = vpack.c.bf16 %v3928_v58, %v3912_v14  ;;  %v3946_v8 = vpack.c.bf16 %v3930_v60, %v3914_v56 }
0x18a7   :  { %v3945_v10 = vpack.c.bf16 %v3929_v63, %v3913_v61  ;;  %v3947_v15 = vpack.c.bf16 %v3931_v1, %v3915_v62  ;;  %v6450_v1 = vld [vmem:[#allocation4 + $0x138] sm:$0xff]  }
0x18a9   :  { %5023 = vmatprep.mubr.bf16.mxu1 %v3945_v10  ;;  %5064 = vmatprep.mubr.bf16.mxu0 %v3947_v15 }
0x18aa   :  { %5024 = vmatmul.mubr.bf16.vlgmr.msra.gmra.mrb[96].mxu1 %v3944_v3  ;;  %5065 = vmatmul.mubr.bf16.vlgmr.msra.gmra.mrb[84].mxu0 %v3946_v8  ;;  %v6451_v3 = vld [vmem:[#allocation4 + $0x1b8] sm:$0xff]  }
0x18ab   :  { %5879 = vmatpush3.bf16.msra.mxu1 %v6422_v20  ;;  %5901 = vmatpush3.bf16.msra.mxu0 %v6423_v21  ;;  %v6452_v21 = vld [vmem:[#allocation4 + $0x240] sm:$0xff]  }
0x18ac   :  { %5880 = vmatprep.subr.bf16.mxu1 %v6424_v22  ;;  %5902 = vmatprep.subr.bf16.mxu0 %v6425_v25  ;;  %v6453_v22 = vld [vmem:[#allocation4 + $0x2c0] sm:$0xff]  }
0x18af   :  { %5881 = vmatpush3.bf16.msra.mxu1 %v6426_v26  ;;  %5903 = vmatpush3.bf16.msra.mxu0 %v6427_v16 }
0x18b0   :  { %5882 = vmatprep.subr.bf16.mxu1 %v6428_v27  ;;  %5904 = vmatprep.subr.bf16.mxu0 %v6429_v28 }
0x18b3   :  { %5883 = vmatpush3.bf16.msra.mxu1 %v6430_v31  ;;  %5905 = vmatpush3.bf16.msra.mxu0 %v6431_v32 }
0x18b4   :  { %5884 = vmatprep.subr.bf16.mxu1 %v6432_v33  ;;  %5906 = vmatprep.subr.bf16.mxu0 %v6433_v9  ;;  %v6454_v9 = vld [vmem:[#allocation4 + $0x200] sm:$0xff]  }
0x18b7   :  { %5885 = vmatpush3.bf16.msra.mxu1 %v6434_v13  ;;  %5907 = vmatpush3.bf16.msra.mxu0 %v6435_v4  ;;  %v6455_v13 = vld [vmem:[#allocation4 + $0x280] sm:$0xff]   ;;  %v6456_v4 = vld [vmem:[#allocation4 + $0x248] sm:$0xff]  }
0x18b8   :  { %5886 = vmatprep.subr.bf16.mxu1 %v6436_v36  ;;  %5908 = vmatprep.subr.bf16.mxu0 %v6437_v37  ;;  %v6457_v36 = vld [vmem:[#allocation4 + $0x2c8] sm:$0xff]  }
0x18b9   :  { %v6458_v37 = vld [vmem:[#allocation4 + $0x208] sm:$0xff]  }
0x18bb   :  { %5887 = vmatpush3.bf16.msra.mxu1 %v6438_v38  ;;  %5909 = vmatpush3.bf16.msra.mxu0 %v6439_v52  ;;  %v6459_v38 = vld [vmem:[#allocation4 + $0x288] sm:$0xff]   ;;  %v6460_v52 = vld [vmem:[#allocation4 + $0x250] sm:$0xff]  }
0x18bc   :  { %5888 = vmatprep.subr.bf16.mxu1 %v6440_v40  ;;  %5910 = vmatprep.subr.bf16.mxu0 %v6441_v0  ;;  %v6461_v40 = vld [vmem:[#allocation4 + $0x2d0] sm:$0xff]  }
0x18bd   :  { %v6462_v0 = vld [vmem:[#allocation4 + $0x210] sm:$0xff]  }
0x18bf   :  { %v3688_v18 = vpop.f32.mrb[84].mxu1  ;;  %v3731_v45 = vpop.f32.mrb[72].mxu0  ;;  %5889 = vmatpush3.bf16.msra.mxu1 %v6442_v50  ;;  %5911 = vmatpush3.bf16.msra.mxu0 %v6443_v29  ;;  %v6463_v50 = vld [vmem:[#allocation4 + $0x290] sm:$0xff]   ;;  %v6464_v29 = vld [vmem:[#allocation4 + $0x258] sm:$0xff]  }
0x18c0   :  { %v3689_v7 = vadd.f32 %v3688_v18, %v2867_v34  ;;  %v3732_v39 = vadd.f32 %v3731_v45, %v2875_v51  ;;  %v3690_v43 = vpop.f32.mrb[85].mxu1  ;;  %v3733_v47 = vpop.f32.mrb[73].mxu0  ;;  %5890 = vmatprep.subr.bf16.mxu1 %v6444_v35  ;;  %5912 = vmatprep.subr.bf16.mxu0 %v6445_v41  ;;  %v6467_v35 = vld [vmem:[#allocation4 + $0x298] sm:$0xff]   ;;  %v6468_v41 = vld [vmem:[#allocation4 + $0x260] sm:$0xff]   ;;  %v6472_v45 = vld [vmem:[#allocation4 + $0x268] sm:$0xff]  }
0x18c1   :  { %v3691_v49 = vadd.f32 %v3690_v43, %v2871_v42  ;;  %v3734_v53 = vadd.f32 %v3733_v47, %v2879_v44  ;;  %v3692_v14 = vpop.f32.mrb[86].mxu1  ;;  %v3735_v56 = vpop.f32.mrb[74].mxu0  ;;  %v6471_v18 = vld [vmem:[#allocation4 + $0x2a0] sm:$0xff]  }
0x18c2   :  { %v3693_v58 = vadd.f32 %v3692_v14, %v2867_v34  ;;  %v3736_v11 = vadd.f32 %v3735_v56, %v2875_v51  ;;  %v3694_v60 = vpop.f32.mrb[87].mxu1  ;;  %v3737_v61 = vpop.f32.mrb[75].mxu0  ;;  %v3916_v8 = vmax.f32 %v3689_v7, 0.0  ;;  %v3918_v10 = vmax.f32 %v3732_v39, 0.0  ;;  %v6465_v34 = vld [vmem:[#allocation4 + $0x2d8] sm:$0xff]   ;;  %v6474_v7 = vld [vmem:[#allocation4 + $0x228] sm:$0xff]  }
0x18c3   :  { %v3695_v62 = vadd.f32 %v3694_v60, %v2871_v42  ;;  %v3738_v63 = vadd.f32 %v3737_v61, %v2879_v44  ;;  %5891 = vmatpush3.bf16.msra.mxu1 %v6446_v17  ;;  %5913 = vmatpush3.bf16.msra.mxu0 %v6447_v24  ;;  %v3917_v25 = vmax.f32 %v3691_v49, 0.0  ;;  %v3919_v26 = vmax.f32 %v3734_v53, 0.0  ;;  %v6466_v51 = vld [vmem:[#allocation4 + $0x218] sm:$0xff]   ;;  %v6469_v42 = vld [vmem:[#allocation4 + $0x2e0] sm:$0xff]   ;;  %v6473_v17 = vld [vmem:[#allocation4 + $0x2e8] sm:$0xff]  }
0x18c4   :  { %v3932_v15 = vmax.f32 %v3693_v58, 0.0  ;;  %v3934_v20 = vmax.f32 %v3736_v11, 0.0  ;;  %5892 = vmatprep.subr.bf16.mxu1 %v6448_v48  ;;  %5914 = vmatprep.subr.bf16.mxu0 %v6449_v46  ;;  %v6470_v44 = vld [vmem:[#allocation4 + $0x220] sm:$0xff]   ;;  %v7486_v24 = vld [vmem:[%s7540_s17 + $0x8] sm:$0xff]  ;;  %v6476_v48 = vld [vmem:[#allocation4 + $0x270] sm:$0xff]  }
0x18c5   :  { %v3933_v16 = vmax.f32 %v3695_v62, 0.0  ;;  %v3935_v27 = vmax.f32 %v3738_v63, 0.0  ;;  %v6475_v39 = vld [vmem:[#allocation4 + $0x2a8] sm:$0xff]   ;;  %v2883_v43 = vrot.slane %v7486_v24, %v6931_v59  ;;  %v2891_v47 = vrot.slane %v7486_v24, %v6927_v57  ;;  %v6477_v46 = vld [vmem:[#allocation4 + $0x2f0] sm:$0xff]   ;;  %v6480_v57 = vld [vmem:[#allocation4 + $0x278] sm:$0xff]  }
0x18c6   :  { %v3948_v28 = vpack.c.bf16 %v3932_v15, %v3916_v8  ;;  %v3950_v31 = vpack.c.bf16 %v3934_v20, %v3918_v10  ;;  %v2887_v49 = vrot.slane %v7486_v24, %v6921_v55  ;;  %v2895_v53 = vrot.slane %v7486_v24, %v2862_v12  ;;  %v6478_v58 = vld [vmem:[#allocation4 + $0x230] sm:$0xff]   ;;  %v6481_v63 = vld [vmem:[#allocation4 + $0x2f8] sm:$0xff]  }
0x18c7   :  { %v3949_v32 = vpack.c.bf16 %v3933_v16, %v3917_v25  ;;  %v3951_v33 = vpack.c.bf16 %v3935_v27, %v3919_v26  ;;  %5893 = vmatpush3.bf16.msra.mxu1 %v6450_v1  ;;  %5915 = vmatpush3.bf16.msra.mxu0 %v6451_v3  ;;  %v6479_v11 = vld [vmem:[#allocation4 + $0x2b0] sm:$0xff]   ;;  %v6482_v25 = vld [vmem:[#allocation4 + $0x238] sm:$0xff]  }
0x18c8   :  { %5922 = vmatprep.subr.bf16.mxu1 %v6452_v21  ;;  %5944 = vmatprep.subr.bf16.mxu0 %v6453_v22  ;;  %v6483_v26 = vld [vmem:[#allocation4 + $0x2b8] sm:$0xff]  }
0x18c9   :  { %5105 = vmatprep.mubr.bf16.mxu1 %v3949_v32  ;;  %5146 = vmatprep.mubr.bf16.mxu0 %v3951_v33  ;;  %v6484_v32 = vld [vmem:[#allocation4 + $0x340] sm:$0xff]  }
0x18ca   :  { %5106 = vmatmul.mubr.bf16.vlgmr.msra.gmra.mrb[100].mxu1 %v3948_v28  ;;  %5147 = vmatmul.mubr.bf16.vlgmr.msra.gmra.mrb[88].mxu0 %v3950_v31  ;;  %v6485_v33 = vld [vmem:[#allocation4 + $0x3c0] sm:$0xff]  }
0x18cb   :  { %5923 = vmatpush3.bf16.msra.mxu1 %v6454_v9  ;;  %5945 = vmatpush3.bf16.msra.mxu0 %v6455_v13 }
0x18cc   :  { %5924 = vmatprep.subr.bf16.mxu1 %v6456_v4  ;;  %5946 = vmatprep.subr.bf16.mxu0 %v6457_v36 }
0x18cf   :  { %5925 = vmatpush3.bf16.msra.mxu1 %v6458_v37  ;;  %5947 = vmatpush3.bf16.msra.mxu0 %v6459_v38 }
0x18d0   :  { %5926 = vmatprep.subr.bf16.mxu1 %v6460_v52  ;;  %5948 = vmatprep.subr.bf16.mxu0 %v6461_v40 }
0x18d3   :  { %5927 = vmatpush3.bf16.msra.mxu1 %v6462_v0  ;;  %5949 = vmatpush3.bf16.msra.mxu0 %v6463_v50  ;;  %v6486_v0 = vld [vmem:[#allocation4 + $0x300] sm:$0xff]  }
0x18d4   :  { %5928 = vmatprep.subr.bf16.mxu1 %v6464_v29  ;;  %5950 = vmatprep.subr.bf16.mxu0 %v6465_v34  ;;  %v6487_v50 = vld [vmem:[#allocation4 + $0x380] sm:$0xff]   ;;  %v6488_v29 = vld [vmem:[#allocation4 + $0x348] sm:$0xff]  }
0x18d5   :  { %v6489_v34 = vld [vmem:[#allocation4 + $0x3c8] sm:$0xff]  }
0x18d7   :  { %5929 = vmatpush3.bf16.msra.mxu1 %v6466_v51  ;;  %5951 = vmatpush3.bf16.msra.mxu0 %v6467_v35  ;;  %v6490_v51 = vld [vmem:[#allocation4 + $0x308] sm:$0xff]  }
0x18d8   :  { %5930 = vmatprep.subr.bf16.mxu1 %v6468_v41  ;;  %5952 = vmatprep.subr.bf16.mxu0 %v6469_v42  ;;  %v6491_v35 = vld [vmem:[#allocation4 + $0x388] sm:$0xff]   ;;  %v6492_v41 = vld [vmem:[#allocation4 + $0x350] sm:$0xff]  }
0x18d9   :  { %v6493_v42 = vld [vmem:[#allocation4 + $0x3d0] sm:$0xff]  }
0x18db   :  { %5931 = vmatpush3.bf16.msra.mxu1 %v6470_v44  ;;  %5953 = vmatpush3.bf16.msra.mxu0 %v6471_v18  ;;  %v6494_v44 = vld [vmem:[#allocation4 + $0x310] sm:$0xff]  }
0x18dc   :  { %5932 = vmatprep.subr.bf16.mxu1 %v6472_v45  ;;  %5954 = vmatprep.subr.bf16.mxu0 %v6473_v17  ;;  %v6495_v18 = vld [vmem:[#allocation4 + $0x390] sm:$0xff]   ;;  %v6496_v45 = vld [vmem:[#allocation4 + $0x358] sm:$0xff]  }
0x18dd   :  { %v6497_v17 = vld [vmem:[#allocation4 + $0x3d8] sm:$0xff]  }
0x18df   :  { %v3774_v14 = vpop.f32.mrb[88].mxu1  ;;  %v3817_v56 = vpop.f32.mrb[76].mxu0  ;;  %5933 = vmatpush3.bf16.msra.mxu1 %v6474_v7  ;;  %5955 = vmatpush3.bf16.msra.mxu0 %v6475_v39  ;;  %v6498_v7 = vld [vmem:[#allocation4 + $0x318] sm:$0xff]  }
0x18e0   :  { %v3775_v60 = vadd.f32 %v3774_v14, %v2883_v43  ;;  %v3818_v59 = vadd.f32 %v3817_v56, %v2891_v47  ;;  %v3776_v61 = vpop.f32.mrb[89].mxu1  ;;  %v3819_v62 = vpop.f32.mrb[77].mxu0  ;;  %5934 = vmatprep.subr.bf16.mxu1 %v6476_v48  ;;  %5956 = vmatprep.subr.bf16.mxu0 %v6477_v46  ;;  %v6499_v39 = vld [vmem:[#allocation4 + $0x398] sm:$0xff]   ;;  %v6502_v48 = vld [vmem:[#allocation4 + $0x320] sm:$0xff]   ;;  %v6506_v14 = vld [vmem:[#allocation4 + $0x328] sm:$0xff]  }
0x18e1   :  { %v3777_v1 = vadd.f32 %v3776_v61, %v2887_v49  ;;  %v3820_v55 = vadd.f32 %v3819_v62, %v2895_v53  ;;  %v3778_v3 = vpop.f32.mrb[90].mxu1  ;;  %v3821_v8 = vpop.f32.mrb[78].mxu0  ;;  %v6503_v46 = vld [vmem:[#allocation4 + $0x3a0] sm:$0xff]   ;;  %v6507_v56 = vld [vmem:[#allocation4 + $0x3a8] sm:$0xff]   ;;  %v2903_v61 = vrot.slane %v7486_v24, %v2870_v6  ;;  %v2911_v62 = vrot.slane %v7486_v24, %v2878_v2 }
0x18e2   :  { %v3779_v10 = vadd.f32 %v3778_v3, %v2883_v43  ;;  %v3822_v12 = vadd.f32 %v3821_v8, %v2891_v47  ;;  %v3780_v15 = vpop.f32.mrb[91].mxu1  ;;  %v3823_v20 = vpop.f32.mrb[79].mxu0  ;;  %v3920_v16 = vmax.f32 %v3775_v60, 0.0  ;;  %v3922_v27 = vmax.f32 %v3818_v59, 0.0  ;;  %v6500_v43 = vld [vmem:[#allocation4 + $0x360] sm:$0xff]   ;;  %v6508_v60 = vld [vmem:[#allocation4 + $0x370] sm:$0xff]  }
0x18e3   :  { %v3781_v21 = vadd.f32 %v3780_v15, %v2887_v49  ;;  %v3824_v22 = vadd.f32 %v3823_v20, %v2895_v53  ;;  %5935 = vmatpush3.bf16.msra.mxu1 %v6478_v58  ;;  %5957 = vmatpush3.bf16.msra.mxu0 %v6479_v11  ;;  %v3921_v9 = vmax.f32 %v3777_v1, 0.0  ;;  %v3923_v13 = vmax.f32 %v3820_v55, 0.0  ;;  %v6501_v47 = vld [vmem:[#allocation4 + $0x3e0] sm:$0xff]   ;;  %v6504_v49 = vld [vmem:[#allocation4 + $0x368] sm:$0xff]   ;;  %v6509_v59 = vld [vmem:[#allocation4 + $0x3f0] sm:$0xff]  }
0x18e4   :  { %v3936_v28 = vmax.f32 %v3779_v10, 0.0  ;;  %v3938_v31 = vmax.f32 %v3822_v12, 0.0  ;;  %5936 = vmatprep.subr.bf16.mxu1 %v6480_v57  ;;  %5958 = vmatprep.subr.bf16.mxu0 %v6481_v63  ;;  %v6505_v53 = vld [vmem:[#allocation4 + $0x3e8] sm:$0xff]   ;;  %v2899_v58 = vrot.slane %v7486_v24, %v2866_v5  ;;  %v2907_v11 = vrot.slane %v7486_v24, %v2874_v30  ;;  %v6510_v1 = vld [vmem:[#allocation4 + $0x330] sm:$0xff]   ;;  %v6512_v10 = vld [vmem:[#allocation4 + $0x378] sm:$0xff]  }
0x18e5   :  { %v3937_v4 = vmax.f32 %v3781_v21, 0.0  ;;  %v3939_v36 = vmax.f32 %v3824_v22, 0.0  ;;  %v6511_v5 = vld [vmem:[#allocation4 + $0x3b0] sm:$0xff]   ;;  %v6513_v12 = vld [vmem:[#allocation4 + $0x3f8] sm:$0xff]  }
0x18e6   :  { %v3952_v37 = vpack.c.bf16 %v3936_v28, %v3920_v16  ;;  %v3954_v38 = vpack.c.bf16 %v3938_v31, %v3922_v27  ;;  %v6514_v16 = vld [vmem:[#allocation4 + $0x338] sm:$0xff]  }
0x18e7   :  { %v3953_v52 = vpack.c.bf16 %v3937_v4, %v3921_v9  ;;  %v3955_v40 = vpack.c.bf16 %v3939_v36, %v3923_v13  ;;  %5937 = vmatpush3.bf16.msra.mxu1 %v6482_v25  ;;  %5959 = vmatpush3.bf16.msra.mxu0 %v6483_v26  ;;  %v6515_v27 = vld [vmem:[#allocation4 + $0x3b8] sm:$0xff]  }
0x18e8   :  { %5966 = vmatprep.subr.bf16.mxu1 %v6484_v32  ;;  %5988 = vmatprep.subr.bf16.mxu0 %v6485_v33 }
0x18e9   :  { %5187 = vmatprep.mubr.bf16.mxu1 %v3953_v52  ;;  %5228 = vmatprep.mubr.bf16.mxu0 %v3955_v40 }
0x18ea   :  { %5188 = vmatmul.mubr.bf16.vlgmr.msra.gmra.mrb[104].mxu1 %v3952_v37  ;;  %5229 = vmatmul.mubr.bf16.vlgmr.msra.gmra.mrb[92].mxu0 %v3954_v38 }
0x18eb   :  { %5967 = vmatpush3.bf16.msra.mxu1 %v6486_v0  ;;  %5989 = vmatpush3.bf16.msra.mxu0 %v6487_v50 }
0x18ec   :  { %5968 = vmatprep.subr.bf16.mxu1 %v6488_v29  ;;  %5990 = vmatprep.subr.bf16.mxu0 %v6489_v34  ;;  %v5594_v29 = vld [vmem:[%s7542_s19] ss:$0 sm:$0xff] }
0x18ef   :  { %5969 = vmatpush3.bf16.msra.mxu1 %v6490_v51  ;;  %5991 = vmatpush3.bf16.msra.mxu0 %v6491_v35 }
0x18f0   :  { %5970 = vmatprep.subr.bf16.mxu1 %v6492_v41  ;;  %5992 = vmatprep.subr.bf16.mxu0 %v6493_v42 }
0x18f3   :  { %5971 = vmatpush3.bf16.msra.mxu1 %v6494_v44  ;;  %5993 = vmatpush3.bf16.msra.mxu0 %v6495_v18 }
0x18f4   :  { %5972 = vmatprep.subr.bf16.mxu1 %v6496_v45  ;;  %5994 = vmatprep.subr.bf16.mxu0 %v6497_v17 }
0x18f7   :  { %5973 = vmatpush3.bf16.msra.mxu1 %v6498_v7  ;;  %5995 = vmatpush3.bf16.msra.mxu0 %v6499_v39 }
0x18f8   :  { %5974 = vmatprep.subr.bf16.mxu1 %v6500_v43  ;;  %5996 = vmatprep.subr.bf16.mxu0 %v6501_v47 }
0x18fb   :  { %5975 = vmatpush3.bf16.msra.mxu1 %v6502_v48  ;;  %5997 = vmatpush3.bf16.msra.mxu0 %v6503_v46 }
0x18fc   :  { %5976 = vmatprep.subr.bf16.mxu1 %v6504_v49  ;;  %5998 = vmatprep.subr.bf16.mxu0 %v6505_v53 }
0x18ff   :  { %v3860_v57 = vpop.f32.mrb[92].mxu1  ;;  %v3903_v63 = vpop.f32.mrb[80].mxu0  ;;  %5977 = vmatpush3.bf16.msra.mxu1 %v6506_v14  ;;  %5999 = vmatpush3.bf16.msra.mxu0 %v6507_v56 }
0x1900   :  { %v3861_v55 = vadd.f32 %v3860_v57, %v2899_v58  ;;  %v3904_v3 = vadd.f32 %v3903_v63, %v2907_v11  ;;  %v3862_v8 = vpop.f32.mrb[93].mxu1  ;;  %v3905_v30 = vpop.f32.mrb[81].mxu0  ;;  %5978 = vmatprep.subr.bf16.mxu1 %v6508_v60  ;;  %6000 = vmatprep.subr.bf16.mxu0 %v6509_v59 }
0x1901   :  { %v3863_v15 = vadd.f32 %v3862_v8, %v2903_v61  ;;  %v3906_v6 = vadd.f32 %v3905_v30, %v2911_v62  ;;  %v3864_v20 = vpop.f32.mrb[94].mxu1  ;;  %v3907_v54 = vpop.f32.mrb[82].mxu0 }
0x1902   :  { %v3865_v21 = vadd.f32 %v3864_v20, %v2899_v58  ;;  %v3908_v2 = vadd.f32 %v3907_v54, %v2907_v11  ;;  %v3866_v24 = vpop.f32.mrb[95].mxu1  ;;  %v3909_v22 = vpop.f32.mrb[83].mxu0  ;;  %v3924_v28 = vmax.f32 %v3861_v55, 0.0  ;;  %v3926_v31 = vmax.f32 %v3904_v3, 0.0 }
0x1903   :  { %v3867_v25 = vadd.f32 %v3866_v24, %v2903_v61  ;;  %v3910_v26 = vadd.f32 %v3909_v22, %v2911_v62  ;;  %5979 = vmatpush3.bf16.msra.mxu1 %v6510_v1  ;;  %6001 = vmatpush3.bf16.msra.mxu0 %v6511_v5  ;;  %v3925_v9 = vmax.f32 %v3863_v15, 0.0  ;;  %v3927_v13 = vmax.f32 %v3906_v6, 0.0 }
0x1904   :  { %v3940_v32 = vmax.f32 %v3865_v21, 0.0  ;;  %v3942_v33 = vmax.f32 %v3908_v2, 0.0  ;;  %5980 = vmatprep.subr.bf16.mxu1 %v6512_v10  ;;  %6002 = vmatprep.subr.bf16.mxu0 %v6513_v12 }
0x1905   :  { %v3941_v4 = vmax.f32 %v3867_v25, 0.0  ;;  %v3943_v36 = vmax.f32 %v3910_v26, 0.0 }
0x1906   :  { %v3956_v37 = vpack.c.bf16 %v3940_v32, %v3924_v28  ;;  %v3958_v38 = vpack.c.bf16 %v3942_v33, %v3926_v31 }
0x1907   :  { %v3957_v52 = vpack.c.bf16 %v3941_v4, %v3925_v9  ;;  %v3959_v40 = vpack.c.bf16 %v3943_v36, %v3927_v13  ;;  %5981 = vmatpush3.bf16.msra.mxu1 %v6514_v16  ;;  %6003 = vmatpush3.bf16.msra.mxu0 %v6515_v27 }
0x1909   :  { %5269 = vmatprep.mubr.bf16.mxu1 %v3957_v52  ;;  %5310 = vmatprep.mubr.bf16.mxu0 %v3959_v40 }
0x190a   :  { %5270 = vmatmul.mubr.bf16.vlgmr.msra.gmra.mrb[108].mxu1 %v3956_v37  ;;  %5311 = vmatmul.mubr.bf16.vlgmr.msra.gmra.mrb[96].mxu0 %v3958_v38 }
0x197d   :  { %v5850_v0 = vpop.f32.mrb[96].mxu1  ;;  %v5872_v50 = vpop.f32.mrb[84].mxu0 }
0x197e   :  { %v5851_v34 = vpop.f32.mrb[97].mxu1  ;;  %v5873_v51 = vpop.f32.mrb[85].mxu0 }
0x197f   :  { %v5852_v35 = vadd.f32 %v5851_v34, %v5850_v0  ;;  %v5874_v41 = vadd.f32 %v5873_v51, %v5872_v50  ;;  %v5853_v42 = vpop.f32.mrb[98].mxu1  ;;  %v5875_v44 = vpop.f32.mrb[86].mxu0 }
0x1980   :  { %v5854_v18 = vpop.f32.mrb[99].mxu1  ;;  %v5876_v45 = vpop.f32.mrb[87].mxu0 }
0x1981   :  { %v5026_v17 = vadd.f32 %v5852_v35, %v5594_v29  ;;  %v5855_v7 = vadd.f32 %v5854_v18, %v5853_v42  ;;  %v5877_v39 = vadd.f32 %v5876_v45, %v5875_v44 }
0x1983   :  { %v5067_v43 = vadd.f32 %v5874_v41, %v5026_v17  ;;  %v5029_v47 = vadd.f32 %v5855_v7, %v5594_v29 }
0x1985   :  { %v5070_v48 = vadd.f32 %v5877_v39, %v5029_v47 }
0x199d   :  { %v5894_v46 = vpop.f32.mrb[100].mxu1  ;;  %v5916_v49 = vpop.f32.mrb[88].mxu0 }
0x199e   :  { %v5895_v53 = vpop.f32.mrb[101].mxu1  ;;  %v5917_v14 = vpop.f32.mrb[89].mxu0 }
0x199f   :  { %v5896_v56 = vadd.f32 %v5895_v53, %v5894_v46  ;;  %v5918_v58 = vadd.f32 %v5917_v14, %v5916_v49  ;;  %v5897_v11 = vpop.f32.mrb[102].mxu1  ;;  %v5919_v60 = vpop.f32.mrb[90].mxu0  ;;  %v5723_v49 = vld [vmem:[%s7543_s20] ss:$0 sm:$0xff] }
0x19a0   :  { %v5898_v59 = vpop.f32.mrb[103].mxu1  ;;  %v5920_v61 = vpop.f32.mrb[91].mxu0 }
0x19a1   :  { %v5108_v62 = vadd.f32 %v5896_v56, %v5067_v43  ;;  %v5899_v57 = vadd.f32 %v5898_v59, %v5897_v11  ;;  %v5921_v63 = vadd.f32 %v5920_v61, %v5919_v60  ;;  %v5724_v11 = vld [vmem:[%s7544_s21] ss:$0 sm:$0xff] }
0x19a3   :  { %v5149_v1 = vadd.f32 %v5918_v58, %v5108_v62  ;;  %v5111_v5 = vadd.f32 %v5899_v57, %v5070_v48 }
0x19a5   :  { %v5152_v55 = vadd.f32 %v5921_v63, %v5111_v5 }
0x19bd   :  { %v5938_v3 = vpop.f32.mrb[104].mxu1  ;;  %v5960_v8 = vpop.f32.mrb[92].mxu0 }
0x19be   :  { %v5939_v30 = vpop.f32.mrb[105].mxu1  ;;  %v5961_v10 = vpop.f32.mrb[93].mxu0 }
0x19bf   :  { %v5940_v12 = vadd.f32 %v5939_v30, %v5938_v3  ;;  %v5962_v15 = vadd.f32 %v5961_v10, %v5960_v8  ;;  %v5941_v6 = vpop.f32.mrb[106].mxu1  ;;  %v5963_v20 = vpop.f32.mrb[94].mxu0 }
0x19c0   :  { %v5942_v54 = vpop.f32.mrb[107].mxu1  ;;  %v5964_v21 = vpop.f32.mrb[95].mxu0 }
0x19c1   :  { %v5190_v2 = vadd.f32 %v5940_v12, %v5149_v1  ;;  %v5943_v24 = vadd.f32 %v5942_v54, %v5941_v6  ;;  %v5965_v22 = vadd.f32 %v5964_v21, %v5963_v20 }
0x19c3   :  { %v5231_v25 = vadd.f32 %v5962_v15, %v5190_v2  ;;  %v5193_v26 = vadd.f32 %v5943_v24, %v5152_v55 }
0x19c5   :  { %v5234_v16 = vadd.f32 %v5965_v22, %v5193_v26 }
0x19dd   :  { %v5982_v27 = vpop.f32.mrb[108].mxu1  ;;  %v6004_v28 = vpop.f32.mrb[96].mxu0 }
0x19de   :  { %v5983_v31 = vpop.f32.mrb[109].mxu1  ;;  %v6005_v32 = vpop.f32.mrb[97].mxu0 }
0x19df   :  { %v5984_v33 = vadd.f32 %v5983_v31, %v5982_v27  ;;  %v6006_v9 = vadd.f32 %v6005_v32, %v6004_v28  ;;  %v5985_v13 = vpop.f32.mrb[110].mxu1  ;;  %v6007_v4 = vpop.f32.mrb[98].mxu0 }
0x19e0   :  { %v5986_v36 = vpop.f32.mrb[111].mxu1  ;;  %v6008_v37 = vpop.f32.mrb[99].mxu0 }
0x19e1   :  { %v5272_v38 = vadd.f32 %v5984_v33, %v5231_v25  ;;  %v5987_v52 = vadd.f32 %v5986_v36, %v5985_v13  ;;  %v6009_v40 = vadd.f32 %v6008_v37, %v6007_v4 }
0x19e3   :  { %v5313_v0 = vadd.f32 %v6006_v9, %v5272_v38  ;;  %v5275_v50 = vadd.f32 %v5987_v52, %v5234_v16 }
0x19e5   :  { %v5316_v29 = vadd.f32 %v6009_v40, %v5275_v50  ;;  %v5319_v34 = vadd.f32 %v5313_v0, %v7430_v23 }
0x19e7   :  { %5323 = vadd.xlane.f32.xlu1 %v5319_v34  ;;  %v5320_v51 = vadd.f32 %v5316_v29, %v7432_v19 }
0x19e9   :  { %5325 = vadd.xlane.f32.xlu0 %v5320_v51 }
0x1a74   :  { %v5324_v35 = vpop.xlane.xlu1 %5323 }
0x1a75   :  { %v5327_v41 = vmul.f32 0.0078125, %v5324_v35 }
0x1a76   :  { %v5326_v42 = vpop.xlane.xlu0 %5325 }
0x1a77   :  { %v5329_v44 = vsub.f32 %v5319_v34, %v5327_v41  ;;  %v5328_v18 = vmul.f32 0.0078125, %v5326_v42 }
0x1a79   :  { %v5330_v45 = vsub.f32 %v5320_v51, %v5328_v18  ;;  %v5331_v17 = vmul.f32 %v5329_v44, %v5329_v44 }
0x1a7b   :  { %5333 = vadd.xlane.f32.xlu1 %v5331_v17  ;;  %v5332_v7 = vmul.f32 %v5330_v45, %v5330_v45 }
0x1a7d   :  { %5335 = vadd.xlane.f32.xlu0 %v5332_v7 }
0x1b08   :  { %v5334_v39 = vpop.xlane.xlu1 %5333 }
0x1b09   :  { %v5337_v43 = vmul.f32 0.0078125, %v5334_v39 }
0x1b0a   :  { %v5336_v47 = vpop.xlane.xlu0 %5335 }
0x1b0b   :  { %v5339_v48 = vadd.f32 1e-05, %v5337_v43  ;;  %v5338_v46 = vmul.f32 0.0078125, %v5336_v47 }
0x1b0d   :  { %6592 = vrsqrt.f32 %v5339_v48  ;;  %v5340_v23 = vadd.f32 1e-05, %v5338_v46 }
0x1b0f   :  { %6594 = vrsqrt.f32 %v5340_v23 }
0x1b17   :  { %v6593_v19 = vpop.eup %6592 }
0x1b18   :  { %v5343_v53 = vmul.f32 %v6593_v19, %v5329_v44 }
0x1b19   :  { %v6595_v14 = vpop.eup %6594 }
0x1b1a   :  { %v5351_v56 = vmul.f32 %v5723_v49, %v5343_v53  ;;  %v5344_v58 = vmul.f32 %v6595_v14, %v5330_v45 }
0x1b1c   :  { %v5352_v60 = vmul.f32 %v5723_v49, %v5344_v58  ;;  %v5359_v59 = vadd.f32 %v5724_v11, %v5351_v56 }
0x1b1e   :  { %v5360_v61 = vadd.f32 %v5724_v11, %v5352_v60 }
0x1b20   :  { %v5732_v62 = vpack.c.bf16 %v5360_v61, %v5359_v59 }
0x1b22   :  { %5733 = vst [vmem:[%s7545_s22] sm:$0xff] %v5732_v62  }
0x1b23   :  { %5375 = vsyncpa [#allocation3], 1 }
0x1b24   :  { %5376 = vsyncpa [#allocation5], 1 }

</bundles_post_ra>
